<compile_context>
chip_gen: v5e
topology: v5e:2x2
jax: 0.10.0
libtpu: 0.0.40
codegen_flags: <defaults>
</compile_context>

<pallas_src>
import functools

import jax
import jax.numpy as jnp
from jax import lax
from jax.experimental import pallas as pl
from jax.experimental.pallas import tpu as pltpu

EPS = 1e-5
LANE = 128
SUBLANE = 8
MATMUL_TILE_M = 256      # rows per matmul tile
ELEMWISE_TILE_M = 512    # rows per BN-stats / BN-apply tile
VMEM_LIMIT = 48 * 1024 * 1024   # <= ~48 MiB keeps blocks legal on v7x (64 MiB VMEM)


# --------------------------------------------------------------------------
# small helpers
# --------------------------------------------------------------------------
def _round_up(n, m):
    return (n + m - 1) // m * m


def _pad_axis(a, size, axis):
    pad = size - a.shape[axis]
    if pad == 0:
        return a
    widths = [(0, 0)] * a.ndim
    widths[axis] = (0, pad)
    return jnp.pad(a, widths)


def _mosaic(*sem):
    return pltpu.CompilerParams(dimension_semantics=sem,
                                vmem_limit_bytes=VMEM_LIMIT)


# --------------------------------------------------------------------------
# Kernel 1: BatchNorm statistics (tiled reduction over rows)
#   x: (Mp, C) zero-row-padded; output (2, C) = [sum; sum of squares]
# --------------------------------------------------------------------------
def bn_stats_kernel(x_ref, o_ref):
    @pl.when(pl.program_id(0) == 0)
    def _():
        o_ref[...] = jnp.zeros_like(o_ref)
    x = x_ref[...]
    o_ref[...] += jnp.concatenate(
        [jnp.sum(x, axis=0, keepdims=True),
         jnp.sum(x * x, axis=0, keepdims=True)], axis=0)


def bn_stats(x2d, tile=ELEMWISE_TILE_M):
    """Returns (mean, biased var) per channel over all M rows of x2d."""
    M, C = x2d.shape
    tile = min(tile, _round_up(M, SUBLANE))
    Mp = _round_up(M, tile)
    xp = _pad_axis(x2d, Mp, 0)          # zero rows do not affect sum / sumsq
    sums = pl.pallas_call(
        bn_stats_kernel,
        out_shape=jax.ShapeDtypeStruct((2, C), jnp.float32),
        grid=(Mp // tile,),
        in_specs=[pl.BlockSpec((tile, C), lambda i: (i, 0))],
        out_specs=pl.BlockSpec((2, C), lambda i: (0, 0)),
        compiler_params=_mosaic("arbitrary"),
    )(xp)
    mean = sums[0] / M
    var = jnp.maximum(sums[1] / M - mean * mean, 0.0)   # biased (torch train BN)
    return mean, var


# --------------------------------------------------------------------------
# Kernel 2: per-channel scale/shift + ReLU (BN apply), tiled over rows
# --------------------------------------------------------------------------
def scale_shift_relu_kernel(x_ref, scale_ref, shift_ref, o_ref):
    o_ref[...] = jnp.maximum(x_ref[...] * scale_ref[...] + shift_ref[...], 0.0)


def bn_relu_apply(x2d, scale, shift, tile=ELEMWISE_TILE_M):
    M, C = x2d.shape
    tile = min(tile, _round_up(M, SUBLANE))
    Mp = _round_up(M, tile)
    xp = _pad_axis(x2d, Mp, 0)
    out = pl.pallas_call(
        scale_shift_relu_kernel,
        out_shape=jax.ShapeDtypeStruct((Mp, C), jnp.float32),
        grid=(Mp // tile,),
        in_specs=[
            pl.BlockSpec((tile, C), lambda i: (i, 0)),
            pl.BlockSpec((1, C), lambda i: (0, 0)),
            pl.BlockSpec((1, C), lambda i: (0, 0)),
        ],
        out_specs=pl.BlockSpec((tile, C), lambda i: (i, 0)),
        compiler_params=_mosaic("parallel"),
    )(xp, scale, shift)
    return out[:M]


# --------------------------------------------------------------------------
# Kernel 3: tiled matmul + bias (+ optional fused residual add)
#   Used for the 1x1 shortcut conv (K = Cpad) and both 3x3 convs via im2col
#   (K = 9*Cpad, all taps folded into the MXU contraction dimension).
# --------------------------------------------------------------------------
def matmul_bias_kernel(x_ref, w_ref, b_ref, o_ref):
    o_ref[...] = (jnp.dot(x_ref[...], w_ref[...],
                          preferred_element_type=jnp.float32)
                  + b_ref[...]).astype(o_ref.dtype)


def matmul_bias_residual_kernel(x_ref, w_ref, b_ref, res_ref, o_ref):
    o_ref[...] = (jnp.dot(x_ref[...], w_ref[...],
                          preferred_element_type=jnp.float32)
                  + b_ref[...] + res_ref[...]).astype(o_ref.dtype)


def matmul_bias(x2d, w, b, residual=None, tile=MATMUL_TILE_M):
    M, K = x2d.shape
    Cout = w.shape[-1]
    tile = min(tile, _round_up(M, SUBLANE))
    Mp = _round_up(M, tile)
    xp = _pad_axis(x2d, Mp, 0)
    in_specs = [
        pl.BlockSpec((tile, K), lambda i: (i, 0)),
        pl.BlockSpec((K, Cout), lambda i: (0, 0)),
        pl.BlockSpec((1, Cout), lambda i: (0, 0)),
    ]
    args = [xp, w, b]
    kernel = matmul_bias_kernel
    if residual is not None:
        in_specs.append(pl.BlockSpec((tile, Cout), lambda i: (i, 0)))
        args.append(_pad_axis(residual, Mp, 0))
        kernel = matmul_bias_residual_kernel
    out = pl.pallas_call(
        kernel,
        out_shape=jax.ShapeDtypeStruct((Mp, Cout), jnp.float32),
        grid=(Mp // tile,),
        in_specs=in_specs,
        out_specs=pl.BlockSpec((tile, Cout), lambda i: (i, 0)),
        compiler_params=_mosaic("parallel"),
    )(*args)
    return out[:M]


# --------------------------------------------------------------------------
# Plain-JAX glue (layout plumbing only)
# --------------------------------------------------------------------------
def upsample2x_nearest(x_nhwc):
    # matches F.upsample(..., scale_factor=2, mode='nearest')
    return jnp.repeat(jnp.repeat(x_nhwc, 2, axis=1), 2, axis=2)


def im2col_3x3(x_nhwc):
    """SAME 3x3 im2col: (N,H,W,C) -> (N*H*W, 9*C); tap order (ky,kx) row-major."""
    N, H, W, C = x_nhwc.shape
    xp = jnp.pad(x_nhwc, ((0, 0), (1, 1), (1, 1), (0, 0)))
    taps = [xp[:, ky:ky + H, kx:kx + W, :] for ky in range(3) for kx in range(3)]
    return jnp.concatenate(taps, axis=-1).reshape(N * H * W, 9 * C)


def generator_block(x_nchw, p, *, upsample=True, has_shortcut_conv=True):
    """Pallas implementation of GeneratorBlock.forward (NCHW in / NCHW out)."""
    x = jnp.transpose(x_nchw, (0, 2, 3, 1)).astype(jnp.float32)   # NHWC
    N, H, W, Cin = x.shape
    Cout = p["w2"].shape[-1]
    Cin_p = _round_up(Cin, LANE)
    Cout_p = _round_up(Cout, LANE)

    # lane-dense channel padding (zero channels stay exactly zero end-to-end)
    xp = _pad_axis(x, Cin_p, 3)
    x2d = xp.reshape(N * H * W, Cin_p)

    g1 = _pad_axis(p["gamma1"], Cin_p, 0)
    bt1 = _pad_axis(p["beta1"], Cin_p, 0)
    g2 = _pad_axis(p["gamma2"], Cin_p, 0)
    bt2 = _pad_axis(p["beta2"], Cin_p, 0)
    w1 = _pad_axis(_pad_axis(p["w1"], Cin_p, 2), Cin_p, 3).reshape(9 * Cin_p, Cin_p)
    b1 = _pad_axis(p["b1"], Cin_p, 0)[None, :]
    w2 = _pad_axis(_pad_axis(p["w2"], Cin_p, 2), Cout_p, 3).reshape(9 * Cin_p, Cout_p)
    b2 = _pad_axis(p["b2"], Cout_p, 0)[None, :]

    # ---- shortcut path: 1x1 conv BEFORE nearest upsample (they commute) ----
    if has_shortcut_conv:
        w_sc = _pad_axis(_pad_axis(p["w_sc"], Cin_p, 0), Cout_p, 1)
        b_sc = _pad_axis(p["b_sc"], Cout_p, 0)[None, :]
        shortcut = matmul_bias(x2d, w_sc, b_sc).reshape(N, H, W, Cout_p)
    else:
        shortcut = xp                      # requires Cin == Cout (as in PyTorch)
    if upsample:
        shortcut = upsample2x_nearest(shortcut)

    # ---- main path ----
    # BN1 (+ ReLU) at pre-upsample resolution: stats pass then tiled apply.
    mean1, var1 = bn_stats(x2d)
    scale1 = g1 * lax.rsqrt(var1 + EPS)
    shift1 = bt1 - mean1 * scale1
    h = bn_relu_apply(x2d, scale1[None, :], shift1[None, :]).reshape(N, H, W, Cin_p)
    if upsample:
        h = upsample2x_nearest(h)
    _, H2, W2, _ = h.shape

    # conv1: 3x3 SAME as a single K = 9*Cin_p matmul per row tile.
    h = matmul_bias(im2col_3x3(h), w1, b1).reshape(N, H2, W2, Cin_p)

    # BN2 (+ ReLU)
    h2d = h.reshape(N * H2 * W2, Cin_p)
    mean2, var2 = bn_stats(h2d)
    scale2 = g2 * lax.rsqrt(var2 + EPS)
    shift2 = bt2 - mean2 * scale2
    h = bn_relu_apply(h2d, scale2[None, :], shift2[None, :]).reshape(N, H2, W2, Cin_p)

    # conv2 + fused residual add
    out = matmul_bias(im2col_3x3(h), w2, b2,
                      residual=shortcut.reshape(N * H2 * W2, Cout_p))
    out = out.reshape(N, H2, W2, Cout_p)[..., :Cout]
    return jnp.transpose(out, (0, 3, 1, 2))                        # back to NCHW


# --------------------------------------------------------------------------
# Pure-JAX reference (for correctness check)
# --------------------------------------------------------------------------
def reference_forward(x_nchw, p, *, upsample=True, has_shortcut_conv=True):
    x = jnp.transpose(x_nchw, (0, 2, 3, 1)).astype(jnp.float32)

    def bn_relu_ref(h, g, b):
        m = jnp.mean(h, axis=(0, 1, 2), keepdims=True)
        v = jnp.mean((h - m) ** 2, axis=(0, 1, 2), keepdims=True)
        return jnp.maximum((h - m) / jnp.sqrt(v + EPS) * g + b, 0.0)

    def conv_ref(h, w_hwio, b):
        y = lax.conv_general_dilated(h, w_hwio, (1, 1), "SAME",
                                     dimension_numbers=("NHWC", "HWIO", "NHWC"))
        return y + b

    shortcut = upsample2x_nearest(x) if upsample else x
    if has_shortcut_conv:
        shortcut = jnp.einsum("nhwc,cd->nhwd", shortcut, p["w_sc"]) + p["b_sc"]
    h = bn_relu_ref(x, p["gamma1"], p["beta1"])
    if upsample:
        h = upsample2x_nearest(h)
    h = conv_ref(h, p["w1"], p["b1"])
    h = bn_relu_ref(h, p["gamma2"], p["beta2"])
    h = conv_ref(h, p["w2"], p["b2"])
    return jnp.transpose(h + shortcut, (0, 3, 1, 2))


if __name__ == "__main__":
    key = jax.random.PRNGKey(0)
    ks = jax.random.split(key, 11)
    N, Cin, Cout, H, W = 2, 4, 8, 16, 16
    upsample = True  # exercise both upsample and the 1x1 shortcut conv (Cin != Cout)

    x = jax.random.normal(ks[0], (N, Cin, H, W), jnp.float32)
    # Deterministic synthetic parameters (conv weights stored directly in HWIO;
    # BN gamma/beta perturbed away from 1/0 so the affine terms matter).
    params = {
        "gamma1": 1.0 + 0.1 * jax.random.normal(ks[1], (Cin,), jnp.float32),
        "beta1": 0.1 * jax.random.normal(ks[2], (Cin,), jnp.float32),
        "w1": 0.2 * jax.random.normal(ks[3], (3, 3, Cin, Cin), jnp.float32),
        "b1": 0.05 * jax.random.normal(ks[4], (Cin,), jnp.float32),
        "gamma2": 1.0 + 0.1 * jax.random.normal(ks[5], (Cin,), jnp.float32),
        "beta2": 0.1 * jax.random.normal(ks[6], (Cin,), jnp.float32),
        "w2": 0.2 * jax.random.normal(ks[7], (3, 3, Cin, Cout), jnp.float32),
        "b2": 0.05 * jax.random.normal(ks[8], (Cout,), jnp.float32),
        "w_sc": 0.2 * jax.random.normal(ks[9], (Cin, Cout), jnp.float32),
        "b_sc": 0.05 * jax.random.normal(ks[10], (Cout,), jnp.float32),
    }

    fwd = jax.jit(functools.partial(generator_block, upsample=upsample,
                                    has_shortcut_conv=True))
    out = jax.block_until_ready(fwd(x, params))
    ref = reference_forward(x, params, upsample=upsample, has_shortcut_conv=True)

    assert out.shape == (N, Cout, 2 * H, 2 * W), out.shape
    max_err = float(jnp.max(jnp.abs(out - ref)))
    assert jnp.allclose(out, ref, atol=1e-3, rtol=1e-3), max_err
    print("KERNEL_OK")
</pallas_src>

<mosaic_0001>
module attributes {stable_mosaic.version = 11 : i64} {
  func.func @bn_stats_kernel(%arg0: i32, %arg1: memref<512x128xf32, #tpu.memory_space<vmem>>, %arg2: memref<2x128xf32, #tpu.memory_space<vmem>>) attributes {dimension_semantics = [#tpu.dimension_semantics<arbitrary>], iteration_bounds = array<i64: 1>, scalar_prefetch = 0 : i64, scratch_operands = 0 : i64, tpu.core_type = #tpu.core_type<tc>, window_params = [{transform_indices = @transform_0, window_bounds = array<i64: 512, 128>}, {pipeline_mode = #tpu.pipeline_mode<synchronous>, transform_indices = @transform_1, window_bounds = array<i64: 2, 128>}]} {
    %c0_i32 = arith.constant 0 : i32
    %0 = arith.cmpi eq, %arg0, %c0_i32 : i32
    %1 = arith.extui %0 : i1 to i32
    %c0_i32_0 = arith.constant 0 : i32
    %2 = arith.cmpi ne, %1, %c0_i32_0 : i32
    scf.if %2 {
      %cst_7 = arith.constant 0.000000e+00 : f32
      %13 = vector.broadcast %cst_7 : f32 to vector<2x128xf32>
      %c0_8 = arith.constant 0 : index
      %c0_9 = arith.constant 0 : index
      %14 = vector.load %arg2[%c0_8, %c0_9] : memref<2x128xf32, #tpu.memory_space<vmem>>, vector<2x128xf32>
      tpu.vector_store %arg2[%c0_8, %c0_9], %13 {strides = array<i32>} : memref<2x128xf32, #tpu.memory_space<vmem>>, vector<2x128xf32>,
    } else {
    }
    %c0 = arith.constant 0 : index
    %c0_1 = arith.constant 0 : index
    %3 = vector.load %arg1[%c0, %c0_1] : memref<512x128xf32, #tpu.memory_space<vmem>>, vector<512x128xf32>
    %c0_2 = arith.constant 0 : index
    %c0_3 = arith.constant 0 : index
    %4 = vector.load %arg2[%c0_2, %c0_3] : memref<2x128xf32, #tpu.memory_space<vmem>>, vector<2x128xf32>
    %cst = arith.constant dense<0.000000e+00> : vector<128xf32>
    %5 = vector.multi_reduction <add>, %3, %cst [0] : vector<512x128xf32> to vector<128xf32>
    %6 = vector.shape_cast %5 : vector<128xf32> to vector<1x128xf32>
    %7 = arith.mulf %3, %3 : vector<512x128xf32>
    %cst_4 = arith.constant dense<0.000000e+00> : vector<128xf32>
    %8 = vector.multi_reduction <add>, %7, %cst_4 [0] : vector<512x128xf32> to vector<128xf32>
    %9 = vector.shape_cast %8 : vector<128xf32> to vector<1x128xf32>
    %10 = tpu.concatenate %6, %9 in 0 : vector<1x128xf32>, vector<1x128xf32> -> vector<2x128xf32>
    %11 = arith.addf %4, %10 : vector<2x128xf32>
    %c0_5 = arith.constant 0 : index
    %c0_6 = arith.constant 0 : index
    %12 = vector.load %arg2[%c0_5, %c0_6] : memref<2x128xf32, #tpu.memory_space<vmem>>, vector<2x128xf32>
    tpu.vector_store %arg2[%c0_5, %c0_6], %11 {strides = array<i32>} : memref<2x128xf32, #tpu.memory_space<vmem>>, vector<2x128xf32>,
    return
  }
  func.func @transform_0(%arg0: i32) -> (i32, i32) {
    %c0_i32 = arith.constant 0 : i32
    %c0_i32_0 = arith.constant 0 : i32
    return %arg0, %c0_i32 : i32, i32
  }
  func.func @transform_1(%arg0: i32) -> (i32, i32) {
    %c0_i32 = arith.constant 0 : i32
    %c0_i32_0 = arith.constant 0 : i32
    %c0_i32_1 = arith.constant 0 : i32
    return %c0_i32, %c0_i32_0 : i32, i32
  }
}

module attributes {stable_mosaic.version = 11 : i64} {
  func.func @scale_shift_relu_kernel(%arg0: i32, %arg1: memref<512x128xf32, #tpu.memory_space<vmem>>, %arg2: memref<1x128xf32, #tpu.memory_space<vmem>>, %arg3: memref<1x128xf32, #tpu.memory_space<vmem>>, %arg4: memref<512x128xf32, #tpu.memory_space<vmem>>) attributes {dimension_semantics = [#tpu.dimension_semantics<parallel>], iteration_bounds = array<i64: 1>, scalar_prefetch = 0 : i64, scratch_operands = 0 : i64, tpu.core_type = #tpu.core_type<tc>, window_params = [{transform_indices = @transform_0, window_bounds = array<i64: 512, 128>}, {pipeline_mode = #tpu.pipeline_mode<synchronous>, transform_indices = @transform_1, window_bounds = array<i64: 1, 128>}, {pipeline_mode = #tpu.pipeline_mode<synchronous>, transform_indices = @transform_2, window_bounds = array<i64: 1, 128>}, {transform_indices = @transform_3, window_bounds = array<i64: 512, 128>}]} {
    %c0 = arith.constant 0 : index
    %c0_0 = arith.constant 0 : index
    %0 = vector.load %arg1[%c0, %c0_0] : memref<512x128xf32, #tpu.memory_space<vmem>>, vector<512x128xf32>
    %c0_1 = arith.constant 0 : index
    %c0_2 = arith.constant 0 : index
    %1 = vector.load %arg2[%c0_1, %c0_2] : memref<1x128xf32, #tpu.memory_space<vmem>>, vector<1x128xf32>
    %2 = vector.broadcast %1 : vector<1x128xf32> to vector<512x128xf32>
    %3 = arith.mulf %0, %2 : vector<512x128xf32>
    %c0_3 = arith.constant 0 : index
    %c0_4 = arith.constant 0 : index
    %4 = vector.load %arg3[%c0_3, %c0_4] : memref<1x128xf32, #tpu.memory_space<vmem>>, vector<1x128xf32>
    %5 = vector.broadcast %4 : vector<1x128xf32> to vector<512x128xf32>
    %6 = arith.addf %3, %5 : vector<512x128xf32>
    %cst = arith.constant 0.000000e+00 : f32
    %7 = vector.broadcast %cst : f32 to vector<512x128xf32>
    %8 = arith.maximumf %6, %7 : vector<512x128xf32>
    %c0_5 = arith.constant 0 : index
    %c0_6 = arith.constant 0 : index
    %9 = vector.load %arg4[%c0_5, %c0_6] : memref<512x128xf32, #tpu.memory_space<vmem>>, vector<512x128xf32>
    tpu.vector_store %arg4[%c0_5, %c0_6], %8 {strides = array<i32>} : memref<512x128xf32, #tpu.memory_space<vmem>>, vector<512x128xf32>,
    return
  }
  func.func @transform_0(%arg0: i32) -> (i32, i32) {
    %c0_i32 = arith.constant 0 : i32
    %c0_i32_0 = arith.constant 0 : i32
    return %arg0, %c0_i32 : i32, i32
  }
  func.func @transform_1(%arg0: i32) -> (i32, i32) {
    %c0_i32 = arith.constant 0 : i32
    %c0_i32_0 = arith.constant 0 : i32
    %c0_i32_1 = arith.constant 0 : i32
    return %c0_i32, %c0_i32_0 : i32, i32
  }
  func.func @transform_2(%arg0: i32) -> (i32, i32) {
    %c0_i32 = arith.constant 0 : i32
    %c0_i32_0 = arith.constant 0 : i32
    %c0_i32_1 = arith.constant 0 : i32
    return %c0_i32, %c0_i32_0 : i32, i32
  }
  func.func @transform_3(%arg0: i32) -> (i32, i32) {
    %c0_i32 = arith.constant 0 : i32
    %c0_i32_0 = arith.constant 0 : i32
    return %arg0, %c0_i32 : i32, i32
  }
}

module attributes {stable_mosaic.version = 11 : i64} {
  func.func @bn_stats_kernel(%arg0: i32, %arg1: memref<512x128xf32, #tpu.memory_space<vmem>>, %arg2: memref<2x128xf32, #tpu.memory_space<vmem>>) attributes {dimension_semantics = [#tpu.dimension_semantics<arbitrary>], iteration_bounds = array<i64: 4>, scalar_prefetch = 0 : i64, scratch_operands = 0 : i64, tpu.core_type = #tpu.core_type<tc>, window_params = [{transform_indices = @transform_0, window_bounds = array<i64: 512, 128>}, {pipeline_mode = #tpu.pipeline_mode<synchronous>, transform_indices = @transform_1, window_bounds = array<i64: 2, 128>}]} {
    %c0_i32 = arith.constant 0 : i32
    %0 = arith.cmpi eq, %arg0, %c0_i32 : i32
    %1 = arith.extui %0 : i1 to i32
    %c0_i32_0 = arith.constant 0 : i32
    %2 = arith.cmpi ne, %1, %c0_i32_0 : i32
    scf.if %2 {
      %cst_7 = arith.constant 0.000000e+00 : f32
      %13 = vector.broadcast %cst_7 : f32 to vector<2x128xf32>
      %c0_8 = arith.constant 0 : index
      %c0_9 = arith.constant 0 : index
      %14 = vector.load %arg2[%c0_8, %c0_9] : memref<2x128xf32, #tpu.memory_space<vmem>>, vector<2x128xf32>
      tpu.vector_store %arg2[%c0_8, %c0_9], %13 {strides = array<i32>} : memref<2x128xf32, #tpu.memory_space<vmem>>, vector<2x128xf32>,
    } else {
    }
    %c0 = arith.constant 0 : index
    %c0_1 = arith.constant 0 : index
    %3 = vector.load %arg1[%c0, %c0_1] : memref<512x128xf32, #tpu.memory_space<vmem>>, vector<512x128xf32>
    %c0_2 = arith.constant 0 : index
    %c0_3 = arith.constant 0 : index
    %4 = vector.load %arg2[%c0_2, %c0_3] : memref<2x128xf32, #tpu.memory_space<vmem>>, vector<2x128xf32>
    %cst = arith.constant dense<0.000000e+00> : vector<128xf32>
    %5 = vector.multi_reduction <add>, %3, %cst [0] : vector<512x128xf32> to vector<128xf32>
    %6 = vector.shape_cast %5 : vector<128xf32> to vector<1x128xf32>
    %7 = arith.mulf %3, %3 : vector<512x128xf32>
    %cst_4 = arith.constant dense<0.000000e+00> : vector<128xf32>
    %8 = vector.multi_reduction <add>, %7, %cst_4 [0] : vector<512x128xf32> to vector<128xf32>
    %9 = vector.shape_cast %8 : vector<128xf32> to vector<1x128xf32>
    %10 = tpu.concatenate %6, %9 in 0 : vector<1x128xf32>, vector<1x128xf32> -> vector<2x128xf32>
    %11 = arith.addf %4, %10 : vector<2x128xf32>
    %c0_5 = arith.constant 0 : index
    %c0_6 = arith.constant 0 : index
    %12 = vector.load %arg2[%c0_5, %c0_6] : memref<2x128xf32, #tpu.memory_space<vmem>>, vector<2x128xf32>
    tpu.vector_store %arg2[%c0_5, %c0_6], %11 {strides = array<i32>} : memref<2x128xf32, #tpu.memory_space<vmem>>, vector<2x128xf32>,
    return
  }
  func.func @transform_0(%arg0: i32) -> (i32, i32) {
    %c0_i32 = arith.constant 0 : i32
    %c0_i32_0 = arith.constant 0 : i32
    return %arg0, %c0_i32 : i32, i32
  }
  func.func @transform_1(%arg0: i32) -> (i32, i32) {
    %c0_i32 = arith.constant 0 : i32
    %c0_i32_0 = arith.constant 0 : i32
    %c0_i32_1 = arith.constant 0 : i32
    return %c0_i32, %c0_i32_0 : i32, i32
  }
}

module attributes {stable_mosaic.version = 11 : i64} {
  func.func @matmul_bias_kernel(%arg0: i32, %arg1: memref<256x1152xf32, #tpu.memory_space<vmem>>, %arg2: memref<1152x128xf32, #tpu.memory_space<vmem>>, %arg3: memref<1x128xf32, #tpu.memory_space<vmem>>, %arg4: memref<256x128xf32, #tpu.memory_space<vmem>>) attributes {dimension_semantics = [#tpu.dimension_semantics<parallel>], iteration_bounds = array<i64: 8>, scalar_prefetch = 0 : i64, scratch_operands = 0 : i64, tpu.core_type = #tpu.core_type<tc>, window_params = [{transform_indices = @transform_0, window_bounds = array<i64: 256, 1152>}, {pipeline_mode = #tpu.pipeline_mode<synchronous>, transform_indices = @transform_1, window_bounds = array<i64: 1152, 128>}, {pipeline_mode = #tpu.pipeline_mode<synchronous>, transform_indices = @transform_2, window_bounds = array<i64: 1, 128>}, {transform_indices = @transform_3, window_bounds = array<i64: 256, 128>}]} {
    %c0 = arith.constant 0 : index
    %c0_0 = arith.constant 0 : index
    %0 = vector.load %arg1[%c0, %c0_0] : memref<256x1152xf32, #tpu.memory_space<vmem>>, vector<256x1152xf32>
    %c0_1 = arith.constant 0 : index
    %c0_2 = arith.constant 0 : index
    %1 = vector.load %arg2[%c0_1, %c0_2] : memref<1152x128xf32, #tpu.memory_space<vmem>>, vector<1152x128xf32>
    %cst = arith.constant dense<0.000000e+00> : vector<256x128xf32>
    %2 = tpu.matmul %0, %1, %cst {dimension_numbers = #tpu.dot_dimension_numbers<[1], [0], [0], [1], [0, 0, 1, 1], [], []>} : vector<256x1152xf32>, vector<1152x128xf32>, vector<256x128xf32> -> vector<256x128xf32>
    %c0_3 = arith.constant 0 : index
    %c0_4 = arith.constant 0 : index
    %3 = vector.load %arg3[%c0_3, %c0_4] : memref<1x128xf32, #tpu.memory_space<vmem>>, vector<1x128xf32>
    %4 = vector.broadcast %3 : vector<1x128xf32> to vector<256x128xf32>
    %5 = arith.addf %2, %4 : vector<256x128xf32>
    %c0_5 = arith.constant 0 : index
    %c0_6 = arith.constant 0 : index
    %6 = vector.load %arg4[%c0_5, %c0_6] : memref<256x128xf32, #tpu.memory_space<vmem>>, vector<256x128xf32>
    tpu.vector_store %arg4[%c0_5, %c0_6], %5 {strides = array<i32>} : memref<256x128xf32, #tpu.memory_space<vmem>>, vector<256x128xf32>,
    return
  }
  func.func @transform_0(%arg0: i32) -> (i32, i32) {
    %c0_i32 = arith.constant 0 : i32
    %c0_i32_0 = arith.constant 0 : i32
    return %arg0, %c0_i32 : i32, i32
  }
  func.func @transform_1(%arg0: i32) -> (i32, i32) {
    %c0_i32 = arith.constant 0 : i32
    %c0_i32_0 = arith.constant 0 : i32
    %c0_i32_1 = arith.constant 0 : i32
    return %c0_i32, %c0_i32_0 : i32, i32
  }
  func.func @transform_2(%arg0: i32) -> (i32, i32) {
    %c0_i32 = arith.constant 0 : i32
    %c0_i32_0 = arith.constant 0 : i32
    %c0_i32_1 = arith.constant 0 : i32
    return %c0_i32, %c0_i32_0 : i32, i32
  }
  func.func @transform_3(%arg0: i32) -> (i32, i32) {
    %c0_i32 = arith.constant 0 : i32
    %c0_i32_0 = arith.constant 0 : i32
    return %arg0, %c0_i32 : i32, i32
  }
}

module attributes {stable_mosaic.version = 11 : i64} {
  func.func @scale_shift_relu_kernel(%arg0: i32, %arg1: memref<512x128xf32, #tpu.memory_space<vmem>>, %arg2: memref<1x128xf32, #tpu.memory_space<vmem>>, %arg3: memref<1x128xf32, #tpu.memory_space<vmem>>, %arg4: memref<512x128xf32, #tpu.memory_space<vmem>>) attributes {dimension_semantics = [#tpu.dimension_semantics<parallel>], iteration_bounds = array<i64: 4>, scalar_prefetch = 0 : i64, scratch_operands = 0 : i64, tpu.core_type = #tpu.core_type<tc>, window_params = [{transform_indices = @transform_0, window_bounds = array<i64: 512, 128>}, {pipeline_mode = #tpu.pipeline_mode<synchronous>, transform_indices = @transform_1, window_bounds = array<i64: 1, 128>}, {pipeline_mode = #tpu.pipeline_mode<synchronous>, transform_indices = @transform_2, window_bounds = array<i64: 1, 128>}, {transform_indices = @transform_3, window_bounds = array<i64: 512, 128>}]} {
    %c0 = arith.constant 0 : index
    %c0_0 = arith.constant 0 : index
    %0 = vector.load %arg1[%c0, %c0_0] : memref<512x128xf32, #tpu.memory_space<vmem>>, vector<512x128xf32>
    %c0_1 = arith.constant 0 : index
    %c0_2 = arith.constant 0 : index
    %1 = vector.load %arg2[%c0_1, %c0_2] : memref<1x128xf32, #tpu.memory_space<vmem>>, vector<1x128xf32>
    %2 = vector.broadcast %1 : vector<1x128xf32> to vector<512x128xf32>
    %3 = arith.mulf %0, %2 : vector<512x128xf32>
    %c0_3 = arith.constant 0 : index
    %c0_4 = arith.constant 0 : index
    %4 = vector.load %arg3[%c0_3, %c0_4] : memref<1x128xf32, #tpu.memory_space<vmem>>, vector<1x128xf32>
    %5 = vector.broadcast %4 : vector<1x128xf32> to vector<512x128xf32>
    %6 = arith.addf %3, %5 : vector<512x128xf32>
    %cst = arith.constant 0.000000e+00 : f32
    %7 = vector.broadcast %cst : f32 to vector<512x128xf32>
    %8 = arith.maximumf %6, %7 : vector<512x128xf32>
    %c0_5 = arith.constant 0 : index
    %c0_6 = arith.constant 0 : index
    %9 = vector.load %arg4[%c0_5, %c0_6] : memref<512x128xf32, #tpu.memory_space<vmem>>, vector<512x128xf32>
    tpu.vector_store %arg4[%c0_5, %c0_6], %8 {strides = array<i32>} : memref<512x128xf32, #tpu.memory_space<vmem>>, vector<512x128xf32>,
    return
  }
  func.func @transform_0(%arg0: i32) -> (i32, i32) {
    %c0_i32 = arith.constant 0 : i32
    %c0_i32_0 = arith.constant 0 : i32
    return %arg0, %c0_i32 : i32, i32
  }
  func.func @transform_1(%arg0: i32) -> (i32, i32) {
    %c0_i32 = arith.constant 0 : i32
    %c0_i32_0 = arith.constant 0 : i32
    %c0_i32_1 = arith.constant 0 : i32
    return %c0_i32, %c0_i32_0 : i32, i32
  }
  func.func @transform_2(%arg0: i32) -> (i32, i32) {
    %c0_i32 = arith.constant 0 : i32
    %c0_i32_0 = arith.constant 0 : i32
    %c0_i32_1 = arith.constant 0 : i32
    return %c0_i32, %c0_i32_0 : i32, i32
  }
  func.func @transform_3(%arg0: i32) -> (i32, i32) {
    %c0_i32 = arith.constant 0 : i32
    %c0_i32_0 = arith.constant 0 : i32
    return %arg0, %c0_i32 : i32, i32
  }
}

module attributes {stable_mosaic.version = 11 : i64} {
  func.func @matmul_bias_kernel(%arg0: i32, %arg1: memref<256x128xf32, #tpu.memory_space<vmem>>, %arg2: memref<128x128xf32, #tpu.memory_space<vmem>>, %arg3: memref<1x128xf32, #tpu.memory_space<vmem>>, %arg4: memref<256x128xf32, #tpu.memory_space<vmem>>) attributes {dimension_semantics = [#tpu.dimension_semantics<parallel>], iteration_bounds = array<i64: 2>, scalar_prefetch = 0 : i64, scratch_operands = 0 : i64, tpu.core_type = #tpu.core_type<tc>, window_params = [{transform_indices = @transform_0, window_bounds = array<i64: 256, 128>}, {pipeline_mode = #tpu.pipeline_mode<synchronous>, transform_indices = @transform_1, window_bounds = array<i64: 128, 128>}, {pipeline_mode = #tpu.pipeline_mode<synchronous>, transform_indices = @transform_2, window_bounds = array<i64: 1, 128>}, {transform_indices = @transform_3, window_bounds = array<i64: 256, 128>}]} {
    %c0 = arith.constant 0 : index
    %c0_0 = arith.constant 0 : index
    %0 = vector.load %arg1[%c0, %c0_0] : memref<256x128xf32, #tpu.memory_space<vmem>>, vector<256x128xf32>
    %c0_1 = arith.constant 0 : index
    %c0_2 = arith.constant 0 : index
    %1 = vector.load %arg2[%c0_1, %c0_2] : memref<128x128xf32, #tpu.memory_space<vmem>>, vector<128x128xf32>
    %cst = arith.constant dense<0.000000e+00> : vector<256x128xf32>
    %2 = tpu.matmul %0, %1, %cst {dimension_numbers = #tpu.dot_dimension_numbers<[1], [0], [0], [1], [0, 0, 1, 1], [], []>} : vector<256x128xf32>, vector<128x128xf32>, vector<256x128xf32> -> vector<256x128xf32>
    %c0_3 = arith.constant 0 : index
    %c0_4 = arith.constant 0 : index
    %3 = vector.load %arg3[%c0_3, %c0_4] : memref<1x128xf32, #tpu.memory_space<vmem>>, vector<1x128xf32>
    %4 = vector.broadcast %3 : vector<1x128xf32> to vector<256x128xf32>
    %5 = arith.addf %2, %4 : vector<256x128xf32>
    %c0_5 = arith.constant 0 : index
    %c0_6 = arith.constant 0 : index
    %6 = vector.load %arg4[%c0_5, %c0_6] : memref<256x128xf32, #tpu.memory_space<vmem>>, vector<256x128xf32>
    tpu.vector_store %arg4[%c0_5, %c0_6], %5 {strides = array<i32>} : memref<256x128xf32, #tpu.memory_space<vmem>>, vector<256x128xf32>,
    return
  }
  func.func @transform_0(%arg0: i32) -> (i32, i32) {
    %c0_i32 = arith.constant 0 : i32
    %c0_i32_0 = arith.constant 0 : i32
    return %arg0, %c0_i32 : i32, i32
  }
  func.func @transform_1(%arg0: i32) -> (i32, i32) {
    %c0_i32 = arith.constant 0 : i32
    %c0_i32_0 = arith.constant 0 : i32
    %c0_i32_1 = arith.constant 0 : i32
    return %c0_i32, %c0_i32_0 : i32, i32
  }
  func.func @transform_2(%arg0: i32) -> (i32, i32) {
    %c0_i32 = arith.constant 0 : i32
    %c0_i32_0 = arith.constant 0 : i32
    %c0_i32_1 = arith.constant 0 : i32
    return %c0_i32, %c0_i32_0 : i32, i32
  }
  func.func @transform_3(%arg0: i32) -> (i32, i32) {
    %c0_i32 = arith.constant 0 : i32
    %c0_i32_0 = arith.constant 0 : i32
    return %arg0, %c0_i32 : i32, i32
  }
}

module attributes {stable_mosaic.version = 11 : i64} {
  func.func @matmul_bias_residual_kernel(%arg0: i32, %arg1: memref<256x1152xf32, #tpu.memory_space<vmem>>, %arg2: memref<1152x128xf32, #tpu.memory_space<vmem>>, %arg3: memref<1x128xf32, #tpu.memory_space<vmem>>, %arg4: memref<256x128xf32, #tpu.memory_space<vmem>>, %arg5: memref<256x128xf32, #tpu.memory_space<vmem>>) attributes {dimension_semantics = [#tpu.dimension_semantics<parallel>], iteration_bounds = array<i64: 8>, scalar_prefetch = 0 : i64, scratch_operands = 0 : i64, tpu.core_type = #tpu.core_type<tc>, window_params = [{transform_indices = @transform_0, window_bounds = array<i64: 256, 1152>}, {pipeline_mode = #tpu.pipeline_mode<synchronous>, transform_indices = @transform_1, window_bounds = array<i64: 1152, 128>}, {pipeline_mode = #tpu.pipeline_mode<synchronous>, transform_indices = @transform_2, window_bounds = array<i64: 1, 128>}, {transform_indices = @transform_3, window_bounds = array<i64: 256, 128>}, {transform_indices = @transform_4, window_bounds = array<i64: 256, 128>}]} {
    %c0 = arith.constant 0 : index
    %c0_0 = arith.constant 0 : index
    %0 = vector.load %arg1[%c0, %c0_0] : memref<256x1152xf32, #tpu.memory_space<vmem>>, vector<256x1152xf32>
    %c0_1 = arith.constant 0 : index
    %c0_2 = arith.constant 0 : index
    %1 = vector.load %arg2[%c0_1, %c0_2] : memref<1152x128xf32, #tpu.memory_space<vmem>>, vector<1152x128xf32>
    %cst = arith.constant dense<0.000000e+00> : vector<256x128xf32>
    %2 = tpu.matmul %0, %1, %cst {dimension_numbers = #tpu.dot_dimension_numbers<[1], [0], [0], [1], [0, 0, 1, 1], [], []>} : vector<256x1152xf32>, vector<1152x128xf32>, vector<256x128xf32> -> vector<256x128xf32>
    %c0_3 = arith.constant 0 : index
    %c0_4 = arith.constant 0 : index
    %3 = vector.load %arg3[%c0_3, %c0_4] : memref<1x128xf32, #tpu.memory_space<vmem>>, vector<1x128xf32>
    %4 = vector.broadcast %3 : vector<1x128xf32> to vector<256x128xf32>
    %5 = arith.addf %2, %4 : vector<256x128xf32>
    %c0_5 = arith.constant 0 : index
    %c0_6 = arith.constant 0 : index
    %6 = vector.load %arg4[%c0_5, %c0_6] : memref<256x128xf32, #tpu.memory_space<vmem>>, vector<256x128xf32>
    %7 = arith.addf %5, %6 : vector<256x128xf32>
    %c0_7 = arith.constant 0 : index
    %c0_8 = arith.constant 0 : index
    %8 = vector.load %arg5[%c0_7, %c0_8] : memref<256x128xf32, #tpu.memory_space<vmem>>, vector<256x128xf32>
    tpu.vector_store %arg5[%c0_7, %c0_8], %7 {strides = array<i32>} : memref<256x128xf32, #tpu.memory_space<vmem>>, vector<256x128xf32>,
    return
  }
  func.func @transform_0(%arg0: i32) -> (i32, i32) {
    %c0_i32 = arith.constant 0 : i32
    %c0_i32_0 = arith.constant 0 : i32
    return %arg0, %c0_i32 : i32, i32
  }
  func.func @transform_1(%arg0: i32) -> (i32, i32) {
    %c0_i32 = arith.constant 0 : i32
    %c0_i32_0 = arith.constant 0 : i32
    %c0_i32_1 = arith.constant 0 : i32
    return %c0_i32, %c0_i32_0 : i32, i32
  }
  func.func @transform_2(%arg0: i32) -> (i32, i32) {
    %c0_i32 = arith.constant 0 : i32
    %c0_i32_0 = arith.constant 0 : i32
    %c0_i32_1 = arith.constant 0 : i32
    return %c0_i32, %c0_i32_0 : i32, i32
  }
  func.func @transform_3(%arg0: i32) -> (i32, i32) {
    %c0_i32 = arith.constant 0 : i32
    %c0_i32_0 = arith.constant 0 : i32
    return %arg0, %c0_i32 : i32, i32
  }
  func.func @transform_4(%arg0: i32) -> (i32, i32) {
    %c0_i32 = arith.constant 0 : i32
    %c0_i32_0 = arith.constant 0 : i32
    return %arg0, %c0_i32 : i32, i32
  }
}

</mosaic_0001>

<bundles_post_ra>
// kernel: generator_block.8
= control target key start
LH: loop header
LB: loop body
LE: loop exit
PB: predicated region body
PF: predicated region fallthrough
CT: control target
= control target key end

     0   :  { %v289_v0 = vmov 0.0   ;;  %vm280_vm0 = vcmask 1040384   ;;  %s501_s0 = inlined_call_operand.vmem [shape: f32[512,128], index: 0, kind: input, shape index: {}]   ;;  %s502_s1 = inlined_call_operand.vmem [shape: f32[2,128], index: 1, kind: output, shape index: {}]  }
   0x1   :  { %12 = vst [vmem:[%s502_s1] sm:$0x3] %v289_v0  ;;  %v13_v1 = vld [vmem:[%s501_s0] sm:$0xff]  ;;  %v14_v2 = vld [vmem:[%s501_s0 + $0x8] sm:$0xff]  ;;  %v15_v3 = vld [vmem:[%s501_s0 + $0x10] sm:$0xff] }
   0x2   :  { %v16_v4 = vld [vmem:[%s501_s0 + $0x18] sm:$0xff]  ;;  %v78_v5 = vadd.f32 %v14_v2, %v13_v1  ;;  %v147_v6 = vmul.f32 %v13_v1, %v13_v1  ;;  %v148_v7 = vmul.f32 %v14_v2, %v14_v2  ;;  %v149_v8 = vmul.f32 %v15_v3, %v15_v3  ;;  %v17_v9 = vld [vmem:[%s501_s0 + $0x20] sm:$0xff]  ;;  %v18_v13 = vld [vmem:[%s501_s0 + $0x28] sm:$0xff] }
   0x3   :  { %v150_v11 = vmul.f32 %v16_v4, %v16_v4  ;;  %v151_v15 = vmul.f32 %v17_v9, %v17_v9  ;;  %v19_v17 = vld [vmem:[%s501_s0 + $0x30] sm:$0xff]  ;;  %v152_v19 = vmul.f32 %v18_v13, %v18_v13  ;;  %v20_v21 = vld [vmem:[%s501_s0 + $0x38] sm:$0xff]  ;;  %v21_v25 = vld [vmem:[%s501_s0 + $0x40] sm:$0xff] }
   0x4   :  { %v79_v10 = vadd.f32 %v78_v5, %v15_v3  ;;  %v211_v12 = vadd.f32 %v148_v7, %v147_v6  ;;  %v153_v23 = vmul.f32 %v19_v17, %v19_v17  ;;  %v154_v27 = vmul.f32 %v20_v21, %v20_v21  ;;  %v22_v29 = vld [vmem:[%s501_s0 + $0x48] sm:$0xff]  ;;  %v23_v33 = vld [vmem:[%s501_s0 + $0x50] sm:$0xff]  ;;  %v24_v37 = vld [vmem:[%s501_s0 + $0x58] sm:$0xff] }
   0x5   :  { %v155_v31 = vmul.f32 %v21_v25, %v21_v25  ;;  %v156_v35 = vmul.f32 %v22_v29, %v22_v29  ;;  %v157_v39 = vmul.f32 %v23_v33, %v23_v33  ;;  %v25_v41 = vld [vmem:[%s501_s0 + $0x60] sm:$0xff]  ;;  %v158_v43 = vmul.f32 %v24_v37, %v24_v37  ;;  %v26_v45 = vld [vmem:[%s501_s0 + $0x68] sm:$0xff]  ;;  %v27_v49 = vld [vmem:[%s501_s0 + $0x70] sm:$0xff] }
   0x6   :  { %v80_v14 = vadd.f32 %v79_v10, %v16_v4  ;;  %v212_v16 = vadd.f32 %v211_v12, %v149_v8  ;;  %v159_v47 = vmul.f32 %v25_v41, %v25_v41  ;;  %v160_v51 = vmul.f32 %v26_v45, %v26_v45  ;;  %v28_v53 = vld [vmem:[%s501_s0 + $0x78] sm:$0xff]  ;;  %v29_v57 = vld [vmem:[%s501_s0 + $0x80] sm:$0xff]  ;;  %v30_v61 = vld [vmem:[%s501_s0 + $0x88] sm:$0xff] }
   0x7   :  { %v161_v55 = vmul.f32 %v27_v49, %v27_v49  ;;  %v162_v59 = vmul.f32 %v28_v53, %v28_v53  ;;  %v163_v63 = vmul.f32 %v29_v57, %v29_v57  ;;  %v31_v1 = vld [vmem:[%s501_s0 + $0x90] sm:$0xff]  ;;  %v164_v3 = vmul.f32 %v30_v61, %v30_v61  ;;  %v32_v5 = vld [vmem:[%s501_s0 + $0x98] sm:$0xff] }
   0x8   :  { %v81_v18 = vadd.f32 %v80_v14, %v17_v9  ;;  %v213_v20 = vadd.f32 %v212_v16, %v150_v11  ;;  %v165_v7 = vmul.f32 %v31_v1, %v31_v1  ;;  %v33_v9 = vld [vmem:[%s501_s0 + $0xa0] sm:$0xff]  ;;  %v166_v11 = vmul.f32 %v32_v5, %v32_v5 }
   0xa   :  { %v82_v22 = vadd.f32 %v81_v18, %v18_v13  ;;  %v214_v24 = vadd.f32 %v213_v20, %v151_v15  ;;  %v34_v13 = vld [vmem:[%s501_s0 + $0xa8] sm:$0xff]  ;;  %v167_v15 = vmul.f32 %v33_v9, %v33_v9 }
   0xc   :  { %v83_v26 = vadd.f32 %v82_v22, %v19_v17  ;;  %v215_v28 = vadd.f32 %v214_v24, %v152_v19  ;;  %v35_v17 = vld [vmem:[%s501_s0 + $0xb0] sm:$0xff]  ;;  %v168_v19 = vmul.f32 %v34_v13, %v34_v13 }
   0xe   :  { %v84_v30 = vadd.f32 %v83_v26, %v20_v21  ;;  %v216_v32 = vadd.f32 %v215_v28, %v153_v23  ;;  %v36_v21 = vld [vmem:[%s501_s0 + $0xb8] sm:$0xff]  ;;  %v169_v23 = vmul.f32 %v35_v17, %v35_v17 }
  0x10   :  { %v85_v34 = vadd.f32 %v84_v30, %v21_v25  ;;  %v217_v36 = vadd.f32 %v216_v32, %v154_v27  ;;  %v37_v25 = vld [vmem:[%s501_s0 + $0xc0] sm:$0xff]  ;;  %v170_v27 = vmul.f32 %v36_v21, %v36_v21 }
  0x12   :  { %v86_v38 = vadd.f32 %v85_v34, %v22_v29  ;;  %v218_v40 = vadd.f32 %v217_v36, %v155_v31  ;;  %v38_v29 = vld [vmem:[%s501_s0 + $0xc8] sm:$0xff]  ;;  %v171_v31 = vmul.f32 %v37_v25, %v37_v25 }
  0x14   :  { %v87_v42 = vadd.f32 %v86_v38, %v23_v33  ;;  %v219_v44 = vadd.f32 %v218_v40, %v156_v35  ;;  %v39_v33 = vld [vmem:[%s501_s0 + $0xd0] sm:$0xff]  ;;  %v172_v35 = vmul.f32 %v38_v29, %v38_v29 }
  0x16   :  { %v88_v46 = vadd.f32 %v87_v42, %v24_v37  ;;  %v220_v48 = vadd.f32 %v219_v44, %v157_v39  ;;  %v40_v37 = vld [vmem:[%s501_s0 + $0xd8] sm:$0xff]  ;;  %v173_v39 = vmul.f32 %v39_v33, %v39_v33 }
  0x18   :  { %v89_v50 = vadd.f32 %v88_v46, %v25_v41  ;;  %v221_v52 = vadd.f32 %v220_v48, %v158_v43  ;;  %v41_v41 = vld [vmem:[%s501_s0 + $0xe0] sm:$0xff]  ;;  %v174_v43 = vmul.f32 %v40_v37, %v40_v37 }
  0x1a   :  { %v90_v54 = vadd.f32 %v89_v50, %v26_v45  ;;  %v222_v56 = vadd.f32 %v221_v52, %v159_v47  ;;  %v42_v45 = vld [vmem:[%s501_s0 + $0xe8] sm:$0xff]  ;;  %v175_v47 = vmul.f32 %v41_v41, %v41_v41 }
  0x1c   :  { %v91_v58 = vadd.f32 %v90_v54, %v27_v49  ;;  %v223_v60 = vadd.f32 %v222_v56, %v160_v51  ;;  %v43_v49 = vld [vmem:[%s501_s0 + $0xf0] sm:$0xff]  ;;  %v176_v51 = vmul.f32 %v42_v45, %v42_v45 }
  0x1e   :  { %v92_v62 = vadd.f32 %v91_v58, %v28_v53  ;;  %v224_v0 = vadd.f32 %v223_v60, %v161_v55  ;;  %v44_v53 = vld [vmem:[%s501_s0 + $0xf8] sm:$0xff]  ;;  %v177_v55 = vmul.f32 %v43_v49, %v43_v49 }
  0x20   :  { %v93_v2 = vadd.f32 %v92_v62, %v29_v57  ;;  %v225_v4 = vadd.f32 %v224_v0, %v162_v59  ;;  %v45_v57 = vld [vmem:[%s501_s0 + $0x100] sm:$0xff]  ;;  %v178_v59 = vmul.f32 %v44_v53, %v44_v53 }
  0x22   :  { %v94_v6 = vadd.f32 %v93_v2, %v30_v61  ;;  %v226_v8 = vadd.f32 %v225_v4, %v163_v63  ;;  %v46_v61 = vld [vmem:[%s501_s0 + $0x108] sm:$0xff]  ;;  %v179_v63 = vmul.f32 %v45_v57, %v45_v57 }
  0x24   :  { %v95_v10 = vadd.f32 %v94_v6, %v31_v1  ;;  %v227_v12 = vadd.f32 %v226_v8, %v164_v3  ;;  %v47_v1 = vld [vmem:[%s501_s0 + $0x110] sm:$0xff]  ;;  %v180_v3 = vmul.f32 %v46_v61, %v46_v61 }
  0x26   :  { %v96_v14 = vadd.f32 %v95_v10, %v32_v5  ;;  %v228_v16 = vadd.f32 %v227_v12, %v165_v7  ;;  %v48_v5 = vld [vmem:[%s501_s0 + $0x118] sm:$0xff]  ;;  %v181_v7 = vmul.f32 %v47_v1, %v47_v1 }
  0x28   :  { %v97_v18 = vadd.f32 %v96_v14, %v33_v9  ;;  %v229_v20 = vadd.f32 %v228_v16, %v166_v11  ;;  %v49_v9 = vld [vmem:[%s501_s0 + $0x120] sm:$0xff]  ;;  %v182_v11 = vmul.f32 %v48_v5, %v48_v5 }
  0x2a   :  { %v98_v22 = vadd.f32 %v97_v18, %v34_v13  ;;  %v230_v24 = vadd.f32 %v229_v20, %v167_v15  ;;  %v50_v13 = vld [vmem:[%s501_s0 + $0x128] sm:$0xff]  ;;  %v183_v15 = vmul.f32 %v49_v9, %v49_v9 }
  0x2c   :  { %v99_v26 = vadd.f32 %v98_v22, %v35_v17  ;;  %v231_v28 = vadd.f32 %v230_v24, %v168_v19  ;;  %v51_v17 = vld [vmem:[%s501_s0 + $0x130] sm:$0xff]  ;;  %v184_v19 = vmul.f32 %v50_v13, %v50_v13 }
  0x2e   :  { %v100_v30 = vadd.f32 %v99_v26, %v36_v21  ;;  %v232_v32 = vadd.f32 %v231_v28, %v169_v23  ;;  %v52_v21 = vld [vmem:[%s501_s0 + $0x138] sm:$0xff]  ;;  %v185_v23 = vmul.f32 %v51_v17, %v51_v17 }
  0x30   :  { %v101_v34 = vadd.f32 %v100_v30, %v37_v25  ;;  %v233_v36 = vadd.f32 %v232_v32, %v170_v27  ;;  %v53_v25 = vld [vmem:[%s501_s0 + $0x140] sm:$0xff]  ;;  %v186_v27 = vmul.f32 %v52_v21, %v52_v21 }
  0x32   :  { %v102_v38 = vadd.f32 %v101_v34, %v38_v29  ;;  %v234_v40 = vadd.f32 %v233_v36, %v171_v31  ;;  %v54_v29 = vld [vmem:[%s501_s0 + $0x148] sm:$0xff]  ;;  %v187_v31 = vmul.f32 %v53_v25, %v53_v25 }
  0x34   :  { %v103_v42 = vadd.f32 %v102_v38, %v39_v33  ;;  %v235_v44 = vadd.f32 %v234_v40, %v172_v35  ;;  %v55_v33 = vld [vmem:[%s501_s0 + $0x150] sm:$0xff]  ;;  %v188_v35 = vmul.f32 %v54_v29, %v54_v29 }
  0x36   :  { %v104_v46 = vadd.f32 %v103_v42, %v40_v37  ;;  %v236_v48 = vadd.f32 %v235_v44, %v173_v39  ;;  %v56_v37 = vld [vmem:[%s501_s0 + $0x158] sm:$0xff]  ;;  %v189_v39 = vmul.f32 %v55_v33, %v55_v33 }
  0x38   :  { %v105_v50 = vadd.f32 %v104_v46, %v41_v41  ;;  %v237_v52 = vadd.f32 %v236_v48, %v174_v43  ;;  %v57_v41 = vld [vmem:[%s501_s0 + $0x160] sm:$0xff]  ;;  %v190_v43 = vmul.f32 %v56_v37, %v56_v37 }
  0x3a   :  { %v106_v54 = vadd.f32 %v105_v50, %v42_v45  ;;  %v238_v56 = vadd.f32 %v237_v52, %v175_v47  ;;  %v58_v45 = vld [vmem:[%s501_s0 + $0x168] sm:$0xff]  ;;  %v191_v47 = vmul.f32 %v57_v41, %v57_v41 }
  0x3c   :  { %v107_v58 = vadd.f32 %v106_v54, %v43_v49  ;;  %v239_v60 = vadd.f32 %v238_v56, %v176_v51  ;;  %v59_v49 = vld [vmem:[%s501_s0 + $0x170] sm:$0xff]  ;;  %v192_v51 = vmul.f32 %v58_v45, %v58_v45 }
  0x3e   :  { %v108_v62 = vadd.f32 %v107_v58, %v44_v53  ;;  %v240_v0 = vadd.f32 %v239_v60, %v177_v55  ;;  %v60_v53 = vld [vmem:[%s501_s0 + $0x178] sm:$0xff]  ;;  %v193_v55 = vmul.f32 %v59_v49, %v59_v49 }
  0x40   :  { %v109_v2 = vadd.f32 %v108_v62, %v45_v57  ;;  %v241_v4 = vadd.f32 %v240_v0, %v178_v59  ;;  %v61_v57 = vld [vmem:[%s501_s0 + $0x180] sm:$0xff]  ;;  %v194_v59 = vmul.f32 %v60_v53, %v60_v53 }
  0x42   :  { %v110_v6 = vadd.f32 %v109_v2, %v46_v61  ;;  %v242_v8 = vadd.f32 %v241_v4, %v179_v63  ;;  %v62_v61 = vld [vmem:[%s501_s0 + $0x188] sm:$0xff]  ;;  %v195_v63 = vmul.f32 %v61_v57, %v61_v57 }
  0x44   :  { %v111_v10 = vadd.f32 %v110_v6, %v47_v1  ;;  %v243_v12 = vadd.f32 %v242_v8, %v180_v3  ;;  %v63_v1 = vld [vmem:[%s501_s0 + $0x190] sm:$0xff]  ;;  %v196_v3 = vmul.f32 %v62_v61, %v62_v61 }
  0x46   :  { %v112_v14 = vadd.f32 %v111_v10, %v48_v5  ;;  %v244_v16 = vadd.f32 %v243_v12, %v181_v7  ;;  %v64_v5 = vld [vmem:[%s501_s0 + $0x198] sm:$0xff]  ;;  %v197_v7 = vmul.f32 %v63_v1, %v63_v1 }
  0x48   :  { %v113_v18 = vadd.f32 %v112_v14, %v49_v9  ;;  %v245_v20 = vadd.f32 %v244_v16, %v182_v11  ;;  %v65_v9 = vld [vmem:[%s501_s0 + $0x1a0] sm:$0xff]  ;;  %v198_v11 = vmul.f32 %v64_v5, %v64_v5 }
  0x4a   :  { %v114_v22 = vadd.f32 %v113_v18, %v50_v13  ;;  %v246_v24 = vadd.f32 %v245_v20, %v183_v15  ;;  %v66_v13 = vld [vmem:[%s501_s0 + $0x1a8] sm:$0xff]  ;;  %v199_v15 = vmul.f32 %v65_v9, %v65_v9 }
  0x4c   :  { %v115_v26 = vadd.f32 %v114_v22, %v51_v17  ;;  %v247_v28 = vadd.f32 %v246_v24, %v184_v19  ;;  %v67_v17 = vld [vmem:[%s501_s0 + $0x1b0] sm:$0xff]  ;;  %v200_v19 = vmul.f32 %v66_v13, %v66_v13 }
  0x4e   :  { %v116_v30 = vadd.f32 %v115_v26, %v52_v21  ;;  %v248_v32 = vadd.f32 %v247_v28, %v185_v23  ;;  %v68_v21 = vld [vmem:[%s501_s0 + $0x1b8] sm:$0xff]  ;;  %v201_v23 = vmul.f32 %v67_v17, %v67_v17 }
  0x50   :  { %v117_v34 = vadd.f32 %v116_v30, %v53_v25  ;;  %v249_v36 = vadd.f32 %v248_v32, %v186_v27  ;;  %v69_v25 = vld [vmem:[%s501_s0 + $0x1c0] sm:$0xff]  ;;  %v202_v27 = vmul.f32 %v68_v21, %v68_v21 }
  0x52   :  { %v118_v38 = vadd.f32 %v117_v34, %v54_v29  ;;  %v250_v40 = vadd.f32 %v249_v36, %v187_v31  ;;  %v70_v29 = vld [vmem:[%s501_s0 + $0x1c8] sm:$0xff]  ;;  %v203_v31 = vmul.f32 %v69_v25, %v69_v25 }
  0x54   :  { %v119_v42 = vadd.f32 %v118_v38, %v55_v33  ;;  %v251_v44 = vadd.f32 %v250_v40, %v188_v35  ;;  %v71_v33 = vld [vmem:[%s501_s0 + $0x1d0] sm:$0xff]  ;;  %v204_v35 = vmul.f32 %v70_v29, %v70_v29 }
  0x56   :  { %v120_v46 = vadd.f32 %v119_v42, %v56_v37  ;;  %v252_v48 = vadd.f32 %v251_v44, %v189_v39  ;;  %v72_v37 = vld [vmem:[%s501_s0 + $0x1d8] sm:$0xff]  ;;  %v205_v39 = vmul.f32 %v71_v33, %v71_v33 }
  0x58   :  { %v121_v50 = vadd.f32 %v120_v46, %v57_v41  ;;  %v253_v52 = vadd.f32 %v252_v48, %v190_v43  ;;  %v73_v41 = vld [vmem:[%s501_s0 + $0x1e0] sm:$0xff]  ;;  %v206_v43 = vmul.f32 %v72_v37, %v72_v37 }
  0x5a   :  { %v122_v54 = vadd.f32 %v121_v50, %v58_v45  ;;  %v254_v56 = vadd.f32 %v253_v52, %v191_v47  ;;  %v74_v45 = vld [vmem:[%s501_s0 + $0x1e8] sm:$0xff]  ;;  %v207_v47 = vmul.f32 %v73_v41, %v73_v41 }
  0x5c   :  { %v123_v58 = vadd.f32 %v122_v54, %v59_v49  ;;  %v255_v60 = vadd.f32 %v254_v56, %v192_v51  ;;  %v75_v49 = vld [vmem:[%s501_s0 + $0x1f0] sm:$0xff]  ;;  %v208_v51 = vmul.f32 %v74_v45, %v74_v45 }
  0x5e   :  { %v124_v62 = vadd.f32 %v123_v58, %v60_v53  ;;  %v256_v0 = vadd.f32 %v255_v60, %v193_v55  ;;  %v76_v53 = vld [vmem:[%s501_s0 + $0x1f8] sm:$0xff]  ;;  %v209_v55 = vmul.f32 %v75_v49, %v75_v49 }
  0x5f   :  { %v210_v58 = vmul.f32 %v76_v53, %v76_v53 }
  0x60   :  { %v125_v2 = vadd.f32 %v124_v62, %v61_v57  ;;  %v257_v4 = vadd.f32 %v256_v0, %v194_v59 }
  0x62   :  { %v126_v6 = vadd.f32 %v125_v2, %v62_v61  ;;  %v258_v8 = vadd.f32 %v257_v4, %v195_v63 }
  0x64   :  { %v127_v10 = vadd.f32 %v126_v6, %v63_v1  ;;  %v259_v12 = vadd.f32 %v258_v8, %v196_v3 }
  0x66   :  { %v128_v14 = vadd.f32 %v127_v10, %v64_v5  ;;  %v260_v16 = vadd.f32 %v259_v12, %v197_v7  ;;  %v77_v10 = vld [vmem:[%s502_s1] sm:$0x3] }
  0x68   :  { %v129_v18 = vadd.f32 %v128_v14, %v65_v9  ;;  %v261_v20 = vadd.f32 %v260_v16, %v198_v11 }
  0x6a   :  { %v130_v22 = vadd.f32 %v129_v18, %v66_v13  ;;  %v262_v24 = vadd.f32 %v261_v20, %v199_v15 }
  0x6c   :  { %v131_v26 = vadd.f32 %v130_v22, %v67_v17  ;;  %v263_v28 = vadd.f32 %v262_v24, %v200_v19 }
  0x6e   :  { %v132_v30 = vadd.f32 %v131_v26, %v68_v21  ;;  %v264_v32 = vadd.f32 %v263_v28, %v201_v23 }
  0x70   :  { %v133_v34 = vadd.f32 %v132_v30, %v69_v25  ;;  %v265_v36 = vadd.f32 %v264_v32, %v202_v27 }
  0x72   :  { %v134_v38 = vadd.f32 %v133_v34, %v70_v29  ;;  %v266_v40 = vadd.f32 %v265_v36, %v203_v31 }
  0x74   :  { %v135_v42 = vadd.f32 %v134_v38, %v71_v33  ;;  %v267_v44 = vadd.f32 %v266_v40, %v204_v35 }
  0x76   :  { %v136_v46 = vadd.f32 %v135_v42, %v72_v37  ;;  %v268_v48 = vadd.f32 %v267_v44, %v205_v39 }
  0x78   :  { %v137_v50 = vadd.f32 %v136_v46, %v73_v41  ;;  %v269_v52 = vadd.f32 %v268_v48, %v206_v43 }
  0x7a   :  { %v138_v54 = vadd.f32 %v137_v50, %v74_v45  ;;  %v270_v56 = vadd.f32 %v269_v52, %v207_v47 }
  0x7c   :  { %v139_v57 = vadd.f32 %v138_v54, %v75_v49  ;;  %v271_v59 = vadd.f32 %v270_v56, %v208_v51 }
  0x7e   :  { %v140_v60 = vadd.f32 %v139_v57, %v76_v53  ;;  %v272_v61 = vadd.f32 %v271_v59, %v209_v55 }
  0x80   :  { %v141_v62 = vrot.slane %v140_v60, 4  ;;  %v273_v63 = vadd.f32 %v272_v61, %v210_v58 }
  0x82   :  { %v142_v0 = vadd.f32 %v141_v62, %v140_v60  ;;  %v274_v1 = vrot.slane %v273_v63, 4 }
  0x84   :  { %v143_v2 = vrot.slane %v142_v0, 2  ;;  %v275_v3 = vadd.f32 %v274_v1, %v273_v63 }
  0x86   :  { %v144_v4 = vadd.f32 %v143_v2, %v142_v0  ;;  %v276_v5 = vrot.slane %v275_v3, 2 }
  0x88   :  { %v145_v6 = vrot.slane %v144_v4, 1  ;;  %v277_v7 = vadd.f32 %v276_v5, %v275_v3 }
  0x8a   :  { %v146_v8 = vadd.f32 %v145_v6, %v144_v4  ;;  %v278_v9 = vrot.slane %v277_v7, 1 }
  0x8c   :  { %v279_v11 = vadd.f32 %v278_v9, %v277_v7 }
  0x8e   :  { %v281_v12 = vsel %vm280_vm0, %v146_v8, %v279_v11 }
  0x8f   :  { %v282_v13 = vadd.f32 %v281_v12, %v77_v10 }
  0x91   :  { %283 = vst [vmem:[%s502_s1] sm:$0x3] %v282_v13 }

// kernel: generator_block.9
= control target key start
LH: loop header
LB: loop body
LE: loop exit
PB: predicated region body
PF: predicated region fallthrough
CT: control target
= control target key end

     0   :  { %s893_s0 = inlined_call_operand.vmem [shape: f32[512,128], index: 0, kind: input, shape index: {}]   ;;  %s894_s1 = inlined_call_operand.vmem [shape: f32[1,128], index: 1, kind: input, shape index: {}]   ;;  %s895_s2 = inlined_call_operand.vmem [shape: f32[1,128], index: 2, kind: input, shape index: {}]   ;;  %s896_s3 = inlined_call_operand.vmem [shape: f32[512,128], index: 3, kind: output, shape index: {}]  }
   0x1   :  { %v14_v0 = vld [vmem:[%s893_s0] sm:$0xff]  ;;  %v15_v3 = vld [vmem:[%s893_s0 + $0x8] sm:$0xff]  ;;  %v16_v6 = vld [vmem:[%s893_s0 + $0x10] sm:$0xff] }
   0x2   :  { %v374_v1 = vld [vmem:[%s894_s1] ss:$0 sm:$0xff]  ;;  %v17_v7 = vld [vmem:[%s893_s0 + $0x18] sm:$0xff]  ;;  %v19_v12 = vld [vmem:[%s893_s0 + $0x28] sm:$0xff] }
   0x3   :  { %v379_v2 = vld [vmem:[%s895_s2] ss:$0 sm:$0xff]  ;;  %v82_v4 = vmul.f32 %v374_v1, %v14_v0  ;;  %v83_v5 = vmul.f32 %v374_v1, %v15_v3  ;;  %v84_v9 = vmul.f32 %v374_v1, %v16_v6  ;;  %v85_v10 = vmul.f32 %v374_v1, %v17_v7  ;;  %v20_v13 = vld [vmem:[%s893_s0 + $0x30] sm:$0xff]  ;;  %v21_v14 = vld [vmem:[%s893_s0 + $0x38] sm:$0xff] }
   0x4   :  { %v18_v8 = vld [vmem:[%s893_s0 + $0x20] sm:$0xff]  ;;  %v87_v17 = vmul.f32 %v374_v1, %v19_v12  ;;  %v88_v18 = vmul.f32 %v374_v1, %v20_v13  ;;  %v89_v22 = vmul.f32 %v374_v1, %v21_v14  ;;  %v23_v24 = vld [vmem:[%s893_s0 + $0x48] sm:$0xff]  ;;  %v24_v29 = vld [vmem:[%s893_s0 + $0x50] sm:$0xff] }
   0x5   :  { %v86_v11 = vmul.f32 %v374_v1, %v18_v8  ;;  %v150_v15 = vadd.f32 %v379_v2, %v82_v4  ;;  %v151_v16 = vadd.f32 %v379_v2, %v83_v5  ;;  %v152_v19 = vadd.f32 %v379_v2, %v84_v9  ;;  %v22_v23 = vld [vmem:[%s893_s0 + $0x40] sm:$0xff]  ;;  %v25_v30 = vld [vmem:[%s893_s0 + $0x58] sm:$0xff]  ;;  %v27_v35 = vld [vmem:[%s893_s0 + $0x68] sm:$0xff] }
   0x6   :  { %v153_v20 = vadd.f32 %v379_v2, %v85_v10  ;;  %v155_v27 = vadd.f32 %v379_v2, %v87_v17  ;;  %v156_v28 = vadd.f32 %v379_v2, %v88_v18  ;;  %v26_v31 = vld [vmem:[%s893_s0 + $0x60] sm:$0xff]  ;;  %v157_v34 = vadd.f32 %v379_v2, %v89_v22  ;;  %v28_v36 = vld [vmem:[%s893_s0 + $0x70] sm:$0xff]  ;;  %v29_v41 = vld [vmem:[%s893_s0 + $0x78] sm:$0xff] }
   0x7   :  { %v154_v21 = vadd.f32 %v379_v2, %v86_v11  ;;  %v214_v25 = vmax.f32 %v150_v15, 0.0  ;;  %v215_v26 = vmax.f32 %v151_v16, 0.0  ;;  %v216_v32 = vmax.f32 %v152_v19, 0.0  ;;  %v30_v54 = vld [vmem:[%s893_s0 + $0x80] sm:$0xff]  ;;  %v31_v55 = vld [vmem:[%s893_s0 + $0x88] sm:$0xff]  ;;  %v32_v58 = vld [vmem:[%s893_s0 + $0x90] sm:$0xff] }
   0x8   :  { %v217_v33 = vmax.f32 %v153_v20, 0.0  ;;  %v219_v38 = vmax.f32 %v155_v27, 0.0  ;;  %v90_v39 = vmul.f32 %v374_v1, %v22_v23  ;;  %v91_v40 = vmul.f32 %v374_v1, %v23_v24  ;;  %v33_v59 = vld [vmem:[%s893_s0 + $0x98] sm:$0xff]  ;;  %v34_v62 = vld [vmem:[%s893_s0 + $0xa0] sm:$0xff]  ;;  %v35_v5 = vld [vmem:[%s893_s0 + $0xa8] sm:$0xff] }
   0x9   :  { %278 = vst [vmem:[%s896_s3] sm:$0xff] %v214_v25  ;;  %v218_v37 = vmax.f32 %v154_v21, 0.0  ;;  %v220_v42 = vmax.f32 %v156_v28, 0.0  ;;  %v92_v43 = vmul.f32 %v374_v1, %v24_v29  ;;  %v93_v44 = vmul.f32 %v374_v1, %v25_v30  ;;  %v36_v10 = vld [vmem:[%s893_s0 + $0xb0] sm:$0xff]  ;;  %v37_v14 = vld [vmem:[%s893_s0 + $0xb8] sm:$0xff]  ;;  %v38_v18 = vld [vmem:[%s893_s0 + $0xc0] sm:$0xff] }
   0xa   :  { %279 = vst [vmem:[%s896_s3 + $0x8] sm:$0xff] %v215_v26  ;;  %v94_v45 = vmul.f32 %v374_v1, %v26_v31  ;;  %v158_v46 = vadd.f32 %v379_v2, %v90_v39  ;;  %v159_v47 = vadd.f32 %v379_v2, %v91_v40  ;;  %v95_v48 = vmul.f32 %v374_v1, %v27_v35  ;;  %v39_v22 = vld [vmem:[%s893_s0 + $0xc8] sm:$0xff]  ;;  %v40_v26 = vld [vmem:[%s893_s0 + $0xd0] sm:$0xff]  ;;  %v41_v30 = vld [vmem:[%s893_s0 + $0xd8] sm:$0xff] }
   0xb   :  { %280 = vst [vmem:[%s896_s3 + $0x10] sm:$0xff] %v216_v32  ;;  %v96_v49 = vmul.f32 %v374_v1, %v28_v36  ;;  %v221_v50 = vmax.f32 %v157_v34, 0.0  ;;  %v160_v51 = vadd.f32 %v379_v2, %v92_v43  ;;  %v161_v52 = vadd.f32 %v379_v2, %v93_v44  ;;  %v42_v34 = vld [vmem:[%s893_s0 + $0xe0] sm:$0xff] }
   0xc   :  { %281 = vst [vmem:[%s896_s3 + $0x18] sm:$0xff] %v217_v33  ;;  %v97_v53 = vmul.f32 %v374_v1, %v29_v41  ;;  %v222_v56 = vmax.f32 %v158_v46, 0.0  ;;  %v162_v57 = vadd.f32 %v379_v2, %v94_v45  ;;  %v223_v60 = vmax.f32 %v159_v47, 0.0  ;;  %v45_v46 = vld [vmem:[%s893_s0 + $0xf8] sm:$0xff] }
   0xd   :  { %282 = vst [vmem:[%s896_s3 + $0x20] sm:$0xff] %v218_v37  ;;  %v163_v61 = vadd.f32 %v379_v2, %v95_v48  ;;  %v224_v63 = vmax.f32 %v160_v51, 0.0  ;;  %v164_v0 = vadd.f32 %v379_v2, %v96_v49  ;;  %v98_v3 = vmul.f32 %v374_v1, %v30_v54  ;;  %v47_v54 = vld [vmem:[%s893_s0 + $0x108] sm:$0xff] }
   0xe   :  { %283 = vst [vmem:[%s896_s3 + $0x28] sm:$0xff] %v219_v38  ;;  %v99_v4 = vmul.f32 %v374_v1, %v31_v55  ;;  %v225_v6 = vmax.f32 %v161_v52, 0.0  ;;  %v165_v7 = vadd.f32 %v379_v2, %v97_v53  ;;  %v100_v8 = vmul.f32 %v374_v1, %v32_v58  ;;  %v43_v38 = vld [vmem:[%s893_s0 + $0xe8] sm:$0xff]  ;;  %v48_v58 = vld [vmem:[%s893_s0 + $0x110] sm:$0xff] }
   0xf   :  { %284 = vst [vmem:[%s896_s3 + $0x30] sm:$0xff] %v220_v42  ;;  %v101_v9 = vmul.f32 %v374_v1, %v33_v59  ;;  %v226_v11 = vmax.f32 %v162_v57, 0.0  ;;  %v166_v12 = vadd.f32 %v379_v2, %v98_v3  ;;  %v102_v13 = vmul.f32 %v374_v1, %v34_v62  ;;  %v44_v42 = vld [vmem:[%s893_s0 + $0xf0] sm:$0xff]  ;;  %v49_v62 = vld [vmem:[%s893_s0 + $0x118] sm:$0xff] }
  0x10   :  { %285 = vst [vmem:[%s896_s3 + $0x38] sm:$0xff] %v221_v50  ;;  %v227_v15 = vmax.f32 %v163_v61, 0.0  ;;  %v167_v16 = vadd.f32 %v379_v2, %v99_v4  ;;  %v103_v17 = vmul.f32 %v374_v1, %v35_v5  ;;  %v228_v19 = vmax.f32 %v164_v0, 0.0  ;;  %v46_v50 = vld [vmem:[%s893_s0 + $0x100] sm:$0xff] }
  0x11   :  { %286 = vst [vmem:[%s896_s3 + $0x40] sm:$0xff] %v222_v56  ;;  %v168_v20 = vadd.f32 %v379_v2, %v100_v8  ;;  %v104_v21 = vmul.f32 %v374_v1, %v36_v10  ;;  %v229_v23 = vmax.f32 %v165_v7, 0.0  ;;  %v169_v24 = vadd.f32 %v379_v2, %v101_v9  ;;  %v50_v4 = vld [vmem:[%s893_s0 + $0x120] sm:$0xff]  ;;  %v51_v8 = vld [vmem:[%s893_s0 + $0x128] sm:$0xff] }
  0x12   :  { %287 = vst [vmem:[%s896_s3 + $0x48] sm:$0xff] %v223_v60  ;;  %v105_v25 = vmul.f32 %v374_v1, %v37_v14  ;;  %v230_v27 = vmax.f32 %v166_v12, 0.0  ;;  %v170_v28 = vadd.f32 %v379_v2, %v102_v13  ;;  %v106_v29 = vmul.f32 %v374_v1, %v38_v18  ;;  %v52_v12 = vld [vmem:[%s893_s0 + $0x130] sm:$0xff] }
  0x13   :  { %288 = vst [vmem:[%s896_s3 + $0x50] sm:$0xff] %v224_v63  ;;  %v231_v31 = vmax.f32 %v167_v16, 0.0  ;;  %v171_v32 = vadd.f32 %v379_v2, %v103_v17  ;;  %v107_v33 = vmul.f32 %v374_v1, %v39_v22  ;;  %v232_v35 = vmax.f32 %v168_v20, 0.0  ;;  %v53_v16 = vld [vmem:[%s893_s0 + $0x138] sm:$0xff]  ;;  %v54_v20 = vld [vmem:[%s893_s0 + $0x140] sm:$0xff] }
  0x14   :  { %289 = vst [vmem:[%s896_s3 + $0x58] sm:$0xff] %v225_v6  ;;  %v172_v36 = vadd.f32 %v379_v2, %v104_v21  ;;  %v108_v37 = vmul.f32 %v374_v1, %v40_v26  ;;  %v233_v39 = vmax.f32 %v169_v24, 0.0  ;;  %v173_v40 = vadd.f32 %v379_v2, %v105_v25  ;;  %v55_v24 = vld [vmem:[%s893_s0 + $0x148] sm:$0xff] }
  0x15   :  { %290 = vst [vmem:[%s896_s3 + $0x60] sm:$0xff] %v226_v11  ;;  %v109_v41 = vmul.f32 %v374_v1, %v41_v30  ;;  %v234_v43 = vmax.f32 %v170_v28, 0.0  ;;  %v174_v44 = vadd.f32 %v379_v2, %v106_v29  ;;  %v110_v45 = vmul.f32 %v374_v1, %v42_v34  ;;  %v56_v28 = vld [vmem:[%s893_s0 + $0x150] sm:$0xff] }
  0x16   :  { %291 = vst [vmem:[%s896_s3 + $0x68] sm:$0xff] %v227_v15  ;;  %v235_v47 = vmax.f32 %v171_v32, 0.0  ;;  %v175_v48 = vadd.f32 %v379_v2, %v107_v33  ;;  %v111_v49 = vmul.f32 %v374_v1, %v43_v38  ;;  %v236_v51 = vmax.f32 %v172_v36, 0.0  ;;  %v57_v32 = vld [vmem:[%s893_s0 + $0x158] sm:$0xff]  ;;  %v58_v36 = vld [vmem:[%s893_s0 + $0x160] sm:$0xff] }
  0x17   :  { %292 = vst [vmem:[%s896_s3 + $0x70] sm:$0xff] %v228_v19  ;;  %v176_v52 = vadd.f32 %v379_v2, %v108_v37  ;;  %v112_v53 = vmul.f32 %v374_v1, %v44_v42  ;;  %v237_v55 = vmax.f32 %v173_v40, 0.0  ;;  %v177_v56 = vadd.f32 %v379_v2, %v109_v41  ;;  %v59_v40 = vld [vmem:[%s893_s0 + $0x168] sm:$0xff] }
  0x18   :  { %293 = vst [vmem:[%s896_s3 + $0x78] sm:$0xff] %v229_v23  ;;  %v113_v57 = vmul.f32 %v374_v1, %v45_v46  ;;  %v238_v59 = vmax.f32 %v174_v44, 0.0  ;;  %v178_v60 = vadd.f32 %v379_v2, %v110_v45  ;;  %v114_v61 = vmul.f32 %v374_v1, %v46_v50  ;;  %v60_v44 = vld [vmem:[%s893_s0 + $0x170] sm:$0xff] }
  0x19   :  { %294 = vst [vmem:[%s896_s3 + $0x80] sm:$0xff] %v230_v27  ;;  %v239_v63 = vmax.f32 %v175_v48, 0.0  ;;  %v179_v0 = vadd.f32 %v379_v2, %v111_v49  ;;  %v115_v3 = vmul.f32 %v374_v1, %v47_v54  ;;  %v240_v5 = vmax.f32 %v176_v52, 0.0  ;;  %v61_v48 = vld [vmem:[%s893_s0 + $0x178] sm:$0xff]  ;;  %v62_v52 = vld [vmem:[%s893_s0 + $0x180] sm:$0xff] }
  0x1a   :  { %295 = vst [vmem:[%s896_s3 + $0x88] sm:$0xff] %v231_v31  ;;  %v180_v6 = vadd.f32 %v379_v2, %v112_v53  ;;  %v116_v7 = vmul.f32 %v374_v1, %v48_v58  ;;  %v241_v9 = vmax.f32 %v177_v56, 0.0  ;;  %v181_v10 = vadd.f32 %v379_v2, %v113_v57  ;;  %v63_v56 = vld [vmem:[%s893_s0 + $0x188] sm:$0xff] }
  0x1b   :  { %296 = vst [vmem:[%s896_s3 + $0x90] sm:$0xff] %v232_v35  ;;  %v117_v11 = vmul.f32 %v374_v1, %v49_v62  ;;  %v242_v13 = vmax.f32 %v178_v60, 0.0  ;;  %v182_v14 = vadd.f32 %v379_v2, %v114_v61  ;;  %v118_v15 = vmul.f32 %v374_v1, %v50_v4  ;;  %v64_v60 = vld [vmem:[%s893_s0 + $0x190] sm:$0xff] }
  0x1c   :  { %297 = vst [vmem:[%s896_s3 + $0x98] sm:$0xff] %v233_v39  ;;  %v243_v17 = vmax.f32 %v179_v0, 0.0  ;;  %v183_v18 = vadd.f32 %v379_v2, %v115_v3  ;;  %v119_v19 = vmul.f32 %v374_v1, %v51_v8  ;;  %v244_v21 = vmax.f32 %v180_v6, 0.0  ;;  %v65_v0 = vld [vmem:[%s893_s0 + $0x198] sm:$0xff] }
  0x1d   :  { %298 = vst [vmem:[%s896_s3 + $0xa0] sm:$0xff] %v234_v43  ;;  %v184_v22 = vadd.f32 %v379_v2, %v116_v7  ;;  %v120_v23 = vmul.f32 %v374_v1, %v52_v12  ;;  %v245_v25 = vmax.f32 %v181_v10, 0.0  ;;  %v185_v26 = vadd.f32 %v379_v2, %v117_v11  ;;  %v77_v3 = vld [vmem:[%s893_s0 + $0x1f8] sm:$0xff]  ;;  %v66_v7 = vld [vmem:[%s893_s0 + $0x1a0] sm:$0xff]  ;;  %v67_v11 = vld [vmem:[%s893_s0 + $0x1a8] sm:$0xff] }
  0x1e   :  { %299 = vst [vmem:[%s896_s3 + $0xa8] sm:$0xff] %v235_v47  ;;  %v121_v27 = vmul.f32 %v374_v1, %v53_v16  ;;  %v246_v29 = vmax.f32 %v182_v14, 0.0  ;;  %v186_v30 = vadd.f32 %v379_v2, %v118_v15  ;;  %v122_v31 = vmul.f32 %v374_v1, %v54_v20  ;;  %v68_v15 = vld [vmem:[%s893_s0 + $0x1b0] sm:$0xff]  ;;  %v69_v20 = vld [vmem:[%s893_s0 + $0x1b8] sm:$0xff] }
  0x1f   :  { %300 = vst [vmem:[%s896_s3 + $0xb0] sm:$0xff] %v236_v51  ;;  %v247_v33 = vmax.f32 %v183_v18, 0.0  ;;  %v187_v34 = vadd.f32 %v379_v2, %v119_v19  ;;  %v123_v35 = vmul.f32 %v374_v1, %v55_v24  ;;  %v248_v37 = vmax.f32 %v184_v22, 0.0  ;;  %v70_v24 = vld [vmem:[%s893_s0 + $0x1c0] sm:$0xff] }
  0x20   :  { %301 = vst [vmem:[%s896_s3 + $0xb8] sm:$0xff] %v237_v55  ;;  %v188_v38 = vadd.f32 %v379_v2, %v120_v23  ;;  %v124_v39 = vmul.f32 %v374_v1, %v56_v28  ;;  %v249_v41 = vmax.f32 %v185_v26, 0.0  ;;  %v189_v42 = vadd.f32 %v379_v2, %v121_v27 }
  0x21   :  { %302 = vst [vmem:[%s896_s3 + $0xc0] sm:$0xff] %v238_v59  ;;  %v125_v43 = vmul.f32 %v374_v1, %v57_v32  ;;  %v250_v45 = vmax.f32 %v186_v30, 0.0  ;;  %v190_v46 = vadd.f32 %v379_v2, %v122_v31  ;;  %v126_v47 = vmul.f32 %v374_v1, %v58_v36 }
  0x22   :  { %303 = vst [vmem:[%s896_s3 + $0xc8] sm:$0xff] %v239_v63  ;;  %v251_v49 = vmax.f32 %v187_v34, 0.0  ;;  %v191_v50 = vadd.f32 %v379_v2, %v123_v35  ;;  %v127_v51 = vmul.f32 %v374_v1, %v59_v40  ;;  %v252_v53 = vmax.f32 %v188_v38, 0.0 }
  0x23   :  { %304 = vst [vmem:[%s896_s3 + $0xd0] sm:$0xff] %v240_v5  ;;  %v192_v54 = vadd.f32 %v379_v2, %v124_v39  ;;  %v128_v55 = vmul.f32 %v374_v1, %v60_v44  ;;  %v253_v57 = vmax.f32 %v189_v42, 0.0  ;;  %v193_v58 = vadd.f32 %v379_v2, %v125_v43 }
  0x24   :  { %305 = vst [vmem:[%s896_s3 + $0xd8] sm:$0xff] %v241_v9  ;;  %v129_v59 = vmul.f32 %v374_v1, %v61_v48  ;;  %v254_v61 = vmax.f32 %v190_v46, 0.0  ;;  %v194_v62 = vadd.f32 %v379_v2, %v126_v47  ;;  %v130_v63 = vmul.f32 %v374_v1, %v62_v52 }
  0x25   :  { %306 = vst [vmem:[%s896_s3 + $0xe0] sm:$0xff] %v242_v13  ;;  %v255_v4 = vmax.f32 %v191_v50, 0.0  ;;  %v195_v5 = vadd.f32 %v379_v2, %v127_v51  ;;  %v131_v6 = vmul.f32 %v374_v1, %v63_v56  ;;  %v256_v8 = vmax.f32 %v192_v54, 0.0 }
  0x26   :  { %307 = vst [vmem:[%s896_s3 + $0xe8] sm:$0xff] %v243_v17  ;;  %v196_v9 = vadd.f32 %v379_v2, %v128_v55  ;;  %v132_v10 = vmul.f32 %v374_v1, %v64_v60  ;;  %v257_v12 = vmax.f32 %v193_v58, 0.0  ;;  %v197_v13 = vadd.f32 %v379_v2, %v129_v59 }
  0x27   :  { %308 = vst [vmem:[%s896_s3 + $0xf0] sm:$0xff] %v244_v21  ;;  %v133_v14 = vmul.f32 %v374_v1, %v65_v0  ;;  %v145_v16 = vmul.f32 %v374_v1, %v77_v3  ;;  %v258_v17 = vmax.f32 %v194_v62, 0.0  ;;  %v198_v18 = vadd.f32 %v379_v2, %v130_v63 }
  0x28   :  { %309 = vst [vmem:[%s896_s3 + $0xf8] sm:$0xff] %v245_v25  ;;  %v134_v19 = vmul.f32 %v374_v1, %v66_v7  ;;  %v259_v21 = vmax.f32 %v195_v5, 0.0  ;;  %v199_v22 = vadd.f32 %v379_v2, %v131_v6  ;;  %v135_v23 = vmul.f32 %v374_v1, %v67_v11 }
  0x29   :  { %310 = vst [vmem:[%s896_s3 + $0x100] sm:$0xff] %v246_v29  ;;  %v784_v25 = vadd.f32 %v379_v2, %v145_v16  ;;  %v260_v26 = vmax.f32 %v196_v9, 0.0  ;;  %v200_v27 = vadd.f32 %v379_v2, %v132_v10  ;;  %v136_v28 = vmul.f32 %v374_v1, %v68_v15  ;;  %v71_v29 = vld [vmem:[%s893_s0 + $0x1c8] sm:$0xff] }
  0x2a   :  { %311 = vst [vmem:[%s896_s3 + $0x108] sm:$0xff] %v247_v33  ;;  %v261_v30 = vmax.f32 %v197_v13, 0.0  ;;  %v201_v31 = vadd.f32 %v379_v2, %v133_v14  ;;  %v137_v32 = vmul.f32 %v374_v1, %v69_v20  ;;  %v72_v33 = vld [vmem:[%s893_s0 + $0x1d0] sm:$0xff]  ;;  %v262_v34 = vmax.f32 %v198_v18, 0.0 }
  0x2b   :  { %312 = vst [vmem:[%s896_s3 + $0x110] sm:$0xff] %v248_v37  ;;  %v202_v35 = vadd.f32 %v379_v2, %v134_v19  ;;  %v138_v36 = vmul.f32 %v374_v1, %v70_v24  ;;  %v73_v37 = vld [vmem:[%s893_s0 + $0x1d8] sm:$0xff]  ;;  %v263_v38 = vmax.f32 %v199_v22, 0.0  ;;  %v203_v39 = vadd.f32 %v379_v2, %v135_v23 }
  0x2c   :  { %313 = vst [vmem:[%s896_s3 + $0x118] sm:$0xff] %v249_v41  ;;  %v139_v40 = vmul.f32 %v374_v1, %v71_v29  ;;  %v74_v41 = vld [vmem:[%s893_s0 + $0x1e0] sm:$0xff]  ;;  %v264_v42 = vmax.f32 %v200_v27, 0.0  ;;  %v204_v43 = vadd.f32 %v379_v2, %v136_v28  ;;  %v140_v44 = vmul.f32 %v374_v1, %v72_v33 }
  0x2d   :  { %314 = vst [vmem:[%s896_s3 + $0x120] sm:$0xff] %v250_v45  ;;  %v75_v45 = vld [vmem:[%s893_s0 + $0x1e8] sm:$0xff]  ;;  %v265_v46 = vmax.f32 %v201_v31, 0.0  ;;  %v205_v47 = vadd.f32 %v379_v2, %v137_v32  ;;  %v141_v48 = vmul.f32 %v374_v1, %v73_v37  ;;  %v266_v50 = vmax.f32 %v202_v35, 0.0 }
  0x2e   :  { %315 = vst [vmem:[%s896_s3 + $0x128] sm:$0xff] %v251_v49  ;;  %v76_v49 = vld [vmem:[%s893_s0 + $0x1f0] sm:$0xff]  ;;  %v206_v51 = vadd.f32 %v379_v2, %v138_v36  ;;  %v142_v52 = vmul.f32 %v374_v1, %v74_v41  ;;  %v207_v54 = vadd.f32 %v379_v2, %v139_v40  ;;  %v143_v55 = vmul.f32 %v374_v1, %v75_v45 }
  0x2f   :  { %316 = vst [vmem:[%s896_s3 + $0x130] sm:$0xff] %v252_v53  ;;  %v267_v53 = vmax.f32 %v203_v39, 0.0  ;;  %v268_v56 = vmax.f32 %v204_v43, 0.0  ;;  %v144_v58 = vmul.f32 %v374_v1, %v76_v49  ;;  %v269_v59 = vmax.f32 %v205_v47, 0.0 }
  0x30   :  { %317 = vst [vmem:[%s896_s3 + $0x138] sm:$0xff] %v253_v57  ;;  %v208_v57 = vadd.f32 %v379_v2, %v140_v44  ;;  %v209_v60 = vadd.f32 %v379_v2, %v141_v48  ;;  %v210_v62 = vadd.f32 %v379_v2, %v142_v52  ;;  %v271_v63 = vmax.f32 %v207_v54, 0.0 }
  0x31   :  { %318 = vst [vmem:[%s896_s3 + $0x140] sm:$0xff] %v254_v61  ;;  %v270_v61 = vmax.f32 %v206_v51, 0.0  ;;  %v211_v1 = vadd.f32 %v379_v2, %v143_v55  ;;  %v212_v3 = vadd.f32 %v379_v2, %v144_v58  ;;  %v277_v7 = vmax.f32 %v784_v25, 0.0 }
  0x32   :  { %319 = vst [vmem:[%s896_s3 + $0x148] sm:$0xff] %v255_v4  ;;  %v272_v0 = vmax.f32 %v208_v57, 0.0  ;;  %v273_v4 = vmax.f32 %v209_v60, 0.0  ;;  %v274_v5 = vmax.f32 %v210_v62, 0.0 }
  0x33   :  { %320 = vst [vmem:[%s896_s3 + $0x150] sm:$0xff] %v256_v8  ;;  %v275_v6 = vmax.f32 %v211_v1, 0.0  ;;  %v276_v2 = vmax.f32 %v212_v3, 0.0 }
  0x34   :  { %321 = vst [vmem:[%s896_s3 + $0x158] sm:$0xff] %v257_v12 }
  0x35   :  { %322 = vst [vmem:[%s896_s3 + $0x160] sm:$0xff] %v258_v17 }
  0x36   :  { %323 = vst [vmem:[%s896_s3 + $0x168] sm:$0xff] %v259_v21 }
  0x37   :  { %324 = vst [vmem:[%s896_s3 + $0x170] sm:$0xff] %v260_v26 }
  0x38   :  { %325 = vst [vmem:[%s896_s3 + $0x178] sm:$0xff] %v261_v30 }
  0x39   :  { %326 = vst [vmem:[%s896_s3 + $0x180] sm:$0xff] %v262_v34 }
  0x3a   :  { %327 = vst [vmem:[%s896_s3 + $0x188] sm:$0xff] %v263_v38 }
  0x3b   :  { %328 = vst [vmem:[%s896_s3 + $0x190] sm:$0xff] %v264_v42 }
  0x3c   :  { %329 = vst [vmem:[%s896_s3 + $0x198] sm:$0xff] %v265_v46 }
  0x3d   :  { %330 = vst [vmem:[%s896_s3 + $0x1a0] sm:$0xff] %v266_v50 }
  0x3e   :  { %331 = vst [vmem:[%s896_s3 + $0x1a8] sm:$0xff] %v267_v53 }
  0x3f   :  { %332 = vst [vmem:[%s896_s3 + $0x1b0] sm:$0xff] %v268_v56 }
  0x40   :  { %333 = vst [vmem:[%s896_s3 + $0x1b8] sm:$0xff] %v269_v59 }
  0x41   :  { %334 = vst [vmem:[%s896_s3 + $0x1c0] sm:$0xff] %v270_v61 }
  0x42   :  { %335 = vst [vmem:[%s896_s3 + $0x1c8] sm:$0xff] %v271_v63 }
  0x43   :  { %336 = vst [vmem:[%s896_s3 + $0x1d0] sm:$0xff] %v272_v0 }
  0x44   :  { %337 = vst [vmem:[%s896_s3 + $0x1d8] sm:$0xff] %v273_v4 }
  0x45   :  { %338 = vst [vmem:[%s896_s3 + $0x1e0] sm:$0xff] %v274_v5 }
  0x46   :  { %339 = vst [vmem:[%s896_s3 + $0x1e8] sm:$0xff] %v275_v6 }
  0x47   :  { %340 = vst [vmem:[%s896_s3 + $0x1f0] sm:$0xff] %v276_v2 }
  0x48   :  { %341 = vst [vmem:[%s896_s3 + $0x1f8] sm:$0xff] %v277_v7 }

// kernel: generator_block.11
= control target key start
LH: loop header
LB: loop body
LE: loop exit
PB: predicated region body
PF: predicated region fallthrough
CT: control target
= control target key end

     0   :  { %s445_s6 = smov 0   ;;  %s534_s0 = inlined_call_operand.vmem [shape: f32[2048,128], index: 0, kind: input, shape index: {}]   ;;  %s535_s1 = inlined_call_operand.vmem [shape: f32[2,128], index: 1, kind: output, shape index: {}]  }
   0x1 LB: > { %s408_s7 = sadd.s32 4294967295, %s432_s6   ;;  %p411_p0 = scmp.ge.s32.totalorder %s432_s6, 1  ;;  %s432_s6 = sphi %s445_s6, %s11_s6  }
   0x2   : > { %p83_p1 = scmp.lt.s32.totalorder %s432_s6, 5 }
   0x4   : > { %p84_p2 = pnand %p411_p0, %p83_p1 }
   0x5   : > { %s412_s8 = sshll.u32 (!%p84_p2), %s408_s7, 6  ;;  %p414_p4 = scmp.ne.s32.totalorder (!%p84_p2), %s408_s7, 0 }
   0x6   : > { %87 = sbr.rel (%p84_p2) target bundleno = 163 (0xa3), region = 24  ;;  %p99_p3 = scmp.lt.s32.totalorder (!%p84_p2), %s412_s8, 255 }
   0xb   : > { %s537_s8 = smov (!%p99_p3, %s412_s8), 255  ;;  %107 = sbr.rel (%p414_p4) target bundleno = 18 (0x12), region = 28 }
   0xc   : > { %s413_s9 = sshll.u32 %s537_s8, 3 }
   0xd   : > { %s456_s12 = scalar_lea.vmem %s534_s0, %s413_s9 }
  0x10   : > { %v434_v0 = vmov 0.0  }
  0x11   : > { %108 = vst [vmem:[%s535_s1] sm:$0x3] %v434_v0 }
  0x12 PF: > { %v109_v1 = vld [vmem:[%s456_s12] sm:$0xff]  ;;  %v110_v2 = vld [vmem:[%s456_s12 + $0x8] sm:$0xff]  ;;  %v111_v3 = vld [vmem:[%s456_s12 + $0x10] sm:$0xff]  ;;  %vm376_vm0 = vcmask 1040384  }
  0x13   : > { %v112_v4 = vld [vmem:[%s456_s12 + $0x18] sm:$0xff]  ;;  %v174_v5 = vadd.f32 %v110_v2, %v109_v1  ;;  %v243_v6 = vmul.f32 %v109_v1, %v109_v1  ;;  %v244_v7 = vmul.f32 %v110_v2, %v110_v2  ;;  %v245_v8 = vmul.f32 %v111_v3, %v111_v3  ;;  %v113_v9 = vld [vmem:[%s456_s12 + $0x20] sm:$0xff]  ;;  %v114_v13 = vld [vmem:[%s456_s12 + $0x28] sm:$0xff] }
  0x14   : > { %v246_v11 = vmul.f32 %v112_v4, %v112_v4  ;;  %v247_v15 = vmul.f32 %v113_v9, %v113_v9  ;;  %v115_v17 = vld [vmem:[%s456_s12 + $0x30] sm:$0xff]  ;;  %v248_v19 = vmul.f32 %v114_v13, %v114_v13  ;;  %v116_v21 = vld [vmem:[%s456_s12 + $0x38] sm:$0xff]  ;;  %v117_v25 = vld [vmem:[%s456_s12 + $0x40] sm:$0xff] }
  0x15   : > { %v175_v10 = vadd.f32 %v174_v5, %v111_v3  ;;  %v307_v12 = vadd.f32 %v244_v7, %v243_v6  ;;  %v249_v23 = vmul.f32 %v115_v17, %v115_v17  ;;  %v250_v27 = vmul.f32 %v116_v21, %v116_v21  ;;  %v118_v29 = vld [vmem:[%s456_s12 + $0x48] sm:$0xff]  ;;  %v119_v33 = vld [vmem:[%s456_s12 + $0x50] sm:$0xff]  ;;  %v120_v37 = vld [vmem:[%s456_s12 + $0x58] sm:$0xff] }
  0x16   : > { %v251_v31 = vmul.f32 %v117_v25, %v117_v25  ;;  %v252_v35 = vmul.f32 %v118_v29, %v118_v29  ;;  %v253_v39 = vmul.f32 %v119_v33, %v119_v33  ;;  %v121_v41 = vld [vmem:[%s456_s12 + $0x60] sm:$0xff]  ;;  %v254_v43 = vmul.f32 %v120_v37, %v120_v37  ;;  %v122_v45 = vld [vmem:[%s456_s12 + $0x68] sm:$0xff]  ;;  %v123_v49 = vld [vmem:[%s456_s12 + $0x70] sm:$0xff] }
  0x17   : > { %v176_v14 = vadd.f32 %v175_v10, %v112_v4  ;;  %v308_v16 = vadd.f32 %v307_v12, %v245_v8  ;;  %v255_v47 = vmul.f32 %v121_v41, %v121_v41  ;;  %v256_v51 = vmul.f32 %v122_v45, %v122_v45  ;;  %v124_v53 = vld [vmem:[%s456_s12 + $0x78] sm:$0xff]  ;;  %v125_v57 = vld [vmem:[%s456_s12 + $0x80] sm:$0xff]  ;;  %v126_v61 = vld [vmem:[%s456_s12 + $0x88] sm:$0xff] }
  0x18   : > { %v257_v55 = vmul.f32 %v123_v49, %v123_v49  ;;  %v258_v59 = vmul.f32 %v124_v53, %v124_v53  ;;  %v259_v63 = vmul.f32 %v125_v57, %v125_v57  ;;  %v127_v1 = vld [vmem:[%s456_s12 + $0x90] sm:$0xff]  ;;  %v260_v3 = vmul.f32 %v126_v61, %v126_v61  ;;  %v128_v5 = vld [vmem:[%s456_s12 + $0x98] sm:$0xff] }
  0x19   : > { %v177_v18 = vadd.f32 %v176_v14, %v113_v9  ;;  %v309_v20 = vadd.f32 %v308_v16, %v246_v11  ;;  %v261_v7 = vmul.f32 %v127_v1, %v127_v1  ;;  %v129_v9 = vld [vmem:[%s456_s12 + $0xa0] sm:$0xff]  ;;  %v262_v11 = vmul.f32 %v128_v5, %v128_v5 }
  0x1b   : > { %v178_v22 = vadd.f32 %v177_v18, %v114_v13  ;;  %v310_v24 = vadd.f32 %v309_v20, %v247_v15  ;;  %v130_v13 = vld [vmem:[%s456_s12 + $0xa8] sm:$0xff]  ;;  %v263_v15 = vmul.f32 %v129_v9, %v129_v9 }
  0x1d   : > { %v179_v26 = vadd.f32 %v178_v22, %v115_v17  ;;  %v311_v28 = vadd.f32 %v310_v24, %v248_v19  ;;  %v131_v17 = vld [vmem:[%s456_s12 + $0xb0] sm:$0xff]  ;;  %v264_v19 = vmul.f32 %v130_v13, %v130_v13 }
  0x1f   : > { %v180_v30 = vadd.f32 %v179_v26, %v116_v21  ;;  %v312_v32 = vadd.f32 %v311_v28, %v249_v23  ;;  %v132_v21 = vld [vmem:[%s456_s12 + $0xb8] sm:$0xff]  ;;  %v265_v23 = vmul.f32 %v131_v17, %v131_v17 }
  0x21   : > { %v181_v34 = vadd.f32 %v180_v30, %v117_v25  ;;  %v313_v36 = vadd.f32 %v312_v32, %v250_v27  ;;  %v133_v25 = vld [vmem:[%s456_s12 + $0xc0] sm:$0xff]  ;;  %v266_v27 = vmul.f32 %v132_v21, %v132_v21 }
  0x23   : > { %v182_v38 = vadd.f32 %v181_v34, %v118_v29  ;;  %v314_v40 = vadd.f32 %v313_v36, %v251_v31  ;;  %v134_v29 = vld [vmem:[%s456_s12 + $0xc8] sm:$0xff]  ;;  %v267_v31 = vmul.f32 %v133_v25, %v133_v25 }
  0x25   : > { %v183_v42 = vadd.f32 %v182_v38, %v119_v33  ;;  %v315_v44 = vadd.f32 %v314_v40, %v252_v35  ;;  %v135_v33 = vld [vmem:[%s456_s12 + $0xd0] sm:$0xff]  ;;  %v268_v35 = vmul.f32 %v134_v29, %v134_v29 }
  0x27   : > { %v184_v46 = vadd.f32 %v183_v42, %v120_v37  ;;  %v316_v48 = vadd.f32 %v315_v44, %v253_v39  ;;  %v136_v37 = vld [vmem:[%s456_s12 + $0xd8] sm:$0xff]  ;;  %v269_v39 = vmul.f32 %v135_v33, %v135_v33 }
  0x29   : > { %v185_v50 = vadd.f32 %v184_v46, %v121_v41  ;;  %v317_v52 = vadd.f32 %v316_v48, %v254_v43  ;;  %v137_v41 = vld [vmem:[%s456_s12 + $0xe0] sm:$0xff]  ;;  %v270_v43 = vmul.f32 %v136_v37, %v136_v37 }
  0x2b   : > { %v186_v54 = vadd.f32 %v185_v50, %v122_v45  ;;  %v318_v56 = vadd.f32 %v317_v52, %v255_v47  ;;  %v138_v45 = vld [vmem:[%s456_s12 + $0xe8] sm:$0xff]  ;;  %v271_v47 = vmul.f32 %v137_v41, %v137_v41 }
  0x2d   : > { %v187_v58 = vadd.f32 %v186_v54, %v123_v49  ;;  %v319_v60 = vadd.f32 %v318_v56, %v256_v51  ;;  %v139_v49 = vld [vmem:[%s456_s12 + $0xf0] sm:$0xff]  ;;  %v272_v51 = vmul.f32 %v138_v45, %v138_v45 }
  0x2f   : > { %v188_v62 = vadd.f32 %v187_v58, %v124_v53  ;;  %v320_v0 = vadd.f32 %v319_v60, %v257_v55  ;;  %v140_v53 = vld [vmem:[%s456_s12 + $0xf8] sm:$0xff]  ;;  %v273_v55 = vmul.f32 %v139_v49, %v139_v49 }
  0x31   : > { %v189_v2 = vadd.f32 %v188_v62, %v125_v57  ;;  %v321_v4 = vadd.f32 %v320_v0, %v258_v59  ;;  %v141_v57 = vld [vmem:[%s456_s12 + $0x100] sm:$0xff]  ;;  %v274_v59 = vmul.f32 %v140_v53, %v140_v53 }
  0x33   : > { %v190_v6 = vadd.f32 %v189_v2, %v126_v61  ;;  %v322_v8 = vadd.f32 %v321_v4, %v259_v63  ;;  %v142_v61 = vld [vmem:[%s456_s12 + $0x108] sm:$0xff]  ;;  %v275_v63 = vmul.f32 %v141_v57, %v141_v57 }
  0x35   : > { %v191_v10 = vadd.f32 %v190_v6, %v127_v1  ;;  %v323_v12 = vadd.f32 %v322_v8, %v260_v3  ;;  %v143_v1 = vld [vmem:[%s456_s12 + $0x110] sm:$0xff]  ;;  %v276_v3 = vmul.f32 %v142_v61, %v142_v61 }
  0x37   : > { %v192_v14 = vadd.f32 %v191_v10, %v128_v5  ;;  %v324_v16 = vadd.f32 %v323_v12, %v261_v7  ;;  %v144_v5 = vld [vmem:[%s456_s12 + $0x118] sm:$0xff]  ;;  %v277_v7 = vmul.f32 %v143_v1, %v143_v1 }
  0x39   : > { %v193_v18 = vadd.f32 %v192_v14, %v129_v9  ;;  %v325_v20 = vadd.f32 %v324_v16, %v262_v11  ;;  %v145_v9 = vld [vmem:[%s456_s12 + $0x120] sm:$0xff]  ;;  %v278_v11 = vmul.f32 %v144_v5, %v144_v5 }
  0x3b   : > { %v194_v22 = vadd.f32 %v193_v18, %v130_v13  ;;  %v326_v24 = vadd.f32 %v325_v20, %v263_v15  ;;  %v146_v13 = vld [vmem:[%s456_s12 + $0x128] sm:$0xff]  ;;  %v279_v15 = vmul.f32 %v145_v9, %v145_v9 }
  0x3d   : > { %v195_v26 = vadd.f32 %v194_v22, %v131_v17  ;;  %v327_v28 = vadd.f32 %v326_v24, %v264_v19  ;;  %v147_v17 = vld [vmem:[%s456_s12 + $0x130] sm:$0xff]  ;;  %v280_v19 = vmul.f32 %v146_v13, %v146_v13 }
  0x3f   : > { %v196_v30 = vadd.f32 %v195_v26, %v132_v21  ;;  %v328_v32 = vadd.f32 %v327_v28, %v265_v23  ;;  %v148_v21 = vld [vmem:[%s456_s12 + $0x138] sm:$0xff]  ;;  %v281_v23 = vmul.f32 %v147_v17, %v147_v17 }
  0x41   : > { %v197_v34 = vadd.f32 %v196_v30, %v133_v25  ;;  %v329_v36 = vadd.f32 %v328_v32, %v266_v27  ;;  %v149_v25 = vld [vmem:[%s456_s12 + $0x140] sm:$0xff]  ;;  %v282_v27 = vmul.f32 %v148_v21, %v148_v21 }
  0x43   : > { %v198_v38 = vadd.f32 %v197_v34, %v134_v29  ;;  %v330_v40 = vadd.f32 %v329_v36, %v267_v31  ;;  %v150_v29 = vld [vmem:[%s456_s12 + $0x148] sm:$0xff]  ;;  %v283_v31 = vmul.f32 %v149_v25, %v149_v25 }
  0x45   : > { %v199_v42 = vadd.f32 %v198_v38, %v135_v33  ;;  %v331_v44 = vadd.f32 %v330_v40, %v268_v35  ;;  %v151_v33 = vld [vmem:[%s456_s12 + $0x150] sm:$0xff]  ;;  %v284_v35 = vmul.f32 %v150_v29, %v150_v29 }
  0x47   : > { %v200_v46 = vadd.f32 %v199_v42, %v136_v37  ;;  %v332_v48 = vadd.f32 %v331_v44, %v269_v39  ;;  %v152_v37 = vld [vmem:[%s456_s12 + $0x158] sm:$0xff]  ;;  %v285_v39 = vmul.f32 %v151_v33, %v151_v33 }
  0x49   : > { %v201_v50 = vadd.f32 %v200_v46, %v137_v41  ;;  %v333_v52 = vadd.f32 %v332_v48, %v270_v43  ;;  %v153_v41 = vld [vmem:[%s456_s12 + $0x160] sm:$0xff]  ;;  %v286_v43 = vmul.f32 %v152_v37, %v152_v37 }
  0x4b   : > { %v202_v54 = vadd.f32 %v201_v50, %v138_v45  ;;  %v334_v56 = vadd.f32 %v333_v52, %v271_v47  ;;  %v154_v45 = vld [vmem:[%s456_s12 + $0x168] sm:$0xff]  ;;  %v287_v47 = vmul.f32 %v153_v41, %v153_v41 }
  0x4d   : > { %v203_v58 = vadd.f32 %v202_v54, %v139_v49  ;;  %v335_v60 = vadd.f32 %v334_v56, %v272_v51  ;;  %v155_v49 = vld [vmem:[%s456_s12 + $0x170] sm:$0xff]  ;;  %v288_v51 = vmul.f32 %v154_v45, %v154_v45 }
  0x4f   : > { %v204_v62 = vadd.f32 %v203_v58, %v140_v53  ;;  %v336_v0 = vadd.f32 %v335_v60, %v273_v55  ;;  %v156_v53 = vld [vmem:[%s456_s12 + $0x178] sm:$0xff]  ;;  %v289_v55 = vmul.f32 %v155_v49, %v155_v49 }
  0x51   : > { %v205_v2 = vadd.f32 %v204_v62, %v141_v57  ;;  %v337_v4 = vadd.f32 %v336_v0, %v274_v59  ;;  %v157_v57 = vld [vmem:[%s456_s12 + $0x180] sm:$0xff]  ;;  %v290_v59 = vmul.f32 %v156_v53, %v156_v53 }
  0x53   : > { %v206_v6 = vadd.f32 %v205_v2, %v142_v61  ;;  %v338_v8 = vadd.f32 %v337_v4, %v275_v63  ;;  %v158_v61 = vld [vmem:[%s456_s12 + $0x188] sm:$0xff]  ;;  %v291_v63 = vmul.f32 %v157_v57, %v157_v57 }
  0x55   : > { %v207_v10 = vadd.f32 %v206_v6, %v143_v1  ;;  %v339_v12 = vadd.f32 %v338_v8, %v276_v3  ;;  %v159_v1 = vld [vmem:[%s456_s12 + $0x190] sm:$0xff]  ;;  %v292_v3 = vmul.f32 %v158_v61, %v158_v61 }
  0x57   : > { %v208_v14 = vadd.f32 %v207_v10, %v144_v5  ;;  %v340_v16 = vadd.f32 %v339_v12, %v277_v7  ;;  %v160_v5 = vld [vmem:[%s456_s12 + $0x198] sm:$0xff]  ;;  %v293_v7 = vmul.f32 %v159_v1, %v159_v1 }
  0x59   : > { %v209_v18 = vadd.f32 %v208_v14, %v145_v9  ;;  %v341_v20 = vadd.f32 %v340_v16, %v278_v11  ;;  %v161_v9 = vld [vmem:[%s456_s12 + $0x1a0] sm:$0xff]  ;;  %v294_v11 = vmul.f32 %v160_v5, %v160_v5 }
  0x5b   : > { %v210_v22 = vadd.f32 %v209_v18, %v146_v13  ;;  %v342_v24 = vadd.f32 %v341_v20, %v279_v15  ;;  %v162_v13 = vld [vmem:[%s456_s12 + $0x1a8] sm:$0xff]  ;;  %v295_v15 = vmul.f32 %v161_v9, %v161_v9 }
  0x5d   : > { %v211_v26 = vadd.f32 %v210_v22, %v147_v17  ;;  %v343_v28 = vadd.f32 %v342_v24, %v280_v19  ;;  %v163_v17 = vld [vmem:[%s456_s12 + $0x1b0] sm:$0xff]  ;;  %v296_v19 = vmul.f32 %v162_v13, %v162_v13 }
  0x5f   : > { %v212_v30 = vadd.f32 %v211_v26, %v148_v21  ;;  %v344_v32 = vadd.f32 %v343_v28, %v281_v23  ;;  %v164_v21 = vld [vmem:[%s456_s12 + $0x1b8] sm:$0xff]  ;;  %v297_v23 = vmul.f32 %v163_v17, %v163_v17 }
  0x61   : > { %v213_v34 = vadd.f32 %v212_v30, %v149_v25  ;;  %v345_v36 = vadd.f32 %v344_v32, %v282_v27  ;;  %v165_v25 = vld [vmem:[%s456_s12 + $0x1c0] sm:$0xff]  ;;  %v298_v27 = vmul.f32 %v164_v21, %v164_v21 }
  0x63   : > { %v214_v38 = vadd.f32 %v213_v34, %v150_v29  ;;  %v346_v40 = vadd.f32 %v345_v36, %v283_v31  ;;  %v166_v29 = vld [vmem:[%s456_s12 + $0x1c8] sm:$0xff]  ;;  %v299_v31 = vmul.f32 %v165_v25, %v165_v25 }
  0x65   : > { %v215_v42 = vadd.f32 %v214_v38, %v151_v33  ;;  %v347_v44 = vadd.f32 %v346_v40, %v284_v35  ;;  %v167_v33 = vld [vmem:[%s456_s12 + $0x1d0] sm:$0xff]  ;;  %v300_v35 = vmul.f32 %v166_v29, %v166_v29 }
  0x67   : > { %v216_v46 = vadd.f32 %v215_v42, %v152_v37  ;;  %v348_v48 = vadd.f32 %v347_v44, %v285_v39  ;;  %v168_v37 = vld [vmem:[%s456_s12 + $0x1d8] sm:$0xff]  ;;  %v301_v39 = vmul.f32 %v167_v33, %v167_v33 }
  0x69   : > { %v217_v50 = vadd.f32 %v216_v46, %v153_v41  ;;  %v349_v52 = vadd.f32 %v348_v48, %v286_v43  ;;  %v169_v41 = vld [vmem:[%s456_s12 + $0x1e0] sm:$0xff]  ;;  %v302_v43 = vmul.f32 %v168_v37, %v168_v37 }
  0x6b   : > { %v218_v54 = vadd.f32 %v217_v50, %v154_v45  ;;  %v350_v56 = vadd.f32 %v349_v52, %v287_v47  ;;  %v170_v45 = vld [vmem:[%s456_s12 + $0x1e8] sm:$0xff]  ;;  %v303_v47 = vmul.f32 %v169_v41, %v169_v41 }
  0x6d   : > { %v219_v58 = vadd.f32 %v218_v54, %v155_v49  ;;  %v351_v60 = vadd.f32 %v350_v56, %v288_v51  ;;  %v171_v49 = vld [vmem:[%s456_s12 + $0x1f0] sm:$0xff]  ;;  %v304_v51 = vmul.f32 %v170_v45, %v170_v45 }
  0x6f   : > { %v220_v62 = vadd.f32 %v219_v58, %v156_v53  ;;  %v352_v0 = vadd.f32 %v351_v60, %v289_v55  ;;  %v172_v53 = vld [vmem:[%s456_s12 + $0x1f8] sm:$0xff]  ;;  %v305_v55 = vmul.f32 %v171_v49, %v171_v49 }
  0x70   : > { %v306_v58 = vmul.f32 %v172_v53, %v172_v53 }
  0x71   : > { %v221_v2 = vadd.f32 %v220_v62, %v157_v57  ;;  %v353_v4 = vadd.f32 %v352_v0, %v290_v59 }
  0x73   : > { %v222_v6 = vadd.f32 %v221_v2, %v158_v61  ;;  %v354_v8 = vadd.f32 %v353_v4, %v291_v63 }
  0x75   : > { %v223_v10 = vadd.f32 %v222_v6, %v159_v1  ;;  %v355_v12 = vadd.f32 %v354_v8, %v292_v3 }
  0x77   : > { %v224_v14 = vadd.f32 %v223_v10, %v160_v5  ;;  %v356_v16 = vadd.f32 %v355_v12, %v293_v7  ;;  %v173_v10 = vld [vmem:[%s535_s1] sm:$0x3] }
  0x79   : > { %v225_v18 = vadd.f32 %v224_v14, %v161_v9  ;;  %v357_v20 = vadd.f32 %v356_v16, %v294_v11 }
  0x7b   : > { %v226_v22 = vadd.f32 %v225_v18, %v162_v13  ;;  %v358_v24 = vadd.f32 %v357_v20, %v295_v15 }
  0x7d   : > { %v227_v26 = vadd.f32 %v226_v22, %v163_v17  ;;  %v359_v28 = vadd.f32 %v358_v24, %v296_v19 }
  0x7f   : > { %v228_v30 = vadd.f32 %v227_v26, %v164_v21  ;;  %v360_v32 = vadd.f32 %v359_v28, %v297_v23 }
  0x81   : > { %v229_v34 = vadd.f32 %v228_v30, %v165_v25  ;;  %v361_v36 = vadd.f32 %v360_v32, %v298_v27 }
  0x83   : > { %v230_v38 = vadd.f32 %v229_v34, %v166_v29  ;;  %v362_v40 = vadd.f32 %v361_v36, %v299_v31 }
  0x85   : > { %v231_v42 = vadd.f32 %v230_v38, %v167_v33  ;;  %v363_v44 = vadd.f32 %v362_v40, %v300_v35 }
  0x87   : > { %v232_v46 = vadd.f32 %v231_v42, %v168_v37  ;;  %v364_v48 = vadd.f32 %v363_v44, %v301_v39 }
  0x89   : > { %v233_v50 = vadd.f32 %v232_v46, %v169_v41  ;;  %v365_v52 = vadd.f32 %v364_v48, %v302_v43 }
  0x8b   : > { %v234_v54 = vadd.f32 %v233_v50, %v170_v45  ;;  %v366_v56 = vadd.f32 %v365_v52, %v303_v47 }
  0x8d   : > { %v235_v57 = vadd.f32 %v234_v54, %v171_v49  ;;  %v367_v59 = vadd.f32 %v366_v56, %v304_v51 }
  0x8f   : > { %v236_v60 = vadd.f32 %v235_v57, %v172_v53  ;;  %v368_v61 = vadd.f32 %v367_v59, %v305_v55 }
  0x91   : > { %v237_v62 = vrot.slane %v236_v60, 4  ;;  %v369_v63 = vadd.f32 %v368_v61, %v306_v58 }
  0x93   : > { %v238_v0 = vadd.f32 %v237_v62, %v236_v60  ;;  %v370_v1 = vrot.slane %v369_v63, 4 }
  0x95   : > { %v239_v2 = vrot.slane %v238_v0, 2  ;;  %v371_v3 = vadd.f32 %v370_v1, %v369_v63 }
  0x97   : > { %v240_v4 = vadd.f32 %v239_v2, %v238_v0  ;;  %v372_v5 = vrot.slane %v371_v3, 2 }
  0x99   : > { %v241_v6 = vrot.slane %v240_v4, 1  ;;  %v373_v7 = vadd.f32 %v372_v5, %v371_v3 }
  0x9b   : > { %v242_v8 = vadd.f32 %v241_v6, %v240_v4  ;;  %v374_v9 = vrot.slane %v373_v7, 1 }
  0x9d   : > { %v375_v11 = vadd.f32 %v374_v9, %v373_v7 }
  0x9f   : > { %v377_v12 = vsel %vm376_vm0, %v242_v8, %v375_v11 }
  0xa0   : > { %v378_v13 = vadd.f32 %v377_v12, %v173_v10 }
  0xa2   : > { %379 = vst [vmem:[%s535_s1] sm:$0x3] %v378_v13 }
  0xa3 PF: > { %s11_s6 = sadd.s32 1, %s432_s6  }
  0xa4   : > { %p8_p5 = scmp.ge.s32.totalorder %s11_s6, 6  }
  0xa6   :  { %10 = sbr.rel (!%p8_p5) target bundleno = 1 (0x1), region = 54 }

// kernel: generator_block.12
= control target key start
LH: loop header
LB: loop body
LE: loop exit
PB: predicated region body
PF: predicated region fallthrough
CT: control target
= control target key end

     0   :  { %s607_s12 = smov 0   ;;  %s897_s0 = inlined_call_operand.vmem [shape: f32[2048,128], index: 0, kind: input, shape index: {}]   ;;  %s898_s1 = inlined_call_operand.vmem [shape: f32[1,128], index: 1, kind: input, shape index: {}]   ;;  %s899_s2 = inlined_call_operand.vmem [shape: f32[1,128], index: 2, kind: input, shape index: {}]   ;;  %s900_s3 = inlined_call_operand.vmem [shape: f32[2048,128], index: 3, kind: output, shape index: {}]  }
   0x1 LB: > { %s558_s13 = sadd.s32 4294967295, %s585_s12   ;;  %p562_p0 = scmp.ge.s32.totalorder %s585_s12, 1  ;;  %s585_s12 = sphi %s607_s12, %s13_s12  }
   0x2   : > { %p138_p1 = scmp.lt.s32.totalorder %s585_s12, 5 }
   0x4   : > { %p139_p2 = pnand %p562_p0, %p138_p1 }
   0x5   : > { %s563_s14 = sshll.u32 (!%p139_p2), %s558_s13, 6 }
   0x6   : > { %142 = sbr.rel (%p139_p2) target bundleno = 85 (0x55), region = 32  ;;  %p163_p3 = scmp.lt.s32.totalorder (!%p139_p2), %s563_s14, 255 }
   0xb   : > { %s902_s14 = smov (!%p163_p3, %s563_s14), 255  ;;  %v618_v0 = vld [vmem:[%s898_s1] ss:$0 sm:$0xff] }
   0xc   : > { %s564_s17 = sshll.u32 %s902_s14, 3  ;;  %v628_v1 = vld [vmem:[%s899_s2] ss:$0 sm:$0xff] }
   0xd   : > { %s623_s20 = scalar_lea.vmem %s897_s0, %s564_s17  ;;  %s651_s25 = scalar_lea.vmem %s900_s3, %s564_s17 }
   0xe   : > { %v174_v2 = vld [vmem:[%s623_s20] sm:$0xff]  ;;  %v175_v3 = vld [vmem:[%s623_s20 + $0x8] sm:$0xff]  ;;  %v176_v4 = vld [vmem:[%s623_s20 + $0x10] sm:$0xff] }
   0xf   : > { %v242_v5 = vmul.f32 %v618_v0, %v174_v2  ;;  %v243_v6 = vmul.f32 %v618_v0, %v175_v3  ;;  %v244_v7 = vmul.f32 %v618_v0, %v176_v4  ;;  %v177_v8 = vld [vmem:[%s623_s20 + $0x18] sm:$0xff]  ;;  %v178_v9 = vld [vmem:[%s623_s20 + $0x20] sm:$0xff]  ;;  %v179_v10 = vld [vmem:[%s623_s20 + $0x28] sm:$0xff] }
  0x10   : > { %v245_v11 = vmul.f32 %v618_v0, %v177_v8  ;;  %v246_v12 = vmul.f32 %v618_v0, %v178_v9  ;;  %v247_v13 = vmul.f32 %v618_v0, %v179_v10  ;;  %v180_v14 = vld [vmem:[%s623_s20 + $0x30] sm:$0xff]  ;;  %v181_v15 = vld [vmem:[%s623_s20 + $0x38] sm:$0xff]  ;;  %v182_v24 = vld [vmem:[%s623_s20 + $0x40] sm:$0xff] }
  0x11   : > { %v310_v16 = vadd.f32 %v628_v1, %v242_v5  ;;  %v311_v17 = vadd.f32 %v628_v1, %v243_v6  ;;  %v312_v18 = vadd.f32 %v628_v1, %v244_v7  ;;  %v248_v19 = vmul.f32 %v618_v0, %v180_v14  ;;  %v183_v25 = vld [vmem:[%s623_s20 + $0x48] sm:$0xff]  ;;  %v184_v26 = vld [vmem:[%s623_s20 + $0x50] sm:$0xff]  ;;  %v185_v31 = vld [vmem:[%s623_s20 + $0x58] sm:$0xff] }
  0x12   : > { %v313_v20 = vadd.f32 %v628_v1, %v245_v11  ;;  %v314_v21 = vadd.f32 %v628_v1, %v246_v12  ;;  %v315_v22 = vadd.f32 %v628_v1, %v247_v13  ;;  %v249_v23 = vmul.f32 %v618_v0, %v181_v15  ;;  %v186_v32 = vld [vmem:[%s623_s20 + $0x60] sm:$0xff]  ;;  %v187_v33 = vld [vmem:[%s623_s20 + $0x68] sm:$0xff]  ;;  %v188_v37 = vld [vmem:[%s623_s20 + $0x70] sm:$0xff] }
  0x13   : > { %v374_v27 = vmax.f32 %v310_v16, 0.0  ;;  %v375_v28 = vmax.f32 %v311_v17, 0.0  ;;  %v376_v29 = vmax.f32 %v312_v18, 0.0  ;;  %v316_v30 = vadd.f32 %v628_v1, %v248_v19  ;;  %v189_v42 = vld [vmem:[%s623_s20 + $0x78] sm:$0xff]  ;;  %v190_v54 = vld [vmem:[%s623_s20 + $0x80] sm:$0xff]  ;;  %v191_v55 = vld [vmem:[%s623_s20 + $0x88] sm:$0xff] }
  0x14   : > { %v377_v34 = vmax.f32 %v313_v20, 0.0  ;;  %v378_v35 = vmax.f32 %v314_v21, 0.0  ;;  %v317_v36 = vadd.f32 %v628_v1, %v249_v23  ;;  %v379_v38 = vmax.f32 %v315_v22, 0.0  ;;  %v192_v56 = vld [vmem:[%s623_s20 + $0x90] sm:$0xff]  ;;  %v193_v59 = vld [vmem:[%s623_s20 + $0x98] sm:$0xff]  ;;  %v194_v63 = vld [vmem:[%s623_s20 + $0xa0] sm:$0xff] }
  0x15   : > { %438 = vst [vmem:[%s651_s25] sm:$0xff] %v374_v27  ;;  %v250_v39 = vmul.f32 %v618_v0, %v182_v24  ;;  %v251_v40 = vmul.f32 %v618_v0, %v183_v25  ;;  %v252_v41 = vmul.f32 %v618_v0, %v184_v26  ;;  %v380_v43 = vmax.f32 %v316_v30, 0.0  ;;  %v195_v6 = vld [vmem:[%s623_s20 + $0xa8] sm:$0xff]  ;;  %v196_v10 = vld [vmem:[%s623_s20 + $0xb0] sm:$0xff]  ;;  %v197_v14 = vld [vmem:[%s623_s20 + $0xb8] sm:$0xff] }
  0x16   : > { %439 = vst [vmem:[%s651_s25 + $0x8] sm:$0xff] %v375_v28  ;;  %v253_v44 = vmul.f32 %v618_v0, %v185_v31  ;;  %v254_v45 = vmul.f32 %v618_v0, %v186_v32  ;;  %v255_v46 = vmul.f32 %v618_v0, %v187_v33  ;;  %v256_v50 = vmul.f32 %v618_v0, %v188_v37  ;;  %v198_v18 = vld [vmem:[%s623_s20 + $0xc0] sm:$0xff]  ;;  %v199_v22 = vld [vmem:[%s623_s20 + $0xc8] sm:$0xff]  ;;  %v200_v26 = vld [vmem:[%s623_s20 + $0xd0] sm:$0xff] }
  0x17   : > { %440 = vst [vmem:[%s651_s25 + $0x10] sm:$0xff] %v376_v29  ;;  %v318_v47 = vadd.f32 %v628_v1, %v250_v39  ;;  %v319_v48 = vadd.f32 %v628_v1, %v251_v40  ;;  %v320_v49 = vadd.f32 %v628_v1, %v252_v41  ;;  %v381_v51 = vmax.f32 %v317_v36, 0.0  ;;  %v201_v30 = vld [vmem:[%s623_s20 + $0xd8] sm:$0xff] }
  0x18   : > { %441 = vst [vmem:[%s651_s25 + $0x18] sm:$0xff] %v377_v34  ;;  %v321_v52 = vadd.f32 %v628_v1, %v253_v44  ;;  %v257_v53 = vmul.f32 %v618_v0, %v189_v42  ;;  %v322_v58 = vadd.f32 %v628_v1, %v254_v45  ;;  %v323_v62 = vadd.f32 %v628_v1, %v255_v46  ;;  %v202_v34 = vld [vmem:[%s623_s20 + $0xe0] sm:$0xff]  ;;  %v204_v42 = vld [vmem:[%s623_s20 + $0xf0] sm:$0xff]  ;;  %v205_v46 = vld [vmem:[%s623_s20 + $0xf8] sm:$0xff] }
  0x19   : > { %442 = vst [vmem:[%s651_s25 + $0x20] sm:$0xff] %v378_v35  ;;  %v382_v57 = vmax.f32 %v318_v47, 0.0  ;;  %v383_v60 = vmax.f32 %v319_v48, 0.0  ;;  %v384_v61 = vmax.f32 %v320_v49, 0.0  ;;  %v324_v2 = vadd.f32 %v628_v1, %v256_v50  ;;  %v206_v50 = vld [vmem:[%s623_s20 + $0x100] sm:$0xff] }
  0x1a   : > { %443 = vst [vmem:[%s651_s25 + $0x28] sm:$0xff] %v379_v38  ;;  %v258_v3 = vmul.f32 %v618_v0, %v190_v54  ;;  %v259_v4 = vmul.f32 %v618_v0, %v191_v55  ;;  %v260_v5 = vmul.f32 %v618_v0, %v192_v56  ;;  %v385_v7 = vmax.f32 %v321_v52, 0.0  ;;  %v203_v38 = vld [vmem:[%s623_s20 + $0xe8] sm:$0xff] }
  0x1b   : > { %444 = vst [vmem:[%s651_s25 + $0x30] sm:$0xff] %v380_v43  ;;  %v325_v8 = vadd.f32 %v628_v1, %v257_v53  ;;  %v261_v9 = vmul.f32 %v618_v0, %v193_v59  ;;  %v386_v11 = vmax.f32 %v322_v58, 0.0  ;;  %v262_v13 = vmul.f32 %v618_v0, %v194_v63  ;;  %v207_v54 = vld [vmem:[%s623_s20 + $0x108] sm:$0xff]  ;;  %v208_v58 = vld [vmem:[%s623_s20 + $0x110] sm:$0xff] }
  0x1c   : > { %445 = vst [vmem:[%s651_s25 + $0x38] sm:$0xff] %v381_v51  ;;  %v326_v12 = vadd.f32 %v628_v1, %v258_v3  ;;  %v387_v15 = vmax.f32 %v323_v62, 0.0  ;;  %v327_v16 = vadd.f32 %v628_v1, %v259_v4  ;;  %v263_v17 = vmul.f32 %v618_v0, %v195_v6  ;;  %v209_v62 = vld [vmem:[%s623_s20 + $0x118] sm:$0xff]  ;;  %v210_v4 = vld [vmem:[%s623_s20 + $0x120] sm:$0xff] }
  0x1d   : > { %446 = vst [vmem:[%s651_s25 + $0x40] sm:$0xff] %v382_v57  ;;  %v388_v19 = vmax.f32 %v324_v2, 0.0  ;;  %v328_v20 = vadd.f32 %v628_v1, %v260_v5  ;;  %v264_v21 = vmul.f32 %v618_v0, %v196_v10  ;;  %v389_v23 = vmax.f32 %v325_v8, 0.0  ;;  %v211_v8 = vld [vmem:[%s623_s20 + $0x128] sm:$0xff] }
  0x1e   : > { %447 = vst [vmem:[%s651_s25 + $0x48] sm:$0xff] %v383_v60  ;;  %v329_v24 = vadd.f32 %v628_v1, %v261_v9  ;;  %v265_v25 = vmul.f32 %v618_v0, %v197_v14  ;;  %v390_v27 = vmax.f32 %v326_v12, 0.0  ;;  %v330_v28 = vadd.f32 %v628_v1, %v262_v13  ;;  %v212_v12 = vld [vmem:[%s623_s20 + $0x130] sm:$0xff] }
  0x1f   : > { %448 = vst [vmem:[%s651_s25 + $0x50] sm:$0xff] %v384_v61  ;;  %v266_v29 = vmul.f32 %v618_v0, %v198_v18  ;;  %v391_v31 = vmax.f32 %v327_v16, 0.0  ;;  %v331_v32 = vadd.f32 %v628_v1, %v263_v17  ;;  %v267_v33 = vmul.f32 %v618_v0, %v199_v22  ;;  %v213_v16 = vld [vmem:[%s623_s20 + $0x138] sm:$0xff] }
  0x20   : > { %449 = vst [vmem:[%s651_s25 + $0x58] sm:$0xff] %v385_v7  ;;  %v392_v35 = vmax.f32 %v328_v20, 0.0  ;;  %v332_v36 = vadd.f32 %v628_v1, %v264_v21  ;;  %v268_v37 = vmul.f32 %v618_v0, %v200_v26  ;;  %v393_v39 = vmax.f32 %v329_v24, 0.0  ;;  %v214_v20 = vld [vmem:[%s623_s20 + $0x140] sm:$0xff]  ;;  %v215_v24 = vld [vmem:[%s623_s20 + $0x148] sm:$0xff] }
  0x21   : > { %450 = vst [vmem:[%s651_s25 + $0x60] sm:$0xff] %v386_v11  ;;  %v333_v40 = vadd.f32 %v628_v1, %v265_v25  ;;  %v269_v41 = vmul.f32 %v618_v0, %v201_v30  ;;  %v394_v43 = vmax.f32 %v330_v28, 0.0  ;;  %v334_v44 = vadd.f32 %v628_v1, %v266_v29  ;;  %v216_v28 = vld [vmem:[%s623_s20 + $0x150] sm:$0xff] }
  0x22   : > { %451 = vst [vmem:[%s651_s25 + $0x68] sm:$0xff] %v387_v15  ;;  %v270_v45 = vmul.f32 %v618_v0, %v202_v34  ;;  %v395_v47 = vmax.f32 %v331_v32, 0.0  ;;  %v335_v48 = vadd.f32 %v628_v1, %v267_v33  ;;  %v271_v49 = vmul.f32 %v618_v0, %v203_v38  ;;  %v217_v32 = vld [vmem:[%s623_s20 + $0x158] sm:$0xff] }
  0x23   : > { %452 = vst [vmem:[%s651_s25 + $0x70] sm:$0xff] %v388_v19  ;;  %v396_v51 = vmax.f32 %v332_v36, 0.0  ;;  %v336_v52 = vadd.f32 %v628_v1, %v268_v37  ;;  %v272_v53 = vmul.f32 %v618_v0, %v204_v42  ;;  %v397_v55 = vmax.f32 %v333_v40, 0.0  ;;  %v218_v36 = vld [vmem:[%s623_s20 + $0x160] sm:$0xff]  ;;  %v219_v40 = vld [vmem:[%s623_s20 + $0x168] sm:$0xff] }
  0x24   : > { %453 = vst [vmem:[%s651_s25 + $0x78] sm:$0xff] %v389_v23  ;;  %v337_v56 = vadd.f32 %v628_v1, %v269_v41  ;;  %v273_v57 = vmul.f32 %v618_v0, %v205_v46  ;;  %v398_v59 = vmax.f32 %v334_v44, 0.0  ;;  %v338_v60 = vadd.f32 %v628_v1, %v270_v45  ;;  %v220_v44 = vld [vmem:[%s623_s20 + $0x170] sm:$0xff] }
  0x25   : > { %454 = vst [vmem:[%s651_s25 + $0x80] sm:$0xff] %v390_v27  ;;  %v274_v61 = vmul.f32 %v618_v0, %v206_v50  ;;  %v399_v63 = vmax.f32 %v335_v48, 0.0  ;;  %v339_v2 = vadd.f32 %v628_v1, %v271_v49  ;;  %v275_v3 = vmul.f32 %v618_v0, %v207_v54  ;;  %v221_v48 = vld [vmem:[%s623_s20 + $0x178] sm:$0xff] }
  0x26   : > { %455 = vst [vmem:[%s651_s25 + $0x88] sm:$0xff] %v391_v31  ;;  %v400_v5 = vmax.f32 %v336_v52, 0.0  ;;  %v340_v6 = vadd.f32 %v628_v1, %v272_v53  ;;  %v276_v7 = vmul.f32 %v618_v0, %v208_v58  ;;  %v401_v9 = vmax.f32 %v337_v56, 0.0  ;;  %v222_v52 = vld [vmem:[%s623_s20 + $0x180] sm:$0xff]  ;;  %v223_v56 = vld [vmem:[%s623_s20 + $0x188] sm:$0xff] }
  0x27   : > { %456 = vst [vmem:[%s651_s25 + $0x90] sm:$0xff] %v392_v35  ;;  %v341_v10 = vadd.f32 %v628_v1, %v273_v57  ;;  %v277_v11 = vmul.f32 %v618_v0, %v209_v62  ;;  %v402_v13 = vmax.f32 %v338_v60, 0.0  ;;  %v342_v14 = vadd.f32 %v628_v1, %v274_v61  ;;  %v224_v60 = vld [vmem:[%s623_s20 + $0x190] sm:$0xff] }
  0x28   : > { %457 = vst [vmem:[%s651_s25 + $0x98] sm:$0xff] %v393_v39  ;;  %v278_v15 = vmul.f32 %v618_v0, %v210_v4  ;;  %v403_v17 = vmax.f32 %v339_v2, 0.0  ;;  %v343_v18 = vadd.f32 %v628_v1, %v275_v3  ;;  %v279_v19 = vmul.f32 %v618_v0, %v211_v8  ;;  %v225_v2 = vld [vmem:[%s623_s20 + $0x198] sm:$0xff] }
  0x29   : > { %458 = vst [vmem:[%s651_s25 + $0xa0] sm:$0xff] %v394_v43  ;;  %v404_v21 = vmax.f32 %v340_v6, 0.0  ;;  %v344_v22 = vadd.f32 %v628_v1, %v276_v7  ;;  %v280_v23 = vmul.f32 %v618_v0, %v212_v12  ;;  %v405_v25 = vmax.f32 %v341_v10, 0.0  ;;  %v237_v3 = vld [vmem:[%s623_s20 + $0x1f8] sm:$0xff]  ;;  %v226_v7 = vld [vmem:[%s623_s20 + $0x1a0] sm:$0xff] }
  0x2a   : > { %459 = vst [vmem:[%s651_s25 + $0xa8] sm:$0xff] %v395_v47  ;;  %v345_v26 = vadd.f32 %v628_v1, %v277_v11  ;;  %v281_v27 = vmul.f32 %v618_v0, %v213_v16  ;;  %v406_v29 = vmax.f32 %v342_v14, 0.0  ;;  %v346_v30 = vadd.f32 %v628_v1, %v278_v15  ;;  %v227_v11 = vld [vmem:[%s623_s20 + $0x1a8] sm:$0xff]  ;;  %v228_v15 = vld [vmem:[%s623_s20 + $0x1b0] sm:$0xff] }
  0x2b   : > { %460 = vst [vmem:[%s651_s25 + $0xb0] sm:$0xff] %v396_v51  ;;  %v282_v31 = vmul.f32 %v618_v0, %v214_v20  ;;  %v407_v33 = vmax.f32 %v343_v18, 0.0  ;;  %v347_v34 = vadd.f32 %v628_v1, %v279_v19  ;;  %v283_v35 = vmul.f32 %v618_v0, %v215_v24  ;;  %v229_v20 = vld [vmem:[%s623_s20 + $0x1b8] sm:$0xff]  ;;  %v230_v24 = vld [vmem:[%s623_s20 + $0x1c0] sm:$0xff] }
  0x2c   : > { %461 = vst [vmem:[%s651_s25 + $0xb8] sm:$0xff] %v397_v55  ;;  %v408_v37 = vmax.f32 %v344_v22, 0.0  ;;  %v348_v38 = vadd.f32 %v628_v1, %v280_v23  ;;  %v284_v39 = vmul.f32 %v618_v0, %v216_v28  ;;  %v409_v41 = vmax.f32 %v345_v26, 0.0 }
  0x2d   : > { %462 = vst [vmem:[%s651_s25 + $0xc0] sm:$0xff] %v398_v59  ;;  %v349_v42 = vadd.f32 %v628_v1, %v281_v27  ;;  %v285_v43 = vmul.f32 %v618_v0, %v217_v32  ;;  %v410_v45 = vmax.f32 %v346_v30, 0.0  ;;  %v350_v46 = vadd.f32 %v628_v1, %v282_v31 }
  0x2e   : > { %463 = vst [vmem:[%s651_s25 + $0xc8] sm:$0xff] %v399_v63  ;;  %v286_v47 = vmul.f32 %v618_v0, %v218_v36  ;;  %v411_v49 = vmax.f32 %v347_v34, 0.0  ;;  %v351_v50 = vadd.f32 %v628_v1, %v283_v35  ;;  %v287_v51 = vmul.f32 %v618_v0, %v219_v40 }
  0x2f   : > { %464 = vst [vmem:[%s651_s25 + $0xd0] sm:$0xff] %v400_v5  ;;  %v412_v53 = vmax.f32 %v348_v38, 0.0  ;;  %v352_v54 = vadd.f32 %v628_v1, %v284_v39  ;;  %v288_v55 = vmul.f32 %v618_v0, %v220_v44  ;;  %v413_v57 = vmax.f32 %v349_v42, 0.0 }
  0x30   : > { %465 = vst [vmem:[%s651_s25 + $0xd8] sm:$0xff] %v401_v9  ;;  %v353_v58 = vadd.f32 %v628_v1, %v285_v43  ;;  %v289_v59 = vmul.f32 %v618_v0, %v221_v48  ;;  %v414_v61 = vmax.f32 %v350_v46, 0.0  ;;  %v354_v62 = vadd.f32 %v628_v1, %v286_v47 }
  0x31   : > { %466 = vst [vmem:[%s651_s25 + $0xe0] sm:$0xff] %v402_v13  ;;  %v290_v63 = vmul.f32 %v618_v0, %v222_v52  ;;  %v415_v4 = vmax.f32 %v351_v50, 0.0  ;;  %v355_v5 = vadd.f32 %v628_v1, %v287_v51  ;;  %v291_v6 = vmul.f32 %v618_v0, %v223_v56 }
  0x32   : > { %467 = vst [vmem:[%s651_s25 + $0xe8] sm:$0xff] %v403_v17  ;;  %v416_v8 = vmax.f32 %v352_v54, 0.0  ;;  %v356_v9 = vadd.f32 %v628_v1, %v288_v55  ;;  %v292_v10 = vmul.f32 %v618_v0, %v224_v60  ;;  %v417_v12 = vmax.f32 %v353_v58, 0.0 }
  0x33   : > { %468 = vst [vmem:[%s651_s25 + $0xf0] sm:$0xff] %v404_v21  ;;  %v357_v13 = vadd.f32 %v628_v1, %v289_v59  ;;  %v293_v14 = vmul.f32 %v618_v0, %v225_v2  ;;  %v305_v16 = vmul.f32 %v618_v0, %v237_v3  ;;  %v418_v17 = vmax.f32 %v354_v62, 0.0 }
  0x34   : > { %469 = vst [vmem:[%s651_s25 + $0xf8] sm:$0xff] %v405_v25  ;;  %v358_v18 = vadd.f32 %v628_v1, %v290_v63  ;;  %v294_v19 = vmul.f32 %v618_v0, %v226_v7  ;;  %v419_v21 = vmax.f32 %v355_v5, 0.0  ;;  %v359_v22 = vadd.f32 %v628_v1, %v291_v6 }
  0x35   : > { %470 = vst [vmem:[%s651_s25 + $0x100] sm:$0xff] %v406_v29  ;;  %v295_v23 = vmul.f32 %v618_v0, %v227_v11  ;;  %v841_v25 = vadd.f32 %v628_v1, %v305_v16  ;;  %v420_v26 = vmax.f32 %v356_v9, 0.0  ;;  %v360_v27 = vadd.f32 %v628_v1, %v292_v10  ;;  %v231_v29 = vld [vmem:[%s623_s20 + $0x1c8] sm:$0xff] }
  0x36   : > { %471 = vst [vmem:[%s651_s25 + $0x108] sm:$0xff] %v407_v33  ;;  %v296_v28 = vmul.f32 %v618_v0, %v228_v15  ;;  %v421_v30 = vmax.f32 %v357_v13, 0.0  ;;  %v361_v31 = vadd.f32 %v628_v1, %v293_v14  ;;  %v297_v32 = vmul.f32 %v618_v0, %v229_v20  ;;  %v232_v33 = vld [vmem:[%s623_s20 + $0x1d0] sm:$0xff] }
  0x37   : > { %472 = vst [vmem:[%s651_s25 + $0x110] sm:$0xff] %v408_v37  ;;  %v422_v34 = vmax.f32 %v358_v18, 0.0  ;;  %v362_v35 = vadd.f32 %v628_v1, %v294_v19  ;;  %v298_v36 = vmul.f32 %v618_v0, %v230_v24  ;;  %v233_v37 = vld [vmem:[%s623_s20 + $0x1d8] sm:$0xff]  ;;  %v423_v38 = vmax.f32 %v359_v22, 0.0 }
  0x38   : > { %473 = vst [vmem:[%s651_s25 + $0x118] sm:$0xff] %v409_v41  ;;  %v363_v39 = vadd.f32 %v628_v1, %v295_v23  ;;  %v299_v40 = vmul.f32 %v618_v0, %v231_v29  ;;  %v234_v41 = vld [vmem:[%s623_s20 + $0x1e0] sm:$0xff]  ;;  %v424_v42 = vmax.f32 %v360_v27, 0.0  ;;  %v364_v43 = vadd.f32 %v628_v1, %v296_v28 }
  0x39   : > { %474 = vst [vmem:[%s651_s25 + $0x120] sm:$0xff] %v410_v45  ;;  %v300_v44 = vmul.f32 %v618_v0, %v232_v33  ;;  %v235_v45 = vld [vmem:[%s623_s20 + $0x1e8] sm:$0xff]  ;;  %v425_v46 = vmax.f32 %v361_v31, 0.0  ;;  %v365_v47 = vadd.f32 %v628_v1, %v297_v32  ;;  %v301_v48 = vmul.f32 %v618_v0, %v233_v37 }
  0x3a   : > { %475 = vst [vmem:[%s651_s25 + $0x128] sm:$0xff] %v411_v49  ;;  %v236_v49 = vld [vmem:[%s623_s20 + $0x1f0] sm:$0xff]  ;;  %v426_v50 = vmax.f32 %v362_v35, 0.0  ;;  %v366_v51 = vadd.f32 %v628_v1, %v298_v36  ;;  %v302_v52 = vmul.f32 %v618_v0, %v234_v41  ;;  %v367_v54 = vadd.f32 %v628_v1, %v299_v40 }
  0x3b   : > { %476 = vst [vmem:[%s651_s25 + $0x130] sm:$0xff] %v412_v53  ;;  %v427_v53 = vmax.f32 %v363_v39, 0.0  ;;  %v303_v55 = vmul.f32 %v618_v0, %v235_v45  ;;  %v428_v56 = vmax.f32 %v364_v43, 0.0  ;;  %v304_v58 = vmul.f32 %v618_v0, %v236_v49 }
  0x3c   : > { %477 = vst [vmem:[%s651_s25 + $0x138] sm:$0xff] %v413_v57  ;;  %v368_v57 = vadd.f32 %v628_v1, %v300_v44  ;;  %v429_v59 = vmax.f32 %v365_v47, 0.0  ;;  %v369_v60 = vadd.f32 %v628_v1, %v301_v48  ;;  %v370_v62 = vadd.f32 %v628_v1, %v302_v52 }
  0x3d   : > { %478 = vst [vmem:[%s651_s25 + $0x140] sm:$0xff] %v414_v61  ;;  %v430_v61 = vmax.f32 %v366_v51, 0.0  ;;  %v431_v63 = vmax.f32 %v367_v54, 0.0  ;;  %v371_v2 = vadd.f32 %v628_v1, %v303_v55  ;;  %v372_v3 = vadd.f32 %v628_v1, %v304_v58 }
  0x3e   : > { %479 = vst [vmem:[%s651_s25 + $0x148] sm:$0xff] %v415_v4  ;;  %v432_v0 = vmax.f32 %v368_v57, 0.0  ;;  %v433_v4 = vmax.f32 %v369_v60, 0.0  ;;  %v434_v5 = vmax.f32 %v370_v62, 0.0 }
  0x3f   : > { %480 = vst [vmem:[%s651_s25 + $0x150] sm:$0xff] %v416_v8  ;;  %v435_v6 = vmax.f32 %v371_v2, 0.0  ;;  %v436_v7 = vmax.f32 %v372_v3, 0.0  ;;  %v437_v8 = vmax.f32 %v841_v25, 0.0 }
  0x40   : > { %481 = vst [vmem:[%s651_s25 + $0x158] sm:$0xff] %v417_v12 }
  0x41   : > { %482 = vst [vmem:[%s651_s25 + $0x160] sm:$0xff] %v418_v17 }
  0x42   : > { %483 = vst [vmem:[%s651_s25 + $0x168] sm:$0xff] %v419_v21 }
  0x43   : > { %484 = vst [vmem:[%s651_s25 + $0x170] sm:$0xff] %v420_v26 }
  0x44   : > { %485 = vst [vmem:[%s651_s25 + $0x178] sm:$0xff] %v421_v30 }
  0x45   : > { %486 = vst [vmem:[%s651_s25 + $0x180] sm:$0xff] %v422_v34 }
  0x46   : > { %487 = vst [vmem:[%s651_s25 + $0x188] sm:$0xff] %v423_v38 }
  0x47   : > { %488 = vst [vmem:[%s651_s25 + $0x190] sm:$0xff] %v424_v42 }
  0x48   : > { %489 = vst [vmem:[%s651_s25 + $0x198] sm:$0xff] %v425_v46 }
  0x49   : > { %490 = vst [vmem:[%s651_s25 + $0x1a0] sm:$0xff] %v426_v50 }
  0x4a   : > { %491 = vst [vmem:[%s651_s25 + $0x1a8] sm:$0xff] %v427_v53 }
  0x4b   : > { %492 = vst [vmem:[%s651_s25 + $0x1b0] sm:$0xff] %v428_v56 }
  0x4c   : > { %493 = vst [vmem:[%s651_s25 + $0x1b8] sm:$0xff] %v429_v59 }
  0x4d   : > { %494 = vst [vmem:[%s651_s25 + $0x1c0] sm:$0xff] %v430_v61 }
  0x4e   : > { %495 = vst [vmem:[%s651_s25 + $0x1c8] sm:$0xff] %v431_v63 }
  0x4f   : > { %496 = vst [vmem:[%s651_s25 + $0x1d0] sm:$0xff] %v432_v0 }
  0x50   : > { %497 = vst [vmem:[%s651_s25 + $0x1d8] sm:$0xff] %v433_v4 }
  0x51   : > { %498 = vst [vmem:[%s651_s25 + $0x1e0] sm:$0xff] %v434_v5 }
  0x52   : > { %499 = vst [vmem:[%s651_s25 + $0x1e8] sm:$0xff] %v435_v6 }
  0x53   : > { %500 = vst [vmem:[%s651_s25 + $0x1f0] sm:$0xff] %v436_v7 }
  0x54   : > { %501 = vst [vmem:[%s651_s25 + $0x1f8] sm:$0xff] %v437_v8 }
  0x55 PF: > { %s13_s12 = sadd.s32 1, %s585_s12  }
  0x56   : > { %p10_p4 = scmp.ge.s32.totalorder %s13_s12, 6  }
  0x58   :  { %12 = sbr.rel (!%p10_p4) target bundleno = 1 (0x1), region = 62 }

// kernel: generator_block.10
= control target key start
LH: loop header
LB: loop body
LE: loop exit
PB: predicated region body
PF: predicated region fallthrough
CT: control target
= control target key end

     0   :  { %s1815_s12 = smov 0   ;;  %s2823_s0 = inlined_call_operand.vmem [shape: f32[2048,1152], index: 0, kind: input, shape index: {}]   ;;  %s2824_s1 = inlined_call_operand.vmem [shape: f32[1152,128], index: 1, kind: input, shape index: {}]   ;;  %s2825_s2 = inlined_call_operand.vmem [shape: f32[1,128], index: 2, kind: input, shape index: {}]   ;;  %s2826_s3 = inlined_call_operand.vmem [shape: f32[2048,128], index: 3, kind: output, shape index: {}]  }
   0x1 LB: > { %s1718_s13 = sadd.s32 4294967295, %s1793_s12   ;;  %p1722_p0 = scmp.ge.s32.totalorder %s1793_s12, 1  ;;  %s1793_s12 = sphi %s1815_s12, %s13_s12  }
   0x2   : > { %p139_p1 = scmp.lt.s32.totalorder %s1793_s12, 9 }
   0x4   : > { %p140_p2 = pnand %p1722_p0, %p139_p1 }
   0x5   : > { %s1723_s28 = sshll.u32 (!%p140_p2), %s1718_s13, 5 }
   0x6   : > { %143 = sbr.rel (%p140_p2) target bundleno = 750 (0x2ee), region = 32  ;;  %p165_p3 = scmp.lt.s32.totalorder (!%p140_p2), %s1723_s28, 255 }
   0xb   : > { %v480_v0 = vld [vmem:[%s2824_s1 + $0x78] sm:$0xff]  ;;  %v479_v1 = vld [vmem:[%s2824_s1 + $0x70] sm:$0xff]  ;;  %v478_v2 = vld [vmem:[%s2824_s1 + $0x68] sm:$0xff]  ;;  %s2828_s28 = smov (!%p165_p3, %s1723_s28), 255 }
   0xc   : > { %1729 = vmatpush.msra.mxu1 %v480_v0  ;;  %1730 = vmatpush.msra.mxu2 %v480_v0  ;;  %v477_v3 = vld [vmem:[%s2824_s1 + $0x60] sm:$0xff]  ;;  %v476_v4 = vld [vmem:[%s2824_s1 + $0x58] sm:$0xff]  ;;  %v475_v5 = vld [vmem:[%s2824_s1 + $0x50] sm:$0xff]  ;;  %s1777_s15 = smul.u32 72, %s2828_s28  ;;  %s1726_s18 = sshll.u32 %s2828_s28, 3 }
   0xd   : > { %1731 = vmatpush.msra.mxu3 %v480_v0  ;;  %613 = vmatpush.msra.mxu0 %v480_v0  ;;  %v474_v6 = vld [vmem:[%s2824_s1 + $0x48] sm:$0xff]  ;;  %v473_v7 = vld [vmem:[%s2824_s1 + $0x40] sm:$0xff]  ;;  %v472_v8 = vld [vmem:[%s2824_s1 + $0x38] sm:$0xff]  ;;  %s2697_s21 = scalar_lea.vmem %s2826_s3, %s1726_s18 }
   0xe   : > { %1732 = vmatpush.msra.mxu1 %v479_v1  ;;  %1733 = vmatpush.msra.mxu2 %v479_v1  ;;  %v471_v9 = vld [vmem:[%s2824_s1 + $0x30] sm:$0xff]  ;;  %v470_v10 = vld [vmem:[%s2824_s1 + $0x28] sm:$0xff]  ;;  %v469_v11 = vld [vmem:[%s2824_s1 + $0x20] sm:$0xff]  ;;  %s1876_s22 = scalar_lea.vmem %s2823_s0, %s1777_s15 }
   0xf   : > { %1734 = vmatpush.msra.mxu3 %v479_v1  ;;  %614 = vmatpush.msra.mxu0 %v479_v1  ;;  %v468_v12 = vld [vmem:[%s2824_s1 + $0x18] sm:$0xff]  ;;  %v467_v13 = vld [vmem:[%s2824_s1 + $0x10] sm:$0xff]  ;;  %v466_v14 = vld [vmem:[%s2824_s1 + $0x8] sm:$0xff] }
  0x10   : > { %1735 = vmatpush.msra.mxu1 %v478_v2  ;;  %1736 = vmatpush.msra.mxu2 %v478_v2  ;;  %v465_v15 = vld [vmem:[%s2824_s1] sm:$0xff]  ;;  %v512_v18 = vld [vmem:[%s2824_s1 + $0x178] sm:$0xff]  ;;  %v511_v22 = vld [vmem:[%s2824_s1 + $0x170] sm:$0xff] }
  0x11   : > { %1737 = vmatpush.msra.mxu3 %v478_v2  ;;  %615 = vmatpush.msra.mxu0 %v478_v2  ;;  %v249_v16 = vld [vmem:[%s1876_s22 + $0x240] sm:$0xff]  ;;  %v496_v20 = vld [vmem:[%s2824_s1 + $0xf8] sm:$0xff]  ;;  %v495_v23 = vld [vmem:[%s2824_s1 + $0xf0] sm:$0xff] }
  0x12   : > { %1738 = vmatpush.msra.mxu1 %v477_v3  ;;  %1739 = vmatpush.msra.mxu2 %v477_v3  ;;  %v321_v17 = vld [vmem:[%s1876_s22 + $0x480] sm:$0xff]  ;;  %v528_v21 = vld [vmem:[%s2824_s1 + $0x1f8] sm:$0xff]  ;;  %v527_v24 = vld [vmem:[%s2824_s1 + $0x1f0] sm:$0xff] }
  0x13   : > { %1740 = vmatpush.msra.mxu3 %v477_v3  ;;  %616 = vmatpush.msra.mxu0 %v477_v3  ;;  %v393_v19 = vld [vmem:[%s1876_s22 + $0x6c0] sm:$0xff]  ;;  %v510_v25 = vld [vmem:[%s2824_s1 + $0x168] sm:$0xff]  ;;  %v544_v29 = vld [vmem:[%s2824_s1 + $0x278] sm:$0xff] }
  0x14   : > { %1741 = vmatpush.msra.mxu1 %v476_v4  ;;  %1742 = vmatpush.msra.mxu2 %v476_v4  ;;  %v177_v26 = vld [vmem:[%s1876_s22] sm:$0xff]  ;;  %v494_v27 = vld [vmem:[%s2824_s1 + $0xe8] sm:$0xff]  ;;  %v543_v35 = vld [vmem:[%s2824_s1 + $0x270] sm:$0xff] }
  0x15   : > { %1743 = vmatpush.msra.mxu3 %v476_v4  ;;  %617 = vmatpush.msra.mxu0 %v476_v4  ;;  %v526_v28 = vld [vmem:[%s2824_s1 + $0x1e8] sm:$0xff]  ;;  %v509_v32 = vld [vmem:[%s2824_s1 + $0x160] sm:$0xff]  ;;  %v508_v37 = vld [vmem:[%s2824_s1 + $0x158] sm:$0xff] }
  0x16   : > { %1744 = vmatpush.msra.mxu1 %v475_v5  ;;  %1745 = vmatpush.msra.mxu2 %v475_v5  ;;  %v258_v30 = vld [vmem:[%s1876_s22 + $0x288] sm:$0xff]  ;;  %v525_v33 = vld [vmem:[%s2824_s1 + $0x1e0] sm:$0xff]  ;;  %v524_v38 = vld [vmem:[%s2824_s1 + $0x1d8] sm:$0xff] }
  0x17   : > { %1746 = vmatpush.msra.mxu3 %v475_v5  ;;  %618 = vmatpush.msra.mxu0 %v475_v5  ;;  %v330_v31 = vld [vmem:[%s1876_s22 + $0x4c8] sm:$0xff]  ;;  %v493_v36 = vld [vmem:[%s2824_s1 + $0xe0] sm:$0xff]  ;;  %v492_v40 = vld [vmem:[%s2824_s1 + $0xd8] sm:$0xff] }
  0x18   : > { %1747 = vmatpush.msra.mxu1 %v474_v6  ;;  %1748 = vmatpush.msra.mxu2 %v474_v6  ;;  %v402_v34 = vld [vmem:[%s1876_s22 + $0x708] sm:$0xff]  ;;  %v507_v41 = vld [vmem:[%s2824_s1 + $0x150] sm:$0xff]  ;;  %v541_v44 = vld [vmem:[%s2824_s1 + $0x260] sm:$0xff] }
  0x19   : > { %1749 = vmatpush.msra.mxu3 %v474_v6  ;;  %619 = vmatpush.msra.mxu0 %v474_v6  ;;  %v542_v39 = vld [vmem:[%s2824_s1 + $0x268] sm:$0xff]  ;;  %v523_v43 = vld [vmem:[%s2824_s1 + $0x1d0] sm:$0xff]  ;;  %v540_v51 = vld [vmem:[%s2824_s1 + $0x258] sm:$0xff] }
  0x1a   : > { %1750 = vmatpush.msra.mxu1 %v473_v7  ;;  %1751 = vmatpush.msra.mxu2 %v473_v7  ;;  %v186_v42 = vld [vmem:[%s1876_s22 + $0x48] sm:$0xff]  ;;  %v491_v45 = vld [vmem:[%s2824_s1 + $0xd0] sm:$0xff]  ;;  %v505_v53 = vld [vmem:[%s2824_s1 + $0x140] sm:$0xff] }
  0x1b   : > { %1752 = vmatpush.msra.mxu3 %v473_v7  ;;  %620 = vmatpush.msra.mxu0 %v473_v7  ;;  %v267_v46 = vld [vmem:[%s1876_s22 + $0x2d0] sm:$0xff]  ;;  %v506_v48 = vld [vmem:[%s2824_s1 + $0x148] sm:$0xff]  ;;  %v521_v54 = vld [vmem:[%s2824_s1 + $0x1c0] sm:$0xff] }
  0x1c   : > { %1753 = vmatpush.msra.mxu1 %v472_v8  ;;  %1754 = vmatpush.msra.mxu2 %v472_v8  ;;  %v339_v47 = vld [vmem:[%s1876_s22 + $0x510] sm:$0xff]  ;;  %v522_v49 = vld [vmem:[%s2824_s1 + $0x1c8] sm:$0xff]  ;;  %v489_v56 = vld [vmem:[%s2824_s1 + $0xc0] sm:$0xff] }
  0x1d   : > { %1755 = vmatpush.msra.mxu3 %v472_v8  ;;  %621 = vmatpush.msra.mxu0 %v472_v8  ;;  %v411_v50 = vld [vmem:[%s1876_s22 + $0x750] sm:$0xff]  ;;  %v490_v52 = vld [vmem:[%s2824_s1 + $0xc8] sm:$0xff]  ;;  %v504_v57 = vld [vmem:[%s2824_s1 + $0x138] sm:$0xff] }
  0x1e   : > { %1756 = vmatpush.msra.mxu1 %v471_v9  ;;  %1757 = vmatpush.msra.mxu2 %v471_v9  ;;  %v539_v55 = vld [vmem:[%s2824_s1 + $0x250] sm:$0xff]  ;;  %v520_v59 = vld [vmem:[%s2824_s1 + $0x1b8] sm:$0xff]  ;;  %v538_v60 = vld [vmem:[%s2824_s1 + $0x248] sm:$0xff] }
  0x1f   : > { %1758 = vmatpush.msra.mxu3 %v471_v9  ;;  %622 = vmatpush.msra.mxu0 %v471_v9  ;;  %v195_v58 = vld [vmem:[%s1876_s22 + $0x90] sm:$0xff]  ;;  %v488_v61 = vld [vmem:[%s2824_s1 + $0xb8] sm:$0xff]  ;;  %v537_v3 = vld [vmem:[%s2824_s1 + $0x240] sm:$0xff] }
  0x20   : > { %1759 = vmatpush.msra.mxu1 %v470_v10  ;;  %1760 = vmatpush.msra.mxu2 %v470_v10  ;;  %v276_v62 = vld [vmem:[%s1876_s22 + $0x318] sm:$0xff]  ;;  %v503_v0 = vld [vmem:[%s2824_s1 + $0x130] sm:$0xff]  ;;  %v502_v5 = vld [vmem:[%s2824_s1 + $0x128] sm:$0xff] }
  0x21   : > { %1761 = vmatpush.msra.mxu3 %v470_v10  ;;  %623 = vmatpush.msra.mxu0 %v470_v10  ;;  %v348_v63 = vld [vmem:[%s1876_s22 + $0x558] sm:$0xff]  ;;  %v519_v1 = vld [vmem:[%s2824_s1 + $0x1b0] sm:$0xff]  ;;  %v518_v6 = vld [vmem:[%s2824_s1 + $0x1a8] sm:$0xff] }
  0x22   : > { %1762 = vmatpush.msra.mxu1 %v469_v11  ;;  %1763 = vmatpush.msra.mxu2 %v469_v11  ;;  %v420_v2 = vld [vmem:[%s1876_s22 + $0x798] sm:$0xff]  ;;  %v487_v4 = vld [vmem:[%s2824_s1 + $0xb0] sm:$0xff]  ;;  %v486_v8 = vld [vmem:[%s2824_s1 + $0xa8] sm:$0xff] }
  0x23   : > { %1764 = vmatpush.msra.mxu3 %v469_v11  ;;  %624 = vmatpush.msra.mxu0 %v469_v11  ;;  %v536_v7 = vld [vmem:[%s2824_s1 + $0x238] sm:$0xff]  ;;  %v501_v9 = vld [vmem:[%s2824_s1 + $0x120] sm:$0xff] }
  0x24   : > { %1765 = vmatpush.msra.mxu1 %v468_v12  ;;  %1766 = vmatpush.msra.mxu2 %v468_v12  ;;  %v204_v10 = vld [vmem:[%s1876_s22 + $0xd8] sm:$0xff]  ;;  %v517_v11 = vld [vmem:[%s2824_s1 + $0x1a0] sm:$0xff] }
  0x25   : > { %1767 = vmatpush.msra.mxu3 %v468_v12  ;;  %625 = vmatpush.msra.mxu0 %v468_v12  ;;  %v535_v12 = vld [vmem:[%s2824_s1 + $0x230] sm:$0xff] }
  0x26   : > { %1768 = vmatpush.msra.mxu1 %v467_v13  ;;  %1769 = vmatpush.msra.mxu2 %v467_v13 }
  0x27   : > { %1770 = vmatpush.msra.mxu3 %v467_v13  ;;  %626 = vmatpush.msra.mxu0 %v467_v13  ;;  %v485_v13 = vld [vmem:[%s2824_s1 + $0xa0] sm:$0xff] }
  0x28   : > { %1771 = vmatpush.msra.mxu1 %v466_v14  ;;  %1772 = vmatpush.msra.mxu2 %v466_v14 }
  0x29   : > { %1773 = vmatpush.msra.mxu3 %v466_v14  ;;  %627 = vmatpush.msra.mxu0 %v466_v14  ;;  %v285_v14 = vld [vmem:[%s1876_s22 + $0x360] sm:$0xff] }
  0x2a   : > { %1774 = vmatpush.msra.mxu1 %v465_v15  ;;  %1775 = vmatpush.msra.mxu2 %v465_v15 }
  0x2b   : > { %653 = vmatmul.f32.vlgmr.msra.gmra.mxu1 %v249_v16  ;;  %677 = vmatmul.f32.vlgmr.msra.gmra.mxu2 %v321_v17  ;;  %v500_v16 = vld [vmem:[%s2824_s1 + $0x118] sm:$0xff] }
  0x2c   : > { %839 = vmatpush.msrb.mxu2 %v512_v18  ;;  %1776 = vmatpush.msra.mxu3 %v465_v15  ;;  %v516_v17 = vld [vmem:[%s2824_s1 + $0x198] sm:$0xff]  ;;  %v429_v18 = vld [vmem:[%s1876_s22 + $0x7e0] sm:$0xff] }
  0x2d   : > { %701 = vmatmul.f32.vlgmr.msra.gmra.mxu3 %v393_v19  ;;  %726 = vmatpush.msrb.mxu1 %v496_v20  ;;  %v534_v19 = vld [vmem:[%s2824_s1 + $0x228] sm:$0xff]  ;;  %v484_v20 = vld [vmem:[%s2824_s1 + $0x98] sm:$0xff] }
  0x2e   : > { %952 = vmatpush.msrb.mxu3 %v528_v21  ;;  %840 = vmatpush.msrb.mxu2 %v511_v22  ;;  %v499_v21 = vld [vmem:[%s2824_s1 + $0x110] sm:$0xff] }
  0x2f   : > { %727 = vmatpush.msrb.mxu1 %v495_v23  ;;  %628 = vmatpush.msra.mxu0 %v465_v15  ;;  %v357_v15 = vld [vmem:[%s1876_s22 + $0x5a0] sm:$0xff]  ;;  %v515_v22 = vld [vmem:[%s2824_s1 + $0x190] sm:$0xff] }
  0x30   : > { %953 = vmatpush.msrb.mxu3 %v527_v24  ;;  %841 = vmatpush.msrb.mxu2 %v510_v25  ;;  %v533_v23 = vld [vmem:[%s2824_s1 + $0x220] sm:$0xff]  ;;  %v483_v24 = vld [vmem:[%s2824_s1 + $0x90] sm:$0xff]  ;;  %v498_v25 = vld [vmem:[%s2824_s1 + $0x108] sm:$0xff] }
  0x31   : > { %629 = vmatmul.f32.vlgmr.msra.gmra.mxu0 %v177_v26  ;;  %728 = vmatpush.msrb.mxu1 %v494_v27  ;;  %v213_v26 = vld [vmem:[%s1876_s22 + $0x120] sm:$0xff]  ;;  %v514_v27 = vld [vmem:[%s2824_s1 + $0x188] sm:$0xff] }
  0x32   : > { %954 = vmatpush.msrb.mxu3 %v526_v28  ;;  %1065 = vmatpush.msrb.mxu0 %v544_v29  ;;  %v532_v28 = vld [vmem:[%s2824_s1 + $0x218] sm:$0xff]  ;;  %v482_v29 = vld [vmem:[%s2824_s1 + $0x88] sm:$0xff] }
  0x33   : > { %656 = vmatmul.f32.gmra.mxu1 %v258_v30  ;;  %680 = vmatmul.f32.gmra.mxu2 %v330_v31  ;;  %v294_v30 = vld [vmem:[%s1876_s22 + $0x3a8] sm:$0xff] }
  0x34   : > { %842 = vmatpush.msrb.mxu2 %v509_v32  ;;  %955 = vmatpush.msrb.mxu3 %v525_v33  ;;  %v366_v31 = vld [vmem:[%s1876_s22 + $0x5e8] sm:$0xff]  ;;  %v497_v32 = vld [vmem:[%s2824_s1 + $0x100] sm:$0xff] }
  0x35   : > { %704 = vmatmul.f32.gmra.mxu3 %v402_v34  ;;  %1066 = vmatpush.msrb.mxu0 %v543_v35  ;;  %v513_v33 = vld [vmem:[%s2824_s1 + $0x180] sm:$0xff]  ;;  %v438_v34 = vld [vmem:[%s1876_s22 + $0x828] sm:$0xff]  ;;  %v531_v35 = vld [vmem:[%s2824_s1 + $0x210] sm:$0xff] }
  0x36   : > { %729 = vmatpush.msrb.mxu1 %v493_v36  ;;  %843 = vmatpush.msrb.mxu2 %v508_v37  ;;  %v481_v36 = vld [vmem:[%s2824_s1 + $0x80] sm:$0xff]  ;;  %v576_v37 = vld [vmem:[%s2824_s1 + $0x378] sm:$0xff] }
  0x37   : > { %956 = vmatpush.msrb.mxu3 %v524_v38  ;;  %1067 = vmatpush.msrb.mxu0 %v542_v39  ;;  %v530_v38 = vld [vmem:[%s2824_s1 + $0x208] sm:$0xff]  ;;  %v592_v39 = vld [vmem:[%s2824_s1 + $0x3f8] sm:$0xff] }
  0x38   : > { %730 = vmatpush.msrb.mxu1 %v492_v40  ;;  %844 = vmatpush.msrb.mxu2 %v507_v41  ;;  %v560_v40 = vld [vmem:[%s2824_s1 + $0x2f8] sm:$0xff]  ;;  %v222_v41 = vld [vmem:[%s1876_s22 + $0x168] sm:$0xff] }
  0x39   : > { %632 = vmatmul.f32.gmra.mxu0 %v186_v42  ;;  %957 = vmatpush.msrb.mxu3 %v523_v43  ;;  %v529_v42 = vld [vmem:[%s2824_s1 + $0x200] sm:$0xff]  ;;  %v303_v43 = vld [vmem:[%s1876_s22 + $0x3f0] sm:$0xff] }
  0x3a   : > { %1068 = vmatpush.msrb.mxu0 %v541_v44  ;;  %731 = vmatpush.msrb.mxu1 %v491_v45  ;;  %v375_v44 = vld [vmem:[%s1876_s22 + $0x630] sm:$0xff]  ;;  %v608_v45 = vld [vmem:[%s2824_s1 + $0x478] sm:$0xff] }
  0x3b   : > { %659 = vmatmul.f32.gmra.mxu1 %v267_v46  ;;  %683 = vmatmul.f32.gmra.mxu2 %v339_v47  ;;  %v447_v46 = vld [vmem:[%s1876_s22 + $0x870] sm:$0xff] }
  0x3c   : > { %845 = vmatpush.msrb.mxu2 %v506_v48  ;;  %958 = vmatpush.msrb.mxu3 %v522_v49  ;;  %v575_v47 = vld [vmem:[%s2824_s1 + $0x370] sm:$0xff] }
  0x3d   : > { %707 = vmatmul.f32.gmra.mxu3 %v411_v50  ;;  %1069 = vmatpush.msrb.mxu0 %v540_v51  ;;  %v591_v48 = vld [vmem:[%s2824_s1 + $0x3f0] sm:$0xff]  ;;  %v312_v51 = vld [vmem:[%s1876_s22 + $0x438] sm:$0xff] }
  0x3e   : > { %732 = vmatpush.msrb.mxu1 %v490_v52  ;;  %846 = vmatpush.msrb.mxu2 %v505_v53  ;;  %v559_v49 = vld [vmem:[%s2824_s1 + $0x2f0] sm:$0xff]  ;;  %v384_v52 = vld [vmem:[%s1876_s22 + $0x678] sm:$0xff] }
  0x3f   : > { %959 = vmatpush.msrb.mxu3 %v521_v54  ;;  %1070 = vmatpush.msrb.mxu0 %v539_v55  ;;  %v231_v50 = vld [vmem:[%s1876_s22 + $0x1b0] sm:$0xff]  ;;  %v456_v53 = vld [vmem:[%s1876_s22 + $0x8b8] sm:$0xff] }
  0x40   : > { %733 = vmatpush.msrb.mxu1 %v489_v56  ;;  %847 = vmatpush.msrb.mxu2 %v504_v57  ;;  %v607_v54 = vld [vmem:[%s2824_s1 + $0x470] sm:$0xff]  ;;  %v240_v55 = vld [vmem:[%s1876_s22 + $0x1f8] sm:$0xff]  ;;  %v178_v56 = vld [vmem:[%s1876_s22 + $0x8] sm:$0xff] }
  0x41   : > { %635 = vmatmul.f32.gmra.mxu0 %v195_v58  ;;  %960 = vmatpush.msrb.mxu3 %v520_v59  ;;  %v179_v57 = vld [vmem:[%s1876_s22 + $0x10] sm:$0xff]  ;;  %v180_v58 = vld [vmem:[%s1876_s22 + $0x18] sm:$0xff]  ;;  %v574_v59 = vld [vmem:[%s2824_s1 + $0x368] sm:$0xff] }
  0x42   : > { %1071 = vmatpush.msrb.mxu0 %v538_v60  ;;  %734 = vmatpush.msrb.mxu1 %v488_v61  ;;  %v590_v60 = vld [vmem:[%s2824_s1 + $0x3e8] sm:$0xff] }
  0x43   : > { %662 = vmatmul.f32.gmra.mxu1 %v276_v62  ;;  %686 = vmatmul.f32.gmra.mxu2 %v348_v63  ;;  %v558_v61 = vld [vmem:[%s2824_s1 + $0x2e8] sm:$0xff]  ;;  %v181_v62 = vld [vmem:[%s1876_s22 + $0x20] sm:$0xff]  ;;  %v187_v63 = vld [vmem:[%s1876_s22 + $0x50] sm:$0xff] }
  0x44   : > { %848 = vmatpush.msrb.mxu2 %v503_v0  ;;  %961 = vmatpush.msrb.mxu3 %v519_v1  ;;  %v188_v0 = vld [vmem:[%s1876_s22 + $0x58] sm:$0xff]  ;;  %v189_v1 = vld [vmem:[%s1876_s22 + $0x60] sm:$0xff] }
  0x45   : > { %710 = vmatmul.f32.gmra.mxu3 %v420_v2  ;;  %1072 = vmatpush.msrb.mxu0 %v537_v3  ;;  %v606_v2 = vld [vmem:[%s2824_s1 + $0x468] sm:$0xff] }
  0x46   : > { %735 = vmatpush.msrb.mxu1 %v487_v4  ;;  %849 = vmatpush.msrb.mxu2 %v502_v5  ;;  %v190_v3 = vld [vmem:[%s1876_s22 + $0x68] sm:$0xff]  ;;  %v196_v4 = vld [vmem:[%s1876_s22 + $0x98] sm:$0xff]  ;;  %v197_v5 = vld [vmem:[%s1876_s22 + $0xa0] sm:$0xff] }
  0x47   : > { %962 = vmatpush.msrb.mxu3 %v518_v6  ;;  %1073 = vmatpush.msrb.mxu0 %v536_v7  ;;  %v198_v6 = vld [vmem:[%s1876_s22 + $0xa8] sm:$0xff]  ;;  %v573_v7 = vld [vmem:[%s2824_s1 + $0x360] sm:$0xff] }
  0x48   : > { %736 = vmatpush.msrb.mxu1 %v486_v8  ;;  %850 = vmatpush.msrb.mxu2 %v501_v9  ;;  %v589_v8 = vld [vmem:[%s2824_s1 + $0x3e0] sm:$0xff] }
  0x49   : > { %638 = vmatmul.f32.gmra.mxu0 %v204_v10  ;;  %963 = vmatpush.msrb.mxu3 %v517_v11  ;;  %v557_v9 = vld [vmem:[%s2824_s1 + $0x2e0] sm:$0xff]  ;;  %v199_v10 = vld [vmem:[%s1876_s22 + $0xb0] sm:$0xff] }
  0x4a   : > { %1074 = vmatpush.msrb.mxu0 %v535_v12  ;;  %737 = vmatpush.msrb.mxu1 %v485_v13  ;;  %v205_v11 = vld [vmem:[%s1876_s22 + $0xe0] sm:$0xff]  ;;  %v206_v12 = vld [vmem:[%s1876_s22 + $0xe8] sm:$0xff]  ;;  %v207_v13 = vld [vmem:[%s1876_s22 + $0xf0] sm:$0xff] }
  0x4b   : > { %665 = vmatmul.f32.gmra.mxu1 %v285_v14  ;;  %689 = vmatmul.f32.gmra.mxu2 %v357_v15  ;;  %v605_v14 = vld [vmem:[%s2824_s1 + $0x460] sm:$0xff]  ;;  %v208_v15 = vld [vmem:[%s1876_s22 + $0xf8] sm:$0xff] }
  0x4c   : > { %851 = vmatpush.msrb.mxu2 %v500_v16  ;;  %964 = vmatpush.msrb.mxu3 %v516_v17  ;;  %v214_v16 = vld [vmem:[%s1876_s22 + $0x128] sm:$0xff]  ;;  %v215_v17 = vld [vmem:[%s1876_s22 + $0x130] sm:$0xff] }
  0x4d   : > { %713 = vmatmul.f32.gmra.mxu3 %v429_v18  ;;  %1075 = vmatpush.msrb.mxu0 %v534_v19  ;;  %v216_v18 = vld [vmem:[%s1876_s22 + $0x138] sm:$0xff] }
  0x4e   : > { %738 = vmatpush.msrb.mxu1 %v484_v20  ;;  %852 = vmatpush.msrb.mxu2 %v499_v21  ;;  %v572_v19 = vld [vmem:[%s2824_s1 + $0x358] sm:$0xff]  ;;  %v217_v21 = vld [vmem:[%s1876_s22 + $0x140] sm:$0xff] }
  0x4f   : > { %965 = vmatpush.msrb.mxu3 %v515_v22  ;;  %1076 = vmatpush.msrb.mxu0 %v533_v23  ;;  %v588_v20 = vld [vmem:[%s2824_s1 + $0x3d8] sm:$0xff]  ;;  %v223_v23 = vld [vmem:[%s1876_s22 + $0x170] sm:$0xff] }
  0x50   : > { %739 = vmatpush.msrb.mxu1 %v483_v24  ;;  %853 = vmatpush.msrb.mxu2 %v498_v25  ;;  %v556_v22 = vld [vmem:[%s2824_s1 + $0x2d8] sm:$0xff]  ;;  %v225_v25 = vld [vmem:[%s1876_s22 + $0x180] sm:$0xff] }
  0x51   : > { %641 = vmatmul.f32.gmra.mxu0 %v213_v26  ;;  %966 = vmatpush.msrb.mxu3 %v514_v27  ;;  %v224_v24 = vld [vmem:[%s1876_s22 + $0x178] sm:$0xff]  ;;  %v226_v27 = vld [vmem:[%s1876_s22 + $0x188] sm:$0xff] }
  0x52   : > { %1077 = vmatpush.msrb.mxu0 %v532_v28  ;;  %740 = vmatpush.msrb.mxu1 %v482_v29  ;;  %v604_v26 = vld [vmem:[%s2824_s1 + $0x458] sm:$0xff]  ;;  %v233_v29 = vld [vmem:[%s1876_s22 + $0x1c0] sm:$0xff] }
  0x53   : > { %668 = vmatmul.f32.gmra.mxu1 %v294_v30  ;;  %692 = vmatmul.f32.gmra.mxu2 %v366_v31  ;;  %v232_v28 = vld [vmem:[%s1876_s22 + $0x1b8] sm:$0xff]  ;;  %v234_v30 = vld [vmem:[%s1876_s22 + $0x1c8] sm:$0xff]  ;;  %v571_v31 = vld [vmem:[%s2824_s1 + $0x350] sm:$0xff] }
  0x54   : > { %854 = vmatpush.msrb.mxu2 %v497_v32  ;;  %967 = vmatpush.msrb.mxu3 %v513_v33  ;;  %v587_v32 = vld [vmem:[%s2824_s1 + $0x3d0] sm:$0xff] }
  0x55   : > { %716 = vmatmul.f32.gmra.mxu3 %v438_v34  ;;  %1078 = vmatpush.msrb.mxu0 %v531_v35  ;;  %v235_v33 = vld [vmem:[%s1876_s22 + $0x1d0] sm:$0xff]  ;;  %v241_v35 = vld [vmem:[%s1876_s22 + $0x200] sm:$0xff] }
  0x56   : > { %741 = vmatpush.msrb.mxu1 %v481_v36  ;;  %1291 = vmatpush.msra.mxu2 %v576_v37  ;;  %v555_v34 = vld [vmem:[%s2824_s1 + $0x2d0] sm:$0xff]  ;;  %v242_v36 = vld [vmem:[%s1876_s22 + $0x208] sm:$0xff] }
  0x57   : > { %1079 = vmatpush.msrb.mxu0 %v530_v38  ;;  %1404 = vmatpush.msra.mxu3 %v592_v39  ;;  %v243_v37 = vld [vmem:[%s1876_s22 + $0x210] sm:$0xff]  ;;  %v244_v39 = vld [vmem:[%s1876_s22 + $0x218] sm:$0xff] }
  0x58   : > { %1178 = vmatpush.msra.mxu1 %v560_v40  ;;  %1292 = vmatpush.msra.mxu2 %v575_v47  ;;  %v603_v38 = vld [vmem:[%s2824_s1 + $0x450] sm:$0xff] }
  0x59   : > { %644 = vmatmul.f32.gmra.mxu0 %v222_v41  ;;  %1405 = vmatpush.msra.mxu3 %v591_v48  ;;  %v250_v41 = vld [vmem:[%s1876_s22 + $0x248] sm:$0xff] }
  0x5a   : > { %1080 = vmatpush.msrb.mxu0 %v529_v42  ;;  %1179 = vmatpush.msra.mxu1 %v559_v49  ;;  %v251_v42 = vld [vmem:[%s1876_s22 + $0x250] sm:$0xff]  ;;  %v253_v49 = vld [vmem:[%s1876_s22 + $0x260] sm:$0xff] }
  0x5b   : > { %671 = vmatmul.f32.gmra.mxu1 %v303_v43  ;;  %695 = vmatmul.f32.gmra.mxu2 %v375_v44  ;;  %v252_v43 = vld [vmem:[%s1876_s22 + $0x258] sm:$0xff]  ;;  %v570_v44 = vld [vmem:[%s2824_s1 + $0x348] sm:$0xff] }
  0x5c   : > { %1517 = vmatpush.msra.mxu0 %v608_v45  ;;  %1293 = vmatpush.msra.mxu2 %v574_v59  ;;  %v2220_v45 = vld [vmem:[%s2825_s2] ss:$0 sm:$0xff] }
  0x5d   : > { %719 = vmatmul.f32.gmra.mxu3 %v447_v46  ;;  %1180 = vmatpush.msra.mxu1 %v558_v61  ;;  %v586_v46 = vld [vmem:[%s2824_s1 + $0x3c8] sm:$0xff] }
  0x5e   : > { %1518 = vmatpush.msra.mxu0 %v607_v54  ;;  %1406 = vmatpush.msra.mxu3 %v590_v60  ;;  %v259_v54 = vld [vmem:[%s1876_s22 + $0x290] sm:$0xff]  ;;  %v262_v61 = vld [vmem:[%s1876_s22 + $0x2a8] sm:$0xff] }
  0x5f   : > { %1294 = vmatpush.msra.mxu2 %v573_v7  ;;  %1181 = vmatpush.msra.mxu1 %v557_v9  ;;  %v271_v9 = vld [vmem:[%s1876_s22 + $0x2f0] sm:$0xff] }
  0x60   : > { %1519 = vmatpush.msra.mxu0 %v606_v2  ;;  %1407 = vmatpush.msra.mxu3 %v589_v8  ;;  %v269_v2 = vld [vmem:[%s1876_s22 + $0x2e0] sm:$0xff] }
  0x61   : > { %647 = vmatmul.f32.gmra.mxu0 %v231_v50  ;;  %1295 = vmatpush.msra.mxu2 %v572_v19 }
  0x62   : > { %1520 = vmatpush.msra.mxu0 %v605_v14  ;;  %1408 = vmatpush.msra.mxu3 %v588_v20  ;;  %v277_v14 = vld [vmem:[%s1876_s22 + $0x320] sm:$0xff] }
  0x63   : > { %674 = vmatmul.f32.gmra.mxu1 %v312_v51  ;;  %698 = vmatmul.f32.gmra.mxu2 %v384_v52  ;;  %v554_v51 = vld [vmem:[%s2824_s1 + $0x2c8] sm:$0xff] }
  0x64   : > { %1182 = vmatpush.msra.mxu1 %v556_v22  ;;  %1521 = vmatpush.msra.mxu0 %v604_v26  ;;  %v287_v26 = vld [vmem:[%s1876_s22 + $0x370] sm:$0xff] }
  0x65   : > { %722 = vmatmul.f32.gmra.mxu3 %v456_v53  ;;  %1296 = vmatpush.msra.mxu2 %v571_v31 }
  0x66   : > { %1409 = vmatpush.msra.mxu3 %v587_v32  ;;  %1183 = vmatpush.msra.mxu1 %v555_v34 }
  0x67   : > { %1522 = vmatpush.msra.mxu0 %v603_v38  ;;  %1297 = vmatpush.msra.mxu2 %v570_v44  ;;  %v295_v38 = vld [vmem:[%s1876_s22 + $0x3b0] sm:$0xff] }
  0x68   : > { %1410 = vmatpush.msra.mxu3 %v586_v46  ;;  %1184 = vmatpush.msra.mxu1 %v554_v51 }
  0x69   : > { %650 = vmatmul.f32.gmra.mxu0 %v240_v55  ;;  %v260_v55 = vld [vmem:[%s1876_s22 + $0x298] sm:$0xff] }
  0x6b   : > { %742 = vmatmul.f32.vlgmr.msrb.gmra.mxu1 %v178_v56  ;;  %855 = vmatmul.f32.vlgmr.msrb.gmra.mxu2 %v179_v57  ;;  %v261_v57 = vld [vmem:[%s1876_s22 + $0x2a0] sm:$0xff] }
  0x6d   : > { %968 = vmatmul.f32.vlgmr.msrb.gmra.mxu3 %v180_v58  ;;  %v602_v58 = vld [vmem:[%s2824_s1 + $0x448] sm:$0xff] }
  0x6e   : > { %1523 = vmatpush.msra.mxu0 %v602_v58  ;;  %v306_v58 = vld [vmem:[%s1876_s22 + $0x408] sm:$0xff] }
  0x71   : > { %1081 = vmatmul.f32.vlgmr.msrb.gmra.mxu0 %v181_v62 }
  0x73   : > { %745 = vmatmul.f32.gmra.mxu1 %v187_v63  ;;  %858 = vmatmul.f32.gmra.mxu2 %v188_v0 }
  0x75   : > { %971 = vmatmul.f32.gmra.mxu3 %v189_v1  ;;  %v268_v1 = vld [vmem:[%s1876_s22 + $0x2d8] sm:$0xff] }
  0x79   : > { %1084 = vmatmul.f32.gmra.mxu0 %v190_v3 }
  0x7b   : > { %748 = vmatmul.f32.gmra.mxu1 %v196_v4  ;;  %861 = vmatmul.f32.gmra.mxu2 %v197_v5  ;;  %v270_v4 = vld [vmem:[%s1876_s22 + $0x2e8] sm:$0xff]  ;;  %v569_v5 = vld [vmem:[%s2824_s1 + $0x340] sm:$0xff] }
  0x7c   : > { %1298 = vmatpush.msra.mxu2 %v569_v5  ;;  %v551_v5 = vld [vmem:[%s2824_s1 + $0x2b0] sm:$0xff] }
  0x7d   : > { %974 = vmatmul.f32.gmra.mxu3 %v198_v6  ;;  %v585_v6 = vld [vmem:[%s2824_s1 + $0x3c0] sm:$0xff] }
  0x7e   : > { %1411 = vmatpush.msra.mxu3 %v585_v6 }
  0x81   : > { %1087 = vmatmul.f32.gmra.mxu0 %v199_v10 }
  0x83   : > { %751 = vmatmul.f32.gmra.mxu1 %v205_v11  ;;  %864 = vmatmul.f32.gmra.mxu2 %v206_v12  ;;  %v553_v11 = vld [vmem:[%s2824_s1 + $0x2c0] sm:$0xff] }
  0x84   : > { %1185 = vmatpush.msra.mxu1 %v553_v11  ;;  %v314_v11 = vld [vmem:[%s1876_s22 + $0x448] sm:$0xff] }
  0x85   : > { %977 = vmatmul.f32.gmra.mxu3 %v207_v13 }
  0x89   : > { %1090 = vmatmul.f32.gmra.mxu0 %v208_v15  ;;  %v278_v15 = vld [vmem:[%s1876_s22 + $0x328] sm:$0xff] }
  0x8b   : > { %754 = vmatmul.f32.gmra.mxu1 %v214_v16  ;;  %867 = vmatmul.f32.gmra.mxu2 %v215_v17  ;;  %v279_v17 = vld [vmem:[%s1876_s22 + $0x330] sm:$0xff] }
  0x8d   : > { %980 = vmatmul.f32.gmra.mxu3 %v216_v18  ;;  %v601_v18 = vld [vmem:[%s2824_s1 + $0x440] sm:$0xff] }
  0x8e   : > { %1524 = vmatpush.msra.mxu0 %v601_v18 }
  0x91   : > { %1093 = vmatmul.f32.gmra.mxu0 %v217_v21  ;;  %v280_v21 = vld [vmem:[%s1876_s22 + $0x338] sm:$0xff] }
  0x93   : > { %757 = vmatmul.f32.gmra.mxu1 %v223_v23  ;;  %870 = vmatmul.f32.gmra.mxu2 %v224_v24 }
  0x95   : > { %983 = vmatmul.f32.gmra.mxu3 %v225_v25  ;;  %v286_v25 = vld [vmem:[%s1876_s22 + $0x368] sm:$0xff] }
  0x99   : > { %1096 = vmatmul.f32.gmra.mxu0 %v226_v27 }
  0x9b   : > { %760 = vmatmul.f32.gmra.mxu1 %v232_v28  ;;  %873 = vmatmul.f32.gmra.mxu2 %v233_v29  ;;  %v288_v28 = vld [vmem:[%s1876_s22 + $0x378] sm:$0xff] }
  0x9c   : > { %v568_v29 = vld [vmem:[%s2824_s1 + $0x338] sm:$0xff] }
  0x9d   : > { %986 = vmatmul.f32.gmra.mxu3 %v234_v30  ;;  %1299 = vmatpush.msra.mxu2 %v568_v29  ;;  %v584_v30 = vld [vmem:[%s2824_s1 + $0x3b8] sm:$0xff] }
  0x9e   : > { %1412 = vmatpush.msra.mxu3 %v584_v30  ;;  %v324_v30 = vld [vmem:[%s1876_s22 + $0x498] sm:$0xff] }
  0xa1   : > { %1099 = vmatmul.f32.gmra.mxu0 %v235_v33  ;;  %v289_v33 = vld [vmem:[%s1876_s22 + $0x380] sm:$0xff] }
  0xa3   : > { %763 = vmatmul.f32.gmra.mxu1 %v241_v35  ;;  %876 = vmatmul.f32.gmra.mxu2 %v242_v36  ;;  %v552_v35 = vld [vmem:[%s2824_s1 + $0x2b8] sm:$0xff] }
  0xa4   : > { %1186 = vmatpush.msra.mxu1 %v552_v35 }
  0xa5   : > { %989 = vmatmul.f32.gmra.mxu3 %v243_v37 }
  0xa6   : > { %1187 = vmatpush.msra.mxu1 %v551_v5 }
  0xa8   : > { %v2209_v40 = vpop.f32.mrf.mxu1 }
  0xa9   : > { %1102 = vmatmul.f32.gmra.mxu0 %v244_v39  ;;  %v296_v39 = vld [vmem:[%s1876_s22 + $0x3b8] sm:$0xff] }
  0xab   : > { %766 = vmatmul.f32.gmra.mxu1 %v250_v41  ;;  %879 = vmatmul.f32.gmra.mxu2 %v251_v42  ;;  %v297_v42 = vld [vmem:[%s1876_s22 + $0x3c0] sm:$0xff] }
  0xad   : > { %992 = vmatmul.f32.gmra.mxu3 %v252_v43  ;;  %v600_v43 = vld [vmem:[%s2824_s1 + $0x438] sm:$0xff] }
  0xae   : > { %v678_v47 = vpop.f32.mrf.mxu2  ;;  %v2225_v48 = vpop.f32.mrf.mxu0  ;;  %1525 = vmatpush.msra.mxu0 %v600_v43  ;;  %v550_v43 = vld [vmem:[%s2824_s1 + $0x2a8] sm:$0xff] }
  0xaf   : > { %v2229_v50 = vadd.f32 %v2220_v45, %v678_v47  ;;  %v298_v47 = vld [vmem:[%s1876_s22 + $0x3c8] sm:$0xff]  ;;  %1188 = vmatpush.msra.mxu1 %v550_v43 }
  0xb0   : > { %v2234_v52 = vpop.f32.mrf.mxu1  ;;  %v702_v53 = vpop.f32.mrf.mxu3  ;;  %v350_v43 = vld [vmem:[%s1876_s22 + $0x568] sm:$0xff] }
  0xb1   : > { %v2239_v56 = vadd.f32 %v2220_v45, %v702_v53  ;;  %1105 = vmatmul.f32.gmra.mxu0 %v253_v49 }
  0xb3   : > { %769 = vmatmul.f32.gmra.mxu1 %v259_v54  ;;  %882 = vmatmul.f32.gmra.mxu2 %v260_v55  ;;  %v304_v54 = vld [vmem:[%s1876_s22 + $0x3f8] sm:$0xff]  ;;  %v305_v55 = vld [vmem:[%s1876_s22 + $0x400] sm:$0xff] }
  0xb5   : > { %995 = vmatmul.f32.gmra.mxu3 %v261_v57 }
  0xb6   : > { %v681_v59 = vpop.f32.mrf.mxu2  ;;  %v2245_v60 = vpop.f32.mrf.mxu0 }
  0xb7   : > { %v2249_v62 = vadd.f32 %v2220_v45, %v681_v59  ;;  %v567_v59 = vld [vmem:[%s2824_s1 + $0x330] sm:$0xff] }
  0xb8   : > { %v2251_v63 = vpop.f32.mrf.mxu1  ;;  %v705_v0 = vpop.f32.mrf.mxu3  ;;  %1300 = vmatpush.msra.mxu2 %v567_v59  ;;  %v634_v59 = vadd.f32 %v2220_v45, %v2245_v60  ;;  %v341_v60 = vld [vmem:[%s1876_s22 + $0x520] sm:$0xff] }
  0xb9   : > { %v2256_v3 = vadd.f32 %v2220_v45, %v705_v0  ;;  %1108 = vmatmul.f32.gmra.mxu0 %v262_v61  ;;  %v583_v61 = vld [vmem:[%s2824_s1 + $0x3b0] sm:$0xff] }
  0xba   : > { %1413 = vmatpush.msra.mxu3 %v583_v61 }
  0xbb   : > { %772 = vmatmul.f32.gmra.mxu1 %v268_v1  ;;  %885 = vmatmul.f32.gmra.mxu2 %v269_v2  ;;  %v307_v2 = vld [vmem:[%s1876_s22 + $0x410] sm:$0xff] }
  0xbd   : > { %998 = vmatmul.f32.gmra.mxu3 %v270_v4 }
  0xbe   : > { %v684_v7 = vpop.f32.mrf.mxu2  ;;  %v2265_v8 = vpop.f32.mrf.mxu0 }
  0xbf   : > { %v2269_v10 = vadd.f32 %v2220_v45, %v684_v7 }
  0xc0   : > { %v2274_v12 = vpop.f32.mrf.mxu1  ;;  %v708_v13 = vpop.f32.mrf.mxu3 }
  0xc1   : > { %v2279_v16 = vadd.f32 %v2220_v45, %v708_v13  ;;  %1111 = vmatmul.f32.gmra.mxu0 %v271_v9  ;;  %v313_v9 = vld [vmem:[%s1876_s22 + $0x440] sm:$0xff] }
  0xc3   : > { %775 = vmatmul.f32.gmra.mxu1 %v277_v14  ;;  %888 = vmatmul.f32.gmra.mxu2 %v278_v15  ;;  %v315_v14 = vld [vmem:[%s1876_s22 + $0x450] sm:$0xff] }
  0xc4   : > { %v599_v15 = vld [vmem:[%s2824_s1 + $0x430] sm:$0xff] }
  0xc5   : > { %1001 = vmatmul.f32.gmra.mxu3 %v279_v17  ;;  %1526 = vmatpush.msra.mxu0 %v599_v15 }
  0xc6   : > { %v687_v19 = vpop.f32.mrf.mxu2  ;;  %v2285_v20 = vpop.f32.mrf.mxu0 }
  0xc7   : > { %v2289_v22 = vadd.f32 %v2220_v45, %v687_v19  ;;  %v316_v19 = vld [vmem:[%s1876_s22 + $0x458] sm:$0xff] }
  0xc8   : > { %v2291_v23 = vpop.f32.mrf.mxu1  ;;  %v711_v24 = vpop.f32.mrf.mxu3 }
  0xc9   : > { %v2296_v27 = vadd.f32 %v2220_v45, %v711_v24  ;;  %1114 = vmatmul.f32.gmra.mxu0 %v280_v21 }
  0xcb   : > { %778 = vmatmul.f32.gmra.mxu1 %v286_v25  ;;  %891 = vmatmul.f32.gmra.mxu2 %v287_v26  ;;  %v322_v26 = vld [vmem:[%s1876_s22 + $0x488] sm:$0xff] }
  0xcd   : > { %1004 = vmatmul.f32.gmra.mxu3 %v288_v28  ;;  %v323_v28 = vld [vmem:[%s1876_s22 + $0x490] sm:$0xff] }
  0xce   : > { %v690_v31 = vpop.f32.mrf.mxu2  ;;  %v2305_v32 = vpop.f32.mrf.mxu0 }
  0xcf   : > { %v2309_v34 = vadd.f32 %v2220_v45, %v690_v31  ;;  %v631_v31 = vadd.f32 %v2220_v45, %v2225_v48 }
  0xd0   : > { %v2314_v36 = vpop.f32.mrf.mxu1  ;;  %v714_v37 = vpop.f32.mrf.mxu3 }
  0xd1   : > { %v2319_v41 = vadd.f32 %v2220_v45, %v714_v37  ;;  %1117 = vmatmul.f32.gmra.mxu0 %v289_v33  ;;  %v566_v33 = vld [vmem:[%s2824_s1 + $0x328] sm:$0xff] }
  0xd2   : > { %1301 = vmatpush.msra.mxu2 %v566_v33  ;;  %v582_v37 = vld [vmem:[%s2824_s1 + $0x3a8] sm:$0xff] }
  0xd3   : > { %781 = vmatmul.f32.gmra.mxu1 %v295_v38  ;;  %894 = vmatmul.f32.gmra.mxu2 %v296_v39 }
  0xd4   : > { %1414 = vmatpush.msra.mxu3 %v582_v37 }
  0xd5   : > { %1007 = vmatmul.f32.gmra.mxu3 %v297_v42  ;;  %v325_v42 = vld [vmem:[%s1876_s22 + $0x4a0] sm:$0xff] }
  0xd6   : > { %v693_v44 = vpop.f32.mrf.mxu2  ;;  %v2325_v46 = vpop.f32.mrf.mxu0 }
  0xd7   : > { %v2329_v49 = vadd.f32 %v2220_v45, %v693_v44 }
  0xd8   : > { %v2331_v51 = vpop.f32.mrf.mxu1  ;;  %v717_v53 = vpop.f32.mrf.mxu3 }
  0xd9   : > { %v2336_v57 = vadd.f32 %v2220_v45, %v717_v53  ;;  %1120 = vmatmul.f32.gmra.mxu0 %v298_v47  ;;  %v331_v53 = vld [vmem:[%s1876_s22 + $0x4d0] sm:$0xff] }
  0xdb   : > { %784 = vmatmul.f32.gmra.mxu1 %v304_v54  ;;  %897 = vmatmul.f32.gmra.mxu2 %v305_v55  ;;  %v332_v54 = vld [vmem:[%s1876_s22 + $0x4d8] sm:$0xff] }
  0xdd   : > { %1010 = vmatmul.f32.gmra.mxu3 %v306_v58  ;;  %v333_v58 = vld [vmem:[%s1876_s22 + $0x4e0] sm:$0xff] }
  0xde   : > { %v696_v0 = vpop.f32.mrf.mxu2  ;;  %v2345_v1 = vpop.f32.mrf.mxu0 }
  0xdf   : > { %v2349_v4 = vadd.f32 %v2220_v45, %v696_v0 }
  0xe0   : > { %v2354_v6 = vpop.f32.mrf.mxu1  ;;  %v720_v7 = vpop.f32.mrf.mxu3 }
  0xe1   : > { %v2359_v13 = vadd.f32 %v2220_v45, %v720_v7  ;;  %1123 = vmatmul.f32.gmra.mxu0 %v307_v2  ;;  %v598_v2 = vld [vmem:[%s2824_s1 + $0x428] sm:$0xff] }
  0xe2   : > { %1527 = vmatpush.msra.mxu0 %v598_v2  ;;  %v352_v2 = vld [vmem:[%s1876_s22 + $0x578] sm:$0xff] }
  0xe3   : > { %787 = vmatmul.f32.gmra.mxu1 %v313_v9  ;;  %900 = vmatmul.f32.gmra.mxu2 %v314_v11  ;;  %v334_v9 = vld [vmem:[%s1876_s22 + $0x4e8] sm:$0xff] }
  0xe5   : > { %1013 = vmatmul.f32.gmra.mxu3 %v315_v14 }
  0xe6   : > { %v699_v17 = vpop.f32.mrf.mxu2  ;;  %v2365_v18 = vpop.f32.mrf.mxu0 }
  0xe7   : > { %v2369_v21 = vadd.f32 %v2220_v45, %v699_v17  ;;  %v340_v17 = vld [vmem:[%s1876_s22 + $0x518] sm:$0xff] }
  0xe8   : > { %v723_v24 = vpop.f32.mrf.mxu3  ;;  %v743_v25 = vpop.f32.mrf.mxu1 }
  0xe9   : > { %v2374_v29 = vadd.f32 %v2220_v45, %v723_v24  ;;  %1126 = vmatmul.f32.gmra.mxu0 %v316_v19  ;;  %v744_v35 = vadd.f32 %v743_v25, %v631_v31  ;;  %v342_v24 = vld [vmem:[%s1876_s22 + $0x528] sm:$0xff]  ;;  %v637_v25 = vadd.f32 %v2220_v45, %v2265_v8  ;;  %v581_v31 = vld [vmem:[%s2824_s1 + $0x3a0] sm:$0xff] }
  0xea   : > { %1415 = vmatpush.msra.mxu3 %v581_v31 }
  0xeb   : > { %790 = vmatmul.f32.gmra.mxu1 %v322_v26  ;;  %903 = vmatmul.f32.gmra.mxu2 %v323_v28  ;;  %v565_v28 = vld [vmem:[%s2824_s1 + $0x320] sm:$0xff] }
  0xec   : > { %1302 = vmatpush.msra.mxu2 %v565_v28 }
  0xed   : > { %1016 = vmatmul.f32.gmra.mxu3 %v324_v30 }
  0xee   : > { %v856_v38 = vpop.f32.mrf.mxu2  ;;  %v1082_v39 = vpop.f32.mrf.mxu0 }
  0xef   : > { %v857_v48 = vadd.f32 %v856_v38, %v744_v35  ;;  %v343_v35 = vld [vmem:[%s1876_s22 + $0x530] sm:$0xff]  ;;  %v549_v38 = vld [vmem:[%s2824_s1 + $0x2a0] sm:$0xff] }
  0xf0   : > { %v746_v44 = vpop.f32.mrf.mxu1  ;;  %v969_v47 = vpop.f32.mrf.mxu3  ;;  %1189 = vmatpush.msra.mxu1 %v549_v38  ;;  %v368_v38 = vld [vmem:[%s1876_s22 + $0x5f8] sm:$0xff] }
  0xf1   : > { %v970_v55 = vadd.f32 %v969_v47, %v857_v48  ;;  %1129 = vmatmul.f32.gmra.mxu0 %v325_v42  ;;  %v747_v0 = vadd.f32 %v746_v44, %v634_v59  ;;  %v349_v48 = vld [vmem:[%s1876_s22 + $0x560] sm:$0xff]  ;;  %v351_v47 = vld [vmem:[%s1876_s22 + $0x570] sm:$0xff] }
  0xf3   : > { %v2394_v61 = vadd.f32 %v1082_v39, %v970_v55  ;;  %793 = vmatmul.f32.gmra.mxu1 %v331_v53  ;;  %906 = vmatmul.f32.gmra.mxu2 %v332_v54  ;;  %v640_v53 = vadd.f32 %v2220_v45, %v2285_v20  ;;  %v359_v20 = vld [vmem:[%s1876_s22 + $0x5b0] sm:$0xff] }
  0xf5   : > { %1019 = vmatmul.f32.gmra.mxu3 %v333_v58  ;;  %v597_v58 = vld [vmem:[%s2824_s1 + $0x420] sm:$0xff] }
  0xf6   : > { %v859_v5 = vpop.f32.mrf.mxu2  ;;  %v1085_v7 = vpop.f32.mrf.mxu0  ;;  %1528 = vmatpush.msra.mxu0 %v597_v58  ;;  %v370_v58 = vld [vmem:[%s1876_s22 + $0x608] sm:$0xff] }
  0xf7   : > { %v860_v11 = vadd.f32 %v859_v5, %v747_v0 }
  0xf8   : > { %v749_v14 = vpop.f32.mrf.mxu1  ;;  %v972_v15 = vpop.f32.mrf.mxu3 }
  0xf9   : > { %v973_v19 = vadd.f32 %v972_v15, %v860_v11  ;;  %1132 = vmatmul.f32.gmra.mxu0 %v334_v9  ;;  %v750_v30 = vadd.f32 %v749_v14, %v637_v25  ;;  %v358_v11 = vld [vmem:[%s1876_s22 + $0x5a8] sm:$0xff]  ;;  %v360_v15 = vld [vmem:[%s1876_s22 + $0x5b8] sm:$0xff] }
  0xfa   : > { %v580_v25 = vld [vmem:[%s2824_s1 + $0x398] sm:$0xff] }
  0xfb   : > { %v2405_v26 = vadd.f32 %v1085_v7, %v973_v19  ;;  %796 = vmatmul.f32.gmra.mxu1 %v340_v17  ;;  %909 = vmatmul.f32.gmra.mxu2 %v341_v60  ;;  %v643_v17 = vadd.f32 %v2220_v45, %v2305_v32  ;;  %v564_v19 = vld [vmem:[%s2824_s1 + $0x318] sm:$0xff] }
  0xfc   : > { %1303 = vmatpush.msra.mxu2 %v564_v19  ;;  %1416 = vmatpush.msra.mxu3 %v580_v25 }
  0xfd   : > { %1022 = vmatmul.f32.gmra.mxu3 %v342_v24 }
  0xfe   : > { %v862_v33 = vpop.f32.mrf.mxu2  ;;  %v1088_v8 = vpop.f32.mrf.mxu0 }
  0xff   : > { %v863_v37 = vadd.f32 %v862_v33, %v750_v30  ;;  %v361_v30 = vld [vmem:[%s1876_s22 + $0x5c0] sm:$0xff]  ;;  %v548_v33 = vld [vmem:[%s2824_s1 + $0x298] sm:$0xff] }
 0x100   : > { %v752_v39 = vpop.f32.mrf.mxu1  ;;  %v975_v42 = vpop.f32.mrf.mxu3  ;;  %1190 = vmatpush.msra.mxu1 %v548_v33  ;;  %v386_v33 = vld [vmem:[%s1876_s22 + $0x688] sm:$0xff] }
 0x101   : > { %v976_v44 = vadd.f32 %v975_v42, %v863_v37  ;;  %1135 = vmatmul.f32.gmra.mxu0 %v343_v35  ;;  %v753_v55 = vadd.f32 %v752_v39, %v640_v53  ;;  %v367_v37 = vld [vmem:[%s1876_s22 + $0x5f0] sm:$0xff]  ;;  %v369_v42 = vld [vmem:[%s1876_s22 + $0x600] sm:$0xff] }
 0x103   : > { %v2422_v54 = vadd.f32 %v1088_v8, %v976_v44  ;;  %799 = vmatmul.f32.gmra.mxu1 %v349_v48  ;;  %912 = vmatmul.f32.gmra.mxu2 %v350_v43  ;;  %v646_v48 = vadd.f32 %v2220_v45, %v2325_v46  ;;  %v377_v46 = vld [vmem:[%s1876_s22 + $0x640] sm:$0xff] }
 0x105   : > { %1025 = vmatmul.f32.gmra.mxu3 %v351_v47  ;;  %v596_v47 = vld [vmem:[%s2824_s1 + $0x418] sm:$0xff] }
 0x106   : > { %v865_v59 = vpop.f32.mrf.mxu2  ;;  %v1091_v0 = vpop.f32.mrf.mxu0  ;;  %1529 = vmatpush.msra.mxu0 %v596_v47  ;;  %v388_v47 = vld [vmem:[%s1876_s22 + $0x698] sm:$0xff] }
 0x107   : > { %v866_v5 = vadd.f32 %v865_v59, %v753_v55 }
 0x108   : > { %v755_v7 = vpop.f32.mrf.mxu1  ;;  %v978_v9 = vpop.f32.mrf.mxu3 }
 0x109   : > { %v979_v14 = vadd.f32 %v978_v9, %v866_v5  ;;  %1138 = vmatmul.f32.gmra.mxu0 %v352_v2  ;;  %v756_v24 = vadd.f32 %v755_v7, %v643_v17  ;;  %v376_v5 = vld [vmem:[%s1876_s22 + $0x638] sm:$0xff]  ;;  %v378_v9 = vld [vmem:[%s1876_s22 + $0x648] sm:$0xff]  ;;  %v579_v17 = vld [vmem:[%s2824_s1 + $0x390] sm:$0xff] }
 0x10a   : > { %1417 = vmatpush.msra.mxu3 %v579_v17 }
 0x10b   : > { %v2433_v60 = vadd.f32 %v1091_v0, %v979_v14  ;;  %802 = vmatmul.f32.gmra.mxu1 %v358_v11  ;;  %915 = vmatmul.f32.gmra.mxu2 %v359_v20  ;;  %v649_v11 = vadd.f32 %v2220_v45, %v2345_v1  ;;  %v563_v14 = vld [vmem:[%s2824_s1 + $0x310] sm:$0xff] }
 0x10c   : > { %1304 = vmatpush.msra.mxu2 %v563_v14 }
 0x10d   : > { %1028 = vmatmul.f32.gmra.mxu3 %v360_v15 }
 0x10e   : > { %v868_v28 = vpop.f32.mrf.mxu2  ;;  %v1094_v32 = vpop.f32.mrf.mxu0 }
 0x10f   : > { %v869_v31 = vadd.f32 %v868_v28, %v756_v24  ;;  %v379_v24 = vld [vmem:[%s1876_s22 + $0x650] sm:$0xff] }
 0x110   : > { %v758_v8 = vpop.f32.mrf.mxu1  ;;  %v981_v35 = vpop.f32.mrf.mxu3  ;;  %v547_v28 = vld [vmem:[%s2824_s1 + $0x290] sm:$0xff] }
 0x111   : > { %v982_v39 = vadd.f32 %v981_v35, %v869_v31  ;;  %1141 = vmatmul.f32.gmra.mxu0 %v361_v30  ;;  %v759_v44 = vadd.f32 %v758_v8, %v646_v48  ;;  %v385_v31 = vld [vmem:[%s1876_s22 + $0x680] sm:$0xff]  ;;  %1191 = vmatpush.msra.mxu1 %v547_v28  ;;  %v387_v35 = vld [vmem:[%s1876_s22 + $0x690] sm:$0xff]  ;;  %v404_v28 = vld [vmem:[%s1876_s22 + $0x718] sm:$0xff] }
 0x113   : > { %v2450_v43 = vadd.f32 %v1094_v32, %v982_v39  ;;  %805 = vmatmul.f32.gmra.mxu1 %v367_v37  ;;  %918 = vmatmul.f32.gmra.mxu2 %v368_v38  ;;  %v652_v37 = vadd.f32 %v2220_v45, %v2365_v18  ;;  %v395_v18 = vld [vmem:[%s1876_s22 + $0x6d0] sm:$0xff] }
 0x115   : > { %1031 = vmatmul.f32.gmra.mxu3 %v369_v42  ;;  %v595_v42 = vld [vmem:[%s2824_s1 + $0x410] sm:$0xff] }
 0x116   : > { %v871_v53 = vpop.f32.mrf.mxu2  ;;  %v1097_v55 = vpop.f32.mrf.mxu0  ;;  %1530 = vmatpush.msra.mxu0 %v595_v42  ;;  %v406_v42 = vld [vmem:[%s1876_s22 + $0x728] sm:$0xff] }
 0x117   : > { %v872_v59 = vadd.f32 %v871_v53, %v759_v44 }
 0x118   : > { %v761_v0 = vpop.f32.mrf.mxu1  ;;  %v984_v2 = vpop.f32.mrf.mxu3 }
 0x119   : > { %v985_v7 = vadd.f32 %v984_v2, %v872_v59  ;;  %1144 = vmatmul.f32.gmra.mxu0 %v370_v58  ;;  %v762_v15 = vadd.f32 %v761_v0, %v649_v11  ;;  %v394_v59 = vld [vmem:[%s1876_s22 + $0x6c8] sm:$0xff]  ;;  %v396_v2 = vld [vmem:[%s1876_s22 + $0x6d8] sm:$0xff] }
 0x11a   : > { %v578_v11 = vld [vmem:[%s2824_s1 + $0x388] sm:$0xff] }
 0x11b   : > { %v2461_v20 = vadd.f32 %v1097_v55, %v985_v7  ;;  %808 = vmatmul.f32.gmra.mxu1 %v376_v5  ;;  %921 = vmatmul.f32.gmra.mxu2 %v377_v46  ;;  %v655_v5 = vadd.f32 %v2220_v45, %v2209_v40  ;;  %v562_v7 = vld [vmem:[%s2824_s1 + $0x308] sm:$0xff] }
 0x11c   : > { %1305 = vmatpush.msra.mxu2 %v562_v7  ;;  %1418 = vmatpush.msra.mxu3 %v578_v11 }
 0x11d   : > { %1034 = vmatmul.f32.gmra.mxu3 %v378_v9 }
 0x11e   : > { %v874_v19 = vpop.f32.mrf.mxu2  ;;  %v1100_v1 = vpop.f32.mrf.mxu0 }
 0x11f   : > { %v875_v25 = vadd.f32 %v874_v19, %v762_v15  ;;  %v397_v15 = vld [vmem:[%s1876_s22 + $0x6e0] sm:$0xff]  ;;  %v546_v19 = vld [vmem:[%s2824_s1 + $0x288] sm:$0xff] }
 0x120   : > { %v764_v32 = vpop.f32.mrf.mxu1  ;;  %v987_v30 = vpop.f32.mrf.mxu3  ;;  %1192 = vmatpush.msra.mxu1 %v546_v19  ;;  %v422_v19 = vld [vmem:[%s1876_s22 + $0x7a8] sm:$0xff] }
 0x121   : > { %v988_v8 = vadd.f32 %v987_v30, %v875_v25  ;;  %1147 = vmatmul.f32.gmra.mxu0 %v379_v24  ;;  %v765_v39 = vadd.f32 %v764_v32, %v652_v37  ;;  %v403_v25 = vld [vmem:[%s1876_s22 + $0x710] sm:$0xff]  ;;  %v405_v30 = vld [vmem:[%s1876_s22 + $0x720] sm:$0xff] }
 0x123   : > { %v2478_v38 = vadd.f32 %v1100_v1, %v988_v8  ;;  %811 = vmatmul.f32.gmra.mxu1 %v385_v31  ;;  %924 = vmatmul.f32.gmra.mxu2 %v386_v33  ;;  %v658_v31 = vadd.f32 %v2220_v45, %v2234_v52  ;;  %v413_v52 = vld [vmem:[%s1876_s22 + $0x760] sm:$0xff] }
 0x125   : > { %1037 = vmatmul.f32.gmra.mxu3 %v387_v35  ;;  %v594_v35 = vld [vmem:[%s2824_s1 + $0x408] sm:$0xff] }
 0x126   : > { %v877_v48 = vpop.f32.mrf.mxu2  ;;  %v1103_v44 = vpop.f32.mrf.mxu0  ;;  %1531 = vmatpush.msra.mxu0 %v594_v35  ;;  %v424_v35 = vld [vmem:[%s1876_s22 + $0x7b8] sm:$0xff] }
 0x127   : > { %v878_v53 = vadd.f32 %v877_v48, %v765_v39 }
 0x128   : > { %v767_v55 = vpop.f32.mrf.mxu1  ;;  %v990_v58 = vpop.f32.mrf.mxu3 }
 0x129   : > { %v991_v0 = vadd.f32 %v990_v58, %v878_v53  ;;  %1150 = vmatmul.f32.gmra.mxu0 %v388_v47  ;;  %v768_v9 = vadd.f32 %v767_v55, %v655_v5  ;;  %v412_v53 = vld [vmem:[%s1876_s22 + $0x758] sm:$0xff]  ;;  %v414_v58 = vld [vmem:[%s1876_s22 + $0x768] sm:$0xff]  ;;  %v577_v5 = vld [vmem:[%s2824_s1 + $0x380] sm:$0xff] }
 0x12a   : > { %1419 = vmatpush.msra.mxu3 %v577_v5 }
 0x12b   : > { %v2489_v46 = vadd.f32 %v1103_v44, %v991_v0  ;;  %814 = vmatmul.f32.gmra.mxu1 %v394_v59  ;;  %927 = vmatmul.f32.gmra.mxu2 %v395_v18  ;;  %v661_v59 = vadd.f32 %v2220_v45, %v2251_v63  ;;  %v561_v0 = vld [vmem:[%s2824_s1 + $0x300] sm:$0xff] }
 0x12c   : > { %1306 = vmatpush.msra.mxu2 %v561_v0  ;;  %v433_v0 = vld [vmem:[%s1876_s22 + $0x800] sm:$0xff] }
 0x12d   : > { %1040 = vmatmul.f32.gmra.mxu3 %v396_v2 }
 0x12e   : > { %v880_v14 = vpop.f32.mrf.mxu2  ;;  %v1106_v40 = vpop.f32.mrf.mxu0 }
 0x12f   : > { %v881_v17 = vadd.f32 %v880_v14, %v768_v9  ;;  %v415_v9 = vld [vmem:[%s1876_s22 + $0x770] sm:$0xff]  ;;  %v545_v14 = vld [vmem:[%s2824_s1 + $0x280] sm:$0xff] }
 0x130   : > { %v770_v1 = vpop.f32.mrf.mxu1  ;;  %v993_v24 = vpop.f32.mrf.mxu3  ;;  %1193 = vmatpush.msra.mxu1 %v545_v14  ;;  %v670_v14 = vadd.f32 %v2220_v45, %v2314_v36  ;;  %v450_v36 = vld [vmem:[%s1876_s22 + $0x888] sm:$0xff] }
 0x131   : > { %v994_v32 = vadd.f32 %v993_v24, %v881_v17  ;;  %1153 = vmatmul.f32.gmra.mxu0 %v397_v15  ;;  %v771_v8 = vadd.f32 %v770_v1, %v658_v31  ;;  %v421_v17 = vld [vmem:[%s1876_s22 + $0x7a0] sm:$0xff]  ;;  %v423_v24 = vld [vmem:[%s1876_s22 + $0x7b0] sm:$0xff] }
 0x133   : > { %v2506_v33 = vadd.f32 %v1106_v40, %v994_v32  ;;  %817 = vmatmul.f32.gmra.mxu1 %v403_v25  ;;  %930 = vmatmul.f32.gmra.mxu2 %v404_v28  ;;  %v664_v25 = vadd.f32 %v2220_v45, %v2274_v12  ;;  %v430_v12 = vld [vmem:[%s1876_s22 + $0x7e8] sm:$0xff] }
 0x135   : > { %1043 = vmatmul.f32.gmra.mxu3 %v405_v30  ;;  %v593_v30 = vld [vmem:[%s2824_s1 + $0x400] sm:$0xff] }
 0x136   : > { %v883_v37 = vpop.f32.mrf.mxu2  ;;  %v1109_v39 = vpop.f32.mrf.mxu0  ;;  %1532 = vmatpush.msra.mxu0 %v593_v30  ;;  %v448_v30 = vld [vmem:[%s1876_s22 + $0x878] sm:$0xff] }
 0x137   : > { %v884_v48 = vadd.f32 %v883_v37, %v771_v8 }
 0x138   : > { %v773_v44 = vpop.f32.mrf.mxu1  ;;  %v996_v47 = vpop.f32.mrf.mxu3 }
 0x139   : > { %v997_v55 = vadd.f32 %v996_v47, %v884_v48  ;;  %1156 = vmatmul.f32.gmra.mxu0 %v406_v42  ;;  %v774_v2 = vadd.f32 %v773_v44, %v661_v59  ;;  %v431_v48 = vld [vmem:[%s1876_s22 + $0x7f0] sm:$0xff]  ;;  %v432_v47 = vld [vmem:[%s1876_s22 + $0x7f8] sm:$0xff] }
 0x13b   : > { %v2517_v18 = vadd.f32 %v1109_v39, %v997_v55  ;;  %820 = vmatmul.f32.gmra.mxu1 %v412_v53  ;;  %933 = vmatmul.f32.gmra.mxu2 %v413_v52  ;;  %v667_v53 = vadd.f32 %v2220_v45, %v2291_v23  ;;  %v441_v23 = vld [vmem:[%s1876_s22 + $0x840] sm:$0xff] }
 0x13d   : > { %1046 = vmatmul.f32.gmra.mxu3 %v414_v58 }
 0x13e   : > { %v886_v7 = vpop.f32.mrf.mxu2  ;;  %v1112_v63 = vpop.f32.mrf.mxu0 }
 0x13f   : > { %v887_v11 = vadd.f32 %v886_v7, %v774_v2 }
 0x140   : > { %v776_v40 = vpop.f32.mrf.mxu1  ;;  %v999_v15 = vpop.f32.mrf.mxu3 }
 0x141   : > { %v1000_v1 = vadd.f32 %v999_v15, %v887_v11  ;;  %1159 = vmatmul.f32.gmra.mxu0 %v415_v9  ;;  %v777_v32 = vadd.f32 %v776_v40, %v664_v25  ;;  %v440_v9 = vld [vmem:[%s1876_s22 + $0x838] sm:$0xff] }
 0x143   : > { %v2534_v28 = vadd.f32 %v1112_v63, %v1000_v1  ;;  %823 = vmatmul.f32.gmra.mxu1 %v421_v17  ;;  %936 = vmatmul.f32.gmra.mxu2 %v422_v19  ;;  %v439_v63 = vld [vmem:[%s1876_s22 + $0x830] sm:$0xff]  ;;  %v442_v1 = vld [vmem:[%s1876_s22 + $0x848] sm:$0xff] }
 0x145   : > { %1049 = vmatmul.f32.gmra.mxu3 %v423_v24 }
 0x146   : > { %v889_v31 = vpop.f32.mrf.mxu2  ;;  %v1115_v8 = vpop.f32.mrf.mxu0 }
 0x147   : > { %v890_v37 = vadd.f32 %v889_v31, %v777_v32  ;;  %v449_v31 = vld [vmem:[%s1876_s22 + $0x880] sm:$0xff] }
 0x148   : > { %v779_v39 = vpop.f32.mrf.mxu1  ;;  %v1002_v42 = vpop.f32.mrf.mxu3 }
 0x149   : > { %v1003_v44 = vadd.f32 %v1002_v42, %v890_v37  ;;  %1162 = vmatmul.f32.gmra.mxu0 %v424_v35  ;;  %v780_v55 = vadd.f32 %v779_v39, %v667_v53  ;;  %v673_v35 = vadd.f32 %v2220_v45, %v2331_v51  ;;  %v459_v51 = vld [vmem:[%s1876_s22 + $0x8d0] sm:$0xff] }
 0x14b   : > { %v2545_v52 = vadd.f32 %v1115_v8, %v1003_v44  ;;  %826 = vmatmul.f32.gmra.mxu1 %v430_v12  ;;  %939 = vmatmul.f32.gmra.mxu2 %v431_v48  ;;  %v451_v48 = vld [vmem:[%s1876_s22 + $0x890] sm:$0xff] }
 0x14d   : > { %1052 = vmatmul.f32.gmra.mxu3 %v432_v47 }
 0x14e   : > { %v892_v58 = vpop.f32.mrf.mxu2  ;;  %v1118_v59 = vpop.f32.mrf.mxu0 }
 0x14f   : > { %v893_v2 = vadd.f32 %v892_v58, %v780_v55  ;;  %v457_v55 = vld [vmem:[%s1876_s22 + $0x8c0] sm:$0xff]  ;;  %v458_v58 = vld [vmem:[%s1876_s22 + $0x8c8] sm:$0xff] }
 0x150   : > { %v782_v5 = vpop.f32.mrf.mxu1  ;;  %v1005_v7 = vpop.f32.mrf.mxu3 }
 0x151   : > { %v1006_v11 = vadd.f32 %v1005_v7, %v893_v2  ;;  %1165 = vmatmul.f32.gmra.mxu0 %v433_v0  ;;  %v783_v15 = vadd.f32 %v782_v5, %v670_v14  ;;  %v676_v0 = vadd.f32 %v2220_v45, %v2354_v6  ;;  %v184_v45 = vld [vmem:[%s1876_s22 + $0x38] sm:$0xff] }
 0x153   : > { %v2553_v40 = vadd.f32 %v1118_v59, %v1006_v11  ;;  %829 = vmatmul.f32.gmra.mxu1 %v439_v63  ;;  %942 = vmatmul.f32.gmra.mxu2 %v440_v9  ;;  %v460_v9 = vld [vmem:[%s1876_s22 + $0x8d8] sm:$0xff] }
 0x155   : > { %1055 = vmatmul.f32.gmra.mxu3 %v441_v23 }
 0x156   : > { %v895_v17 = vpop.f32.mrf.mxu2  ;;  %v1121_v19 = vpop.f32.mrf.mxu0 }
 0x157   : > { %v896_v24 = vadd.f32 %v895_v17, %v783_v15  ;;  %v182_v15 = vld [vmem:[%s1876_s22 + $0x28] sm:$0xff]  ;;  %v183_v17 = vld [vmem:[%s1876_s22 + $0x30] sm:$0xff] }
 0x158   : > { %v785_v25 = vpop.f32.mrf.mxu1  ;;  %v1008_v32 = vpop.f32.mrf.mxu3 }
 0x159   : > { %v1009_v8 = vadd.f32 %v1008_v32, %v896_v24  ;;  %1168 = vmatmul.f32.gmra.mxu0 %v442_v1  ;;  %v786_v39 = vadd.f32 %v785_v25, %v673_v35  ;;  %v185_v32 = vld [vmem:[%s1876_s22 + $0x40] sm:$0xff]  ;;  %v192_v35 = vld [vmem:[%s1876_s22 + $0x78] sm:$0xff] }
 0x15b   : > { %v2561_v37 = vadd.f32 %v1121_v19, %v1009_v8  ;;  %832 = vmatmul.f32.gmra.mxu1 %v448_v30  ;;  %945 = vmatmul.f32.gmra.mxu2 %v449_v31 }
 0x15d   : > { %1058 = vmatmul.f32.gmra.mxu3 %v450_v36  ;;  %v191_v36 = vld [vmem:[%s1876_s22 + $0x70] sm:$0xff] }
 0x15e   : > { %v898_v42 = vpop.f32.mrf.mxu2  ;;  %v1124_v12 = vpop.f32.mrf.mxu0 }
 0x15f   : > { %v899_v44 = vadd.f32 %v898_v42, %v786_v39  ;;  %v193_v42 = vld [vmem:[%s1876_s22 + $0x80] sm:$0xff] }
 0x160   : > { %v788_v47 = vpop.f32.mrf.mxu1  ;;  %v1011_v53 = vpop.f32.mrf.mxu3 }
 0x161   : > { %v1012_v59 = vadd.f32 %v1011_v53, %v899_v44  ;;  %1171 = vmatmul.f32.gmra.mxu0 %v451_v48  ;;  %v789_v5 = vadd.f32 %v788_v47, %v676_v0  ;;  %v194_v47 = vld [vmem:[%s1876_s22 + $0x88] sm:$0xff] }
 0x163   : > { %v2569_v2 = vadd.f32 %v1124_v12, %v1012_v59  ;;  %835 = vmatmul.f32.gmra.mxu1 %v457_v55  ;;  %948 = vmatmul.f32.gmra.mxu2 %v458_v58  ;;  %v200_v59 = vld [vmem:[%s1876_s22 + $0xb8] sm:$0xff] }
 0x165   : > { %1061 = vmatmul.f32.gmra.mxu3 %v459_v51  ;;  %v201_v51 = vld [vmem:[%s1876_s22 + $0xc0] sm:$0xff] }
 0x166   : > { %v901_v7 = vpop.f32.mrf.mxu2  ;;  %v1127_v63 = vpop.f32.mrf.mxu0 }
 0x167   : > { %v902_v11 = vadd.f32 %v901_v7, %v789_v5  ;;  %v202_v5 = vld [vmem:[%s1876_s22 + $0xc8] sm:$0xff] }
 0x168   : > { %v791_v23 = vpop.f32.mrf.mxu1  ;;  %v1014_v14 = vpop.f32.mrf.mxu3 }
 0x169   : > { %v1015_v19 = vadd.f32 %v1014_v14, %v902_v11  ;;  %1174 = vmatmul.f32.gmra.mxu0 %v460_v9  ;;  %v792_v1 = vadd.f32 %v791_v23, %v2229_v50  ;;  %v203_v11 = vld [vmem:[%s1876_s22 + $0xd0] sm:$0xff] }
 0x16b   : > { %v2575_v6 = vadd.f32 %v1127_v63, %v1015_v19  ;;  %1194 = vmatmul.f32.vlgmr.msra.gmra.mxu1 %v182_v15  ;;  %1307 = vmatmul.f32.vlgmr.msra.gmra.mxu2 %v183_v17  ;;  %v209_v17 = vld [vmem:[%s1876_s22 + $0x100] sm:$0xff]  ;;  %v210_v19 = vld [vmem:[%s1876_s22 + $0x108] sm:$0xff] }
 0x16d   : > { %1420 = vmatmul.f32.vlgmr.msra.gmra.mxu3 %v184_v45 }
 0x16e   : > { %v904_v24 = vpop.f32.mrf.mxu2  ;;  %v1130_v25 = vpop.f32.mrf.mxu0 }
 0x16f   : > { %v905_v30 = vadd.f32 %v904_v24, %v792_v1  ;;  %v211_v1 = vld [vmem:[%s1876_s22 + $0x110] sm:$0xff] }
 0x170   : > { %v794_v31 = vpop.f32.mrf.mxu1  ;;  %v1017_v8 = vpop.f32.mrf.mxu3 }
 0x171   : > { %v1018_v39 = vadd.f32 %v1017_v8, %v905_v30  ;;  %1533 = vmatmul.f32.vlgmr.msra.gmra.mxu0 %v185_v32  ;;  %v795_v50 = vadd.f32 %v794_v31, %v2249_v62  ;;  %v212_v30 = vld [vmem:[%s1876_s22 + $0x118] sm:$0xff] }
 0x173   : > { %v2582_v12 = vadd.f32 %v1130_v25, %v1018_v39  ;;  %1197 = vmatmul.f32.gmra.mxu1 %v191_v36  ;;  %1310 = vmatmul.f32.gmra.mxu2 %v192_v35  ;;  %v218_v35 = vld [vmem:[%s1876_s22 + $0x148] sm:$0xff]  ;;  %v219_v39 = vld [vmem:[%s1876_s22 + $0x150] sm:$0xff] }
 0x175   : > { %1423 = vmatmul.f32.gmra.mxu3 %v193_v42 }
 0x176   : > { %v907_v48 = vpop.f32.mrf.mxu2  ;;  %v1133_v44 = vpop.f32.mrf.mxu0 }
 0x177   : > { %v908_v53 = vadd.f32 %v907_v48, %v795_v50  ;;  %v220_v50 = vld [vmem:[%s1876_s22 + $0x158] sm:$0xff] }
 0x178   : > { %v797_v55 = vpop.f32.mrf.mxu1  ;;  %v1020_v58 = vpop.f32.mrf.mxu3 }
 0x179   : > { %v1021_v0 = vadd.f32 %v1020_v58, %v908_v53  ;;  %1536 = vmatmul.f32.gmra.mxu0 %v194_v47  ;;  %v798_v62 = vadd.f32 %v797_v55, %v2269_v10  ;;  %v221_v53 = vld [vmem:[%s1876_s22 + $0x160] sm:$0xff] }
 0x17b   : > { %v2589_v7 = vadd.f32 %v1133_v44, %v1021_v0  ;;  %1200 = vmatmul.f32.gmra.mxu1 %v200_v59  ;;  %1313 = vmatmul.f32.gmra.mxu2 %v201_v51  ;;  %v227_v51 = vld [vmem:[%s1876_s22 + $0x190] sm:$0xff]  ;;  %v228_v0 = vld [vmem:[%s1876_s22 + $0x198] sm:$0xff] }
 0x17d   : > { %1426 = vmatmul.f32.gmra.mxu3 %v202_v5 }
 0x17e   : > { %v910_v63 = vpop.f32.mrf.mxu2  ;;  %v1136_v9 = vpop.f32.mrf.mxu0 }
 0x17f   : > { %v911_v23 = vadd.f32 %v910_v63, %v798_v62  ;;  %v229_v62 = vld [vmem:[%s1876_s22 + $0x1a0] sm:$0xff] }
 0x180   : > { %v800_v14 = vpop.f32.mrf.mxu1  ;;  %v1023_v15 = vpop.f32.mrf.mxu3 }
 0x181   : > { %v1024_v45 = vadd.f32 %v1023_v15, %v911_v23  ;;  %1539 = vmatmul.f32.gmra.mxu0 %v203_v11  ;;  %v801_v10 = vadd.f32 %v800_v14, %v2289_v22  ;;  %v230_v23 = vld [vmem:[%s1876_s22 + $0x1a8] sm:$0xff] }
 0x183   : > { %v2596_v24 = vadd.f32 %v1136_v9, %v1024_v45  ;;  %1203 = vmatmul.f32.gmra.mxu1 %v209_v17  ;;  %1316 = vmatmul.f32.gmra.mxu2 %v210_v19  ;;  %v236_v19 = vld [vmem:[%s1876_s22 + $0x1d8] sm:$0xff]  ;;  %v237_v45 = vld [vmem:[%s1876_s22 + $0x1e0] sm:$0xff] }
 0x185   : > { %1429 = vmatmul.f32.gmra.mxu3 %v211_v1 }
 0x186   : > { %v913_v25 = vpop.f32.mrf.mxu2  ;;  %v1139_v32 = vpop.f32.mrf.mxu0 }
 0x187   : > { %v914_v31 = vadd.f32 %v913_v25, %v801_v10  ;;  %v238_v10 = vld [vmem:[%s1876_s22 + $0x1e8] sm:$0xff] }
 0x188   : > { %v803_v8 = vpop.f32.mrf.mxu1  ;;  %v1026_v36 = vpop.f32.mrf.mxu3 }
 0x189   : > { %v1027_v42 = vadd.f32 %v1026_v36, %v914_v31  ;;  %1542 = vmatmul.f32.gmra.mxu0 %v212_v30  ;;  %v804_v22 = vadd.f32 %v803_v8, %v2309_v34  ;;  %v239_v31 = vld [vmem:[%s1876_s22 + $0x1f0] sm:$0xff] }
 0x18b   : > { %v2603_v48 = vadd.f32 %v1139_v32, %v1027_v42  ;;  %1206 = vmatmul.f32.gmra.mxu1 %v218_v35  ;;  %1319 = vmatmul.f32.gmra.mxu2 %v219_v39  ;;  %v245_v39 = vld [vmem:[%s1876_s22 + $0x220] sm:$0xff]  ;;  %v246_v42 = vld [vmem:[%s1876_s22 + $0x228] sm:$0xff] }
 0x18d   : > { %1432 = vmatmul.f32.gmra.mxu3 %v220_v50 }
 0x18e   : > { %v916_v44 = vpop.f32.mrf.mxu2  ;;  %v1142_v47 = vpop.f32.mrf.mxu0 }
 0x18f   : > { %v917_v55 = vadd.f32 %v916_v44, %v804_v22  ;;  %v247_v22 = vld [vmem:[%s1876_s22 + $0x230] sm:$0xff] }
 0x190   : > { %v806_v58 = vpop.f32.mrf.mxu1  ;;  %v1029_v59 = vpop.f32.mrf.mxu3 }
 0x191   : > { %v1030_v5 = vadd.f32 %v1029_v59, %v917_v55  ;;  %1545 = vmatmul.f32.gmra.mxu0 %v221_v53  ;;  %v807_v34 = vadd.f32 %v806_v58, %v2329_v49  ;;  %v248_v55 = vld [vmem:[%s1876_s22 + $0x238] sm:$0xff] }
 0x193   : > { %v2610_v63 = vadd.f32 %v1142_v47, %v1030_v5  ;;  %1209 = vmatmul.f32.gmra.mxu1 %v227_v51  ;;  %1322 = vmatmul.f32.gmra.mxu2 %v228_v0  ;;  %v254_v0 = vld [vmem:[%s1876_s22 + $0x268] sm:$0xff]  ;;  %v255_v5 = vld [vmem:[%s1876_s22 + $0x270] sm:$0xff] }
 0x195   : > { %1435 = vmatmul.f32.gmra.mxu3 %v229_v62 }
 0x196   : > { %v919_v9 = vpop.f32.mrf.mxu2  ;;  %v1145_v11 = vpop.f32.mrf.mxu0 }
 0x197   : > { %v920_v14 = vadd.f32 %v919_v9, %v807_v34  ;;  %v256_v34 = vld [vmem:[%s1876_s22 + $0x278] sm:$0xff] }
 0x198   : > { %v809_v15 = vpop.f32.mrf.mxu1  ;;  %v1032_v17 = vpop.f32.mrf.mxu3 }
 0x199   : > { %v1033_v1 = vadd.f32 %v1032_v17, %v920_v14  ;;  %1548 = vmatmul.f32.gmra.mxu0 %v230_v23  ;;  %v810_v49 = vadd.f32 %v809_v15, %v2349_v4  ;;  %v257_v14 = vld [vmem:[%s1876_s22 + $0x280] sm:$0xff] }
 0x19b   : > { %v2617_v25 = vadd.f32 %v1145_v11, %v1033_v1  ;;  %1212 = vmatmul.f32.gmra.mxu1 %v236_v19  ;;  %1325 = vmatmul.f32.gmra.mxu2 %v237_v45  ;;  %v263_v45 = vld [vmem:[%s1876_s22 + $0x2b0] sm:$0xff]  ;;  %v264_v1 = vld [vmem:[%s1876_s22 + $0x2b8] sm:$0xff] }
 0x19d   : > { %1438 = vmatmul.f32.gmra.mxu3 %v238_v10 }
 0x19e   : > { %v922_v32 = vpop.f32.mrf.mxu2  ;;  %v1148_v30 = vpop.f32.mrf.mxu0 }
 0x19f   : > { %v923_v8 = vadd.f32 %v922_v32, %v810_v49  ;;  %v265_v49 = vld [vmem:[%s1876_s22 + $0x2c0] sm:$0xff] }
 0x1a0   : > { %v812_v36 = vpop.f32.mrf.mxu1  ;;  %v1035_v35 = vpop.f32.mrf.mxu3 }
 0x1a1   : > { %v1036_v50 = vadd.f32 %v1035_v35, %v923_v8  ;;  %1551 = vmatmul.f32.gmra.mxu0 %v239_v31  ;;  %v813_v4 = vadd.f32 %v812_v36, %v2369_v21  ;;  %v266_v8 = vld [vmem:[%s1876_s22 + $0x2c8] sm:$0xff] }
 0x1a3   : > { %v2624_v44 = vadd.f32 %v1148_v30, %v1036_v50  ;;  %1215 = vmatmul.f32.gmra.mxu1 %v245_v39  ;;  %1328 = vmatmul.f32.gmra.mxu2 %v246_v42  ;;  %v272_v42 = vld [vmem:[%s1876_s22 + $0x2f8] sm:$0xff]  ;;  %v273_v50 = vld [vmem:[%s1876_s22 + $0x300] sm:$0xff] }
 0x1a5   : > { %1441 = vmatmul.f32.gmra.mxu3 %v247_v22 }
 0x1a6   : > { %v925_v47 = vpop.f32.mrf.mxu2  ;;  %v1151_v53 = vpop.f32.mrf.mxu0 }
 0x1a7   : > { %v926_v58 = vadd.f32 %v925_v47, %v813_v4  ;;  %v274_v4 = vld [vmem:[%s1876_s22 + $0x308] sm:$0xff] }
 0x1a8   : > { %v815_v59 = vpop.f32.mrf.mxu1  ;;  %v1038_v51 = vpop.f32.mrf.mxu3 }
 0x1a9   : > { %v1039_v62 = vadd.f32 %v1038_v51, %v926_v58  ;;  %1554 = vmatmul.f32.gmra.mxu0 %v248_v55  ;;  %v816_v21 = vadd.f32 %v815_v59, %v2239_v56  ;;  %v275_v58 = vld [vmem:[%s1876_s22 + $0x310] sm:$0xff] }
 0x1ab   : > { %v2631_v9 = vadd.f32 %v1151_v53, %v1039_v62  ;;  %1218 = vmatmul.f32.gmra.mxu1 %v254_v0  ;;  %1331 = vmatmul.f32.gmra.mxu2 %v255_v5  ;;  %v281_v5 = vld [vmem:[%s1876_s22 + $0x340] sm:$0xff]  ;;  %v282_v62 = vld [vmem:[%s1876_s22 + $0x348] sm:$0xff] }
 0x1ad   : > { %1444 = vmatmul.f32.gmra.mxu3 %v256_v34 }
 0x1ae   : > { %v928_v11 = vpop.f32.mrf.mxu2  ;;  %v1154_v23 = vpop.f32.mrf.mxu0 }
 0x1af   : > { %v929_v15 = vadd.f32 %v928_v11, %v816_v21  ;;  %v283_v21 = vld [vmem:[%s1876_s22 + $0x350] sm:$0xff] }
 0x1b0   : > { %v818_v17 = vpop.f32.mrf.mxu1  ;;  %v1041_v19 = vpop.f32.mrf.mxu3 }
 0x1b1   : > { %v1042_v10 = vadd.f32 %v1041_v19, %v929_v15  ;;  %1557 = vmatmul.f32.gmra.mxu0 %v257_v14  ;;  %v819_v56 = vadd.f32 %v818_v17, %v2256_v3  ;;  %v284_v15 = vld [vmem:[%s1876_s22 + $0x358] sm:$0xff] }
 0x1b3   : > { %v2638_v32 = vadd.f32 %v1154_v23, %v1042_v10  ;;  %1221 = vmatmul.f32.gmra.mxu1 %v263_v45  ;;  %1334 = vmatmul.f32.gmra.mxu2 %v264_v1  ;;  %v290_v1 = vld [vmem:[%s1876_s22 + $0x388] sm:$0xff]  ;;  %v291_v10 = vld [vmem:[%s1876_s22 + $0x390] sm:$0xff] }
 0x1b5   : > { %1447 = vmatmul.f32.gmra.mxu3 %v265_v49 }
 0x1b6   : > { %v931_v30 = vpop.f32.mrf.mxu2  ;;  %v1157_v31 = vpop.f32.mrf.mxu0 }
 0x1b7   : > { %v932_v36 = vadd.f32 %v931_v30, %v819_v56  ;;  %v292_v56 = vld [vmem:[%s1876_s22 + $0x398] sm:$0xff] }
 0x1b8   : > { %v821_v35 = vpop.f32.mrf.mxu1  ;;  %v1044_v39 = vpop.f32.mrf.mxu3 }
 0x1b9   : > { %v1045_v22 = vadd.f32 %v1044_v39, %v932_v36  ;;  %1560 = vmatmul.f32.gmra.mxu0 %v266_v8  ;;  %v822_v3 = vadd.f32 %v821_v35, %v2279_v16  ;;  %v293_v36 = vld [vmem:[%s1876_s22 + $0x3a0] sm:$0xff] }
 0x1bb   : > { %v2645_v47 = vadd.f32 %v1157_v31, %v1045_v22  ;;  %1224 = vmatmul.f32.gmra.mxu1 %v272_v42  ;;  %1337 = vmatmul.f32.gmra.mxu2 %v273_v50  ;;  %v299_v50 = vld [vmem:[%s1876_s22 + $0x3d0] sm:$0xff]  ;;  %v300_v22 = vld [vmem:[%s1876_s22 + $0x3d8] sm:$0xff] }
 0x1bd   : > { %1450 = vmatmul.f32.gmra.mxu3 %v274_v4 }
 0x1be   : > { %v934_v53 = vpop.f32.mrf.mxu2  ;;  %v1160_v55 = vpop.f32.mrf.mxu0 }
 0x1bf   : > { %v935_v59 = vadd.f32 %v934_v53, %v822_v3  ;;  %v301_v3 = vld [vmem:[%s1876_s22 + $0x3e0] sm:$0xff] }
 0x1c0   : > { %v824_v51 = vpop.f32.mrf.mxu1  ;;  %v1047_v0 = vpop.f32.mrf.mxu3 }
 0x1c1   : > { %v1048_v34 = vadd.f32 %v1047_v0, %v935_v59  ;;  %1563 = vmatmul.f32.gmra.mxu0 %v275_v58  ;;  %v825_v16 = vadd.f32 %v824_v51, %v2296_v27  ;;  %v302_v59 = vld [vmem:[%s1876_s22 + $0x3e8] sm:$0xff] }
 0x1c3   : > { %v2652_v11 = vadd.f32 %v1160_v55, %v1048_v34  ;;  %1227 = vmatmul.f32.gmra.mxu1 %v281_v5  ;;  %1340 = vmatmul.f32.gmra.mxu2 %v282_v62  ;;  %v308_v62 = vld [vmem:[%s1876_s22 + $0x418] sm:$0xff]  ;;  %v309_v34 = vld [vmem:[%s1876_s22 + $0x420] sm:$0xff] }
 0x1c5   : > { %1453 = vmatmul.f32.gmra.mxu3 %v283_v21 }
 0x1c6   : > { %v937_v23 = vpop.f32.mrf.mxu2  ;;  %v1163_v14 = vpop.f32.mrf.mxu0 }
 0x1c7   : > { %v938_v17 = vadd.f32 %v937_v23, %v825_v16  ;;  %v310_v16 = vld [vmem:[%s1876_s22 + $0x428] sm:$0xff] }
 0x1c8   : > { %v827_v19 = vpop.f32.mrf.mxu1  ;;  %v1050_v45 = vpop.f32.mrf.mxu3 }
 0x1c9   : > { %v1051_v49 = vadd.f32 %v1050_v45, %v938_v17  ;;  %1566 = vmatmul.f32.gmra.mxu0 %v284_v15  ;;  %v828_v27 = vadd.f32 %v827_v19, %v2319_v41  ;;  %v311_v17 = vld [vmem:[%s1876_s22 + $0x430] sm:$0xff] }
 0x1cb   : > { %v2659_v30 = vadd.f32 %v1163_v14, %v1051_v49  ;;  %1230 = vmatmul.f32.gmra.mxu1 %v290_v1  ;;  %1343 = vmatmul.f32.gmra.mxu2 %v291_v10  ;;  %v317_v10 = vld [vmem:[%s1876_s22 + $0x460] sm:$0xff]  ;;  %v318_v49 = vld [vmem:[%s1876_s22 + $0x468] sm:$0xff] }
 0x1cd   : > { %1456 = vmatmul.f32.gmra.mxu3 %v292_v56 }
 0x1ce   : > { %v940_v31 = vpop.f32.mrf.mxu2  ;;  %v1166_v8 = vpop.f32.mrf.mxu0 }
 0x1cf   : > { %v941_v35 = vadd.f32 %v940_v31, %v828_v27  ;;  %v319_v27 = vld [vmem:[%s1876_s22 + $0x470] sm:$0xff] }
 0x1d0   : > { %v830_v39 = vpop.f32.mrf.mxu1  ;;  %v1053_v42 = vpop.f32.mrf.mxu3 }
 0x1d1   : > { %v1054_v4 = vadd.f32 %v1053_v42, %v941_v35  ;;  %1569 = vmatmul.f32.gmra.mxu0 %v293_v36  ;;  %v831_v41 = vadd.f32 %v830_v39, %v2336_v57  ;;  %v320_v35 = vld [vmem:[%s1876_s22 + $0x478] sm:$0xff] }
 0x1d3   : > { %v2666_v53 = vadd.f32 %v1166_v8, %v1054_v4  ;;  %1233 = vmatmul.f32.gmra.mxu1 %v299_v50  ;;  %1346 = vmatmul.f32.gmra.mxu2 %v300_v22  ;;  %v326_v22 = vld [vmem:[%s1876_s22 + $0x4a8] sm:$0xff]  ;;  %v327_v4 = vld [vmem:[%s1876_s22 + $0x4b0] sm:$0xff] }
 0x1d5   : > { %1459 = vmatmul.f32.gmra.mxu3 %v301_v3 }
 0x1d6   : > { %v943_v55 = vpop.f32.mrf.mxu2  ;;  %v1169_v58 = vpop.f32.mrf.mxu0 }
 0x1d7   : > { %v944_v51 = vadd.f32 %v943_v55, %v831_v41  ;;  %v328_v41 = vld [vmem:[%s1876_s22 + $0x4b8] sm:$0xff] }
 0x1d8   : > { %v833_v0 = vpop.f32.mrf.mxu1  ;;  %v1056_v5 = vpop.f32.mrf.mxu3 }
 0x1d9   : > { %v1057_v21 = vadd.f32 %v1056_v5, %v944_v51  ;;  %1572 = vmatmul.f32.gmra.mxu0 %v302_v59  ;;  %v834_v57 = vadd.f32 %v833_v0, %v2359_v13  ;;  %v329_v51 = vld [vmem:[%s1876_s22 + $0x4c0] sm:$0xff] }
 0x1db   : > { %v2673_v23 = vadd.f32 %v1169_v58, %v1057_v21  ;;  %1236 = vmatmul.f32.gmra.mxu1 %v308_v62  ;;  %1349 = vmatmul.f32.gmra.mxu2 %v309_v34  ;;  %v335_v34 = vld [vmem:[%s1876_s22 + $0x4f0] sm:$0xff]  ;;  %v336_v21 = vld [vmem:[%s1876_s22 + $0x4f8] sm:$0xff] }
 0x1dd   : > { %1462 = vmatmul.f32.gmra.mxu3 %v310_v16 }
 0x1de   : > { %v946_v14 = vpop.f32.mrf.mxu2  ;;  %v1172_v15 = vpop.f32.mrf.mxu0 }
 0x1df   : > { %v947_v19 = vadd.f32 %v946_v14, %v834_v57 }
 0x1e0   : > { %v836_v45 = vpop.f32.mrf.mxu1  ;;  %v1059_v1 = vpop.f32.mrf.mxu3 }
 0x1e1   : > { %v1060_v56 = vadd.f32 %v1059_v1, %v947_v19  ;;  %1575 = vmatmul.f32.gmra.mxu0 %v311_v17  ;;  %v837_v13 = vadd.f32 %v836_v45, %v2374_v29  ;;  %v338_v19 = vld [vmem:[%s1876_s22 + $0x508] sm:$0xff] }
 0x1e3   : > { %v2680_v31 = vadd.f32 %v1172_v15, %v1060_v56  ;;  %1239 = vmatmul.f32.gmra.mxu1 %v317_v10  ;;  %1352 = vmatmul.f32.gmra.mxu2 %v318_v49  ;;  %v344_v49 = vld [vmem:[%s1876_s22 + $0x538] sm:$0xff]  ;;  %v345_v56 = vld [vmem:[%s1876_s22 + $0x540] sm:$0xff] }
 0x1e5   : > { %1465 = vmatmul.f32.gmra.mxu3 %v319_v27 }
 0x1e6   : > { %v949_v8 = vpop.f32.mrf.mxu2  ;;  %v1175_v36 = vpop.f32.mrf.mxu0 }
 0x1e7   : > { %v950_v39 = vadd.f32 %v949_v8, %v837_v13  ;;  %v346_v13 = vld [vmem:[%s1876_s22 + $0x548] sm:$0xff] }
 0x1e8   : > { %v1062_v42 = vpop.f32.mrf.mxu3  ;;  %v1195_v50 = vpop.f32.mrf.mxu1 }
 0x1e9   : > { %v1063_v3 = vadd.f32 %v1062_v42, %v950_v39  ;;  %1578 = vmatmul.f32.gmra.mxu0 %v320_v35  ;;  %v1196_v29 = vadd.f32 %v1195_v50, %v2394_v61  ;;  %v337_v61 = vld [vmem:[%s1876_s22 + $0x500] sm:$0xff]  ;;  %v347_v39 = vld [vmem:[%s1876_s22 + $0x550] sm:$0xff] }
 0x1eb   : > { %v2687_v55 = vadd.f32 %v1175_v36, %v1063_v3  ;;  %1242 = vmatmul.f32.gmra.mxu1 %v326_v22  ;;  %1355 = vmatmul.f32.gmra.mxu2 %v327_v4  ;;  %v353_v4 = vld [vmem:[%s1876_s22 + $0x580] sm:$0xff]  ;;  %v354_v3 = vld [vmem:[%s1876_s22 + $0x588] sm:$0xff] }
 0x1ed   : > { %1468 = vmatmul.f32.gmra.mxu3 %v328_v41 }
 0x1ee   : > { %v1308_v58 = vpop.f32.mrf.mxu2  ;;  %v1534_v59 = vpop.f32.mrf.mxu0 }
 0x1ef   : > { %v1309_v0 = vadd.f32 %v1308_v58, %v1196_v29  ;;  %v355_v29 = vld [vmem:[%s1876_s22 + $0x590] sm:$0xff] }
 0x1f0   : > { %v1198_v5 = vpop.f32.mrf.mxu1  ;;  %v1421_v62 = vpop.f32.mrf.mxu3 }
 0x1f1   : > { %v1422_v16 = vadd.f32 %v1421_v62, %v1309_v0  ;;  %1581 = vmatmul.f32.gmra.mxu0 %v329_v51  ;;  %v1199_v14 = vadd.f32 %v1198_v5, %v2405_v26  ;;  %v356_v0 = vld [vmem:[%s1876_s22 + $0x598] sm:$0xff] }
 0x1f3   : > { %v1535_v57 = vadd.f32 %v1534_v59, %v1422_v16  ;;  %1245 = vmatmul.f32.gmra.mxu1 %v335_v34  ;;  %1358 = vmatmul.f32.gmra.mxu2 %v336_v21  ;;  %v362_v21 = vld [vmem:[%s1876_s22 + $0x5c8] sm:$0xff]  ;;  %v363_v16 = vld [vmem:[%s1876_s22 + $0x5d0] sm:$0xff] }
 0x1f5   : > { %1630 = vst [vmem:[%s2697_s21] sm:$0xff] %v1535_v57  ;;  %1471 = vmatmul.f32.gmra.mxu3 %v337_v61  ;;  %v364_v57 = vld [vmem:[%s1876_s22 + $0x5d8] sm:$0xff] }
 0x1f6   : > { %v1311_v15 = vpop.f32.mrf.mxu2  ;;  %v1537_v17 = vpop.f32.mrf.mxu0 }
 0x1f7   : > { %v1312_v45 = vadd.f32 %v1311_v15, %v1199_v14 }
 0x1f8   : > { %v1201_v1 = vpop.f32.mrf.mxu1  ;;  %v1424_v10 = vpop.f32.mrf.mxu3 }
 0x1f9   : > { %v1425_v27 = vadd.f32 %v1424_v10, %v1312_v45  ;;  %1584 = vmatmul.f32.gmra.mxu0 %v338_v19  ;;  %v1202_v26 = vadd.f32 %v1201_v1, %v2422_v54  ;;  %v365_v19 = vld [vmem:[%s1876_s22 + $0x5e0] sm:$0xff] }
 0x1fb   : > { %v1538_v8 = vadd.f32 %v1537_v17, %v1425_v27  ;;  %1248 = vmatmul.f32.gmra.mxu1 %v344_v49  ;;  %1361 = vmatmul.f32.gmra.mxu2 %v345_v56  ;;  %v371_v49 = vld [vmem:[%s1876_s22 + $0x610] sm:$0xff]  ;;  %v372_v56 = vld [vmem:[%s1876_s22 + $0x618] sm:$0xff] }
 0x1fd   : > { %1631 = vst [vmem:[%s2697_s21 + $0x8] sm:$0xff] %v1538_v8  ;;  %1474 = vmatmul.f32.gmra.mxu3 %v346_v13  ;;  %v373_v13 = vld [vmem:[%s1876_s22 + $0x620] sm:$0xff] }
 0x1fe   : > { %v1314_v36 = vpop.f32.mrf.mxu2  ;;  %v1540_v35 = vpop.f32.mrf.mxu0 }
 0x1ff   : > { %v1315_v42 = vadd.f32 %v1314_v36, %v1202_v26 }
 0x200   : > { %v1204_v50 = vpop.f32.mrf.mxu1  ;;  %v1427_v22 = vpop.f32.mrf.mxu3 }
 0x201   : > { %v1428_v41 = vadd.f32 %v1427_v22, %v1315_v42  ;;  %1587 = vmatmul.f32.gmra.mxu0 %v347_v39  ;;  %v1205_v54 = vadd.f32 %v1204_v50, %v2433_v60  ;;  %v380_v22 = vld [vmem:[%s1876_s22 + $0x658] sm:$0xff] }
 0x203   : > { %v1541_v58 = vadd.f32 %v1540_v35, %v1428_v41  ;;  %1251 = vmatmul.f32.gmra.mxu1 %v353_v4  ;;  %1364 = vmatmul.f32.gmra.mxu2 %v354_v3  ;;  %v374_v35 = vld [vmem:[%s1876_s22 + $0x628] sm:$0xff]  ;;  %v381_v4 = vld [vmem:[%s1876_s22 + $0x660] sm:$0xff] }
 0x204   : > { %v382_v41 = vld [vmem:[%s1876_s22 + $0x668] sm:$0xff] }
 0x205   : > { %1632 = vst [vmem:[%s2697_s21 + $0x10] sm:$0xff] %v1541_v58  ;;  %1477 = vmatmul.f32.gmra.mxu3 %v355_v29 }
 0x206   : > { %v1317_v59 = vpop.f32.mrf.mxu2  ;;  %v1543_v51 = vpop.f32.mrf.mxu0 }
 0x207   : > { %v1318_v5 = vadd.f32 %v1317_v59, %v1205_v54  ;;  %v383_v59 = vld [vmem:[%s1876_s22 + $0x670] sm:$0xff] }
 0x208   : > { %v1207_v62 = vpop.f32.mrf.mxu1  ;;  %v1430_v34 = vpop.f32.mrf.mxu3 }
 0x209   : > { %v1431_v61 = vadd.f32 %v1430_v34, %v1318_v5  ;;  %1590 = vmatmul.f32.gmra.mxu0 %v356_v0  ;;  %v1208_v60 = vadd.f32 %v1207_v62, %v2450_v43  ;;  %v389_v62 = vld [vmem:[%s1876_s22 + $0x6a0] sm:$0xff]  ;;  %v390_v34 = vld [vmem:[%s1876_s22 + $0x6a8] sm:$0xff] }
 0x20b   : > { %v1544_v14 = vadd.f32 %v1543_v51, %v1431_v61  ;;  %1254 = vmatmul.f32.gmra.mxu1 %v362_v21  ;;  %1367 = vmatmul.f32.gmra.mxu2 %v363_v16  ;;  %v391_v16 = vld [vmem:[%s1876_s22 + $0x6b0] sm:$0xff] }
 0x20d   : > { %1633 = vst [vmem:[%s2697_s21 + $0x18] sm:$0xff] %v1544_v14  ;;  %1480 = vmatmul.f32.gmra.mxu3 %v364_v57 }
 0x20e   : > { %v1320_v15 = vpop.f32.mrf.mxu2  ;;  %v1546_v17 = vpop.f32.mrf.mxu0 }
 0x20f   : > { %v1321_v45 = vadd.f32 %v1320_v15, %v1208_v60  ;;  %v392_v60 = vld [vmem:[%s1876_s22 + $0x6b8] sm:$0xff] }
 0x210   : > { %v1210_v1 = vpop.f32.mrf.mxu1  ;;  %v1433_v10 = vpop.f32.mrf.mxu3 }
 0x211   : > { %v1434_v27 = vadd.f32 %v1433_v10, %v1321_v45  ;;  %1593 = vmatmul.f32.gmra.mxu0 %v365_v19  ;;  %v1211_v43 = vadd.f32 %v1210_v1, %v2461_v20  ;;  %v398_v45 = vld [vmem:[%s1876_s22 + $0x6e8] sm:$0xff]  ;;  %v399_v1 = vld [vmem:[%s1876_s22 + $0x6f0] sm:$0xff] }
 0x213   : > { %v1547_v8 = vadd.f32 %v1546_v17, %v1434_v27  ;;  %1257 = vmatmul.f32.gmra.mxu1 %v371_v49  ;;  %1370 = vmatmul.f32.gmra.mxu2 %v372_v56  ;;  %v400_v49 = vld [vmem:[%s1876_s22 + $0x6f8] sm:$0xff] }
 0x215   : > { %1634 = vst [vmem:[%s2697_s21 + $0x20] sm:$0xff] %v1547_v8  ;;  %1483 = vmatmul.f32.gmra.mxu3 %v373_v13  ;;  %v401_v8 = vld [vmem:[%s1876_s22 + $0x700] sm:$0xff] }
 0x216   : > { %v1323_v26 = vpop.f32.mrf.mxu2  ;;  %v1549_v36 = vpop.f32.mrf.mxu0 }
 0x217   : > { %v1324_v39 = vadd.f32 %v1323_v26, %v1211_v43 }
 0x218   : > { %v1213_v42 = vpop.f32.mrf.mxu1  ;;  %v1436_v50 = vpop.f32.mrf.mxu3 }
 0x219   : > { %v1437_v3 = vadd.f32 %v1436_v50, %v1324_v39  ;;  %1596 = vmatmul.f32.gmra.mxu0 %v374_v35  ;;  %v1214_v20 = vadd.f32 %v1213_v42, %v2478_v38  ;;  %v407_v35 = vld [vmem:[%s1876_s22 + $0x730] sm:$0xff]  ;;  %v408_v39 = vld [vmem:[%s1876_s22 + $0x738] sm:$0xff]  ;;  %v409_v50 = vld [vmem:[%s1876_s22 + $0x740] sm:$0xff] }
 0x21b   : > { %v1550_v29 = vadd.f32 %v1549_v36, %v1437_v3  ;;  %1260 = vmatmul.f32.gmra.mxu1 %v380_v22  ;;  %1373 = vmatmul.f32.gmra.mxu2 %v381_v4 }
 0x21d   : > { %1635 = vst [vmem:[%s2697_s21 + $0x28] sm:$0xff] %v1550_v29  ;;  %1486 = vmatmul.f32.gmra.mxu3 %v382_v41  ;;  %v410_v41 = vld [vmem:[%s1876_s22 + $0x748] sm:$0xff] }
 0x21e   : > { %v1326_v58 = vpop.f32.mrf.mxu2  ;;  %v1552_v54 = vpop.f32.mrf.mxu0 }
 0x21f   : > { %v1327_v51 = vadd.f32 %v1326_v58, %v1214_v20 }
 0x220   : > { %v1216_v0 = vpop.f32.mrf.mxu1  ;;  %v1439_v5 = vpop.f32.mrf.mxu3 }
 0x221   : > { %v1440_v21 = vadd.f32 %v1439_v5, %v1327_v51  ;;  %1599 = vmatmul.f32.gmra.mxu0 %v383_v59  ;;  %v1217_v38 = vadd.f32 %v1216_v0, %v2489_v46  ;;  %v417_v59 = vld [vmem:[%s1876_s22 + $0x780] sm:$0xff]  ;;  %v418_v0 = vld [vmem:[%s1876_s22 + $0x788] sm:$0xff] }
 0x223   : > { %v1553_v61 = vadd.f32 %v1552_v54, %v1440_v21  ;;  %1263 = vmatmul.f32.gmra.mxu1 %v389_v62  ;;  %1376 = vmatmul.f32.gmra.mxu2 %v390_v34  ;;  %v416_v54 = vld [vmem:[%s1876_s22 + $0x778] sm:$0xff]  ;;  %v419_v21 = vld [vmem:[%s1876_s22 + $0x790] sm:$0xff] }
 0x225   : > { %1636 = vst [vmem:[%s2697_s21 + $0x30] sm:$0xff] %v1553_v61  ;;  %1489 = vmatmul.f32.gmra.mxu3 %v391_v16 }
 0x226   : > { %v1329_v57 = vpop.f32.mrf.mxu2  ;;  %v1555_v14 = vpop.f32.mrf.mxu0 }
 0x227   : > { %v1330_v15 = vadd.f32 %v1329_v57, %v1217_v38  ;;  %v425_v57 = vld [vmem:[%s1876_s22 + $0x7c0] sm:$0xff] }
 0x228   : > { %v1219_v17 = vpop.f32.mrf.mxu1  ;;  %v1442_v19 = vpop.f32.mrf.mxu3 }
 0x229   : > { %v1443_v10 = vadd.f32 %v1442_v19, %v1330_v15  ;;  %1602 = vmatmul.f32.gmra.mxu0 %v392_v60  ;;  %v1220_v46 = vadd.f32 %v1219_v17, %v2506_v33  ;;  %v427_v15 = vld [vmem:[%s1876_s22 + $0x7d0] sm:$0xff] }
 0x22b   : > { %v1556_v56 = vadd.f32 %v1555_v14, %v1443_v10  ;;  %1266 = vmatmul.f32.gmra.mxu1 %v398_v45  ;;  %1379 = vmatmul.f32.gmra.mxu2 %v399_v1  ;;  %v426_v14 = vld [vmem:[%s1876_s22 + $0x7c8] sm:$0xff]  ;;  %v428_v1 = vld [vmem:[%s1876_s22 + $0x7d8] sm:$0xff] }
 0x22d   : > { %1637 = vst [vmem:[%s2697_s21 + $0x38] sm:$0xff] %v1556_v56  ;;  %1492 = vmatmul.f32.gmra.mxu3 %v400_v49 }
 0x22e   : > { %v1332_v27 = vpop.f32.mrf.mxu2  ;;  %v1558_v13 = vpop.f32.mrf.mxu0 }
 0x22f   : > { %v1333_v43 = vadd.f32 %v1332_v27, %v1220_v46  ;;  %v434_v46 = vld [vmem:[%s1876_s22 + $0x808] sm:$0xff]  ;;  %v435_v27 = vld [vmem:[%s1876_s22 + $0x810] sm:$0xff] }
 0x230   : > { %v1222_v26 = vpop.f32.mrf.mxu1  ;;  %v1445_v36 = vpop.f32.mrf.mxu3 }
 0x231   : > { %v1446_v42 = vadd.f32 %v1445_v36, %v1333_v43  ;;  %1605 = vmatmul.f32.gmra.mxu0 %v401_v8  ;;  %v1223_v33 = vadd.f32 %v1222_v26, %v2517_v18  ;;  %v436_v8 = vld [vmem:[%s1876_s22 + $0x818] sm:$0xff] }
 0x233   : > { %v1559_v22 = vadd.f32 %v1558_v13, %v1446_v42  ;;  %1269 = vmatmul.f32.gmra.mxu1 %v407_v35  ;;  %1382 = vmatmul.f32.gmra.mxu2 %v408_v39  ;;  %v437_v35 = vld [vmem:[%s1876_s22 + $0x820] sm:$0xff] }
 0x235   : > { %1638 = vst [vmem:[%s2697_s21 + $0x40] sm:$0xff] %v1559_v22  ;;  %1495 = vmatmul.f32.gmra.mxu3 %v409_v50  ;;  %v443_v22 = vld [vmem:[%s1876_s22 + $0x850] sm:$0xff] }
 0x236   : > { %v1335_v4 = vpop.f32.mrf.mxu2  ;;  %v1561_v3 = vpop.f32.mrf.mxu0 }
 0x237   : > { %v1336_v29 = vadd.f32 %v1335_v4, %v1223_v33  ;;  %v444_v33 = vld [vmem:[%s1876_s22 + $0x858] sm:$0xff] }
 0x238   : > { %v1225_v20 = vpop.f32.mrf.mxu1  ;;  %v1448_v58 = vpop.f32.mrf.mxu3 }
 0x239   : > { %v1449_v51 = vadd.f32 %v1448_v58, %v1336_v29  ;;  %1608 = vmatmul.f32.gmra.mxu0 %v410_v41  ;;  %v1226_v18 = vadd.f32 %v1225_v20, %v2534_v28  ;;  %v446_v58 = vld [vmem:[%s1876_s22 + $0x868] sm:$0xff] }
 0x23b   : > { %v1562_v5 = vadd.f32 %v1561_v3, %v1449_v51  ;;  %1272 = vmatmul.f32.gmra.mxu1 %v416_v54  ;;  %1385 = vmatmul.f32.gmra.mxu2 %v417_v59  ;;  %v445_v3 = vld [vmem:[%s1876_s22 + $0x860] sm:$0xff] }
 0x23d   : > { %1639 = vst [vmem:[%s2697_s21 + $0x48] sm:$0xff] %v1562_v5  ;;  %1498 = vmatmul.f32.gmra.mxu3 %v418_v0  ;;  %v452_v0 = vld [vmem:[%s1876_s22 + $0x898] sm:$0xff]  ;;  %v453_v5 = vld [vmem:[%s1876_s22 + $0x8a0] sm:$0xff] }
 0x23e   : > { %v1338_v62 = vpop.f32.mrf.mxu2  ;;  %v1564_v34 = vpop.f32.mrf.mxu0 }
 0x23f   : > { %v1339_v16 = vadd.f32 %v1338_v62, %v1226_v18  ;;  %v454_v62 = vld [vmem:[%s1876_s22 + $0x8a8] sm:$0xff] }
 0x240   : > { %v1228_v61 = vpop.f32.mrf.mxu1  ;;  %v1451_v38 = vpop.f32.mrf.mxu3 }
 0x241   : > { %v1452_v60 = vadd.f32 %v1451_v38, %v1339_v16  ;;  %1611 = vmatmul.f32.gmra.mxu0 %v419_v21  ;;  %v1229_v28 = vadd.f32 %v1228_v61, %v2545_v52  ;;  %v455_v61 = vld [vmem:[%s1876_s22 + $0x8b0] sm:$0xff] }
 0x243   : > { %v1565_v17 = vadd.f32 %v1564_v34, %v1452_v60  ;;  %1275 = vmatmul.f32.gmra.mxu1 %v425_v57  ;;  %1388 = vmatmul.f32.gmra.mxu2 %v426_v14  ;;  %v461_v60 = vld [vmem:[%s1876_s22 + $0x8e0] sm:$0xff] }
 0x245   : > { %1640 = vst [vmem:[%s2697_s21 + $0x50] sm:$0xff] %v1565_v17  ;;  %1501 = vmatmul.f32.gmra.mxu3 %v427_v15  ;;  %v462_v15 = vld [vmem:[%s1876_s22 + $0x8e8] sm:$0xff] }
 0x246   : > { %v1341_v19 = vpop.f32.mrf.mxu2  ;;  %v1567_v45 = vpop.f32.mrf.mxu0 }
 0x247   : > { %v1342_v10 = vadd.f32 %v1341_v19, %v1229_v28  ;;  %v463_v28 = vld [vmem:[%s1876_s22 + $0x8f0] sm:$0xff] }
 0x248   : > { %v1231_v49 = vpop.f32.mrf.mxu1  ;;  %v1454_v56 = vpop.f32.mrf.mxu3 }
 0x249   : > { %v1455_v13 = vadd.f32 %v1454_v56, %v1342_v10  ;;  %1614 = vmatmul.f32.gmra.mxu0 %v428_v1  ;;  %v1232_v52 = vadd.f32 %v1231_v49, %v2553_v40  ;;  %v464_v10 = vld [vmem:[%s1876_s22 + $0x8f8] sm:$0xff] }
 0x24b   : > { %v1568_v43 = vadd.f32 %v1567_v45, %v1455_v13  ;;  %1278 = vmatmul.f32.gmra.mxu1 %v434_v46  ;;  %1391 = vmatmul.f32.gmra.mxu2 %v435_v27 }
 0x24d   : > { %1641 = vst [vmem:[%s2697_s21 + $0x58] sm:$0xff] %v1568_v43  ;;  %1504 = vmatmul.f32.gmra.mxu3 %v436_v8 }
 0x24e   : > { %v1344_v26 = vpop.f32.mrf.mxu2  ;;  %v1570_v36 = vpop.f32.mrf.mxu0 }
 0x24f   : > { %v1345_v39 = vadd.f32 %v1344_v26, %v1232_v52 }
 0x250   : > { %v1234_v42 = vpop.f32.mrf.mxu1  ;;  %v1457_v50 = vpop.f32.mrf.mxu3 }
 0x251   : > { %v1458_v4 = vadd.f32 %v1457_v50, %v1345_v39  ;;  %1617 = vmatmul.f32.gmra.mxu0 %v437_v35  ;;  %v1235_v40 = vadd.f32 %v1234_v42, %v2561_v37 }
 0x253   : > { %v1571_v41 = vadd.f32 %v1570_v36, %v1458_v4  ;;  %1281 = vmatmul.f32.gmra.mxu1 %v443_v22  ;;  %1394 = vmatmul.f32.gmra.mxu2 %v444_v33 }
 0x255   : > { %1642 = vst [vmem:[%s2697_s21 + $0x60] sm:$0xff] %v1571_v41  ;;  %1507 = vmatmul.f32.gmra.mxu3 %v445_v3 }
 0x256   : > { %v1347_v29 = vpop.f32.mrf.mxu2  ;;  %v1573_v20 = vpop.f32.mrf.mxu0 }
 0x257   : > { %v1348_v54 = vadd.f32 %v1347_v29, %v1235_v40 }
 0x258   : > { %v1237_v59 = vpop.f32.mrf.mxu1  ;;  %v1460_v51 = vpop.f32.mrf.mxu3 }
 0x259   : > { %v1461_v18 = vadd.f32 %v1460_v51, %v1348_v54  ;;  %1620 = vmatmul.f32.gmra.mxu0 %v446_v58  ;;  %v1238_v37 = vadd.f32 %v1237_v59, %v2569_v2 }
 0x25b   : > { %v1574_v34 = vadd.f32 %v1573_v20, %v1461_v18  ;;  %1284 = vmatmul.f32.gmra.mxu1 %v452_v0  ;;  %1397 = vmatmul.f32.gmra.mxu2 %v453_v5 }
 0x25d   : > { %1643 = vst [vmem:[%s2697_s21 + $0x68] sm:$0xff] %v1574_v34  ;;  %1510 = vmatmul.f32.gmra.mxu3 %v454_v62 }
 0x25e   : > { %v1350_v21 = vpop.f32.mrf.mxu2  ;;  %v1576_v16 = vpop.f32.mrf.mxu0 }
 0x25f   : > { %v1351_v38 = vadd.f32 %v1350_v21, %v1238_v37 }
 0x260   : > { %v1240_v57 = vpop.f32.mrf.mxu1  ;;  %v1463_v14 = vpop.f32.mrf.mxu3 }
 0x261   : > { %v1464_v17 = vadd.f32 %v1463_v14, %v1351_v38  ;;  %1623 = vmatmul.f32.gmra.mxu0 %v455_v61  ;;  %v1241_v2 = vadd.f32 %v1240_v57, %v2575_v6 }
 0x263   : > { %v1577_v19 = vadd.f32 %v1576_v16, %v1464_v17  ;;  %1287 = vmatmul.f32.gmra.mxu1 %v461_v60  ;;  %1400 = vmatmul.f32.gmra.mxu2 %v462_v15 }
 0x265   : > { %1644 = vst [vmem:[%s2697_s21 + $0x70] sm:$0xff] %v1577_v19  ;;  %1513 = vmatmul.f32.gmra.mxu3 %v463_v28 }
 0x266   : > { %v1353_v45 = vpop.f32.mrf.mxu2  ;;  %v1579_v1 = vpop.f32.mrf.mxu0 }
 0x267   : > { %v1354_v49 = vadd.f32 %v1353_v45, %v1241_v2 }
 0x268   : > { %v1243_v56 = vpop.f32.mrf.mxu1  ;;  %v1466_v46 = vpop.f32.mrf.mxu3 }
 0x269   : > { %v1467_v27 = vadd.f32 %v1466_v46, %v1354_v49  ;;  %1626 = vmatmul.f32.gmra.mxu0 %v464_v10  ;;  %v1244_v8 = vadd.f32 %v1243_v56, %v2582_v12 }
 0x26b   : > { %v1580_v13 = vadd.f32 %v1579_v1, %v1467_v27 }
 0x26d   : > { %1645 = vst [vmem:[%s2697_s21 + $0x78] sm:$0xff] %v1580_v13 }
 0x26e   : > { %v1356_v43 = vpop.f32.mrf.mxu2  ;;  %v1582_v52 = vpop.f32.mrf.mxu0 }
 0x26f   : > { %v1357_v26 = vadd.f32 %v1356_v43, %v1244_v8 }
 0x270   : > { %v1246_v6 = vpop.f32.mrf.mxu1  ;;  %v1469_v36 = vpop.f32.mrf.mxu3 }
 0x271   : > { %v1470_v35 = vadd.f32 %v1469_v36, %v1357_v26  ;;  %v1247_v42 = vadd.f32 %v1246_v6, %v2589_v7 }
 0x273   : > { %v1583_v39 = vadd.f32 %v1582_v52, %v1470_v35 }
 0x275   : > { %1646 = vst [vmem:[%s2697_s21 + $0x80] sm:$0xff] %v1583_v39 }
 0x276   : > { %v1359_v50 = vpop.f32.mrf.mxu2  ;;  %v1585_v22 = vpop.f32.mrf.mxu0 }
 0x277   : > { %v1360_v33 = vadd.f32 %v1359_v50, %v1247_v42 }
 0x278   : > { %v1249_v4 = vpop.f32.mrf.mxu1  ;;  %v1472_v3 = vpop.f32.mrf.mxu3 }
 0x279   : > { %v1473_v41 = vadd.f32 %v1472_v3, %v1360_v33  ;;  %v1250_v40 = vadd.f32 %v1249_v4, %v2596_v24 }
 0x27b   : > { %v1586_v12 = vadd.f32 %v1585_v22, %v1473_v41 }
 0x27d   : > { %1647 = vst [vmem:[%s2697_s21 + $0x88] sm:$0xff] %v1586_v12 }
 0x27e   : > { %v1362_v29 = vpop.f32.mrf.mxu2  ;;  %v1588_v20 = vpop.f32.mrf.mxu0 }
 0x27f   : > { %v1363_v58 = vadd.f32 %v1362_v29, %v1250_v40 }
 0x280   : > { %v1252_v54 = vpop.f32.mrf.mxu1  ;;  %v1475_v59 = vpop.f32.mrf.mxu3 }
 0x281   : > { %v1476_v51 = vadd.f32 %v1475_v59, %v1363_v58  ;;  %v1253_v0 = vadd.f32 %v1252_v54, %v2603_v48 }
 0x283   : > { %v1589_v7 = vadd.f32 %v1588_v20, %v1476_v51 }
 0x285   : > { %1648 = vst [vmem:[%s2697_s21 + $0x90] sm:$0xff] %v1589_v7 }
 0x286   : > { %v1365_v5 = vpop.f32.mrf.mxu2  ;;  %v1591_v18 = vpop.f32.mrf.mxu0 }
 0x287   : > { %v1366_v62 = vadd.f32 %v1365_v5, %v1253_v0 }
 0x288   : > { %v1255_v34 = vpop.f32.mrf.mxu1  ;;  %v1478_v37 = vpop.f32.mrf.mxu3 }
 0x289   : > { %v1479_v21 = vadd.f32 %v1478_v37, %v1366_v62  ;;  %v1256_v16 = vadd.f32 %v1255_v34, %v2610_v63 }
 0x28b   : > { %v1592_v24 = vadd.f32 %v1591_v18, %v1479_v21 }
 0x28d   : > { %1649 = vst [vmem:[%s2697_s21 + $0x98] sm:$0xff] %v1592_v24 }
 0x28e   : > { %v1368_v61 = vpop.f32.mrf.mxu2  ;;  %v1594_v38 = vpop.f32.mrf.mxu0 }
 0x28f   : > { %v1369_v57 = vadd.f32 %v1368_v61, %v1256_v16 }
 0x290   : > { %v1258_v14 = vpop.f32.mrf.mxu1  ;;  %v1481_v60 = vpop.f32.mrf.mxu3 }
 0x291   : > { %v1482_v15 = vadd.f32 %v1481_v60, %v1369_v57  ;;  %v1259_v17 = vadd.f32 %v1258_v14, %v2617_v25 }
 0x293   : > { %v1595_v48 = vadd.f32 %v1594_v38, %v1482_v15 }
 0x295   : > { %1650 = vst [vmem:[%s2697_s21 + $0xa0] sm:$0xff] %v1595_v48 }
 0x296   : > { %v1371_v28 = vpop.f32.mrf.mxu2  ;;  %v1597_v19 = vpop.f32.mrf.mxu0 }
 0x297   : > { %v1372_v2 = vadd.f32 %v1371_v28, %v1259_v17 }
 0x298   : > { %v1261_v45 = vpop.f32.mrf.mxu1  ;;  %v1484_v1 = vpop.f32.mrf.mxu3 }
 0x299   : > { %v1485_v10 = vadd.f32 %v1484_v1, %v1372_v2  ;;  %v1262_v49 = vadd.f32 %v1261_v45, %v2624_v44 }
 0x29b   : > { %v1598_v63 = vadd.f32 %v1597_v19, %v1485_v10 }
 0x29d   : > { %1651 = vst [vmem:[%s2697_s21 + $0xa8] sm:$0xff] %v1598_v63 }
 0x29e   : > { %v1374_v56 = vpop.f32.mrf.mxu2  ;;  %v1600_v46 = vpop.f32.mrf.mxu0 }
 0x29f   : > { %v1375_v27 = vadd.f32 %v1374_v56, %v1262_v49 }
 0x2a0   : > { %v1264_v13 = vpop.f32.mrf.mxu1  ;;  %v1487_v8 = vpop.f32.mrf.mxu3 }
 0x2a1   : > { %v1488_v43 = vadd.f32 %v1487_v8, %v1375_v27  ;;  %v1265_v52 = vadd.f32 %v1264_v13, %v2631_v9 }
 0x2a3   : > { %v1601_v25 = vadd.f32 %v1600_v46, %v1488_v43 }
 0x2a5   : > { %1652 = vst [vmem:[%s2697_s21 + $0xb0] sm:$0xff] %v1601_v25 }
 0x2a6   : > { %v1377_v26 = vpop.f32.mrf.mxu2  ;;  %v1603_v6 = vpop.f32.mrf.mxu0 }
 0x2a7   : > { %v1378_v36 = vadd.f32 %v1377_v26, %v1265_v52 }
 0x2a8   : > { %v1267_v35 = vpop.f32.mrf.mxu1  ;;  %v1490_v39 = vpop.f32.mrf.mxu3 }
 0x2a9   : > { %v1491_v42 = vadd.f32 %v1490_v39, %v1378_v36  ;;  %v1268_v50 = vadd.f32 %v1267_v35, %v2638_v32 }
 0x2ab   : > { %v1604_v44 = vadd.f32 %v1603_v6, %v1491_v42 }
 0x2ad   : > { %1653 = vst [vmem:[%s2697_s21 + $0xb8] sm:$0xff] %v1604_v44 }
 0x2ae   : > { %v1380_v22 = vpop.f32.mrf.mxu2  ;;  %v1606_v33 = vpop.f32.mrf.mxu0 }
 0x2af   : > { %v1381_v4 = vadd.f32 %v1380_v22, %v1268_v50 }
 0x2b0   : > { %v1270_v3 = vpop.f32.mrf.mxu1  ;;  %v1493_v41 = vpop.f32.mrf.mxu3 }
 0x2b1   : > { %v1494_v12 = vadd.f32 %v1493_v41, %v1381_v4  ;;  %v1271_v40 = vadd.f32 %v1270_v3, %v2645_v47 }
 0x2b3   : > { %v1607_v9 = vadd.f32 %v1606_v33, %v1494_v12 }
 0x2b5   : > { %1654 = vst [vmem:[%s2697_s21 + $0xc0] sm:$0xff] %v1607_v9 }
 0x2b6   : > { %v1383_v29 = vpop.f32.mrf.mxu2  ;;  %v1609_v20 = vpop.f32.mrf.mxu0 }
 0x2b7   : > { %v1384_v58 = vadd.f32 %v1383_v29, %v1271_v40 }
 0x2b8   : > { %v1273_v54 = vpop.f32.mrf.mxu1  ;;  %v1496_v59 = vpop.f32.mrf.mxu3 }
 0x2b9   : > { %v1497_v51 = vadd.f32 %v1496_v59, %v1384_v58  ;;  %v1274_v7 = vadd.f32 %v1273_v54, %v2652_v11 }
 0x2bb   : > { %v1610_v32 = vadd.f32 %v1609_v20, %v1497_v51 }
 0x2bd   : > { %1655 = vst [vmem:[%s2697_s21 + $0xc8] sm:$0xff] %v1610_v32 }
 0x2be   : > { %v1386_v0 = vpop.f32.mrf.mxu2  ;;  %v1612_v5 = vpop.f32.mrf.mxu0 }
 0x2bf   : > { %v1387_v18 = vadd.f32 %v1386_v0, %v1274_v7 }
 0x2c0   : > { %v1276_v62 = vpop.f32.mrf.mxu1  ;;  %v1499_v34 = vpop.f32.mrf.mxu3 }
 0x2c1   : > { %v1500_v37 = vadd.f32 %v1499_v34, %v1387_v18  ;;  %v1277_v21 = vadd.f32 %v1276_v62, %v2659_v30 }
 0x2c3   : > { %v1613_v47 = vadd.f32 %v1612_v5, %v1500_v37 }
 0x2c5   : > { %1656 = vst [vmem:[%s2697_s21 + $0xd0] sm:$0xff] %v1613_v47 }
 0x2c6   : > { %v1389_v24 = vpop.f32.mrf.mxu2  ;;  %v1615_v16 = vpop.f32.mrf.mxu0 }
 0x2c7   : > { %v1390_v61 = vadd.f32 %v1389_v24, %v1277_v21 }
 0x2c8   : > { %v1279_v38 = vpop.f32.mrf.mxu1  ;;  %v1502_v57 = vpop.f32.mrf.mxu3 }
 0x2c9   : > { %v1503_v14 = vadd.f32 %v1502_v57, %v1390_v61  ;;  %v1280_v60 = vadd.f32 %v1279_v38, %v2666_v53 }
 0x2cb   : > { %v1616_v11 = vadd.f32 %v1615_v16, %v1503_v14 }
 0x2cd   : > { %1657 = vst [vmem:[%s2697_s21 + $0xd8] sm:$0xff] %v1616_v11 }
 0x2ce   : > { %v1392_v15 = vpop.f32.mrf.mxu2  ;;  %v1618_v48 = vpop.f32.mrf.mxu0 }
 0x2cf   : > { %v1393_v17 = vadd.f32 %v1392_v15, %v1280_v60 }
 0x2d0   : > { %v1282_v28 = vpop.f32.mrf.mxu1  ;;  %v1505_v19 = vpop.f32.mrf.mxu3 }
 0x2d1   : > { %v1506_v2 = vadd.f32 %v1505_v19, %v1393_v17  ;;  %v1283_v45 = vadd.f32 %v1282_v28, %v2673_v23 }
 0x2d3   : > { %v1619_v30 = vadd.f32 %v1618_v48, %v1506_v2 }
 0x2d5   : > { %1658 = vst [vmem:[%s2697_s21 + $0xe0] sm:$0xff] %v1619_v30 }
 0x2d6   : > { %v1395_v1 = vpop.f32.mrf.mxu2  ;;  %v1621_v10 = vpop.f32.mrf.mxu0 }
 0x2d7   : > { %v1396_v63 = vadd.f32 %v1395_v1, %v1283_v45 }
 0x2d8   : > { %v1285_v49 = vpop.f32.mrf.mxu1  ;;  %v1508_v56 = vpop.f32.mrf.mxu3 }
 0x2d9   : > { %v1509_v46 = vadd.f32 %v1508_v56, %v1396_v63  ;;  %v1286_v27 = vadd.f32 %v1285_v49, %v2680_v31 }
 0x2db   : > { %v1622_v53 = vadd.f32 %v1621_v10, %v1509_v46 }
 0x2dd   : > { %1659 = vst [vmem:[%s2697_s21 + $0xe8] sm:$0xff] %v1622_v53 }
 0x2de   : > { %v1398_v13 = vpop.f32.mrf.mxu2  ;;  %v1624_v8 = vpop.f32.mrf.mxu0 }
 0x2df   : > { %v1399_v43 = vadd.f32 %v1398_v13, %v1286_v27 }
 0x2e0   : > { %v1511_v25 = vpop.f32.mrf.mxu3  ;;  %v1288_v26 = vpop.f32.mrf.mxu1 }
 0x2e1   : > { %v1512_v52 = vadd.f32 %v1511_v25, %v1399_v43  ;;  %v1289_v6 = vadd.f32 %v1288_v26, %v2687_v55 }
 0x2e3   : > { %v1625_v23 = vadd.f32 %v1624_v8, %v1512_v52 }
 0x2e5   : > { %1660 = vst [vmem:[%s2697_s21 + $0xf0] sm:$0xff] %v1625_v23 }
 0x2e6   : > { %v1401_v36 = vpop.f32.mrf.mxu2  ;;  %v1627_v42 = vpop.f32.mrf.mxu0 }
 0x2e7   : > { %v1402_v35 = vadd.f32 %v1401_v36, %v1289_v6 }
 0x2e8   : > { %v1514_v39 = vpop.f32.mrf.mxu3 }
 0x2e9   : > { %v1515_v44 = vadd.f32 %v1514_v39, %v1402_v35 }
 0x2eb   : > { %v1628_v50 = vadd.f32 %v1627_v42, %v1515_v44 }
 0x2ed   : > { %1661 = vst [vmem:[%s2697_s21 + $0xf8] sm:$0xff] %v1628_v50 }
 0x2ee PF: > { %s13_s12 = sadd.s32 1, %s1793_s12  }
 0x2ef   : > { %p10_p4 = scmp.ge.s32.totalorder %s13_s12, 10  }
 0x2f1   :  { %12 = sbr.rel (!%p10_p4) target bundleno = 1 (0x1), region = 62 }

// kernel: generator_block.7
= control target key start
LH: loop header
LB: loop body
LE: loop exit
PB: predicated region body
PF: predicated region fallthrough
CT: control target
= control target key end

     0   :  { %s523_s12 = smov 0   ;;  %s702_s0 = inlined_call_operand.vmem [shape: f32[512,128], index: 0, kind: input, shape index: {}]   ;;  %s703_s1 = inlined_call_operand.vmem [shape: f32[128,128], index: 1, kind: input, shape index: {}]   ;;  %s704_s2 = inlined_call_operand.vmem [shape: f32[1,128], index: 2, kind: input, shape index: {}]   ;;  %s705_s3 = inlined_call_operand.vmem [shape: f32[512,128], index: 3, kind: output, shape index: {}]  }
   0x1 LB: > { %s427_s13 = sadd.s32 4294967295, %s501_s12   ;;  %p431_p0 = scmp.ge.s32.totalorder %s501_s12, 1  ;;  %s501_s12 = sphi %s523_s12, %s13_s12  }
   0x2   : > { %p138_p1 = scmp.lt.s32.totalorder %s501_s12, 3 }
   0x4   : > { %p139_p2 = pnand %p431_p0, %p138_p1 }
   0x5   : > { %s432_s30 = sshll.u32 (!%p139_p2), %s427_s13, 5 }
   0x6   : > { %142 = sbr.rel (%p139_p2) target bundleno = 235 (0xeb), region = 32  ;;  %p163_p3 = scmp.lt.s32.totalorder (!%p139_p2), %s432_s30, 63 }
   0xb   : > { %v221_v0 = vld [vmem:[%s703_s1 + $0x78] sm:$0xff]  ;;  %v220_v1 = vld [vmem:[%s703_s1 + $0x70] sm:$0xff]  ;;  %v219_v2 = vld [vmem:[%s703_s1 + $0x68] sm:$0xff]  ;;  %s707_s30 = smov (!%p163_p3, %s432_s30), 63 }
   0xc   : > { %439 = vmatpush.msra.mxu2 %v221_v0  ;;  %440 = vmatpush.msra.mxu3 %v221_v0  ;;  %v218_v3 = vld [vmem:[%s703_s1 + $0x60] sm:$0xff]  ;;  %v217_v4 = vld [vmem:[%s703_s1 + $0x58] sm:$0xff]  ;;  %v216_v5 = vld [vmem:[%s703_s1 + $0x50] sm:$0xff]  ;;  %s433_s15 = sshll.u32 %s707_s30, 3 }
   0xd   : > { %226 = vmatpush.msra.mxu0 %v221_v0  ;;  %438 = vmatpush.msra.mxu1 %v221_v0  ;;  %v215_v6 = vld [vmem:[%s703_s1 + $0x48] sm:$0xff]  ;;  %v214_v7 = vld [vmem:[%s703_s1 + $0x40] sm:$0xff]  ;;  %v213_v8 = vld [vmem:[%s703_s1 + $0x38] sm:$0xff]  ;;  %s586_s22 = scalar_lea.vmem %s702_s0, %s433_s15  ;;  %s633_s29 = scalar_lea.vmem %s705_s3, %s433_s15 }
   0xe   : > { %442 = vmatpush.msra.mxu2 %v220_v1  ;;  %443 = vmatpush.msra.mxu3 %v220_v1  ;;  %v212_v9 = vld [vmem:[%s703_s1 + $0x30] sm:$0xff]  ;;  %v211_v10 = vld [vmem:[%s703_s1 + $0x28] sm:$0xff]  ;;  %v210_v11 = vld [vmem:[%s703_s1 + $0x20] sm:$0xff] }
   0xf   : > { %227 = vmatpush.msra.mxu0 %v220_v1  ;;  %441 = vmatpush.msra.mxu1 %v220_v1  ;;  %v209_v12 = vld [vmem:[%s703_s1 + $0x18] sm:$0xff]  ;;  %v208_v13 = vld [vmem:[%s703_s1 + $0x10] sm:$0xff]  ;;  %v207_v14 = vld [vmem:[%s703_s1 + $0x8] sm:$0xff] }
  0x10   : > { %445 = vmatpush.msra.mxu2 %v219_v2  ;;  %446 = vmatpush.msra.mxu3 %v219_v2  ;;  %v206_v15 = vld [vmem:[%s703_s1] sm:$0xff]  ;;  %v191_v20 = vld [vmem:[%s586_s22 + $0x88] sm:$0xff]  ;;  %v192_v24 = vld [vmem:[%s586_s22 + $0x90] sm:$0xff] }
  0x11   : > { %228 = vmatpush.msra.mxu0 %v219_v2  ;;  %444 = vmatpush.msra.mxu1 %v219_v2  ;;  %v190_v16 = vld [vmem:[%s586_s22 + $0x80] sm:$0xff]  ;;  %v199_v21 = vld [vmem:[%s586_s22 + $0xc8] sm:$0xff]  ;;  %v200_v25 = vld [vmem:[%s586_s22 + $0xd0] sm:$0xff] }
  0x12   : > { %448 = vmatpush.msra.mxu2 %v218_v3  ;;  %449 = vmatpush.msra.mxu3 %v218_v3  ;;  %v198_v17 = vld [vmem:[%s586_s22 + $0xc0] sm:$0xff]  ;;  %v175_v22 = vld [vmem:[%s586_s22 + $0x8] sm:$0xff]  ;;  %v176_v26 = vld [vmem:[%s586_s22 + $0x10] sm:$0xff] }
  0x13   : > { %229 = vmatpush.msra.mxu0 %v218_v3  ;;  %447 = vmatpush.msra.mxu1 %v218_v3  ;;  %v174_v18 = vld [vmem:[%s586_s22] sm:$0xff]  ;;  %v183_v23 = vld [vmem:[%s586_s22 + $0x48] sm:$0xff]  ;;  %v184_v27 = vld [vmem:[%s586_s22 + $0x50] sm:$0xff] }
  0x14   : > { %451 = vmatpush.msra.mxu2 %v217_v4  ;;  %452 = vmatpush.msra.mxu3 %v217_v4  ;;  %v182_v19 = vld [vmem:[%s586_s22 + $0x40] sm:$0xff]  ;;  %v193_v28 = vld [vmem:[%s586_s22 + $0x98] sm:$0xff]  ;;  %v195_v36 = vld [vmem:[%s586_s22 + $0xa8] sm:$0xff] }
  0x15   : > { %230 = vmatpush.msra.mxu0 %v217_v4  ;;  %450 = vmatpush.msra.mxu1 %v217_v4  ;;  %v201_v29 = vld [vmem:[%s586_s22 + $0xd8] sm:$0xff]  ;;  %v194_v32 = vld [vmem:[%s586_s22 + $0xa0] sm:$0xff]  ;;  %v203_v37 = vld [vmem:[%s586_s22 + $0xe8] sm:$0xff] }
  0x16   : > { %454 = vmatpush.msra.mxu2 %v216_v5  ;;  %455 = vmatpush.msra.mxu3 %v216_v5  ;;  %v177_v30 = vld [vmem:[%s586_s22 + $0x18] sm:$0xff]  ;;  %v202_v33 = vld [vmem:[%s586_s22 + $0xe0] sm:$0xff]  ;;  %v179_v38 = vld [vmem:[%s586_s22 + $0x28] sm:$0xff] }
  0x17   : > { %231 = vmatpush.msra.mxu0 %v216_v5  ;;  %453 = vmatpush.msra.mxu1 %v216_v5  ;;  %v185_v31 = vld [vmem:[%s586_s22 + $0x58] sm:$0xff]  ;;  %v178_v34 = vld [vmem:[%s586_s22 + $0x20] sm:$0xff]  ;;  %v187_v39 = vld [vmem:[%s586_s22 + $0x68] sm:$0xff] }
  0x18   : > { %457 = vmatpush.msra.mxu2 %v215_v6  ;;  %458 = vmatpush.msra.mxu3 %v215_v6  ;;  %v186_v35 = vld [vmem:[%s586_s22 + $0x60] sm:$0xff]  ;;  %v196_v40 = vld [vmem:[%s586_s22 + $0xb0] sm:$0xff]  ;;  %v197_v44 = vld [vmem:[%s586_s22 + $0xb8] sm:$0xff] }
  0x19   : > { %232 = vmatpush.msra.mxu0 %v215_v6  ;;  %456 = vmatpush.msra.mxu1 %v215_v6  ;;  %v204_v41 = vld [vmem:[%s586_s22 + $0xf0] sm:$0xff]  ;;  %v205_v45 = vld [vmem:[%s586_s22 + $0xf8] sm:$0xff]  ;;  %v626_v48 = vld [vmem:[%s704_s2] ss:$0 sm:$0xff] }
  0x1a   : > { %460 = vmatpush.msra.mxu2 %v214_v7  ;;  %461 = vmatpush.msra.mxu3 %v214_v7  ;;  %v180_v42 = vld [vmem:[%s586_s22 + $0x30] sm:$0xff]  ;;  %v181_v46 = vld [vmem:[%s586_s22 + $0x38] sm:$0xff] }
  0x1b   : > { %233 = vmatpush.msra.mxu0 %v214_v7  ;;  %459 = vmatpush.msra.mxu1 %v214_v7  ;;  %v188_v43 = vld [vmem:[%s586_s22 + $0x70] sm:$0xff]  ;;  %v189_v47 = vld [vmem:[%s586_s22 + $0x78] sm:$0xff] }
  0x1c   : > { %463 = vmatpush.msra.mxu2 %v213_v8  ;;  %464 = vmatpush.msra.mxu3 %v213_v8 }
  0x1d   : > { %234 = vmatpush.msra.mxu0 %v213_v8  ;;  %462 = vmatpush.msra.mxu1 %v213_v8 }
  0x1e   : > { %466 = vmatpush.msra.mxu2 %v212_v9  ;;  %467 = vmatpush.msra.mxu3 %v212_v9 }
  0x1f   : > { %235 = vmatpush.msra.mxu0 %v212_v9  ;;  %465 = vmatpush.msra.mxu1 %v212_v9 }
  0x20   : > { %469 = vmatpush.msra.mxu2 %v211_v10  ;;  %470 = vmatpush.msra.mxu3 %v211_v10 }
  0x21   : > { %236 = vmatpush.msra.mxu0 %v211_v10  ;;  %468 = vmatpush.msra.mxu1 %v211_v10 }
  0x22   : > { %472 = vmatpush.msra.mxu2 %v210_v11  ;;  %473 = vmatpush.msra.mxu3 %v210_v11 }
  0x23   : > { %237 = vmatpush.msra.mxu0 %v210_v11  ;;  %471 = vmatpush.msra.mxu1 %v210_v11 }
  0x24   : > { %475 = vmatpush.msra.mxu2 %v209_v12  ;;  %476 = vmatpush.msra.mxu3 %v209_v12 }
  0x25   : > { %238 = vmatpush.msra.mxu0 %v209_v12  ;;  %474 = vmatpush.msra.mxu1 %v209_v12 }
  0x26   : > { %478 = vmatpush.msra.mxu2 %v208_v13  ;;  %479 = vmatpush.msra.mxu3 %v208_v13 }
  0x27   : > { %239 = vmatpush.msra.mxu0 %v208_v13  ;;  %477 = vmatpush.msra.mxu1 %v208_v13 }
  0x28   : > { %481 = vmatpush.msra.mxu2 %v207_v14  ;;  %482 = vmatpush.msra.mxu3 %v207_v14 }
  0x29   : > { %240 = vmatpush.msra.mxu0 %v207_v14  ;;  %480 = vmatpush.msra.mxu1 %v207_v14 }
  0x2a   : > { %484 = vmatpush.msra.mxu2 %v206_v15  ;;  %485 = vmatpush.msra.mxu3 %v206_v15 }
  0x2b   : > { %290 = vmatmul.f32.vlgmr.msra.gmra.mxu2 %v190_v16  ;;  %314 = vmatmul.f32.vlgmr.msra.gmra.mxu3 %v198_v17 }
  0x2c   : > { %241 = vmatpush.msra.mxu0 %v206_v15  ;;  %483 = vmatpush.msra.mxu1 %v206_v15 }
  0x2d   : > { %242 = vmatmul.f32.vlgmr.msra.gmra.mxu0 %v174_v18  ;;  %266 = vmatmul.f32.vlgmr.msra.gmra.mxu1 %v182_v19 }
  0x33   : > { %293 = vmatmul.f32.gmra.mxu2 %v191_v20  ;;  %317 = vmatmul.f32.gmra.mxu3 %v199_v21 }
  0x35   : > { %245 = vmatmul.f32.gmra.mxu0 %v175_v22  ;;  %269 = vmatmul.f32.gmra.mxu1 %v183_v23 }
  0x3b   : > { %296 = vmatmul.f32.gmra.mxu2 %v192_v24  ;;  %320 = vmatmul.f32.gmra.mxu3 %v200_v25 }
  0x3d   : > { %248 = vmatmul.f32.gmra.mxu0 %v176_v26  ;;  %272 = vmatmul.f32.gmra.mxu1 %v184_v27 }
  0x43   : > { %299 = vmatmul.f32.gmra.mxu2 %v193_v28  ;;  %323 = vmatmul.f32.gmra.mxu3 %v201_v29 }
  0x45   : > { %251 = vmatmul.f32.gmra.mxu0 %v177_v30  ;;  %275 = vmatmul.f32.gmra.mxu1 %v185_v31 }
  0x4b   : > { %302 = vmatmul.f32.gmra.mxu2 %v194_v32  ;;  %326 = vmatmul.f32.gmra.mxu3 %v202_v33 }
  0x4d   : > { %254 = vmatmul.f32.gmra.mxu0 %v178_v34  ;;  %278 = vmatmul.f32.gmra.mxu1 %v186_v35 }
  0x53   : > { %305 = vmatmul.f32.gmra.mxu2 %v195_v36  ;;  %329 = vmatmul.f32.gmra.mxu3 %v203_v37 }
  0x55   : > { %257 = vmatmul.f32.gmra.mxu0 %v179_v38  ;;  %281 = vmatmul.f32.gmra.mxu1 %v187_v39 }
  0x5b   : > { %308 = vmatmul.f32.gmra.mxu2 %v196_v40  ;;  %332 = vmatmul.f32.gmra.mxu3 %v204_v41 }
  0x5d   : > { %260 = vmatmul.f32.gmra.mxu0 %v180_v42  ;;  %284 = vmatmul.f32.gmra.mxu1 %v188_v43 }
  0x63   : > { %311 = vmatmul.f32.gmra.mxu2 %v197_v44  ;;  %335 = vmatmul.f32.gmra.mxu3 %v205_v45 }
  0x65   : > { %263 = vmatmul.f32.gmra.mxu0 %v181_v46  ;;  %287 = vmatmul.f32.gmra.mxu1 %v189_v47 }
  0xaa   : > { %v243_v49 = vpop.f32.mrf.mxu0  ;;  %v267_v50 = vpop.f32.mrf.mxu1 }
  0xab   : > { %v244_v51 = vadd.f32 %v626_v48, %v243_v49  ;;  %v268_v52 = vadd.f32 %v626_v48, %v267_v50 }
  0xad   : > { %339 = vst [vmem:[%s633_s29] sm:$0xff] %v244_v51 }
  0xae   : > { %347 = vst [vmem:[%s633_s29 + $0x40] sm:$0xff] %v268_v52  ;;  %v291_v53 = vpop.f32.mrf.mxu2  ;;  %v315_v54 = vpop.f32.mrf.mxu3 }
  0xaf   : > { %v292_v55 = vadd.f32 %v626_v48, %v291_v53  ;;  %v316_v56 = vadd.f32 %v626_v48, %v315_v54 }
  0xb1   : > { %355 = vst [vmem:[%s633_s29 + $0x80] sm:$0xff] %v292_v55 }
  0xb2   : > { %363 = vst [vmem:[%s633_s29 + $0xc0] sm:$0xff] %v316_v56  ;;  %v246_v57 = vpop.f32.mrf.mxu0  ;;  %v270_v58 = vpop.f32.mrf.mxu1 }
  0xb3   : > { %v247_v59 = vadd.f32 %v626_v48, %v246_v57  ;;  %v271_v60 = vadd.f32 %v626_v48, %v270_v58 }
  0xb5   : > { %340 = vst [vmem:[%s633_s29 + $0x8] sm:$0xff] %v247_v59 }
  0xb6   : > { %348 = vst [vmem:[%s633_s29 + $0x48] sm:$0xff] %v271_v60  ;;  %v294_v61 = vpop.f32.mrf.mxu2  ;;  %v318_v62 = vpop.f32.mrf.mxu3 }
  0xb7   : > { %v295_v63 = vadd.f32 %v626_v48, %v294_v61  ;;  %v319_v0 = vadd.f32 %v626_v48, %v318_v62 }
  0xb9   : > { %356 = vst [vmem:[%s633_s29 + $0x88] sm:$0xff] %v295_v63 }
  0xba   : > { %364 = vst [vmem:[%s633_s29 + $0xc8] sm:$0xff] %v319_v0  ;;  %v249_v1 = vpop.f32.mrf.mxu0  ;;  %v273_v2 = vpop.f32.mrf.mxu1 }
  0xbb   : > { %v250_v3 = vadd.f32 %v626_v48, %v249_v1  ;;  %v274_v4 = vadd.f32 %v626_v48, %v273_v2 }
  0xbd   : > { %341 = vst [vmem:[%s633_s29 + $0x10] sm:$0xff] %v250_v3 }
  0xbe   : > { %349 = vst [vmem:[%s633_s29 + $0x50] sm:$0xff] %v274_v4  ;;  %v297_v5 = vpop.f32.mrf.mxu2  ;;  %v321_v6 = vpop.f32.mrf.mxu3 }
  0xbf   : > { %v298_v7 = vadd.f32 %v626_v48, %v297_v5  ;;  %v322_v8 = vadd.f32 %v626_v48, %v321_v6 }
  0xc1   : > { %357 = vst [vmem:[%s633_s29 + $0x90] sm:$0xff] %v298_v7 }
  0xc2   : > { %365 = vst [vmem:[%s633_s29 + $0xd0] sm:$0xff] %v322_v8  ;;  %v252_v9 = vpop.f32.mrf.mxu0  ;;  %v276_v10 = vpop.f32.mrf.mxu1 }
  0xc3   : > { %v253_v11 = vadd.f32 %v626_v48, %v252_v9  ;;  %v277_v12 = vadd.f32 %v626_v48, %v276_v10 }
  0xc5   : > { %342 = vst [vmem:[%s633_s29 + $0x18] sm:$0xff] %v253_v11 }
  0xc6   : > { %350 = vst [vmem:[%s633_s29 + $0x58] sm:$0xff] %v277_v12  ;;  %v300_v13 = vpop.f32.mrf.mxu2  ;;  %v324_v14 = vpop.f32.mrf.mxu3 }
  0xc7   : > { %v301_v15 = vadd.f32 %v626_v48, %v300_v13  ;;  %v325_v16 = vadd.f32 %v626_v48, %v324_v14 }
  0xc9   : > { %358 = vst [vmem:[%s633_s29 + $0x98] sm:$0xff] %v301_v15 }
  0xca   : > { %366 = vst [vmem:[%s633_s29 + $0xd8] sm:$0xff] %v325_v16  ;;  %v255_v17 = vpop.f32.mrf.mxu0  ;;  %v279_v18 = vpop.f32.mrf.mxu1 }
  0xcb   : > { %v256_v19 = vadd.f32 %v626_v48, %v255_v17  ;;  %v280_v20 = vadd.f32 %v626_v48, %v279_v18 }
  0xcd   : > { %343 = vst [vmem:[%s633_s29 + $0x20] sm:$0xff] %v256_v19 }
  0xce   : > { %351 = vst [vmem:[%s633_s29 + $0x60] sm:$0xff] %v280_v20  ;;  %v303_v21 = vpop.f32.mrf.mxu2  ;;  %v327_v22 = vpop.f32.mrf.mxu3 }
  0xcf   : > { %v304_v23 = vadd.f32 %v626_v48, %v303_v21  ;;  %v328_v24 = vadd.f32 %v626_v48, %v327_v22 }
  0xd1   : > { %359 = vst [vmem:[%s633_s29 + $0xa0] sm:$0xff] %v304_v23 }
  0xd2   : > { %367 = vst [vmem:[%s633_s29 + $0xe0] sm:$0xff] %v328_v24  ;;  %v258_v25 = vpop.f32.mrf.mxu0  ;;  %v282_v26 = vpop.f32.mrf.mxu1 }
  0xd3   : > { %v259_v27 = vadd.f32 %v626_v48, %v258_v25  ;;  %v283_v28 = vadd.f32 %v626_v48, %v282_v26 }
  0xd5   : > { %344 = vst [vmem:[%s633_s29 + $0x28] sm:$0xff] %v259_v27 }
  0xd6   : > { %352 = vst [vmem:[%s633_s29 + $0x68] sm:$0xff] %v283_v28  ;;  %v306_v29 = vpop.f32.mrf.mxu2  ;;  %v330_v30 = vpop.f32.mrf.mxu3 }
  0xd7   : > { %v307_v31 = vadd.f32 %v626_v48, %v306_v29  ;;  %v331_v32 = vadd.f32 %v626_v48, %v330_v30 }
  0xd9   : > { %360 = vst [vmem:[%s633_s29 + $0xa8] sm:$0xff] %v307_v31 }
  0xda   : > { %368 = vst [vmem:[%s633_s29 + $0xe8] sm:$0xff] %v331_v32  ;;  %v261_v33 = vpop.f32.mrf.mxu0  ;;  %v285_v34 = vpop.f32.mrf.mxu1 }
  0xdb   : > { %v262_v35 = vadd.f32 %v626_v48, %v261_v33  ;;  %v286_v36 = vadd.f32 %v626_v48, %v285_v34 }
  0xdd   : > { %345 = vst [vmem:[%s633_s29 + $0x30] sm:$0xff] %v262_v35 }
  0xde   : > { %353 = vst [vmem:[%s633_s29 + $0x70] sm:$0xff] %v286_v36  ;;  %v309_v37 = vpop.f32.mrf.mxu2  ;;  %v333_v38 = vpop.f32.mrf.mxu3 }
  0xdf   : > { %v310_v39 = vadd.f32 %v626_v48, %v309_v37  ;;  %v334_v40 = vadd.f32 %v626_v48, %v333_v38 }
  0xe1   : > { %361 = vst [vmem:[%s633_s29 + $0xb0] sm:$0xff] %v310_v39 }
  0xe2   : > { %369 = vst [vmem:[%s633_s29 + $0xf0] sm:$0xff] %v334_v40  ;;  %v264_v41 = vpop.f32.mrf.mxu0  ;;  %v288_v42 = vpop.f32.mrf.mxu1 }
  0xe3   : > { %v265_v43 = vadd.f32 %v626_v48, %v264_v41  ;;  %v289_v44 = vadd.f32 %v626_v48, %v288_v42 }
  0xe5   : > { %346 = vst [vmem:[%s633_s29 + $0x38] sm:$0xff] %v265_v43 }
  0xe6   : > { %354 = vst [vmem:[%s633_s29 + $0x78] sm:$0xff] %v289_v44  ;;  %v312_v45 = vpop.f32.mrf.mxu2  ;;  %v336_v46 = vpop.f32.mrf.mxu3 }
  0xe7   : > { %v313_v47 = vadd.f32 %v626_v48, %v312_v45  ;;  %v337_v49 = vadd.f32 %v626_v48, %v336_v46 }
  0xe9   : > { %362 = vst [vmem:[%s633_s29 + $0xb8] sm:$0xff] %v313_v47 }
  0xea   : > { %370 = vst [vmem:[%s633_s29 + $0xf8] sm:$0xff] %v337_v49 }
  0xeb PF: > { %s13_s12 = sadd.s32 1, %s501_s12  }
  0xec   : > { %p10_p4 = scmp.ge.s32.totalorder %s13_s12, 4  }
  0xee   :  { %12 = sbr.rel (!%p10_p4) target bundleno = 1 (0x1), region = 62 }

// kernel: generator_block.13
= control target key start
LH: loop header
LB: loop body
LE: loop exit
PB: predicated region body
PF: predicated region fallthrough
CT: control target
= control target key end

     0   :  { %s1947_s15 = smov 0   ;;  %s2992_s0 = inlined_call_operand.vmem [shape: f32[2048,1152], index: 0, kind: input, shape index: {}]   ;;  %s2993_s1 = inlined_call_operand.vmem [shape: f32[1152,128], index: 1, kind: input, shape index: {}]   ;;  %s2994_s2 = inlined_call_operand.vmem [shape: f32[1,128], index: 2, kind: input, shape index: {}]   ;;  %s2995_s3 = inlined_call_operand.vmem [shape: f32[2048,128], index: 3, kind: input, shape index: {}]   ;;  %s2996_s4 = inlined_call_operand.vmem [shape: f32[2048,128], index: 4, kind: output, shape index: {}]  }
   0x1 LB: > { %s1843_s16 = sadd.s32 4294967295, %s1920_s15   ;;  %p1847_p0 = scmp.ge.s32.totalorder %s1920_s15, 1  ;;  %s1920_s15 = sphi %s1947_s15, %s14_s15  }
   0x2   : > { %p175_p1 = scmp.lt.s32.totalorder %s1920_s15, 9 }
   0x4   : > { %p176_p2 = pnand %p1847_p0, %p175_p1 }
   0x5   : > { %s1848_s5 = sshll.u32 (!%p176_p2), %s1843_s16, 5 }
   0x6   : > { %179 = sbr.rel (%p176_p2) target bundleno = 752 (0x2f0), region = 36  ;;  %p208_p3 = scmp.lt.s32.totalorder (!%p176_p2), %s1848_s5, 255 }
   0xb   : > { %v529_v0 = vld [vmem:[%s2993_s1 + $0x78] sm:$0xff]  ;;  %v528_v1 = vld [vmem:[%s2993_s1 + $0x70] sm:$0xff]  ;;  %v527_v2 = vld [vmem:[%s2993_s1 + $0x68] sm:$0xff]  ;;  %s2998_s5 = smov (!%p208_p3, %s1848_s5), 255 }
   0xc   : > { %1856 = vmatpush.msra.mxu1 %v529_v0  ;;  %1857 = vmatpush.msra.mxu2 %v529_v0  ;;  %v526_v3 = vld [vmem:[%s2993_s1 + $0x60] sm:$0xff]  ;;  %v525_v4 = vld [vmem:[%s2993_s1 + $0x58] sm:$0xff]  ;;  %v524_v5 = vld [vmem:[%s2993_s1 + $0x50] sm:$0xff]  ;;  %s1904_s19 = smul.u32 72, %s2998_s5  ;;  %s1851_s9 = sshll.u32 %s2998_s5, 3 }
   0xd   : > { %1858 = vmatpush.msra.mxu3 %v529_v0  ;;  %662 = vmatpush.msra.mxu0 %v529_v0  ;;  %v523_v6 = vld [vmem:[%s2993_s1 + $0x48] sm:$0xff]  ;;  %v522_v7 = vld [vmem:[%s2993_s1 + $0x40] sm:$0xff]  ;;  %v521_v8 = vld [vmem:[%s2993_s1 + $0x38] sm:$0xff]  ;;  %s2827_s12 = scalar_lea.vmem %s2995_s3, %s1851_s9  ;;  %s2836_s14 = scalar_lea.vmem %s2996_s4, %s1851_s9 }
   0xe   : > { %1859 = vmatpush.msra.mxu1 %v528_v1  ;;  %1860 = vmatpush.msra.mxu2 %v528_v1  ;;  %v520_v9 = vld [vmem:[%s2993_s1 + $0x30] sm:$0xff]  ;;  %v519_v10 = vld [vmem:[%s2993_s1 + $0x28] sm:$0xff]  ;;  %v518_v11 = vld [vmem:[%s2993_s1 + $0x20] sm:$0xff]  ;;  %s2008_s26 = scalar_lea.vmem %s2992_s0, %s1904_s19 }
   0xf   : > { %1861 = vmatpush.msra.mxu3 %v528_v1  ;;  %663 = vmatpush.msra.mxu0 %v528_v1  ;;  %v517_v12 = vld [vmem:[%s2993_s1 + $0x18] sm:$0xff]  ;;  %v516_v13 = vld [vmem:[%s2993_s1 + $0x10] sm:$0xff]  ;;  %v515_v14 = vld [vmem:[%s2993_s1 + $0x8] sm:$0xff] }
  0x10   : > { %1862 = vmatpush.msra.mxu1 %v527_v2  ;;  %1863 = vmatpush.msra.mxu2 %v527_v2  ;;  %v514_v15 = vld [vmem:[%s2993_s1] sm:$0xff]  ;;  %v561_v18 = vld [vmem:[%s2993_s1 + $0x178] sm:$0xff]  ;;  %v560_v22 = vld [vmem:[%s2993_s1 + $0x170] sm:$0xff] }
  0x11   : > { %1864 = vmatpush.msra.mxu3 %v527_v2  ;;  %664 = vmatpush.msra.mxu0 %v527_v2  ;;  %v298_v16 = vld [vmem:[%s2008_s26 + $0x240] sm:$0xff]  ;;  %v545_v20 = vld [vmem:[%s2993_s1 + $0xf8] sm:$0xff]  ;;  %v544_v23 = vld [vmem:[%s2993_s1 + $0xf0] sm:$0xff] }
  0x12   : > { %1865 = vmatpush.msra.mxu1 %v526_v3  ;;  %1866 = vmatpush.msra.mxu2 %v526_v3  ;;  %v370_v17 = vld [vmem:[%s2008_s26 + $0x480] sm:$0xff]  ;;  %v577_v21 = vld [vmem:[%s2993_s1 + $0x1f8] sm:$0xff]  ;;  %v576_v24 = vld [vmem:[%s2993_s1 + $0x1f0] sm:$0xff] }
  0x13   : > { %1867 = vmatpush.msra.mxu3 %v526_v3  ;;  %665 = vmatpush.msra.mxu0 %v526_v3  ;;  %v442_v19 = vld [vmem:[%s2008_s26 + $0x6c0] sm:$0xff]  ;;  %v559_v25 = vld [vmem:[%s2993_s1 + $0x168] sm:$0xff]  ;;  %v593_v29 = vld [vmem:[%s2993_s1 + $0x278] sm:$0xff] }
  0x14   : > { %1868 = vmatpush.msra.mxu1 %v525_v4  ;;  %1869 = vmatpush.msra.mxu2 %v525_v4  ;;  %v226_v26 = vld [vmem:[%s2008_s26] sm:$0xff]  ;;  %v543_v27 = vld [vmem:[%s2993_s1 + $0xe8] sm:$0xff]  ;;  %v592_v35 = vld [vmem:[%s2993_s1 + $0x270] sm:$0xff] }
  0x15   : > { %1870 = vmatpush.msra.mxu3 %v525_v4  ;;  %666 = vmatpush.msra.mxu0 %v525_v4  ;;  %v575_v28 = vld [vmem:[%s2993_s1 + $0x1e8] sm:$0xff]  ;;  %v558_v32 = vld [vmem:[%s2993_s1 + $0x160] sm:$0xff]  ;;  %v557_v37 = vld [vmem:[%s2993_s1 + $0x158] sm:$0xff] }
  0x16   : > { %1871 = vmatpush.msra.mxu1 %v524_v5  ;;  %1872 = vmatpush.msra.mxu2 %v524_v5  ;;  %v307_v30 = vld [vmem:[%s2008_s26 + $0x288] sm:$0xff]  ;;  %v574_v33 = vld [vmem:[%s2993_s1 + $0x1e0] sm:$0xff]  ;;  %v573_v38 = vld [vmem:[%s2993_s1 + $0x1d8] sm:$0xff] }
  0x17   : > { %1873 = vmatpush.msra.mxu3 %v524_v5  ;;  %667 = vmatpush.msra.mxu0 %v524_v5  ;;  %v379_v31 = vld [vmem:[%s2008_s26 + $0x4c8] sm:$0xff]  ;;  %v542_v36 = vld [vmem:[%s2993_s1 + $0xe0] sm:$0xff]  ;;  %v541_v40 = vld [vmem:[%s2993_s1 + $0xd8] sm:$0xff] }
  0x18   : > { %1874 = vmatpush.msra.mxu1 %v523_v6  ;;  %1875 = vmatpush.msra.mxu2 %v523_v6  ;;  %v451_v34 = vld [vmem:[%s2008_s26 + $0x708] sm:$0xff]  ;;  %v556_v41 = vld [vmem:[%s2993_s1 + $0x150] sm:$0xff]  ;;  %v590_v44 = vld [vmem:[%s2993_s1 + $0x260] sm:$0xff] }
  0x19   : > { %1876 = vmatpush.msra.mxu3 %v523_v6  ;;  %668 = vmatpush.msra.mxu0 %v523_v6  ;;  %v591_v39 = vld [vmem:[%s2993_s1 + $0x268] sm:$0xff]  ;;  %v572_v43 = vld [vmem:[%s2993_s1 + $0x1d0] sm:$0xff]  ;;  %v589_v51 = vld [vmem:[%s2993_s1 + $0x258] sm:$0xff] }
  0x1a   : > { %1877 = vmatpush.msra.mxu1 %v522_v7  ;;  %1878 = vmatpush.msra.mxu2 %v522_v7  ;;  %v235_v42 = vld [vmem:[%s2008_s26 + $0x48] sm:$0xff]  ;;  %v540_v45 = vld [vmem:[%s2993_s1 + $0xd0] sm:$0xff]  ;;  %v554_v53 = vld [vmem:[%s2993_s1 + $0x140] sm:$0xff] }
  0x1b   : > { %1879 = vmatpush.msra.mxu3 %v522_v7  ;;  %669 = vmatpush.msra.mxu0 %v522_v7  ;;  %v316_v46 = vld [vmem:[%s2008_s26 + $0x2d0] sm:$0xff]  ;;  %v555_v48 = vld [vmem:[%s2993_s1 + $0x148] sm:$0xff]  ;;  %v570_v54 = vld [vmem:[%s2993_s1 + $0x1c0] sm:$0xff] }
  0x1c   : > { %1880 = vmatpush.msra.mxu1 %v521_v8  ;;  %1881 = vmatpush.msra.mxu2 %v521_v8  ;;  %v388_v47 = vld [vmem:[%s2008_s26 + $0x510] sm:$0xff]  ;;  %v571_v49 = vld [vmem:[%s2993_s1 + $0x1c8] sm:$0xff]  ;;  %v538_v56 = vld [vmem:[%s2993_s1 + $0xc0] sm:$0xff] }
  0x1d   : > { %1882 = vmatpush.msra.mxu3 %v521_v8  ;;  %670 = vmatpush.msra.mxu0 %v521_v8  ;;  %v460_v50 = vld [vmem:[%s2008_s26 + $0x750] sm:$0xff]  ;;  %v539_v52 = vld [vmem:[%s2993_s1 + $0xc8] sm:$0xff]  ;;  %v553_v57 = vld [vmem:[%s2993_s1 + $0x138] sm:$0xff] }
  0x1e   : > { %1883 = vmatpush.msra.mxu1 %v520_v9  ;;  %1884 = vmatpush.msra.mxu2 %v520_v9  ;;  %v588_v55 = vld [vmem:[%s2993_s1 + $0x250] sm:$0xff]  ;;  %v569_v59 = vld [vmem:[%s2993_s1 + $0x1b8] sm:$0xff]  ;;  %v587_v60 = vld [vmem:[%s2993_s1 + $0x248] sm:$0xff] }
  0x1f   : > { %1885 = vmatpush.msra.mxu3 %v520_v9  ;;  %671 = vmatpush.msra.mxu0 %v520_v9  ;;  %v244_v58 = vld [vmem:[%s2008_s26 + $0x90] sm:$0xff]  ;;  %v537_v61 = vld [vmem:[%s2993_s1 + $0xb8] sm:$0xff]  ;;  %v586_v3 = vld [vmem:[%s2993_s1 + $0x240] sm:$0xff] }
  0x20   : > { %1886 = vmatpush.msra.mxu1 %v519_v10  ;;  %1887 = vmatpush.msra.mxu2 %v519_v10  ;;  %v325_v62 = vld [vmem:[%s2008_s26 + $0x318] sm:$0xff]  ;;  %v552_v0 = vld [vmem:[%s2993_s1 + $0x130] sm:$0xff]  ;;  %v551_v5 = vld [vmem:[%s2993_s1 + $0x128] sm:$0xff] }
  0x21   : > { %1888 = vmatpush.msra.mxu3 %v519_v10  ;;  %672 = vmatpush.msra.mxu0 %v519_v10  ;;  %v397_v63 = vld [vmem:[%s2008_s26 + $0x558] sm:$0xff]  ;;  %v568_v1 = vld [vmem:[%s2993_s1 + $0x1b0] sm:$0xff]  ;;  %v567_v6 = vld [vmem:[%s2993_s1 + $0x1a8] sm:$0xff] }
  0x22   : > { %1889 = vmatpush.msra.mxu1 %v518_v11  ;;  %1890 = vmatpush.msra.mxu2 %v518_v11  ;;  %v469_v2 = vld [vmem:[%s2008_s26 + $0x798] sm:$0xff]  ;;  %v536_v4 = vld [vmem:[%s2993_s1 + $0xb0] sm:$0xff]  ;;  %v535_v8 = vld [vmem:[%s2993_s1 + $0xa8] sm:$0xff] }
  0x23   : > { %1891 = vmatpush.msra.mxu3 %v518_v11  ;;  %673 = vmatpush.msra.mxu0 %v518_v11  ;;  %v585_v7 = vld [vmem:[%s2993_s1 + $0x238] sm:$0xff]  ;;  %v550_v9 = vld [vmem:[%s2993_s1 + $0x120] sm:$0xff] }
  0x24   : > { %1892 = vmatpush.msra.mxu1 %v517_v12  ;;  %1893 = vmatpush.msra.mxu2 %v517_v12  ;;  %v253_v10 = vld [vmem:[%s2008_s26 + $0xd8] sm:$0xff]  ;;  %v566_v11 = vld [vmem:[%s2993_s1 + $0x1a0] sm:$0xff] }
  0x25   : > { %1894 = vmatpush.msra.mxu3 %v517_v12  ;;  %674 = vmatpush.msra.mxu0 %v517_v12  ;;  %v584_v12 = vld [vmem:[%s2993_s1 + $0x230] sm:$0xff] }
  0x26   : > { %1895 = vmatpush.msra.mxu1 %v516_v13  ;;  %1896 = vmatpush.msra.mxu2 %v516_v13 }
  0x27   : > { %1897 = vmatpush.msra.mxu3 %v516_v13  ;;  %675 = vmatpush.msra.mxu0 %v516_v13  ;;  %v534_v13 = vld [vmem:[%s2993_s1 + $0xa0] sm:$0xff] }
  0x28   : > { %1898 = vmatpush.msra.mxu1 %v515_v14  ;;  %1899 = vmatpush.msra.mxu2 %v515_v14 }
  0x29   : > { %1900 = vmatpush.msra.mxu3 %v515_v14  ;;  %676 = vmatpush.msra.mxu0 %v515_v14  ;;  %v334_v14 = vld [vmem:[%s2008_s26 + $0x360] sm:$0xff] }
  0x2a   : > { %1901 = vmatpush.msra.mxu1 %v514_v15  ;;  %1902 = vmatpush.msra.mxu2 %v514_v15 }
  0x2b   : > { %702 = vmatmul.f32.vlgmr.msra.gmra.mxu1 %v298_v16  ;;  %726 = vmatmul.f32.vlgmr.msra.gmra.mxu2 %v370_v17  ;;  %v549_v16 = vld [vmem:[%s2993_s1 + $0x118] sm:$0xff] }
  0x2c   : > { %888 = vmatpush.msrb.mxu2 %v561_v18  ;;  %1903 = vmatpush.msra.mxu3 %v514_v15  ;;  %v565_v17 = vld [vmem:[%s2993_s1 + $0x198] sm:$0xff]  ;;  %v478_v18 = vld [vmem:[%s2008_s26 + $0x7e0] sm:$0xff] }
  0x2d   : > { %750 = vmatmul.f32.vlgmr.msra.gmra.mxu3 %v442_v19  ;;  %775 = vmatpush.msrb.mxu1 %v545_v20  ;;  %v583_v19 = vld [vmem:[%s2993_s1 + $0x228] sm:$0xff]  ;;  %v533_v20 = vld [vmem:[%s2993_s1 + $0x98] sm:$0xff] }
  0x2e   : > { %1001 = vmatpush.msrb.mxu3 %v577_v21  ;;  %889 = vmatpush.msrb.mxu2 %v560_v22  ;;  %v548_v21 = vld [vmem:[%s2993_s1 + $0x110] sm:$0xff] }
  0x2f   : > { %776 = vmatpush.msrb.mxu1 %v544_v23  ;;  %677 = vmatpush.msra.mxu0 %v514_v15  ;;  %v406_v15 = vld [vmem:[%s2008_s26 + $0x5a0] sm:$0xff]  ;;  %v564_v22 = vld [vmem:[%s2993_s1 + $0x190] sm:$0xff] }
  0x30   : > { %1002 = vmatpush.msrb.mxu3 %v576_v24  ;;  %890 = vmatpush.msrb.mxu2 %v559_v25  ;;  %v582_v23 = vld [vmem:[%s2993_s1 + $0x220] sm:$0xff]  ;;  %v532_v24 = vld [vmem:[%s2993_s1 + $0x90] sm:$0xff]  ;;  %v547_v25 = vld [vmem:[%s2993_s1 + $0x108] sm:$0xff] }
  0x31   : > { %678 = vmatmul.f32.vlgmr.msra.gmra.mxu0 %v226_v26  ;;  %777 = vmatpush.msrb.mxu1 %v543_v27  ;;  %v262_v26 = vld [vmem:[%s2008_s26 + $0x120] sm:$0xff]  ;;  %v563_v27 = vld [vmem:[%s2993_s1 + $0x188] sm:$0xff] }
  0x32   : > { %1003 = vmatpush.msrb.mxu3 %v575_v28  ;;  %1114 = vmatpush.msrb.mxu0 %v593_v29  ;;  %v581_v28 = vld [vmem:[%s2993_s1 + $0x218] sm:$0xff]  ;;  %v531_v29 = vld [vmem:[%s2993_s1 + $0x88] sm:$0xff] }
  0x33   : > { %705 = vmatmul.f32.gmra.mxu1 %v307_v30  ;;  %729 = vmatmul.f32.gmra.mxu2 %v379_v31  ;;  %v343_v30 = vld [vmem:[%s2008_s26 + $0x3a8] sm:$0xff] }
  0x34   : > { %891 = vmatpush.msrb.mxu2 %v558_v32  ;;  %1004 = vmatpush.msrb.mxu3 %v574_v33  ;;  %v415_v31 = vld [vmem:[%s2008_s26 + $0x5e8] sm:$0xff]  ;;  %v546_v32 = vld [vmem:[%s2993_s1 + $0x100] sm:$0xff] }
  0x35   : > { %753 = vmatmul.f32.gmra.mxu3 %v451_v34  ;;  %1115 = vmatpush.msrb.mxu0 %v592_v35  ;;  %v562_v33 = vld [vmem:[%s2993_s1 + $0x180] sm:$0xff]  ;;  %v487_v34 = vld [vmem:[%s2008_s26 + $0x828] sm:$0xff]  ;;  %v580_v35 = vld [vmem:[%s2993_s1 + $0x210] sm:$0xff] }
  0x36   : > { %778 = vmatpush.msrb.mxu1 %v542_v36  ;;  %892 = vmatpush.msrb.mxu2 %v557_v37  ;;  %v530_v36 = vld [vmem:[%s2993_s1 + $0x80] sm:$0xff]  ;;  %v625_v37 = vld [vmem:[%s2993_s1 + $0x378] sm:$0xff] }
  0x37   : > { %1005 = vmatpush.msrb.mxu3 %v573_v38  ;;  %1116 = vmatpush.msrb.mxu0 %v591_v39  ;;  %v579_v38 = vld [vmem:[%s2993_s1 + $0x208] sm:$0xff]  ;;  %v641_v39 = vld [vmem:[%s2993_s1 + $0x3f8] sm:$0xff] }
  0x38   : > { %779 = vmatpush.msrb.mxu1 %v541_v40  ;;  %893 = vmatpush.msrb.mxu2 %v556_v41  ;;  %v609_v40 = vld [vmem:[%s2993_s1 + $0x2f8] sm:$0xff]  ;;  %v271_v41 = vld [vmem:[%s2008_s26 + $0x168] sm:$0xff] }
  0x39   : > { %681 = vmatmul.f32.gmra.mxu0 %v235_v42  ;;  %1006 = vmatpush.msrb.mxu3 %v572_v43  ;;  %v578_v42 = vld [vmem:[%s2993_s1 + $0x200] sm:$0xff]  ;;  %v352_v43 = vld [vmem:[%s2008_s26 + $0x3f0] sm:$0xff] }
  0x3a   : > { %1117 = vmatpush.msrb.mxu0 %v590_v44  ;;  %780 = vmatpush.msrb.mxu1 %v540_v45  ;;  %v424_v44 = vld [vmem:[%s2008_s26 + $0x630] sm:$0xff]  ;;  %v657_v45 = vld [vmem:[%s2993_s1 + $0x478] sm:$0xff] }
  0x3b   : > { %708 = vmatmul.f32.gmra.mxu1 %v316_v46  ;;  %732 = vmatmul.f32.gmra.mxu2 %v388_v47  ;;  %v496_v46 = vld [vmem:[%s2008_s26 + $0x870] sm:$0xff] }
  0x3c   : > { %894 = vmatpush.msrb.mxu2 %v555_v48  ;;  %1007 = vmatpush.msrb.mxu3 %v571_v49  ;;  %v624_v47 = vld [vmem:[%s2993_s1 + $0x370] sm:$0xff] }
  0x3d   : > { %756 = vmatmul.f32.gmra.mxu3 %v460_v50  ;;  %1118 = vmatpush.msrb.mxu0 %v589_v51  ;;  %v640_v48 = vld [vmem:[%s2993_s1 + $0x3f0] sm:$0xff]  ;;  %v361_v51 = vld [vmem:[%s2008_s26 + $0x438] sm:$0xff] }
  0x3e   : > { %781 = vmatpush.msrb.mxu1 %v539_v52  ;;  %895 = vmatpush.msrb.mxu2 %v554_v53  ;;  %v608_v49 = vld [vmem:[%s2993_s1 + $0x2f0] sm:$0xff]  ;;  %v433_v52 = vld [vmem:[%s2008_s26 + $0x678] sm:$0xff] }
  0x3f   : > { %1008 = vmatpush.msrb.mxu3 %v570_v54  ;;  %1119 = vmatpush.msrb.mxu0 %v588_v55  ;;  %v280_v50 = vld [vmem:[%s2008_s26 + $0x1b0] sm:$0xff]  ;;  %v505_v53 = vld [vmem:[%s2008_s26 + $0x8b8] sm:$0xff] }
  0x40   : > { %782 = vmatpush.msrb.mxu1 %v538_v56  ;;  %896 = vmatpush.msrb.mxu2 %v553_v57  ;;  %v656_v54 = vld [vmem:[%s2993_s1 + $0x470] sm:$0xff]  ;;  %v289_v55 = vld [vmem:[%s2008_s26 + $0x1f8] sm:$0xff]  ;;  %v227_v56 = vld [vmem:[%s2008_s26 + $0x8] sm:$0xff] }
  0x41   : > { %684 = vmatmul.f32.gmra.mxu0 %v244_v58  ;;  %1009 = vmatpush.msrb.mxu3 %v569_v59  ;;  %v228_v57 = vld [vmem:[%s2008_s26 + $0x10] sm:$0xff]  ;;  %v229_v58 = vld [vmem:[%s2008_s26 + $0x18] sm:$0xff]  ;;  %v623_v59 = vld [vmem:[%s2993_s1 + $0x368] sm:$0xff] }
  0x42   : > { %1120 = vmatpush.msrb.mxu0 %v587_v60  ;;  %783 = vmatpush.msrb.mxu1 %v537_v61  ;;  %v639_v60 = vld [vmem:[%s2993_s1 + $0x3e8] sm:$0xff] }
  0x43   : > { %711 = vmatmul.f32.gmra.mxu1 %v325_v62  ;;  %735 = vmatmul.f32.gmra.mxu2 %v397_v63  ;;  %v607_v61 = vld [vmem:[%s2993_s1 + $0x2e8] sm:$0xff]  ;;  %v230_v62 = vld [vmem:[%s2008_s26 + $0x20] sm:$0xff]  ;;  %v236_v63 = vld [vmem:[%s2008_s26 + $0x50] sm:$0xff] }
  0x44   : > { %897 = vmatpush.msrb.mxu2 %v552_v0  ;;  %1010 = vmatpush.msrb.mxu3 %v568_v1  ;;  %v237_v0 = vld [vmem:[%s2008_s26 + $0x58] sm:$0xff]  ;;  %v238_v1 = vld [vmem:[%s2008_s26 + $0x60] sm:$0xff] }
  0x45   : > { %759 = vmatmul.f32.gmra.mxu3 %v469_v2  ;;  %1121 = vmatpush.msrb.mxu0 %v586_v3  ;;  %v655_v2 = vld [vmem:[%s2993_s1 + $0x468] sm:$0xff] }
  0x46   : > { %784 = vmatpush.msrb.mxu1 %v536_v4  ;;  %898 = vmatpush.msrb.mxu2 %v551_v5  ;;  %v239_v3 = vld [vmem:[%s2008_s26 + $0x68] sm:$0xff]  ;;  %v245_v4 = vld [vmem:[%s2008_s26 + $0x98] sm:$0xff]  ;;  %v246_v5 = vld [vmem:[%s2008_s26 + $0xa0] sm:$0xff] }
  0x47   : > { %1011 = vmatpush.msrb.mxu3 %v567_v6  ;;  %1122 = vmatpush.msrb.mxu0 %v585_v7  ;;  %v247_v6 = vld [vmem:[%s2008_s26 + $0xa8] sm:$0xff]  ;;  %v622_v7 = vld [vmem:[%s2993_s1 + $0x360] sm:$0xff] }
  0x48   : > { %785 = vmatpush.msrb.mxu1 %v535_v8  ;;  %899 = vmatpush.msrb.mxu2 %v550_v9  ;;  %v638_v8 = vld [vmem:[%s2993_s1 + $0x3e0] sm:$0xff] }
  0x49   : > { %687 = vmatmul.f32.gmra.mxu0 %v253_v10  ;;  %1012 = vmatpush.msrb.mxu3 %v566_v11  ;;  %v606_v9 = vld [vmem:[%s2993_s1 + $0x2e0] sm:$0xff]  ;;  %v248_v10 = vld [vmem:[%s2008_s26 + $0xb0] sm:$0xff] }
  0x4a   : > { %1123 = vmatpush.msrb.mxu0 %v584_v12  ;;  %786 = vmatpush.msrb.mxu1 %v534_v13  ;;  %v254_v11 = vld [vmem:[%s2008_s26 + $0xe0] sm:$0xff]  ;;  %v255_v12 = vld [vmem:[%s2008_s26 + $0xe8] sm:$0xff]  ;;  %v256_v13 = vld [vmem:[%s2008_s26 + $0xf0] sm:$0xff] }
  0x4b   : > { %714 = vmatmul.f32.gmra.mxu1 %v334_v14  ;;  %738 = vmatmul.f32.gmra.mxu2 %v406_v15  ;;  %v654_v14 = vld [vmem:[%s2993_s1 + $0x460] sm:$0xff]  ;;  %v257_v15 = vld [vmem:[%s2008_s26 + $0xf8] sm:$0xff] }
  0x4c   : > { %900 = vmatpush.msrb.mxu2 %v549_v16  ;;  %1013 = vmatpush.msrb.mxu3 %v565_v17  ;;  %v263_v16 = vld [vmem:[%s2008_s26 + $0x128] sm:$0xff]  ;;  %v264_v17 = vld [vmem:[%s2008_s26 + $0x130] sm:$0xff] }
  0x4d   : > { %762 = vmatmul.f32.gmra.mxu3 %v478_v18  ;;  %1124 = vmatpush.msrb.mxu0 %v583_v19  ;;  %v265_v18 = vld [vmem:[%s2008_s26 + $0x138] sm:$0xff] }
  0x4e   : > { %787 = vmatpush.msrb.mxu1 %v533_v20  ;;  %901 = vmatpush.msrb.mxu2 %v548_v21  ;;  %v621_v19 = vld [vmem:[%s2993_s1 + $0x358] sm:$0xff]  ;;  %v266_v21 = vld [vmem:[%s2008_s26 + $0x140] sm:$0xff] }
  0x4f   : > { %1014 = vmatpush.msrb.mxu3 %v564_v22  ;;  %1125 = vmatpush.msrb.mxu0 %v582_v23  ;;  %v637_v20 = vld [vmem:[%s2993_s1 + $0x3d8] sm:$0xff]  ;;  %v272_v23 = vld [vmem:[%s2008_s26 + $0x170] sm:$0xff] }
  0x50   : > { %788 = vmatpush.msrb.mxu1 %v532_v24  ;;  %902 = vmatpush.msrb.mxu2 %v547_v25  ;;  %v605_v22 = vld [vmem:[%s2993_s1 + $0x2d8] sm:$0xff]  ;;  %v274_v25 = vld [vmem:[%s2008_s26 + $0x180] sm:$0xff] }
  0x51   : > { %690 = vmatmul.f32.gmra.mxu0 %v262_v26  ;;  %1015 = vmatpush.msrb.mxu3 %v563_v27  ;;  %v273_v24 = vld [vmem:[%s2008_s26 + $0x178] sm:$0xff]  ;;  %v275_v27 = vld [vmem:[%s2008_s26 + $0x188] sm:$0xff] }
  0x52   : > { %1126 = vmatpush.msrb.mxu0 %v581_v28  ;;  %789 = vmatpush.msrb.mxu1 %v531_v29  ;;  %v653_v26 = vld [vmem:[%s2993_s1 + $0x458] sm:$0xff]  ;;  %v282_v29 = vld [vmem:[%s2008_s26 + $0x1c0] sm:$0xff] }
  0x53   : > { %717 = vmatmul.f32.gmra.mxu1 %v343_v30  ;;  %741 = vmatmul.f32.gmra.mxu2 %v415_v31  ;;  %v281_v28 = vld [vmem:[%s2008_s26 + $0x1b8] sm:$0xff]  ;;  %v283_v30 = vld [vmem:[%s2008_s26 + $0x1c8] sm:$0xff]  ;;  %v620_v31 = vld [vmem:[%s2993_s1 + $0x350] sm:$0xff] }
  0x54   : > { %903 = vmatpush.msrb.mxu2 %v546_v32  ;;  %1016 = vmatpush.msrb.mxu3 %v562_v33  ;;  %v636_v32 = vld [vmem:[%s2993_s1 + $0x3d0] sm:$0xff] }
  0x55   : > { %765 = vmatmul.f32.gmra.mxu3 %v487_v34  ;;  %1127 = vmatpush.msrb.mxu0 %v580_v35  ;;  %v284_v33 = vld [vmem:[%s2008_s26 + $0x1d0] sm:$0xff]  ;;  %v290_v35 = vld [vmem:[%s2008_s26 + $0x200] sm:$0xff] }
  0x56   : > { %790 = vmatpush.msrb.mxu1 %v530_v36  ;;  %1340 = vmatpush.msra.mxu2 %v625_v37  ;;  %v604_v34 = vld [vmem:[%s2993_s1 + $0x2d0] sm:$0xff]  ;;  %v291_v36 = vld [vmem:[%s2008_s26 + $0x208] sm:$0xff] }
  0x57   : > { %1128 = vmatpush.msrb.mxu0 %v579_v38  ;;  %1453 = vmatpush.msra.mxu3 %v641_v39  ;;  %v292_v37 = vld [vmem:[%s2008_s26 + $0x210] sm:$0xff]  ;;  %v293_v39 = vld [vmem:[%s2008_s26 + $0x218] sm:$0xff] }
  0x58   : > { %1227 = vmatpush.msra.mxu1 %v609_v40  ;;  %1341 = vmatpush.msra.mxu2 %v624_v47  ;;  %v652_v38 = vld [vmem:[%s2993_s1 + $0x450] sm:$0xff] }
  0x59   : > { %693 = vmatmul.f32.gmra.mxu0 %v271_v41  ;;  %1454 = vmatpush.msra.mxu3 %v640_v48  ;;  %v299_v41 = vld [vmem:[%s2008_s26 + $0x248] sm:$0xff] }
  0x5a   : > { %1129 = vmatpush.msrb.mxu0 %v578_v42  ;;  %1228 = vmatpush.msra.mxu1 %v608_v49  ;;  %v300_v42 = vld [vmem:[%s2008_s26 + $0x250] sm:$0xff]  ;;  %v302_v49 = vld [vmem:[%s2008_s26 + $0x260] sm:$0xff] }
  0x5b   : > { %720 = vmatmul.f32.gmra.mxu1 %v352_v43  ;;  %744 = vmatmul.f32.gmra.mxu2 %v424_v44  ;;  %v301_v43 = vld [vmem:[%s2008_s26 + $0x258] sm:$0xff]  ;;  %v619_v44 = vld [vmem:[%s2993_s1 + $0x348] sm:$0xff] }
  0x5c   : > { %1566 = vmatpush.msra.mxu0 %v657_v45  ;;  %1342 = vmatpush.msra.mxu2 %v623_v59  ;;  %v2352_v45 = vld [vmem:[%s2994_s2] ss:$0 sm:$0xff] }
  0x5d   : > { %768 = vmatmul.f32.gmra.mxu3 %v496_v46  ;;  %1229 = vmatpush.msra.mxu1 %v607_v61  ;;  %v635_v46 = vld [vmem:[%s2993_s1 + $0x3c8] sm:$0xff] }
  0x5e   : > { %1567 = vmatpush.msra.mxu0 %v656_v54  ;;  %1455 = vmatpush.msra.mxu3 %v639_v60  ;;  %v308_v54 = vld [vmem:[%s2008_s26 + $0x290] sm:$0xff]  ;;  %v311_v61 = vld [vmem:[%s2008_s26 + $0x2a8] sm:$0xff] }
  0x5f   : > { %1343 = vmatpush.msra.mxu2 %v622_v7  ;;  %1230 = vmatpush.msra.mxu1 %v606_v9  ;;  %v320_v9 = vld [vmem:[%s2008_s26 + $0x2f0] sm:$0xff] }
  0x60   : > { %1568 = vmatpush.msra.mxu0 %v655_v2  ;;  %1456 = vmatpush.msra.mxu3 %v638_v8  ;;  %v318_v2 = vld [vmem:[%s2008_s26 + $0x2e0] sm:$0xff] }
  0x61   : > { %696 = vmatmul.f32.gmra.mxu0 %v280_v50  ;;  %1344 = vmatpush.msra.mxu2 %v621_v19 }
  0x62   : > { %1569 = vmatpush.msra.mxu0 %v654_v14  ;;  %1457 = vmatpush.msra.mxu3 %v637_v20  ;;  %v326_v14 = vld [vmem:[%s2008_s26 + $0x320] sm:$0xff] }
  0x63   : > { %723 = vmatmul.f32.gmra.mxu1 %v361_v51  ;;  %747 = vmatmul.f32.gmra.mxu2 %v433_v52  ;;  %v603_v51 = vld [vmem:[%s2993_s1 + $0x2c8] sm:$0xff] }
  0x64   : > { %1231 = vmatpush.msra.mxu1 %v605_v22  ;;  %1570 = vmatpush.msra.mxu0 %v653_v26  ;;  %v336_v26 = vld [vmem:[%s2008_s26 + $0x370] sm:$0xff] }
  0x65   : > { %771 = vmatmul.f32.gmra.mxu3 %v505_v53  ;;  %1345 = vmatpush.msra.mxu2 %v620_v31 }
  0x66   : > { %1458 = vmatpush.msra.mxu3 %v636_v32  ;;  %1232 = vmatpush.msra.mxu1 %v604_v34 }
  0x67   : > { %1571 = vmatpush.msra.mxu0 %v652_v38  ;;  %1346 = vmatpush.msra.mxu2 %v619_v44  ;;  %v344_v38 = vld [vmem:[%s2008_s26 + $0x3b0] sm:$0xff] }
  0x68   : > { %1459 = vmatpush.msra.mxu3 %v635_v46  ;;  %1233 = vmatpush.msra.mxu1 %v603_v51 }
  0x69   : > { %699 = vmatmul.f32.gmra.mxu0 %v289_v55  ;;  %v309_v55 = vld [vmem:[%s2008_s26 + $0x298] sm:$0xff] }
  0x6b   : > { %791 = vmatmul.f32.vlgmr.msrb.gmra.mxu1 %v227_v56  ;;  %904 = vmatmul.f32.vlgmr.msrb.gmra.mxu2 %v228_v57  ;;  %v310_v57 = vld [vmem:[%s2008_s26 + $0x2a0] sm:$0xff] }
  0x6d   : > { %1017 = vmatmul.f32.vlgmr.msrb.gmra.mxu3 %v229_v58  ;;  %v651_v58 = vld [vmem:[%s2993_s1 + $0x448] sm:$0xff] }
  0x6e   : > { %1572 = vmatpush.msra.mxu0 %v651_v58  ;;  %v355_v58 = vld [vmem:[%s2008_s26 + $0x408] sm:$0xff] }
  0x71   : > { %1130 = vmatmul.f32.vlgmr.msrb.gmra.mxu0 %v230_v62 }
  0x73   : > { %794 = vmatmul.f32.gmra.mxu1 %v236_v63  ;;  %907 = vmatmul.f32.gmra.mxu2 %v237_v0 }
  0x75   : > { %1020 = vmatmul.f32.gmra.mxu3 %v238_v1  ;;  %v317_v1 = vld [vmem:[%s2008_s26 + $0x2d8] sm:$0xff] }
  0x79   : > { %1133 = vmatmul.f32.gmra.mxu0 %v239_v3 }
  0x7b   : > { %797 = vmatmul.f32.gmra.mxu1 %v245_v4  ;;  %910 = vmatmul.f32.gmra.mxu2 %v246_v5  ;;  %v319_v4 = vld [vmem:[%s2008_s26 + $0x2e8] sm:$0xff]  ;;  %v618_v5 = vld [vmem:[%s2993_s1 + $0x340] sm:$0xff] }
  0x7c   : > { %1347 = vmatpush.msra.mxu2 %v618_v5  ;;  %v600_v5 = vld [vmem:[%s2993_s1 + $0x2b0] sm:$0xff] }
  0x7d   : > { %1023 = vmatmul.f32.gmra.mxu3 %v247_v6  ;;  %v634_v6 = vld [vmem:[%s2993_s1 + $0x3c0] sm:$0xff] }
  0x7e   : > { %1460 = vmatpush.msra.mxu3 %v634_v6 }
  0x81   : > { %1136 = vmatmul.f32.gmra.mxu0 %v248_v10 }
  0x83   : > { %800 = vmatmul.f32.gmra.mxu1 %v254_v11  ;;  %913 = vmatmul.f32.gmra.mxu2 %v255_v12  ;;  %v602_v11 = vld [vmem:[%s2993_s1 + $0x2c0] sm:$0xff] }
  0x84   : > { %1234 = vmatpush.msra.mxu1 %v602_v11  ;;  %v363_v11 = vld [vmem:[%s2008_s26 + $0x448] sm:$0xff] }
  0x85   : > { %1026 = vmatmul.f32.gmra.mxu3 %v256_v13 }
  0x89   : > { %1139 = vmatmul.f32.gmra.mxu0 %v257_v15  ;;  %v327_v15 = vld [vmem:[%s2008_s26 + $0x328] sm:$0xff] }
  0x8b   : > { %803 = vmatmul.f32.gmra.mxu1 %v263_v16  ;;  %916 = vmatmul.f32.gmra.mxu2 %v264_v17  ;;  %v328_v17 = vld [vmem:[%s2008_s26 + $0x330] sm:$0xff] }
  0x8d   : > { %1029 = vmatmul.f32.gmra.mxu3 %v265_v18  ;;  %v650_v18 = vld [vmem:[%s2993_s1 + $0x440] sm:$0xff] }
  0x8e   : > { %1573 = vmatpush.msra.mxu0 %v650_v18 }
  0x91   : > { %1142 = vmatmul.f32.gmra.mxu0 %v266_v21  ;;  %v329_v21 = vld [vmem:[%s2008_s26 + $0x338] sm:$0xff] }
  0x93   : > { %806 = vmatmul.f32.gmra.mxu1 %v272_v23  ;;  %919 = vmatmul.f32.gmra.mxu2 %v273_v24 }
  0x95   : > { %1032 = vmatmul.f32.gmra.mxu3 %v274_v25  ;;  %v335_v25 = vld [vmem:[%s2008_s26 + $0x368] sm:$0xff] }
  0x99   : > { %1145 = vmatmul.f32.gmra.mxu0 %v275_v27 }
  0x9b   : > { %809 = vmatmul.f32.gmra.mxu1 %v281_v28  ;;  %922 = vmatmul.f32.gmra.mxu2 %v282_v29  ;;  %v337_v28 = vld [vmem:[%s2008_s26 + $0x378] sm:$0xff] }
  0x9c   : > { %v617_v29 = vld [vmem:[%s2993_s1 + $0x338] sm:$0xff] }
  0x9d   : > { %1035 = vmatmul.f32.gmra.mxu3 %v283_v30  ;;  %1348 = vmatpush.msra.mxu2 %v617_v29  ;;  %v633_v30 = vld [vmem:[%s2993_s1 + $0x3b8] sm:$0xff] }
  0x9e   : > { %1461 = vmatpush.msra.mxu3 %v633_v30  ;;  %v373_v30 = vld [vmem:[%s2008_s26 + $0x498] sm:$0xff] }
  0xa1   : > { %1148 = vmatmul.f32.gmra.mxu0 %v284_v33  ;;  %v338_v33 = vld [vmem:[%s2008_s26 + $0x380] sm:$0xff] }
  0xa3   : > { %812 = vmatmul.f32.gmra.mxu1 %v290_v35  ;;  %925 = vmatmul.f32.gmra.mxu2 %v291_v36  ;;  %v601_v35 = vld [vmem:[%s2993_s1 + $0x2b8] sm:$0xff] }
  0xa4   : > { %1235 = vmatpush.msra.mxu1 %v601_v35 }
  0xa5   : > { %1038 = vmatmul.f32.gmra.mxu3 %v292_v37 }
  0xa6   : > { %1236 = vmatpush.msra.mxu1 %v600_v5 }
  0xa8   : > { %v2341_v40 = vpop.f32.mrf.mxu1 }
  0xa9   : > { %1151 = vmatmul.f32.gmra.mxu0 %v293_v39  ;;  %v345_v39 = vld [vmem:[%s2008_s26 + $0x3b8] sm:$0xff] }
  0xab   : > { %815 = vmatmul.f32.gmra.mxu1 %v299_v41  ;;  %928 = vmatmul.f32.gmra.mxu2 %v300_v42  ;;  %v346_v42 = vld [vmem:[%s2008_s26 + $0x3c0] sm:$0xff] }
  0xad   : > { %1041 = vmatmul.f32.gmra.mxu3 %v301_v43  ;;  %v649_v43 = vld [vmem:[%s2993_s1 + $0x438] sm:$0xff] }
  0xae   : > { %v727_v47 = vpop.f32.mrf.mxu2  ;;  %v2357_v48 = vpop.f32.mrf.mxu0  ;;  %1574 = vmatpush.msra.mxu0 %v649_v43  ;;  %v599_v43 = vld [vmem:[%s2993_s1 + $0x2a8] sm:$0xff] }
  0xaf   : > { %v2361_v50 = vadd.f32 %v2352_v45, %v727_v47  ;;  %v347_v47 = vld [vmem:[%s2008_s26 + $0x3c8] sm:$0xff]  ;;  %1237 = vmatpush.msra.mxu1 %v599_v43 }
  0xb0   : > { %v2366_v52 = vpop.f32.mrf.mxu1  ;;  %v751_v53 = vpop.f32.mrf.mxu3  ;;  %v399_v43 = vld [vmem:[%s2008_s26 + $0x568] sm:$0xff] }
  0xb1   : > { %v2371_v56 = vadd.f32 %v2352_v45, %v751_v53  ;;  %1154 = vmatmul.f32.gmra.mxu0 %v302_v49 }
  0xb3   : > { %818 = vmatmul.f32.gmra.mxu1 %v308_v54  ;;  %931 = vmatmul.f32.gmra.mxu2 %v309_v55  ;;  %v353_v54 = vld [vmem:[%s2008_s26 + $0x3f8] sm:$0xff]  ;;  %v354_v55 = vld [vmem:[%s2008_s26 + $0x400] sm:$0xff] }
  0xb5   : > { %1044 = vmatmul.f32.gmra.mxu3 %v310_v57 }
  0xb6   : > { %v730_v59 = vpop.f32.mrf.mxu2  ;;  %v2377_v60 = vpop.f32.mrf.mxu0 }
  0xb7   : > { %v2381_v62 = vadd.f32 %v2352_v45, %v730_v59  ;;  %v616_v59 = vld [vmem:[%s2993_s1 + $0x330] sm:$0xff] }
  0xb8   : > { %v2383_v63 = vpop.f32.mrf.mxu1  ;;  %v754_v0 = vpop.f32.mrf.mxu3  ;;  %1349 = vmatpush.msra.mxu2 %v616_v59  ;;  %v683_v59 = vadd.f32 %v2352_v45, %v2377_v60  ;;  %v390_v60 = vld [vmem:[%s2008_s26 + $0x520] sm:$0xff] }
  0xb9   : > { %v2388_v3 = vadd.f32 %v2352_v45, %v754_v0  ;;  %1157 = vmatmul.f32.gmra.mxu0 %v311_v61  ;;  %v632_v61 = vld [vmem:[%s2993_s1 + $0x3b0] sm:$0xff] }
  0xba   : > { %1462 = vmatpush.msra.mxu3 %v632_v61 }
  0xbb   : > { %821 = vmatmul.f32.gmra.mxu1 %v317_v1  ;;  %934 = vmatmul.f32.gmra.mxu2 %v318_v2  ;;  %v356_v2 = vld [vmem:[%s2008_s26 + $0x410] sm:$0xff] }
  0xbd   : > { %1047 = vmatmul.f32.gmra.mxu3 %v319_v4 }
  0xbe   : > { %v733_v7 = vpop.f32.mrf.mxu2  ;;  %v2397_v8 = vpop.f32.mrf.mxu0 }
  0xbf   : > { %v2401_v10 = vadd.f32 %v2352_v45, %v733_v7 }
  0xc0   : > { %v2406_v12 = vpop.f32.mrf.mxu1  ;;  %v757_v13 = vpop.f32.mrf.mxu3 }
  0xc1   : > { %v2411_v16 = vadd.f32 %v2352_v45, %v757_v13  ;;  %1160 = vmatmul.f32.gmra.mxu0 %v320_v9  ;;  %v362_v9 = vld [vmem:[%s2008_s26 + $0x440] sm:$0xff] }
  0xc3   : > { %824 = vmatmul.f32.gmra.mxu1 %v326_v14  ;;  %937 = vmatmul.f32.gmra.mxu2 %v327_v15  ;;  %v364_v14 = vld [vmem:[%s2008_s26 + $0x450] sm:$0xff] }
  0xc4   : > { %v648_v15 = vld [vmem:[%s2993_s1 + $0x430] sm:$0xff] }
  0xc5   : > { %1050 = vmatmul.f32.gmra.mxu3 %v328_v17  ;;  %1575 = vmatpush.msra.mxu0 %v648_v15 }
  0xc6   : > { %v736_v19 = vpop.f32.mrf.mxu2  ;;  %v2417_v20 = vpop.f32.mrf.mxu0 }
  0xc7   : > { %v2421_v22 = vadd.f32 %v2352_v45, %v736_v19  ;;  %v365_v19 = vld [vmem:[%s2008_s26 + $0x458] sm:$0xff] }
  0xc8   : > { %v2423_v23 = vpop.f32.mrf.mxu1  ;;  %v760_v24 = vpop.f32.mrf.mxu3 }
  0xc9   : > { %v2428_v27 = vadd.f32 %v2352_v45, %v760_v24  ;;  %1163 = vmatmul.f32.gmra.mxu0 %v329_v21 }
  0xcb   : > { %827 = vmatmul.f32.gmra.mxu1 %v335_v25  ;;  %940 = vmatmul.f32.gmra.mxu2 %v336_v26  ;;  %v371_v26 = vld [vmem:[%s2008_s26 + $0x488] sm:$0xff] }
  0xcd   : > { %1053 = vmatmul.f32.gmra.mxu3 %v337_v28  ;;  %v372_v28 = vld [vmem:[%s2008_s26 + $0x490] sm:$0xff] }
  0xce   : > { %v739_v31 = vpop.f32.mrf.mxu2  ;;  %v2437_v32 = vpop.f32.mrf.mxu0 }
  0xcf   : > { %v2441_v34 = vadd.f32 %v2352_v45, %v739_v31  ;;  %v680_v31 = vadd.f32 %v2352_v45, %v2357_v48 }
  0xd0   : > { %v2446_v36 = vpop.f32.mrf.mxu1  ;;  %v763_v37 = vpop.f32.mrf.mxu3 }
  0xd1   : > { %v2451_v41 = vadd.f32 %v2352_v45, %v763_v37  ;;  %1166 = vmatmul.f32.gmra.mxu0 %v338_v33  ;;  %v615_v33 = vld [vmem:[%s2993_s1 + $0x328] sm:$0xff] }
  0xd2   : > { %1350 = vmatpush.msra.mxu2 %v615_v33  ;;  %v631_v37 = vld [vmem:[%s2993_s1 + $0x3a8] sm:$0xff] }
  0xd3   : > { %830 = vmatmul.f32.gmra.mxu1 %v344_v38  ;;  %943 = vmatmul.f32.gmra.mxu2 %v345_v39 }
  0xd4   : > { %1463 = vmatpush.msra.mxu3 %v631_v37 }
  0xd5   : > { %1056 = vmatmul.f32.gmra.mxu3 %v346_v42  ;;  %v374_v42 = vld [vmem:[%s2008_s26 + $0x4a0] sm:$0xff] }
  0xd6   : > { %v742_v44 = vpop.f32.mrf.mxu2  ;;  %v2457_v46 = vpop.f32.mrf.mxu0 }
  0xd7   : > { %v2461_v49 = vadd.f32 %v2352_v45, %v742_v44 }
  0xd8   : > { %v2463_v51 = vpop.f32.mrf.mxu1  ;;  %v766_v53 = vpop.f32.mrf.mxu3 }
  0xd9   : > { %v2468_v57 = vadd.f32 %v2352_v45, %v766_v53  ;;  %1169 = vmatmul.f32.gmra.mxu0 %v347_v47  ;;  %v380_v53 = vld [vmem:[%s2008_s26 + $0x4d0] sm:$0xff] }
  0xdb   : > { %833 = vmatmul.f32.gmra.mxu1 %v353_v54  ;;  %946 = vmatmul.f32.gmra.mxu2 %v354_v55  ;;  %v381_v54 = vld [vmem:[%s2008_s26 + $0x4d8] sm:$0xff] }
  0xdd   : > { %1059 = vmatmul.f32.gmra.mxu3 %v355_v58  ;;  %v382_v58 = vld [vmem:[%s2008_s26 + $0x4e0] sm:$0xff] }
  0xde   : > { %v745_v0 = vpop.f32.mrf.mxu2  ;;  %v2477_v1 = vpop.f32.mrf.mxu0 }
  0xdf   : > { %v2481_v4 = vadd.f32 %v2352_v45, %v745_v0 }
  0xe0   : > { %v2486_v6 = vpop.f32.mrf.mxu1  ;;  %v769_v7 = vpop.f32.mrf.mxu3 }
  0xe1   : > { %v2491_v13 = vadd.f32 %v2352_v45, %v769_v7  ;;  %1172 = vmatmul.f32.gmra.mxu0 %v356_v2  ;;  %v647_v2 = vld [vmem:[%s2993_s1 + $0x428] sm:$0xff] }
  0xe2   : > { %1576 = vmatpush.msra.mxu0 %v647_v2  ;;  %v401_v2 = vld [vmem:[%s2008_s26 + $0x578] sm:$0xff] }
  0xe3   : > { %836 = vmatmul.f32.gmra.mxu1 %v362_v9  ;;  %949 = vmatmul.f32.gmra.mxu2 %v363_v11  ;;  %v383_v9 = vld [vmem:[%s2008_s26 + $0x4e8] sm:$0xff] }
  0xe5   : > { %1062 = vmatmul.f32.gmra.mxu3 %v364_v14 }
  0xe6   : > { %v748_v17 = vpop.f32.mrf.mxu2  ;;  %v2497_v18 = vpop.f32.mrf.mxu0 }
  0xe7   : > { %v2501_v21 = vadd.f32 %v2352_v45, %v748_v17  ;;  %v389_v17 = vld [vmem:[%s2008_s26 + $0x518] sm:$0xff] }
  0xe8   : > { %v772_v24 = vpop.f32.mrf.mxu3  ;;  %v792_v25 = vpop.f32.mrf.mxu1 }
  0xe9   : > { %v2506_v29 = vadd.f32 %v2352_v45, %v772_v24  ;;  %1175 = vmatmul.f32.gmra.mxu0 %v365_v19  ;;  %v793_v35 = vadd.f32 %v792_v25, %v680_v31  ;;  %v391_v24 = vld [vmem:[%s2008_s26 + $0x528] sm:$0xff]  ;;  %v686_v25 = vadd.f32 %v2352_v45, %v2397_v8  ;;  %v630_v31 = vld [vmem:[%s2993_s1 + $0x3a0] sm:$0xff] }
  0xea   : > { %1464 = vmatpush.msra.mxu3 %v630_v31 }
  0xeb   : > { %839 = vmatmul.f32.gmra.mxu1 %v371_v26  ;;  %952 = vmatmul.f32.gmra.mxu2 %v372_v28  ;;  %v614_v28 = vld [vmem:[%s2993_s1 + $0x320] sm:$0xff] }
  0xec   : > { %1351 = vmatpush.msra.mxu2 %v614_v28 }
  0xed   : > { %1065 = vmatmul.f32.gmra.mxu3 %v373_v30 }
  0xee   : > { %v905_v38 = vpop.f32.mrf.mxu2  ;;  %v1131_v39 = vpop.f32.mrf.mxu0 }
  0xef   : > { %v906_v48 = vadd.f32 %v905_v38, %v793_v35  ;;  %v392_v35 = vld [vmem:[%s2008_s26 + $0x530] sm:$0xff]  ;;  %v598_v38 = vld [vmem:[%s2993_s1 + $0x2a0] sm:$0xff] }
  0xf0   : > { %v795_v44 = vpop.f32.mrf.mxu1  ;;  %v1018_v47 = vpop.f32.mrf.mxu3  ;;  %1238 = vmatpush.msra.mxu1 %v598_v38  ;;  %v417_v38 = vld [vmem:[%s2008_s26 + $0x5f8] sm:$0xff] }
  0xf1   : > { %v1019_v55 = vadd.f32 %v1018_v47, %v906_v48  ;;  %1178 = vmatmul.f32.gmra.mxu0 %v374_v42  ;;  %v796_v0 = vadd.f32 %v795_v44, %v683_v59  ;;  %v398_v48 = vld [vmem:[%s2008_s26 + $0x560] sm:$0xff]  ;;  %v400_v47 = vld [vmem:[%s2008_s26 + $0x570] sm:$0xff] }
  0xf3   : > { %v2526_v61 = vadd.f32 %v1131_v39, %v1019_v55  ;;  %842 = vmatmul.f32.gmra.mxu1 %v380_v53  ;;  %955 = vmatmul.f32.gmra.mxu2 %v381_v54  ;;  %v689_v53 = vadd.f32 %v2352_v45, %v2417_v20  ;;  %v408_v20 = vld [vmem:[%s2008_s26 + $0x5b0] sm:$0xff] }
  0xf5   : > { %1068 = vmatmul.f32.gmra.mxu3 %v382_v58  ;;  %v646_v58 = vld [vmem:[%s2993_s1 + $0x420] sm:$0xff] }
  0xf6   : > { %v908_v5 = vpop.f32.mrf.mxu2  ;;  %v1134_v7 = vpop.f32.mrf.mxu0  ;;  %1577 = vmatpush.msra.mxu0 %v646_v58  ;;  %v419_v58 = vld [vmem:[%s2008_s26 + $0x608] sm:$0xff] }
  0xf7   : > { %v909_v11 = vadd.f32 %v908_v5, %v796_v0 }
  0xf8   : > { %v798_v14 = vpop.f32.mrf.mxu1  ;;  %v1021_v15 = vpop.f32.mrf.mxu3 }
  0xf9   : > { %v1022_v19 = vadd.f32 %v1021_v15, %v909_v11  ;;  %1181 = vmatmul.f32.gmra.mxu0 %v383_v9  ;;  %v799_v30 = vadd.f32 %v798_v14, %v686_v25  ;;  %v407_v11 = vld [vmem:[%s2008_s26 + $0x5a8] sm:$0xff]  ;;  %v409_v15 = vld [vmem:[%s2008_s26 + $0x5b8] sm:$0xff] }
  0xfa   : > { %v629_v25 = vld [vmem:[%s2993_s1 + $0x398] sm:$0xff] }
  0xfb   : > { %v2537_v26 = vadd.f32 %v1134_v7, %v1022_v19  ;;  %845 = vmatmul.f32.gmra.mxu1 %v389_v17  ;;  %958 = vmatmul.f32.gmra.mxu2 %v390_v60  ;;  %v692_v17 = vadd.f32 %v2352_v45, %v2437_v32  ;;  %v613_v19 = vld [vmem:[%s2993_s1 + $0x318] sm:$0xff] }
  0xfc   : > { %1352 = vmatpush.msra.mxu2 %v613_v19  ;;  %1465 = vmatpush.msra.mxu3 %v629_v25 }
  0xfd   : > { %1071 = vmatmul.f32.gmra.mxu3 %v391_v24 }
  0xfe   : > { %v911_v33 = vpop.f32.mrf.mxu2  ;;  %v1137_v8 = vpop.f32.mrf.mxu0 }
  0xff   : > { %v912_v37 = vadd.f32 %v911_v33, %v799_v30  ;;  %v410_v30 = vld [vmem:[%s2008_s26 + $0x5c0] sm:$0xff]  ;;  %v597_v33 = vld [vmem:[%s2993_s1 + $0x298] sm:$0xff] }
 0x100   : > { %v801_v39 = vpop.f32.mrf.mxu1  ;;  %v1024_v42 = vpop.f32.mrf.mxu3  ;;  %1239 = vmatpush.msra.mxu1 %v597_v33  ;;  %v435_v33 = vld [vmem:[%s2008_s26 + $0x688] sm:$0xff] }
 0x101   : > { %v1025_v44 = vadd.f32 %v1024_v42, %v912_v37  ;;  %1184 = vmatmul.f32.gmra.mxu0 %v392_v35  ;;  %v802_v55 = vadd.f32 %v801_v39, %v689_v53  ;;  %v416_v37 = vld [vmem:[%s2008_s26 + $0x5f0] sm:$0xff]  ;;  %v418_v42 = vld [vmem:[%s2008_s26 + $0x600] sm:$0xff] }
 0x103   : > { %v2554_v54 = vadd.f32 %v1137_v8, %v1025_v44  ;;  %848 = vmatmul.f32.gmra.mxu1 %v398_v48  ;;  %961 = vmatmul.f32.gmra.mxu2 %v399_v43  ;;  %v695_v48 = vadd.f32 %v2352_v45, %v2457_v46  ;;  %v426_v46 = vld [vmem:[%s2008_s26 + $0x640] sm:$0xff] }
 0x105   : > { %1074 = vmatmul.f32.gmra.mxu3 %v400_v47  ;;  %v645_v47 = vld [vmem:[%s2993_s1 + $0x418] sm:$0xff] }
 0x106   : > { %v914_v59 = vpop.f32.mrf.mxu2  ;;  %v1140_v0 = vpop.f32.mrf.mxu0  ;;  %1578 = vmatpush.msra.mxu0 %v645_v47  ;;  %v437_v47 = vld [vmem:[%s2008_s26 + $0x698] sm:$0xff] }
 0x107   : > { %v915_v5 = vadd.f32 %v914_v59, %v802_v55 }
 0x108   : > { %v804_v7 = vpop.f32.mrf.mxu1  ;;  %v1027_v9 = vpop.f32.mrf.mxu3 }
 0x109   : > { %v1028_v14 = vadd.f32 %v1027_v9, %v915_v5  ;;  %1187 = vmatmul.f32.gmra.mxu0 %v401_v2  ;;  %v805_v24 = vadd.f32 %v804_v7, %v692_v17  ;;  %v425_v5 = vld [vmem:[%s2008_s26 + $0x638] sm:$0xff]  ;;  %v427_v9 = vld [vmem:[%s2008_s26 + $0x648] sm:$0xff]  ;;  %v628_v17 = vld [vmem:[%s2993_s1 + $0x390] sm:$0xff] }
 0x10a   : > { %1466 = vmatpush.msra.mxu3 %v628_v17 }
 0x10b   : > { %v2565_v60 = vadd.f32 %v1140_v0, %v1028_v14  ;;  %851 = vmatmul.f32.gmra.mxu1 %v407_v11  ;;  %964 = vmatmul.f32.gmra.mxu2 %v408_v20  ;;  %v698_v11 = vadd.f32 %v2352_v45, %v2477_v1  ;;  %v612_v14 = vld [vmem:[%s2993_s1 + $0x310] sm:$0xff] }
 0x10c   : > { %1353 = vmatpush.msra.mxu2 %v612_v14 }
 0x10d   : > { %1077 = vmatmul.f32.gmra.mxu3 %v409_v15 }
 0x10e   : > { %v917_v28 = vpop.f32.mrf.mxu2  ;;  %v1143_v32 = vpop.f32.mrf.mxu0 }
 0x10f   : > { %v918_v31 = vadd.f32 %v917_v28, %v805_v24  ;;  %v428_v24 = vld [vmem:[%s2008_s26 + $0x650] sm:$0xff] }
 0x110   : > { %v807_v8 = vpop.f32.mrf.mxu1  ;;  %v1030_v35 = vpop.f32.mrf.mxu3  ;;  %v596_v28 = vld [vmem:[%s2993_s1 + $0x290] sm:$0xff] }
 0x111   : > { %v1031_v39 = vadd.f32 %v1030_v35, %v918_v31  ;;  %1190 = vmatmul.f32.gmra.mxu0 %v410_v30  ;;  %v808_v44 = vadd.f32 %v807_v8, %v695_v48  ;;  %v434_v31 = vld [vmem:[%s2008_s26 + $0x680] sm:$0xff]  ;;  %1240 = vmatpush.msra.mxu1 %v596_v28  ;;  %v436_v35 = vld [vmem:[%s2008_s26 + $0x690] sm:$0xff]  ;;  %v453_v28 = vld [vmem:[%s2008_s26 + $0x718] sm:$0xff] }
 0x113   : > { %v2582_v43 = vadd.f32 %v1143_v32, %v1031_v39  ;;  %854 = vmatmul.f32.gmra.mxu1 %v416_v37  ;;  %967 = vmatmul.f32.gmra.mxu2 %v417_v38  ;;  %v701_v37 = vadd.f32 %v2352_v45, %v2497_v18  ;;  %v444_v18 = vld [vmem:[%s2008_s26 + $0x6d0] sm:$0xff] }
 0x115   : > { %1080 = vmatmul.f32.gmra.mxu3 %v418_v42  ;;  %v644_v42 = vld [vmem:[%s2993_s1 + $0x410] sm:$0xff] }
 0x116   : > { %v920_v53 = vpop.f32.mrf.mxu2  ;;  %v1146_v55 = vpop.f32.mrf.mxu0  ;;  %1579 = vmatpush.msra.mxu0 %v644_v42  ;;  %v455_v42 = vld [vmem:[%s2008_s26 + $0x728] sm:$0xff] }
 0x117   : > { %v921_v59 = vadd.f32 %v920_v53, %v808_v44 }
 0x118   : > { %v810_v0 = vpop.f32.mrf.mxu1  ;;  %v1033_v2 = vpop.f32.mrf.mxu3 }
 0x119   : > { %v1034_v7 = vadd.f32 %v1033_v2, %v921_v59  ;;  %1193 = vmatmul.f32.gmra.mxu0 %v419_v58  ;;  %v811_v15 = vadd.f32 %v810_v0, %v698_v11  ;;  %v443_v59 = vld [vmem:[%s2008_s26 + $0x6c8] sm:$0xff]  ;;  %v445_v2 = vld [vmem:[%s2008_s26 + $0x6d8] sm:$0xff] }
 0x11a   : > { %v627_v11 = vld [vmem:[%s2993_s1 + $0x388] sm:$0xff] }
 0x11b   : > { %v2593_v20 = vadd.f32 %v1146_v55, %v1034_v7  ;;  %857 = vmatmul.f32.gmra.mxu1 %v425_v5  ;;  %970 = vmatmul.f32.gmra.mxu2 %v426_v46  ;;  %v704_v5 = vadd.f32 %v2352_v45, %v2341_v40  ;;  %v611_v7 = vld [vmem:[%s2993_s1 + $0x308] sm:$0xff] }
 0x11c   : > { %1354 = vmatpush.msra.mxu2 %v611_v7  ;;  %1467 = vmatpush.msra.mxu3 %v627_v11 }
 0x11d   : > { %1083 = vmatmul.f32.gmra.mxu3 %v427_v9 }
 0x11e   : > { %v923_v19 = vpop.f32.mrf.mxu2  ;;  %v1149_v1 = vpop.f32.mrf.mxu0 }
 0x11f   : > { %v924_v25 = vadd.f32 %v923_v19, %v811_v15  ;;  %v446_v15 = vld [vmem:[%s2008_s26 + $0x6e0] sm:$0xff]  ;;  %v595_v19 = vld [vmem:[%s2993_s1 + $0x288] sm:$0xff] }
 0x120   : > { %v813_v32 = vpop.f32.mrf.mxu1  ;;  %v1036_v30 = vpop.f32.mrf.mxu3  ;;  %1241 = vmatpush.msra.mxu1 %v595_v19  ;;  %v471_v19 = vld [vmem:[%s2008_s26 + $0x7a8] sm:$0xff] }
 0x121   : > { %v1037_v8 = vadd.f32 %v1036_v30, %v924_v25  ;;  %1196 = vmatmul.f32.gmra.mxu0 %v428_v24  ;;  %v814_v39 = vadd.f32 %v813_v32, %v701_v37  ;;  %v452_v25 = vld [vmem:[%s2008_s26 + $0x710] sm:$0xff]  ;;  %v454_v30 = vld [vmem:[%s2008_s26 + $0x720] sm:$0xff] }
 0x123   : > { %v2610_v38 = vadd.f32 %v1149_v1, %v1037_v8  ;;  %860 = vmatmul.f32.gmra.mxu1 %v434_v31  ;;  %973 = vmatmul.f32.gmra.mxu2 %v435_v33  ;;  %v707_v31 = vadd.f32 %v2352_v45, %v2366_v52  ;;  %v462_v52 = vld [vmem:[%s2008_s26 + $0x760] sm:$0xff] }
 0x125   : > { %1086 = vmatmul.f32.gmra.mxu3 %v436_v35  ;;  %v643_v35 = vld [vmem:[%s2993_s1 + $0x408] sm:$0xff] }
 0x126   : > { %v926_v48 = vpop.f32.mrf.mxu2  ;;  %v1152_v44 = vpop.f32.mrf.mxu0  ;;  %1580 = vmatpush.msra.mxu0 %v643_v35  ;;  %v473_v35 = vld [vmem:[%s2008_s26 + $0x7b8] sm:$0xff] }
 0x127   : > { %v927_v53 = vadd.f32 %v926_v48, %v814_v39 }
 0x128   : > { %v816_v55 = vpop.f32.mrf.mxu1  ;;  %v1039_v58 = vpop.f32.mrf.mxu3 }
 0x129   : > { %v1040_v0 = vadd.f32 %v1039_v58, %v927_v53  ;;  %1199 = vmatmul.f32.gmra.mxu0 %v437_v47  ;;  %v817_v9 = vadd.f32 %v816_v55, %v704_v5  ;;  %v461_v53 = vld [vmem:[%s2008_s26 + $0x758] sm:$0xff]  ;;  %v463_v58 = vld [vmem:[%s2008_s26 + $0x768] sm:$0xff]  ;;  %v626_v5 = vld [vmem:[%s2993_s1 + $0x380] sm:$0xff] }
 0x12a   : > { %1468 = vmatpush.msra.mxu3 %v626_v5 }
 0x12b   : > { %v2621_v46 = vadd.f32 %v1152_v44, %v1040_v0  ;;  %863 = vmatmul.f32.gmra.mxu1 %v443_v59  ;;  %976 = vmatmul.f32.gmra.mxu2 %v444_v18  ;;  %v710_v59 = vadd.f32 %v2352_v45, %v2383_v63  ;;  %v610_v0 = vld [vmem:[%s2993_s1 + $0x300] sm:$0xff] }
 0x12c   : > { %1355 = vmatpush.msra.mxu2 %v610_v0  ;;  %v482_v0 = vld [vmem:[%s2008_s26 + $0x800] sm:$0xff] }
 0x12d   : > { %1089 = vmatmul.f32.gmra.mxu3 %v445_v2 }
 0x12e   : > { %v929_v14 = vpop.f32.mrf.mxu2  ;;  %v1155_v40 = vpop.f32.mrf.mxu0 }
 0x12f   : > { %v930_v17 = vadd.f32 %v929_v14, %v817_v9  ;;  %v464_v9 = vld [vmem:[%s2008_s26 + $0x770] sm:$0xff]  ;;  %v594_v14 = vld [vmem:[%s2993_s1 + $0x280] sm:$0xff] }
 0x130   : > { %v819_v1 = vpop.f32.mrf.mxu1  ;;  %v1042_v24 = vpop.f32.mrf.mxu3  ;;  %1242 = vmatpush.msra.mxu1 %v594_v14  ;;  %v719_v14 = vadd.f32 %v2352_v45, %v2446_v36  ;;  %v499_v36 = vld [vmem:[%s2008_s26 + $0x888] sm:$0xff] }
 0x131   : > { %v1043_v32 = vadd.f32 %v1042_v24, %v930_v17  ;;  %1202 = vmatmul.f32.gmra.mxu0 %v446_v15  ;;  %v820_v8 = vadd.f32 %v819_v1, %v707_v31  ;;  %v470_v17 = vld [vmem:[%s2008_s26 + $0x7a0] sm:$0xff]  ;;  %v472_v24 = vld [vmem:[%s2008_s26 + $0x7b0] sm:$0xff] }
 0x133   : > { %v2638_v33 = vadd.f32 %v1155_v40, %v1043_v32  ;;  %866 = vmatmul.f32.gmra.mxu1 %v452_v25  ;;  %979 = vmatmul.f32.gmra.mxu2 %v453_v28  ;;  %v713_v25 = vadd.f32 %v2352_v45, %v2406_v12  ;;  %v479_v12 = vld [vmem:[%s2008_s26 + $0x7e8] sm:$0xff] }
 0x135   : > { %1092 = vmatmul.f32.gmra.mxu3 %v454_v30  ;;  %v642_v30 = vld [vmem:[%s2993_s1 + $0x400] sm:$0xff] }
 0x136   : > { %v932_v37 = vpop.f32.mrf.mxu2  ;;  %v1158_v39 = vpop.f32.mrf.mxu0  ;;  %1581 = vmatpush.msra.mxu0 %v642_v30  ;;  %v497_v30 = vld [vmem:[%s2008_s26 + $0x878] sm:$0xff] }
 0x137   : > { %v933_v48 = vadd.f32 %v932_v37, %v820_v8 }
 0x138   : > { %v822_v44 = vpop.f32.mrf.mxu1  ;;  %v1045_v47 = vpop.f32.mrf.mxu3 }
 0x139   : > { %v1046_v55 = vadd.f32 %v1045_v47, %v933_v48  ;;  %1205 = vmatmul.f32.gmra.mxu0 %v455_v42  ;;  %v823_v2 = vadd.f32 %v822_v44, %v710_v59  ;;  %v480_v48 = vld [vmem:[%s2008_s26 + $0x7f0] sm:$0xff]  ;;  %v481_v47 = vld [vmem:[%s2008_s26 + $0x7f8] sm:$0xff] }
 0x13b   : > { %v2649_v18 = vadd.f32 %v1158_v39, %v1046_v55  ;;  %869 = vmatmul.f32.gmra.mxu1 %v461_v53  ;;  %982 = vmatmul.f32.gmra.mxu2 %v462_v52  ;;  %v716_v53 = vadd.f32 %v2352_v45, %v2423_v23  ;;  %v490_v23 = vld [vmem:[%s2008_s26 + $0x840] sm:$0xff] }
 0x13d   : > { %1095 = vmatmul.f32.gmra.mxu3 %v463_v58 }
 0x13e   : > { %v935_v7 = vpop.f32.mrf.mxu2  ;;  %v1161_v63 = vpop.f32.mrf.mxu0 }
 0x13f   : > { %v936_v11 = vadd.f32 %v935_v7, %v823_v2 }
 0x140   : > { %v825_v40 = vpop.f32.mrf.mxu1  ;;  %v1048_v15 = vpop.f32.mrf.mxu3 }
 0x141   : > { %v1049_v1 = vadd.f32 %v1048_v15, %v936_v11  ;;  %1208 = vmatmul.f32.gmra.mxu0 %v464_v9  ;;  %v826_v32 = vadd.f32 %v825_v40, %v713_v25  ;;  %v489_v9 = vld [vmem:[%s2008_s26 + $0x838] sm:$0xff] }
 0x143   : > { %v2666_v28 = vadd.f32 %v1161_v63, %v1049_v1  ;;  %872 = vmatmul.f32.gmra.mxu1 %v470_v17  ;;  %985 = vmatmul.f32.gmra.mxu2 %v471_v19  ;;  %v488_v63 = vld [vmem:[%s2008_s26 + $0x830] sm:$0xff]  ;;  %v491_v1 = vld [vmem:[%s2008_s26 + $0x848] sm:$0xff] }
 0x145   : > { %1098 = vmatmul.f32.gmra.mxu3 %v472_v24 }
 0x146   : > { %v938_v31 = vpop.f32.mrf.mxu2  ;;  %v1164_v8 = vpop.f32.mrf.mxu0 }
 0x147   : > { %v939_v37 = vadd.f32 %v938_v31, %v826_v32  ;;  %v498_v31 = vld [vmem:[%s2008_s26 + $0x880] sm:$0xff] }
 0x148   : > { %v828_v39 = vpop.f32.mrf.mxu1  ;;  %v1051_v42 = vpop.f32.mrf.mxu3 }
 0x149   : > { %v1052_v44 = vadd.f32 %v1051_v42, %v939_v37  ;;  %1211 = vmatmul.f32.gmra.mxu0 %v473_v35  ;;  %v829_v55 = vadd.f32 %v828_v39, %v716_v53  ;;  %v722_v35 = vadd.f32 %v2352_v45, %v2463_v51  ;;  %v508_v51 = vld [vmem:[%s2008_s26 + $0x8d0] sm:$0xff] }
 0x14b   : > { %v2677_v52 = vadd.f32 %v1164_v8, %v1052_v44  ;;  %875 = vmatmul.f32.gmra.mxu1 %v479_v12  ;;  %988 = vmatmul.f32.gmra.mxu2 %v480_v48  ;;  %v500_v48 = vld [vmem:[%s2008_s26 + $0x890] sm:$0xff] }
 0x14d   : > { %1101 = vmatmul.f32.gmra.mxu3 %v481_v47 }
 0x14e   : > { %v941_v58 = vpop.f32.mrf.mxu2  ;;  %v1167_v59 = vpop.f32.mrf.mxu0 }
 0x14f   : > { %v942_v2 = vadd.f32 %v941_v58, %v829_v55  ;;  %v506_v55 = vld [vmem:[%s2008_s26 + $0x8c0] sm:$0xff]  ;;  %v507_v58 = vld [vmem:[%s2008_s26 + $0x8c8] sm:$0xff] }
 0x150   : > { %v831_v5 = vpop.f32.mrf.mxu1  ;;  %v1054_v7 = vpop.f32.mrf.mxu3 }
 0x151   : > { %v1055_v11 = vadd.f32 %v1054_v7, %v942_v2  ;;  %1214 = vmatmul.f32.gmra.mxu0 %v482_v0  ;;  %v832_v15 = vadd.f32 %v831_v5, %v719_v14  ;;  %v725_v0 = vadd.f32 %v2352_v45, %v2486_v6  ;;  %v233_v45 = vld [vmem:[%s2008_s26 + $0x38] sm:$0xff] }
 0x153   : > { %v2685_v40 = vadd.f32 %v1167_v59, %v1055_v11  ;;  %878 = vmatmul.f32.gmra.mxu1 %v488_v63  ;;  %991 = vmatmul.f32.gmra.mxu2 %v489_v9  ;;  %v509_v9 = vld [vmem:[%s2008_s26 + $0x8d8] sm:$0xff] }
 0x155   : > { %1104 = vmatmul.f32.gmra.mxu3 %v490_v23 }
 0x156   : > { %v944_v17 = vpop.f32.mrf.mxu2  ;;  %v1170_v19 = vpop.f32.mrf.mxu0 }
 0x157   : > { %v945_v24 = vadd.f32 %v944_v17, %v832_v15  ;;  %v231_v15 = vld [vmem:[%s2008_s26 + $0x28] sm:$0xff]  ;;  %v232_v17 = vld [vmem:[%s2008_s26 + $0x30] sm:$0xff] }
 0x158   : > { %v834_v25 = vpop.f32.mrf.mxu1  ;;  %v1057_v32 = vpop.f32.mrf.mxu3 }
 0x159   : > { %v1058_v8 = vadd.f32 %v1057_v32, %v945_v24  ;;  %1217 = vmatmul.f32.gmra.mxu0 %v491_v1  ;;  %v835_v39 = vadd.f32 %v834_v25, %v722_v35  ;;  %v234_v32 = vld [vmem:[%s2008_s26 + $0x40] sm:$0xff]  ;;  %v241_v35 = vld [vmem:[%s2008_s26 + $0x78] sm:$0xff] }
 0x15b   : > { %v2693_v37 = vadd.f32 %v1170_v19, %v1058_v8  ;;  %881 = vmatmul.f32.gmra.mxu1 %v497_v30  ;;  %994 = vmatmul.f32.gmra.mxu2 %v498_v31 }
 0x15d   : > { %1107 = vmatmul.f32.gmra.mxu3 %v499_v36  ;;  %v240_v36 = vld [vmem:[%s2008_s26 + $0x70] sm:$0xff] }
 0x15e   : > { %v947_v42 = vpop.f32.mrf.mxu2  ;;  %v1173_v12 = vpop.f32.mrf.mxu0 }
 0x15f   : > { %v948_v44 = vadd.f32 %v947_v42, %v835_v39  ;;  %v242_v42 = vld [vmem:[%s2008_s26 + $0x80] sm:$0xff] }
 0x160   : > { %v837_v47 = vpop.f32.mrf.mxu1  ;;  %v1060_v53 = vpop.f32.mrf.mxu3 }
 0x161   : > { %v1061_v59 = vadd.f32 %v1060_v53, %v948_v44  ;;  %1220 = vmatmul.f32.gmra.mxu0 %v500_v48  ;;  %v838_v5 = vadd.f32 %v837_v47, %v725_v0  ;;  %v243_v47 = vld [vmem:[%s2008_s26 + $0x88] sm:$0xff] }
 0x163   : > { %v2701_v2 = vadd.f32 %v1173_v12, %v1061_v59  ;;  %884 = vmatmul.f32.gmra.mxu1 %v506_v55  ;;  %997 = vmatmul.f32.gmra.mxu2 %v507_v58  ;;  %v249_v59 = vld [vmem:[%s2008_s26 + $0xb8] sm:$0xff] }
 0x165   : > { %1110 = vmatmul.f32.gmra.mxu3 %v508_v51  ;;  %v250_v51 = vld [vmem:[%s2008_s26 + $0xc0] sm:$0xff] }
 0x166   : > { %v950_v7 = vpop.f32.mrf.mxu2  ;;  %v1176_v63 = vpop.f32.mrf.mxu0 }
 0x167   : > { %v951_v11 = vadd.f32 %v950_v7, %v838_v5  ;;  %v251_v5 = vld [vmem:[%s2008_s26 + $0xc8] sm:$0xff] }
 0x168   : > { %v840_v23 = vpop.f32.mrf.mxu1  ;;  %v1063_v14 = vpop.f32.mrf.mxu3 }
 0x169   : > { %v1064_v19 = vadd.f32 %v1063_v14, %v951_v11  ;;  %1223 = vmatmul.f32.gmra.mxu0 %v509_v9  ;;  %v841_v1 = vadd.f32 %v840_v23, %v2361_v50  ;;  %v252_v11 = vld [vmem:[%s2008_s26 + $0xd0] sm:$0xff] }
 0x16b   : > { %v2707_v6 = vadd.f32 %v1176_v63, %v1064_v19  ;;  %1243 = vmatmul.f32.vlgmr.msra.gmra.mxu1 %v231_v15  ;;  %1356 = vmatmul.f32.vlgmr.msra.gmra.mxu2 %v232_v17  ;;  %v258_v17 = vld [vmem:[%s2008_s26 + $0x100] sm:$0xff]  ;;  %v259_v19 = vld [vmem:[%s2008_s26 + $0x108] sm:$0xff] }
 0x16d   : > { %1469 = vmatmul.f32.vlgmr.msra.gmra.mxu3 %v233_v45 }
 0x16e   : > { %v953_v24 = vpop.f32.mrf.mxu2  ;;  %v1179_v25 = vpop.f32.mrf.mxu0 }
 0x16f   : > { %v954_v30 = vadd.f32 %v953_v24, %v841_v1  ;;  %v260_v1 = vld [vmem:[%s2008_s26 + $0x110] sm:$0xff] }
 0x170   : > { %v843_v31 = vpop.f32.mrf.mxu1  ;;  %v1066_v8 = vpop.f32.mrf.mxu3 }
 0x171   : > { %v1067_v39 = vadd.f32 %v1066_v8, %v954_v30  ;;  %1582 = vmatmul.f32.vlgmr.msra.gmra.mxu0 %v234_v32  ;;  %v844_v50 = vadd.f32 %v843_v31, %v2381_v62  ;;  %v261_v30 = vld [vmem:[%s2008_s26 + $0x118] sm:$0xff] }
 0x173   : > { %v2714_v12 = vadd.f32 %v1179_v25, %v1067_v39  ;;  %1246 = vmatmul.f32.gmra.mxu1 %v240_v36  ;;  %1359 = vmatmul.f32.gmra.mxu2 %v241_v35  ;;  %v267_v35 = vld [vmem:[%s2008_s26 + $0x148] sm:$0xff]  ;;  %v268_v39 = vld [vmem:[%s2008_s26 + $0x150] sm:$0xff] }
 0x175   : > { %1472 = vmatmul.f32.gmra.mxu3 %v242_v42 }
 0x176   : > { %v956_v48 = vpop.f32.mrf.mxu2  ;;  %v1182_v44 = vpop.f32.mrf.mxu0 }
 0x177   : > { %v957_v53 = vadd.f32 %v956_v48, %v844_v50  ;;  %v269_v50 = vld [vmem:[%s2008_s26 + $0x158] sm:$0xff] }
 0x178   : > { %v846_v55 = vpop.f32.mrf.mxu1  ;;  %v1069_v58 = vpop.f32.mrf.mxu3 }
 0x179   : > { %v1070_v0 = vadd.f32 %v1069_v58, %v957_v53  ;;  %1585 = vmatmul.f32.gmra.mxu0 %v243_v47  ;;  %v847_v62 = vadd.f32 %v846_v55, %v2401_v10  ;;  %v270_v53 = vld [vmem:[%s2008_s26 + $0x160] sm:$0xff] }
 0x17b   : > { %v2721_v7 = vadd.f32 %v1182_v44, %v1070_v0  ;;  %1249 = vmatmul.f32.gmra.mxu1 %v249_v59  ;;  %1362 = vmatmul.f32.gmra.mxu2 %v250_v51  ;;  %v276_v51 = vld [vmem:[%s2008_s26 + $0x190] sm:$0xff]  ;;  %v277_v0 = vld [vmem:[%s2008_s26 + $0x198] sm:$0xff] }
 0x17d   : > { %1475 = vmatmul.f32.gmra.mxu3 %v251_v5 }
 0x17e   : > { %v959_v63 = vpop.f32.mrf.mxu2  ;;  %v1185_v9 = vpop.f32.mrf.mxu0 }
 0x17f   : > { %v960_v23 = vadd.f32 %v959_v63, %v847_v62  ;;  %v278_v62 = vld [vmem:[%s2008_s26 + $0x1a0] sm:$0xff] }
 0x180   : > { %v849_v14 = vpop.f32.mrf.mxu1  ;;  %v1072_v15 = vpop.f32.mrf.mxu3 }
 0x181   : > { %v1073_v45 = vadd.f32 %v1072_v15, %v960_v23  ;;  %1588 = vmatmul.f32.gmra.mxu0 %v252_v11  ;;  %v850_v10 = vadd.f32 %v849_v14, %v2421_v22  ;;  %v279_v23 = vld [vmem:[%s2008_s26 + $0x1a8] sm:$0xff] }
 0x183   : > { %v2728_v24 = vadd.f32 %v1185_v9, %v1073_v45  ;;  %1252 = vmatmul.f32.gmra.mxu1 %v258_v17  ;;  %1365 = vmatmul.f32.gmra.mxu2 %v259_v19  ;;  %v285_v19 = vld [vmem:[%s2008_s26 + $0x1d8] sm:$0xff]  ;;  %v286_v45 = vld [vmem:[%s2008_s26 + $0x1e0] sm:$0xff] }
 0x185   : > { %1478 = vmatmul.f32.gmra.mxu3 %v260_v1 }
 0x186   : > { %v962_v25 = vpop.f32.mrf.mxu2  ;;  %v1188_v32 = vpop.f32.mrf.mxu0 }
 0x187   : > { %v963_v31 = vadd.f32 %v962_v25, %v850_v10  ;;  %v287_v10 = vld [vmem:[%s2008_s26 + $0x1e8] sm:$0xff] }
 0x188   : > { %v852_v8 = vpop.f32.mrf.mxu1  ;;  %v1075_v36 = vpop.f32.mrf.mxu3 }
 0x189   : > { %v1076_v42 = vadd.f32 %v1075_v36, %v963_v31  ;;  %1591 = vmatmul.f32.gmra.mxu0 %v261_v30  ;;  %v853_v22 = vadd.f32 %v852_v8, %v2441_v34  ;;  %v288_v31 = vld [vmem:[%s2008_s26 + $0x1f0] sm:$0xff] }
 0x18b   : > { %v2735_v48 = vadd.f32 %v1188_v32, %v1076_v42  ;;  %1255 = vmatmul.f32.gmra.mxu1 %v267_v35  ;;  %1368 = vmatmul.f32.gmra.mxu2 %v268_v39  ;;  %v294_v39 = vld [vmem:[%s2008_s26 + $0x220] sm:$0xff]  ;;  %v295_v42 = vld [vmem:[%s2008_s26 + $0x228] sm:$0xff] }
 0x18d   : > { %1481 = vmatmul.f32.gmra.mxu3 %v269_v50 }
 0x18e   : > { %v965_v44 = vpop.f32.mrf.mxu2  ;;  %v1191_v47 = vpop.f32.mrf.mxu0 }
 0x18f   : > { %v966_v55 = vadd.f32 %v965_v44, %v853_v22  ;;  %v296_v22 = vld [vmem:[%s2008_s26 + $0x230] sm:$0xff] }
 0x190   : > { %v855_v58 = vpop.f32.mrf.mxu1  ;;  %v1078_v59 = vpop.f32.mrf.mxu3 }
 0x191   : > { %v1079_v5 = vadd.f32 %v1078_v59, %v966_v55  ;;  %1594 = vmatmul.f32.gmra.mxu0 %v270_v53  ;;  %v856_v34 = vadd.f32 %v855_v58, %v2461_v49  ;;  %v297_v55 = vld [vmem:[%s2008_s26 + $0x238] sm:$0xff] }
 0x193   : > { %v2742_v63 = vadd.f32 %v1191_v47, %v1079_v5  ;;  %1258 = vmatmul.f32.gmra.mxu1 %v276_v51  ;;  %1371 = vmatmul.f32.gmra.mxu2 %v277_v0  ;;  %v303_v0 = vld [vmem:[%s2008_s26 + $0x268] sm:$0xff]  ;;  %v304_v5 = vld [vmem:[%s2008_s26 + $0x270] sm:$0xff] }
 0x195   : > { %1484 = vmatmul.f32.gmra.mxu3 %v278_v62 }
 0x196   : > { %v968_v9 = vpop.f32.mrf.mxu2  ;;  %v1194_v11 = vpop.f32.mrf.mxu0 }
 0x197   : > { %v969_v14 = vadd.f32 %v968_v9, %v856_v34  ;;  %v305_v34 = vld [vmem:[%s2008_s26 + $0x278] sm:$0xff] }
 0x198   : > { %v858_v15 = vpop.f32.mrf.mxu1  ;;  %v1081_v17 = vpop.f32.mrf.mxu3 }
 0x199   : > { %v1082_v1 = vadd.f32 %v1081_v17, %v969_v14  ;;  %1597 = vmatmul.f32.gmra.mxu0 %v279_v23  ;;  %v859_v49 = vadd.f32 %v858_v15, %v2481_v4  ;;  %v306_v14 = vld [vmem:[%s2008_s26 + $0x280] sm:$0xff] }
 0x19b   : > { %v2749_v25 = vadd.f32 %v1194_v11, %v1082_v1  ;;  %1261 = vmatmul.f32.gmra.mxu1 %v285_v19  ;;  %1374 = vmatmul.f32.gmra.mxu2 %v286_v45  ;;  %v312_v45 = vld [vmem:[%s2008_s26 + $0x2b0] sm:$0xff]  ;;  %v313_v1 = vld [vmem:[%s2008_s26 + $0x2b8] sm:$0xff] }
 0x19d   : > { %1487 = vmatmul.f32.gmra.mxu3 %v287_v10 }
 0x19e   : > { %v971_v32 = vpop.f32.mrf.mxu2  ;;  %v1197_v30 = vpop.f32.mrf.mxu0 }
 0x19f   : > { %v972_v8 = vadd.f32 %v971_v32, %v859_v49  ;;  %v314_v49 = vld [vmem:[%s2008_s26 + $0x2c0] sm:$0xff] }
 0x1a0   : > { %v861_v36 = vpop.f32.mrf.mxu1  ;;  %v1084_v35 = vpop.f32.mrf.mxu3 }
 0x1a1   : > { %v1085_v50 = vadd.f32 %v1084_v35, %v972_v8  ;;  %1600 = vmatmul.f32.gmra.mxu0 %v288_v31  ;;  %v862_v4 = vadd.f32 %v861_v36, %v2501_v21  ;;  %v315_v8 = vld [vmem:[%s2008_s26 + $0x2c8] sm:$0xff] }
 0x1a3   : > { %v2756_v44 = vadd.f32 %v1197_v30, %v1085_v50  ;;  %1264 = vmatmul.f32.gmra.mxu1 %v294_v39  ;;  %1377 = vmatmul.f32.gmra.mxu2 %v295_v42  ;;  %v321_v42 = vld [vmem:[%s2008_s26 + $0x2f8] sm:$0xff]  ;;  %v322_v50 = vld [vmem:[%s2008_s26 + $0x300] sm:$0xff] }
 0x1a5   : > { %1490 = vmatmul.f32.gmra.mxu3 %v296_v22 }
 0x1a6   : > { %v974_v47 = vpop.f32.mrf.mxu2  ;;  %v1200_v53 = vpop.f32.mrf.mxu0 }
 0x1a7   : > { %v975_v58 = vadd.f32 %v974_v47, %v862_v4  ;;  %v323_v4 = vld [vmem:[%s2008_s26 + $0x308] sm:$0xff] }
 0x1a8   : > { %v864_v59 = vpop.f32.mrf.mxu1  ;;  %v1087_v51 = vpop.f32.mrf.mxu3 }
 0x1a9   : > { %v1088_v62 = vadd.f32 %v1087_v51, %v975_v58  ;;  %1603 = vmatmul.f32.gmra.mxu0 %v297_v55  ;;  %v865_v21 = vadd.f32 %v864_v59, %v2371_v56  ;;  %v324_v58 = vld [vmem:[%s2008_s26 + $0x310] sm:$0xff] }
 0x1ab   : > { %v2763_v9 = vadd.f32 %v1200_v53, %v1088_v62  ;;  %1267 = vmatmul.f32.gmra.mxu1 %v303_v0  ;;  %1380 = vmatmul.f32.gmra.mxu2 %v304_v5  ;;  %v330_v5 = vld [vmem:[%s2008_s26 + $0x340] sm:$0xff]  ;;  %v331_v62 = vld [vmem:[%s2008_s26 + $0x348] sm:$0xff] }
 0x1ad   : > { %1493 = vmatmul.f32.gmra.mxu3 %v305_v34 }
 0x1ae   : > { %v977_v11 = vpop.f32.mrf.mxu2  ;;  %v1203_v23 = vpop.f32.mrf.mxu0 }
 0x1af   : > { %v978_v15 = vadd.f32 %v977_v11, %v865_v21  ;;  %v332_v21 = vld [vmem:[%s2008_s26 + $0x350] sm:$0xff] }
 0x1b0   : > { %v867_v17 = vpop.f32.mrf.mxu1  ;;  %v1090_v19 = vpop.f32.mrf.mxu3 }
 0x1b1   : > { %v1091_v10 = vadd.f32 %v1090_v19, %v978_v15  ;;  %1606 = vmatmul.f32.gmra.mxu0 %v306_v14  ;;  %v868_v56 = vadd.f32 %v867_v17, %v2388_v3  ;;  %v333_v15 = vld [vmem:[%s2008_s26 + $0x358] sm:$0xff] }
 0x1b3   : > { %v2770_v32 = vadd.f32 %v1203_v23, %v1091_v10  ;;  %1270 = vmatmul.f32.gmra.mxu1 %v312_v45  ;;  %1383 = vmatmul.f32.gmra.mxu2 %v313_v1  ;;  %v339_v1 = vld [vmem:[%s2008_s26 + $0x388] sm:$0xff]  ;;  %v340_v10 = vld [vmem:[%s2008_s26 + $0x390] sm:$0xff] }
 0x1b5   : > { %1496 = vmatmul.f32.gmra.mxu3 %v314_v49 }
 0x1b6   : > { %v980_v30 = vpop.f32.mrf.mxu2  ;;  %v1206_v31 = vpop.f32.mrf.mxu0 }
 0x1b7   : > { %v981_v36 = vadd.f32 %v980_v30, %v868_v56  ;;  %v341_v56 = vld [vmem:[%s2008_s26 + $0x398] sm:$0xff] }
 0x1b8   : > { %v870_v35 = vpop.f32.mrf.mxu1  ;;  %v1093_v39 = vpop.f32.mrf.mxu3 }
 0x1b9   : > { %v1094_v22 = vadd.f32 %v1093_v39, %v981_v36  ;;  %1609 = vmatmul.f32.gmra.mxu0 %v315_v8  ;;  %v871_v3 = vadd.f32 %v870_v35, %v2411_v16  ;;  %v342_v36 = vld [vmem:[%s2008_s26 + $0x3a0] sm:$0xff] }
 0x1bb   : > { %v2777_v47 = vadd.f32 %v1206_v31, %v1094_v22  ;;  %1273 = vmatmul.f32.gmra.mxu1 %v321_v42  ;;  %1386 = vmatmul.f32.gmra.mxu2 %v322_v50  ;;  %v348_v50 = vld [vmem:[%s2008_s26 + $0x3d0] sm:$0xff]  ;;  %v349_v22 = vld [vmem:[%s2008_s26 + $0x3d8] sm:$0xff] }
 0x1bd   : > { %1499 = vmatmul.f32.gmra.mxu3 %v323_v4 }
 0x1be   : > { %v983_v53 = vpop.f32.mrf.mxu2  ;;  %v1209_v55 = vpop.f32.mrf.mxu0 }
 0x1bf   : > { %v984_v59 = vadd.f32 %v983_v53, %v871_v3  ;;  %v350_v3 = vld [vmem:[%s2008_s26 + $0x3e0] sm:$0xff] }
 0x1c0   : > { %v873_v51 = vpop.f32.mrf.mxu1  ;;  %v1096_v0 = vpop.f32.mrf.mxu3 }
 0x1c1   : > { %v1097_v34 = vadd.f32 %v1096_v0, %v984_v59  ;;  %1612 = vmatmul.f32.gmra.mxu0 %v324_v58  ;;  %v874_v16 = vadd.f32 %v873_v51, %v2428_v27  ;;  %v351_v59 = vld [vmem:[%s2008_s26 + $0x3e8] sm:$0xff] }
 0x1c3   : > { %v2784_v11 = vadd.f32 %v1209_v55, %v1097_v34  ;;  %1276 = vmatmul.f32.gmra.mxu1 %v330_v5  ;;  %1389 = vmatmul.f32.gmra.mxu2 %v331_v62  ;;  %v357_v62 = vld [vmem:[%s2008_s26 + $0x418] sm:$0xff]  ;;  %v358_v34 = vld [vmem:[%s2008_s26 + $0x420] sm:$0xff] }
 0x1c5   : > { %1502 = vmatmul.f32.gmra.mxu3 %v332_v21 }
 0x1c6   : > { %v986_v23 = vpop.f32.mrf.mxu2  ;;  %v1212_v14 = vpop.f32.mrf.mxu0 }
 0x1c7   : > { %v987_v17 = vadd.f32 %v986_v23, %v874_v16  ;;  %v359_v16 = vld [vmem:[%s2008_s26 + $0x428] sm:$0xff] }
 0x1c8   : > { %v876_v19 = vpop.f32.mrf.mxu1  ;;  %v1099_v45 = vpop.f32.mrf.mxu3 }
 0x1c9   : > { %v1100_v49 = vadd.f32 %v1099_v45, %v987_v17  ;;  %1615 = vmatmul.f32.gmra.mxu0 %v333_v15  ;;  %v877_v27 = vadd.f32 %v876_v19, %v2451_v41  ;;  %v360_v17 = vld [vmem:[%s2008_s26 + $0x430] sm:$0xff] }
 0x1cb   : > { %v2791_v30 = vadd.f32 %v1212_v14, %v1100_v49  ;;  %1279 = vmatmul.f32.gmra.mxu1 %v339_v1  ;;  %1392 = vmatmul.f32.gmra.mxu2 %v340_v10  ;;  %v366_v10 = vld [vmem:[%s2008_s26 + $0x460] sm:$0xff]  ;;  %v367_v49 = vld [vmem:[%s2008_s26 + $0x468] sm:$0xff] }
 0x1cd   : > { %1505 = vmatmul.f32.gmra.mxu3 %v341_v56 }
 0x1ce   : > { %v989_v31 = vpop.f32.mrf.mxu2  ;;  %v1215_v8 = vpop.f32.mrf.mxu0 }
 0x1cf   : > { %v990_v35 = vadd.f32 %v989_v31, %v877_v27  ;;  %v368_v27 = vld [vmem:[%s2008_s26 + $0x470] sm:$0xff] }
 0x1d0   : > { %v879_v39 = vpop.f32.mrf.mxu1  ;;  %v1102_v42 = vpop.f32.mrf.mxu3 }
 0x1d1   : > { %v1103_v4 = vadd.f32 %v1102_v42, %v990_v35  ;;  %1618 = vmatmul.f32.gmra.mxu0 %v342_v36  ;;  %v880_v41 = vadd.f32 %v879_v39, %v2468_v57  ;;  %v369_v35 = vld [vmem:[%s2008_s26 + $0x478] sm:$0xff] }
 0x1d3   : > { %v2798_v53 = vadd.f32 %v1215_v8, %v1103_v4  ;;  %1282 = vmatmul.f32.gmra.mxu1 %v348_v50  ;;  %1395 = vmatmul.f32.gmra.mxu2 %v349_v22  ;;  %v375_v22 = vld [vmem:[%s2008_s26 + $0x4a8] sm:$0xff]  ;;  %v376_v4 = vld [vmem:[%s2008_s26 + $0x4b0] sm:$0xff] }
 0x1d5   : > { %1508 = vmatmul.f32.gmra.mxu3 %v350_v3 }
 0x1d6   : > { %v992_v55 = vpop.f32.mrf.mxu2  ;;  %v1218_v58 = vpop.f32.mrf.mxu0 }
 0x1d7   : > { %v993_v51 = vadd.f32 %v992_v55, %v880_v41  ;;  %v377_v41 = vld [vmem:[%s2008_s26 + $0x4b8] sm:$0xff] }
 0x1d8   : > { %v882_v0 = vpop.f32.mrf.mxu1  ;;  %v1105_v5 = vpop.f32.mrf.mxu3 }
 0x1d9   : > { %v1106_v21 = vadd.f32 %v1105_v5, %v993_v51  ;;  %1621 = vmatmul.f32.gmra.mxu0 %v351_v59  ;;  %v883_v57 = vadd.f32 %v882_v0, %v2491_v13  ;;  %v378_v51 = vld [vmem:[%s2008_s26 + $0x4c0] sm:$0xff] }
 0x1db   : > { %v2805_v23 = vadd.f32 %v1218_v58, %v1106_v21  ;;  %1285 = vmatmul.f32.gmra.mxu1 %v357_v62  ;;  %1398 = vmatmul.f32.gmra.mxu2 %v358_v34  ;;  %v384_v34 = vld [vmem:[%s2008_s26 + $0x4f0] sm:$0xff]  ;;  %v385_v21 = vld [vmem:[%s2008_s26 + $0x4f8] sm:$0xff] }
 0x1dd   : > { %1511 = vmatmul.f32.gmra.mxu3 %v359_v16 }
 0x1de   : > { %v995_v14 = vpop.f32.mrf.mxu2  ;;  %v1221_v15 = vpop.f32.mrf.mxu0 }
 0x1df   : > { %v996_v19 = vadd.f32 %v995_v14, %v883_v57  ;;  %v1679_v57 = vld [vmem:[%s2827_s12] sm:$0xff] }
 0x1e0   : > { %v885_v45 = vpop.f32.mrf.mxu1  ;;  %v1108_v1 = vpop.f32.mrf.mxu3 }
 0x1e1   : > { %v1109_v56 = vadd.f32 %v1108_v1, %v996_v19  ;;  %1624 = vmatmul.f32.gmra.mxu0 %v360_v17  ;;  %v886_v13 = vadd.f32 %v885_v45, %v2506_v29  ;;  %v387_v1 = vld [vmem:[%s2008_s26 + $0x508] sm:$0xff] }
 0x1e3   : > { %v2812_v31 = vadd.f32 %v1221_v15, %v1109_v56  ;;  %1288 = vmatmul.f32.gmra.mxu1 %v366_v10  ;;  %1401 = vmatmul.f32.gmra.mxu2 %v367_v49 }
 0x1e5   : > { %1514 = vmatmul.f32.gmra.mxu3 %v368_v27  ;;  %v393_v27 = vld [vmem:[%s2008_s26 + $0x538] sm:$0xff] }
 0x1e6   : > { %v998_v8 = vpop.f32.mrf.mxu2  ;;  %v1224_v36 = vpop.f32.mrf.mxu0 }
 0x1e7   : > { %v999_v39 = vadd.f32 %v998_v8, %v886_v13  ;;  %v394_v13 = vld [vmem:[%s2008_s26 + $0x540] sm:$0xff] }
 0x1e8   : > { %v1111_v42 = vpop.f32.mrf.mxu3  ;;  %v1244_v50 = vpop.f32.mrf.mxu1 }
 0x1e9   : > { %v1112_v3 = vadd.f32 %v1111_v42, %v999_v39  ;;  %1627 = vmatmul.f32.gmra.mxu0 %v369_v35  ;;  %v1245_v29 = vadd.f32 %v1244_v50, %v2526_v61  ;;  %v386_v61 = vld [vmem:[%s2008_s26 + $0x500] sm:$0xff]  ;;  %v395_v35 = vld [vmem:[%s2008_s26 + $0x548] sm:$0xff] }
 0x1eb   : > { %v2819_v55 = vadd.f32 %v1224_v36, %v1112_v3  ;;  %1291 = vmatmul.f32.gmra.mxu1 %v375_v22  ;;  %1404 = vmatmul.f32.gmra.mxu2 %v376_v4  ;;  %v1680_v36 = vld [vmem:[%s2827_s12 + $0x8] sm:$0xff]  ;;  %v396_v4 = vld [vmem:[%s2008_s26 + $0x550] sm:$0xff] }
 0x1ed   : > { %1517 = vmatmul.f32.gmra.mxu3 %v377_v41 }
 0x1ee   : > { %v1357_v58 = vpop.f32.mrf.mxu2  ;;  %v1583_v59 = vpop.f32.mrf.mxu0 }
 0x1ef   : > { %v1358_v0 = vadd.f32 %v1357_v58, %v1245_v29  ;;  %v402_v58 = vld [vmem:[%s2008_s26 + $0x580] sm:$0xff] }
 0x1f0   : > { %v1247_v5 = vpop.f32.mrf.mxu1  ;;  %v1470_v62 = vpop.f32.mrf.mxu3 }
 0x1f1   : > { %v1471_v16 = vadd.f32 %v1470_v62, %v1358_v0  ;;  %1630 = vmatmul.f32.gmra.mxu0 %v378_v51  ;;  %v1248_v15 = vadd.f32 %v1247_v5, %v2537_v26  ;;  %v1681_v0 = vld [vmem:[%s2827_s12 + $0x10] sm:$0xff] }
 0x1f2   : > { %v404_v5 = vld [vmem:[%s2008_s26 + $0x590] sm:$0xff] }
 0x1f3   : > { %v1584_v14 = vadd.f32 %v1583_v59, %v1471_v16  ;;  %1294 = vmatmul.f32.gmra.mxu1 %v384_v34  ;;  %1407 = vmatmul.f32.gmra.mxu2 %v385_v21  ;;  %v403_v59 = vld [vmem:[%s2008_s26 + $0x588] sm:$0xff] }
 0x1f5   : > { %v1711_v17 = vadd.f32 %v1679_v57, %v1584_v14  ;;  %1520 = vmatmul.f32.gmra.mxu3 %v386_v61  ;;  %v405_v57 = vld [vmem:[%s2008_s26 + $0x598] sm:$0xff] }
 0x1f6   : > { %v1360_v19 = vpop.f32.mrf.mxu2  ;;  %v1586_v45 = vpop.f32.mrf.mxu0 }
 0x1f7   : > { %1743 = vst [vmem:[%s2836_s14] sm:$0xff] %v1711_v17  ;;  %v1361_v10 = vadd.f32 %v1360_v19, %v1248_v15  ;;  %v411_v17 = vld [vmem:[%s2008_s26 + $0x5c8] sm:$0xff]  ;;  %v412_v19 = vld [vmem:[%s2008_s26 + $0x5d0] sm:$0xff] }
 0x1f8   : > { %v1250_v49 = vpop.f32.mrf.mxu1  ;;  %v1473_v56 = vpop.f32.mrf.mxu3 }
 0x1f9   : > { %v1474_v8 = vadd.f32 %v1473_v56, %v1361_v10  ;;  %1633 = vmatmul.f32.gmra.mxu0 %v387_v1  ;;  %v1251_v39 = vadd.f32 %v1250_v49, %v2554_v54  ;;  %v1682_v1 = vld [vmem:[%s2827_s12 + $0x18] sm:$0xff] }
 0x1fa   : > { %v413_v10 = vld [vmem:[%s2008_s26 + $0x5d8] sm:$0xff] }
 0x1fb   : > { %v1587_v26 = vadd.f32 %v1586_v45, %v1474_v8  ;;  %1297 = vmatmul.f32.gmra.mxu1 %v393_v27  ;;  %1410 = vmatmul.f32.gmra.mxu2 %v394_v13  ;;  %v414_v8 = vld [vmem:[%s2008_s26 + $0x5e0] sm:$0xff] }
 0x1fd   : > { %v1712_v42 = vadd.f32 %v1680_v36, %v1587_v26  ;;  %1523 = vmatmul.f32.gmra.mxu3 %v395_v35 }
 0x1fe   : > { %v1363_v50 = vpop.f32.mrf.mxu2  ;;  %v1589_v22 = vpop.f32.mrf.mxu0 }
 0x1ff   : > { %1744 = vst [vmem:[%s2836_s14 + $0x8] sm:$0xff] %v1712_v42  ;;  %v1364_v3 = vadd.f32 %v1363_v50, %v1251_v39  ;;  %v420_v39 = vld [vmem:[%s2008_s26 + $0x610] sm:$0xff]  ;;  %v421_v42 = vld [vmem:[%s2008_s26 + $0x618] sm:$0xff] }
 0x200   : > { %v1253_v41 = vpop.f32.mrf.mxu1  ;;  %v1476_v29 = vpop.f32.mrf.mxu3 }
 0x201   : > { %v1477_v51 = vadd.f32 %v1476_v29, %v1364_v3  ;;  %1636 = vmatmul.f32.gmra.mxu0 %v396_v4  ;;  %v1254_v62 = vadd.f32 %v1253_v41, %v2565_v60  ;;  %v422_v4 = vld [vmem:[%s2008_s26 + $0x620] sm:$0xff] }
 0x203   : > { %v1590_v54 = vadd.f32 %v1589_v22, %v1477_v51  ;;  %1300 = vmatmul.f32.gmra.mxu1 %v402_v58  ;;  %1413 = vmatmul.f32.gmra.mxu2 %v403_v59  ;;  %v1683_v22 = vld [vmem:[%s2827_s12 + $0x20] sm:$0xff]  ;;  %v423_v59 = vld [vmem:[%s2008_s26 + $0x628] sm:$0xff] }
 0x205   : > { %v1713_v34 = vadd.f32 %v1681_v0, %v1590_v54  ;;  %1526 = vmatmul.f32.gmra.mxu3 %v404_v5  ;;  %v429_v54 = vld [vmem:[%s2008_s26 + $0x658] sm:$0xff] }
 0x206   : > { %v1366_v21 = vpop.f32.mrf.mxu2  ;;  %v1592_v16 = vpop.f32.mrf.mxu0 }
 0x207   : > { %1745 = vst [vmem:[%s2836_s14 + $0x10] sm:$0xff] %v1713_v34  ;;  %v1367_v61 = vadd.f32 %v1366_v21, %v1254_v62  ;;  %v430_v62 = vld [vmem:[%s2008_s26 + $0x660] sm:$0xff]  ;;  %v1684_v21 = vld [vmem:[%s2827_s12 + $0x28] sm:$0xff] }
 0x208   : > { %v1256_v14 = vpop.f32.mrf.mxu1  ;;  %v1479_v15 = vpop.f32.mrf.mxu3 }
 0x209   : > { %v1480_v45 = vadd.f32 %v1479_v15, %v1367_v61  ;;  %1639 = vmatmul.f32.gmra.mxu0 %v405_v57  ;;  %v1257_v49 = vadd.f32 %v1256_v14, %v2582_v43 }
 0x20b   : > { %v1593_v60 = vadd.f32 %v1592_v16, %v1480_v45  ;;  %1303 = vmatmul.f32.gmra.mxu1 %v411_v17  ;;  %1416 = vmatmul.f32.gmra.mxu2 %v412_v19  ;;  %v431_v16 = vld [vmem:[%s2008_s26 + $0x668] sm:$0xff]  ;;  %v432_v17 = vld [vmem:[%s2008_s26 + $0x670] sm:$0xff] }
 0x20d   : > { %v1714_v56 = vadd.f32 %v1682_v1, %v1593_v60  ;;  %1529 = vmatmul.f32.gmra.mxu3 %v413_v10  ;;  %v438_v10 = vld [vmem:[%s2008_s26 + $0x6a0] sm:$0xff]  ;;  %v439_v60 = vld [vmem:[%s2008_s26 + $0x6a8] sm:$0xff] }
 0x20e   : > { %v1369_v27 = vpop.f32.mrf.mxu2  ;;  %v1595_v13 = vpop.f32.mrf.mxu0 }
 0x20f   : > { %1746 = vst [vmem:[%s2836_s14 + $0x18] sm:$0xff] %v1714_v56  ;;  %v1370_v36 = vadd.f32 %v1369_v27, %v1257_v49  ;;  %v1685_v56 = vld [vmem:[%s2827_s12 + $0x30] sm:$0xff] }
 0x210   : > { %v1259_v35 = vpop.f32.mrf.mxu1  ;;  %v1482_v26 = vpop.f32.mrf.mxu3  ;;  %v440_v27 = vld [vmem:[%s2008_s26 + $0x6b0] sm:$0xff] }
 0x211   : > { %v1483_v50 = vadd.f32 %v1482_v26, %v1370_v36  ;;  %1642 = vmatmul.f32.gmra.mxu0 %v414_v8  ;;  %v1260_v3 = vadd.f32 %v1259_v35, %v2593_v20  ;;  %v441_v26 = vld [vmem:[%s2008_s26 + $0x6b8] sm:$0xff] }
 0x213   : > { %v1596_v43 = vadd.f32 %v1595_v13, %v1483_v50  ;;  %1306 = vmatmul.f32.gmra.mxu1 %v420_v39  ;;  %1419 = vmatmul.f32.gmra.mxu2 %v421_v42 }
 0x215   : > { %v1715_v41 = vadd.f32 %v1683_v22, %v1596_v43  ;;  %1532 = vmatmul.f32.gmra.mxu3 %v422_v4  ;;  %v447_v22 = vld [vmem:[%s2008_s26 + $0x6e8] sm:$0xff]  ;;  %v448_v4 = vld [vmem:[%s2008_s26 + $0x6f0] sm:$0xff] }
 0x216   : > { %v1372_v29 = vpop.f32.mrf.mxu2  ;;  %v1598_v58 = vpop.f32.mrf.mxu0 }
 0x217   : > { %1747 = vst [vmem:[%s2836_s14 + $0x20] sm:$0xff] %v1715_v41  ;;  %v1373_v51 = vadd.f32 %v1372_v29, %v1260_v3  ;;  %v1686_v3 = vld [vmem:[%s2827_s12 + $0x38] sm:$0xff] }
 0x218   : > { %v1262_v0 = vpop.f32.mrf.mxu1  ;;  %v1485_v5 = vpop.f32.mrf.mxu3  ;;  %v449_v41 = vld [vmem:[%s2008_s26 + $0x6f8] sm:$0xff] }
 0x219   : > { %v1486_v34 = vadd.f32 %v1485_v5, %v1373_v51  ;;  %1645 = vmatmul.f32.gmra.mxu0 %v423_v59  ;;  %v1263_v57 = vadd.f32 %v1262_v0, %v2610_v38  ;;  %v450_v0 = vld [vmem:[%s2008_s26 + $0x700] sm:$0xff] }
 0x21b   : > { %v1599_v20 = vadd.f32 %v1598_v58, %v1486_v34  ;;  %1309 = vmatmul.f32.gmra.mxu1 %v429_v54  ;;  %1422 = vmatmul.f32.gmra.mxu2 %v430_v62  ;;  %v456_v34 = vld [vmem:[%s2008_s26 + $0x730] sm:$0xff] }
 0x21d   : > { %v1716_v61 = vadd.f32 %v1684_v21, %v1599_v20  ;;  %1535 = vmatmul.f32.gmra.mxu3 %v431_v16  ;;  %v457_v21 = vld [vmem:[%s2008_s26 + $0x738] sm:$0xff]  ;;  %v1687_v20 = vld [vmem:[%s2827_s12 + $0x40] sm:$0xff] }
 0x21e   : > { %v1375_v14 = vpop.f32.mrf.mxu2  ;;  %v1601_v15 = vpop.f32.mrf.mxu0 }
 0x21f   : > { %1748 = vst [vmem:[%s2836_s14 + $0x28] sm:$0xff] %v1716_v61  ;;  %v1376_v19 = vadd.f32 %v1375_v14, %v1263_v57  ;;  %v458_v57 = vld [vmem:[%s2008_s26 + $0x740] sm:$0xff] }
 0x220   : > { %v1265_v45 = vpop.f32.mrf.mxu1  ;;  %v1488_v1 = vpop.f32.mrf.mxu3 }
 0x221   : > { %v1489_v49 = vadd.f32 %v1488_v1, %v1376_v19  ;;  %1648 = vmatmul.f32.gmra.mxu0 %v432_v17  ;;  %v1266_v13 = vadd.f32 %v1265_v45, %v2621_v46  ;;  %v459_v19 = vld [vmem:[%s2008_s26 + $0x748] sm:$0xff] }
 0x223   : > { %v1602_v38 = vadd.f32 %v1601_v15, %v1489_v49  ;;  %1312 = vmatmul.f32.gmra.mxu1 %v438_v10  ;;  %1425 = vmatmul.f32.gmra.mxu2 %v439_v60  ;;  %v465_v60 = vld [vmem:[%s2008_s26 + $0x778] sm:$0xff]  ;;  %v466_v49 = vld [vmem:[%s2008_s26 + $0x780] sm:$0xff] }
 0x225   : > { %v1717_v8 = vadd.f32 %v1685_v56, %v1602_v38  ;;  %1538 = vmatmul.f32.gmra.mxu3 %v440_v27  ;;  %v1688_v27 = vld [vmem:[%s2827_s12 + $0x48] sm:$0xff] }
 0x226   : > { %v1378_v36 = vpop.f32.mrf.mxu2  ;;  %v1604_v35 = vpop.f32.mrf.mxu0  ;;  %v467_v38 = vld [vmem:[%s2008_s26 + $0x788] sm:$0xff] }
 0x227   : > { %1749 = vst [vmem:[%s2836_s14 + $0x30] sm:$0xff] %v1717_v8  ;;  %v1379_v39 = vadd.f32 %v1378_v36, %v1266_v13 }
 0x228   : > { %v1268_v42 = vpop.f32.mrf.mxu1  ;;  %v1491_v50 = vpop.f32.mrf.mxu3 }
 0x229   : > { %v1492_v43 = vadd.f32 %v1491_v50, %v1379_v39  ;;  %1651 = vmatmul.f32.gmra.mxu0 %v441_v26  ;;  %v1269_v29 = vadd.f32 %v1268_v42, %v2638_v33  ;;  %v468_v26 = vld [vmem:[%s2008_s26 + $0x790] sm:$0xff] }
 0x22b   : > { %v1605_v46 = vadd.f32 %v1604_v35, %v1492_v43  ;;  %1315 = vmatmul.f32.gmra.mxu1 %v447_v22  ;;  %1428 = vmatmul.f32.gmra.mxu2 %v448_v4  ;;  %v474_v22 = vld [vmem:[%s2008_s26 + $0x7c0] sm:$0xff]  ;;  %v475_v4 = vld [vmem:[%s2008_s26 + $0x7c8] sm:$0xff] }
 0x22d   : > { %v1718_v58 = vadd.f32 %v1686_v3, %v1605_v46  ;;  %1541 = vmatmul.f32.gmra.mxu3 %v449_v41  ;;  %v1689_v3 = vld [vmem:[%s2827_s12 + $0x50] sm:$0xff] }
 0x22e   : > { %v1381_v59 = vpop.f32.mrf.mxu2  ;;  %v1607_v51 = vpop.f32.mrf.mxu0  ;;  %v476_v41 = vld [vmem:[%s2008_s26 + $0x7d0] sm:$0xff] }
 0x22f   : > { %1750 = vst [vmem:[%s2836_s14 + $0x38] sm:$0xff] %v1718_v58  ;;  %v1382_v5 = vadd.f32 %v1381_v59, %v1269_v29 }
 0x230   : > { %v1271_v54 = vpop.f32.mrf.mxu1  ;;  %v1494_v62 = vpop.f32.mrf.mxu3 }
 0x231   : > { %v1495_v16 = vadd.f32 %v1494_v62, %v1382_v5  ;;  %1654 = vmatmul.f32.gmra.mxu0 %v450_v0  ;;  %v1272_v61 = vadd.f32 %v1271_v54, %v2649_v18  ;;  %v483_v62 = vld [vmem:[%s2008_s26 + $0x808] sm:$0xff] }
 0x233   : > { %v1608_v33 = vadd.f32 %v1607_v51, %v1495_v16  ;;  %1318 = vmatmul.f32.gmra.mxu1 %v456_v34  ;;  %1431 = vmatmul.f32.gmra.mxu2 %v457_v21  ;;  %v477_v51 = vld [vmem:[%s2008_s26 + $0x7d8] sm:$0xff]  ;;  %v484_v34 = vld [vmem:[%s2008_s26 + $0x810] sm:$0xff] }
 0x234   : > { %v1690_v16 = vld [vmem:[%s2827_s12 + $0x58] sm:$0xff] }
 0x235   : > { %v1719_v14 = vadd.f32 %v1687_v20, %v1608_v33  ;;  %1544 = vmatmul.f32.gmra.mxu3 %v458_v57  ;;  %v485_v20 = vld [vmem:[%s2008_s26 + $0x818] sm:$0xff] }
 0x236   : > { %v1384_v15 = vpop.f32.mrf.mxu2  ;;  %v1610_v17 = vpop.f32.mrf.mxu0 }
 0x237   : > { %1751 = vst [vmem:[%s2836_s14 + $0x40] sm:$0xff] %v1719_v14  ;;  %v1385_v45 = vadd.f32 %v1384_v15, %v1272_v61  ;;  %v486_v15 = vld [vmem:[%s2008_s26 + $0x820] sm:$0xff] }
 0x238   : > { %v1274_v1 = vpop.f32.mrf.mxu1  ;;  %v1497_v10 = vpop.f32.mrf.mxu3 }
 0x239   : > { %v1498_v56 = vadd.f32 %v1497_v10, %v1385_v45  ;;  %1657 = vmatmul.f32.gmra.mxu0 %v459_v19  ;;  %v1275_v13 = vadd.f32 %v1274_v1, %v2666_v28  ;;  %v492_v1 = vld [vmem:[%s2008_s26 + $0x850] sm:$0xff]  ;;  %v493_v10 = vld [vmem:[%s2008_s26 + $0x858] sm:$0xff] }
 0x23b   : > { %v1611_v18 = vadd.f32 %v1610_v17, %v1498_v56  ;;  %1321 = vmatmul.f32.gmra.mxu1 %v465_v60  ;;  %1434 = vmatmul.f32.gmra.mxu2 %v466_v49  ;;  %v1691_v49 = vld [vmem:[%s2827_s12 + $0x60] sm:$0xff] }
 0x23c   : > { %v494_v56 = vld [vmem:[%s2008_s26 + $0x860] sm:$0xff] }
 0x23d   : > { %v1720_v8 = vadd.f32 %v1688_v27, %v1611_v18  ;;  %1547 = vmatmul.f32.gmra.mxu3 %v467_v38 }
 0x23e   : > { %v1387_v36 = vpop.f32.mrf.mxu2  ;;  %v1613_v35 = vpop.f32.mrf.mxu0 }
 0x23f   : > { %1752 = vst [vmem:[%s2836_s14 + $0x48] sm:$0xff] %v1720_v8  ;;  %v1388_v39 = vadd.f32 %v1387_v36, %v1275_v13  ;;  %v495_v8 = vld [vmem:[%s2008_s26 + $0x868] sm:$0xff] }
 0x240   : > { %v1277_v42 = vpop.f32.mrf.mxu1  ;;  %v1500_v50 = vpop.f32.mrf.mxu3 }
 0x241   : > { %v1501_v43 = vadd.f32 %v1500_v50, %v1388_v39  ;;  %1660 = vmatmul.f32.gmra.mxu0 %v468_v26  ;;  %v1278_v46 = vadd.f32 %v1277_v42, %v2677_v52  ;;  %v501_v39 = vld [vmem:[%s2008_s26 + $0x898] sm:$0xff]  ;;  %v502_v42 = vld [vmem:[%s2008_s26 + $0x8a0] sm:$0xff] }
 0x243   : > { %v1614_v28 = vadd.f32 %v1613_v35, %v1501_v43  ;;  %1324 = vmatmul.f32.gmra.mxu1 %v474_v22  ;;  %1437 = vmatmul.f32.gmra.mxu2 %v475_v4  ;;  %v1692_v22 = vld [vmem:[%s2827_s12 + $0x68] sm:$0xff] }
 0x244   : > { %v503_v4 = vld [vmem:[%s2008_s26 + $0x8a8] sm:$0xff] }
 0x245   : > { %v1721_v29 = vadd.f32 %v1689_v3, %v1614_v28  ;;  %1550 = vmatmul.f32.gmra.mxu3 %v476_v41 }
 0x246   : > { %v1390_v58 = vpop.f32.mrf.mxu2  ;;  %v1616_v59 = vpop.f32.mrf.mxu0 }
 0x247   : > { %1753 = vst [vmem:[%s2836_s14 + $0x50] sm:$0xff] %v1721_v29  ;;  %v1391_v0 = vadd.f32 %v1390_v58, %v1278_v46  ;;  %v504_v46 = vld [vmem:[%s2008_s26 + $0x8b0] sm:$0xff] }
 0x248   : > { %v1280_v5 = vpop.f32.mrf.mxu1  ;;  %v1503_v54 = vpop.f32.mrf.mxu3 }
 0x249   : > { %v1504_v21 = vadd.f32 %v1503_v54, %v1391_v0  ;;  %1663 = vmatmul.f32.gmra.mxu0 %v477_v51  ;;  %v1281_v57 = vadd.f32 %v1280_v5, %v2685_v40  ;;  %v510_v51 = vld [vmem:[%s2008_s26 + $0x8e0] sm:$0xff]  ;;  %v511_v0 = vld [vmem:[%s2008_s26 + $0x8e8] sm:$0xff]  ;;  %v1693_v54 = vld [vmem:[%s2827_s12 + $0x70] sm:$0xff] }
 0x24b   : > { %v1617_v52 = vadd.f32 %v1616_v59, %v1504_v21  ;;  %1327 = vmatmul.f32.gmra.mxu1 %v483_v62  ;;  %1440 = vmatmul.f32.gmra.mxu2 %v484_v34  ;;  %v512_v62 = vld [vmem:[%s2008_s26 + $0x8f0] sm:$0xff] }
 0x24d   : > { %v1722_v33 = vadd.f32 %v1690_v16, %v1617_v52  ;;  %1553 = vmatmul.f32.gmra.mxu3 %v485_v20  ;;  %v513_v52 = vld [vmem:[%s2008_s26 + $0x8f8] sm:$0xff] }
 0x24e   : > { %v1393_v61 = vpop.f32.mrf.mxu2  ;;  %v1619_v14 = vpop.f32.mrf.mxu0 }
 0x24f   : > { %1754 = vst [vmem:[%s2836_s14 + $0x58] sm:$0xff] %v1722_v33  ;;  %v1394_v17 = vadd.f32 %v1393_v61, %v1281_v57 }
 0x250   : > { %v1283_v19 = vpop.f32.mrf.mxu1  ;;  %v1506_v45 = vpop.f32.mrf.mxu3 }
 0x251   : > { %v1507_v60 = vadd.f32 %v1506_v45, %v1394_v17  ;;  %1666 = vmatmul.f32.gmra.mxu0 %v486_v15  ;;  %v1284_v27 = vadd.f32 %v1283_v19, %v2693_v37  ;;  %v1694_v15 = vld [vmem:[%s2827_s12 + $0x78] sm:$0xff] }
 0x253   : > { %v1620_v40 = vadd.f32 %v1619_v14, %v1507_v60  ;;  %1330 = vmatmul.f32.gmra.mxu1 %v492_v1  ;;  %1443 = vmatmul.f32.gmra.mxu2 %v493_v10 }
 0x255   : > { %v1723_v38 = vadd.f32 %v1691_v49, %v1620_v40  ;;  %1556 = vmatmul.f32.gmra.mxu3 %v494_v56  ;;  %v1695_v40 = vld [vmem:[%s2827_s12 + $0x80] sm:$0xff] }
 0x256   : > { %v1396_v18 = vpop.f32.mrf.mxu2  ;;  %v1622_v13 = vpop.f32.mrf.mxu0 }
 0x257   : > { %1755 = vst [vmem:[%s2836_s14 + $0x60] sm:$0xff] %v1723_v38  ;;  %v1397_v36 = vadd.f32 %v1396_v18, %v1284_v27 }
 0x258   : > { %v1286_v35 = vpop.f32.mrf.mxu1  ;;  %v1509_v26 = vpop.f32.mrf.mxu3 }
 0x259   : > { %v1510_v50 = vadd.f32 %v1509_v26, %v1397_v36  ;;  %1669 = vmatmul.f32.gmra.mxu0 %v495_v8  ;;  %v1287_v43 = vadd.f32 %v1286_v35, %v2701_v2 }
 0x25b   : > { %v1623_v37 = vadd.f32 %v1622_v13, %v1510_v50  ;;  %1333 = vmatmul.f32.gmra.mxu1 %v501_v39  ;;  %1446 = vmatmul.f32.gmra.mxu2 %v502_v42  ;;  %v1696_v39 = vld [vmem:[%s2827_s12 + $0x88] sm:$0xff] }
 0x25d   : > { %v1724_v3 = vadd.f32 %v1692_v22, %v1623_v37  ;;  %1559 = vmatmul.f32.gmra.mxu3 %v503_v4 }
 0x25e   : > { %v1399_v41 = vpop.f32.mrf.mxu2  ;;  %v1625_v28 = vpop.f32.mrf.mxu0 }
 0x25f   : > { %1756 = vst [vmem:[%s2836_s14 + $0x68] sm:$0xff] %v1724_v3  ;;  %v1400_v29 = vadd.f32 %v1399_v41, %v1287_v43 }
 0x260   : > { %v1289_v58 = vpop.f32.mrf.mxu1  ;;  %v1512_v59 = vpop.f32.mrf.mxu3 }
 0x261   : > { %v1513_v5 = vadd.f32 %v1512_v59, %v1400_v29  ;;  %1672 = vmatmul.f32.gmra.mxu0 %v504_v46  ;;  %v1290_v2 = vadd.f32 %v1289_v58, %v2707_v6 }
 0x263   : > { %v1626_v34 = vadd.f32 %v1625_v28, %v1513_v5  ;;  %1336 = vmatmul.f32.gmra.mxu1 %v510_v51  ;;  %1449 = vmatmul.f32.gmra.mxu2 %v511_v0  ;;  %v1697_v28 = vld [vmem:[%s2827_s12 + $0x90] sm:$0xff] }
 0x265   : > { %v1725_v21 = vadd.f32 %v1693_v54, %v1626_v34  ;;  %1562 = vmatmul.f32.gmra.mxu3 %v512_v62  ;;  %v1698_v62 = vld [vmem:[%s2827_s12 + $0x98] sm:$0xff] }
 0x266   : > { %v1402_v16 = vpop.f32.mrf.mxu2  ;;  %v1628_v20 = vpop.f32.mrf.mxu0 }
 0x267   : > { %1757 = vst [vmem:[%s2836_s14 + $0x70] sm:$0xff] %v1725_v21  ;;  %v1403_v57 = vadd.f32 %v1402_v16, %v1290_v2 }
 0x268   : > { %v1292_v33 = vpop.f32.mrf.mxu1  ;;  %v1515_v61 = vpop.f32.mrf.mxu3 }
 0x269   : > { %v1516_v14 = vadd.f32 %v1515_v61, %v1403_v57  ;;  %1675 = vmatmul.f32.gmra.mxu0 %v513_v52  ;;  %v1293_v19 = vadd.f32 %v1292_v33, %v2714_v12  ;;  %v1699_v61 = vld [vmem:[%s2827_s12 + $0xa0] sm:$0xff] }
 0x26b   : > { %v1629_v17 = vadd.f32 %v1628_v20, %v1516_v14 }
 0x26d   : > { %v1726_v45 = vadd.f32 %v1694_v15, %v1629_v17 }
 0x26e   : > { %v1405_v6 = vpop.f32.mrf.mxu2  ;;  %v1631_v1 = vpop.f32.mrf.mxu0 }
 0x26f   : > { %1758 = vst [vmem:[%s2836_s14 + $0x78] sm:$0xff] %v1726_v45  ;;  %v1406_v10 = vadd.f32 %v1405_v6, %v1293_v19 }
 0x270   : > { %v1295_v60 = vpop.f32.mrf.mxu1  ;;  %v1518_v49 = vpop.f32.mrf.mxu3 }
 0x271   : > { %v1519_v56 = vadd.f32 %v1518_v49, %v1406_v10  ;;  %v1296_v38 = vadd.f32 %v1295_v60, %v2721_v7  ;;  %v1700_v60 = vld [vmem:[%s2827_s12 + $0xa8] sm:$0xff] }
 0x273   : > { %v1632_v27 = vadd.f32 %v1631_v1, %v1519_v56 }
 0x275   : > { %v1727_v18 = vadd.f32 %v1695_v40, %v1632_v27 }
 0x276   : > { %v1408_v13 = vpop.f32.mrf.mxu2  ;;  %v1634_v8 = vpop.f32.mrf.mxu0 }
 0x277   : > { %1759 = vst [vmem:[%s2836_s14 + $0x80] sm:$0xff] %v1727_v18  ;;  %v1409_v12 = vadd.f32 %v1408_v13, %v1296_v38 }
 0x278   : > { %v1298_v36 = vpop.f32.mrf.mxu1  ;;  %v1521_v35 = vpop.f32.mrf.mxu3 }
 0x279   : > { %v1522_v26 = vadd.f32 %v1521_v35, %v1409_v12  ;;  %v1299_v50 = vadd.f32 %v1298_v36, %v2728_v24  ;;  %v1701_v12 = vld [vmem:[%s2827_s12 + $0xb0] sm:$0xff] }
 0x27b   : > { %v1635_v42 = vadd.f32 %v1634_v8, %v1522_v26 }
 0x27d   : > { %v1728_v22 = vadd.f32 %v1696_v39, %v1635_v42 }
 0x27e   : > { %v1411_v4 = vpop.f32.mrf.mxu2  ;;  %v1637_v37 = vpop.f32.mrf.mxu0 }
 0x27f   : > { %1760 = vst [vmem:[%s2836_s14 + $0x88] sm:$0xff] %v1728_v22  ;;  %v1412_v7 = vadd.f32 %v1411_v4, %v1299_v50 }
 0x280   : > { %v1301_v43 = vpop.f32.mrf.mxu1  ;;  %v1524_v3 = vpop.f32.mrf.mxu3 }
 0x281   : > { %v1525_v41 = vadd.f32 %v1524_v3, %v1412_v7  ;;  %v1302_v29 = vadd.f32 %v1301_v43, %v2735_v48 }
 0x283   : > { %v1638_v46 = vadd.f32 %v1637_v37, %v1525_v41  ;;  %v1702_v37 = vld [vmem:[%s2827_s12 + $0xb8] sm:$0xff] }
 0x285   : > { %v1729_v58 = vadd.f32 %v1697_v28, %v1638_v46 }
 0x286   : > { %v1414_v59 = vpop.f32.mrf.mxu2  ;;  %v1640_v51 = vpop.f32.mrf.mxu0 }
 0x287   : > { %1761 = vst [vmem:[%s2836_s14 + $0x90] sm:$0xff] %v1729_v58  ;;  %v1415_v24 = vadd.f32 %v1414_v59, %v1302_v29  ;;  %v1703_v59 = vld [vmem:[%s2827_s12 + $0xc0] sm:$0xff] }
 0x288   : > { %v1304_v0 = vpop.f32.mrf.mxu1  ;;  %v1527_v5 = vpop.f32.mrf.mxu3 }
 0x289   : > { %v1528_v54 = vadd.f32 %v1527_v5, %v1415_v24  ;;  %v1305_v2 = vadd.f32 %v1304_v0, %v2742_v63 }
 0x28b   : > { %v1641_v34 = vadd.f32 %v1640_v51, %v1528_v54 }
 0x28d   : > { %v1730_v21 = vadd.f32 %v1698_v62, %v1641_v34 }
 0x28e   : > { %v1417_v16 = vpop.f32.mrf.mxu2  ;;  %v1643_v20 = vpop.f32.mrf.mxu0 }
 0x28f   : > { %1762 = vst [vmem:[%s2836_s14 + $0x98] sm:$0xff] %v1730_v21  ;;  %v1418_v48 = vadd.f32 %v1417_v16, %v1305_v2  ;;  %v1704_v21 = vld [vmem:[%s2827_s12 + $0xc8] sm:$0xff] }
 0x290   : > { %v1307_v52 = vpop.f32.mrf.mxu1  ;;  %v1530_v57 = vpop.f32.mrf.mxu3 }
 0x291   : > { %v1531_v33 = vadd.f32 %v1530_v57, %v1418_v48  ;;  %v1308_v15 = vadd.f32 %v1307_v52, %v2749_v25 }
 0x293   : > { %v1644_v14 = vadd.f32 %v1643_v20, %v1531_v33 }
 0x295   : > { %v1731_v17 = vadd.f32 %v1699_v61, %v1644_v14 }
 0x296   : > { %v1420_v19 = vpop.f32.mrf.mxu2  ;;  %v1646_v45 = vpop.f32.mrf.mxu0 }
 0x297   : > { %1763 = vst [vmem:[%s2836_s14 + $0xa0] sm:$0xff] %v1731_v17  ;;  %v1421_v63 = vadd.f32 %v1420_v19, %v1308_v15  ;;  %v1705_v15 = vld [vmem:[%s2827_s12 + $0xd0] sm:$0xff] }
 0x298   : > { %v1310_v6 = vpop.f32.mrf.mxu1  ;;  %v1533_v1 = vpop.f32.mrf.mxu3 }
 0x299   : > { %v1534_v10 = vadd.f32 %v1533_v1, %v1421_v63  ;;  %v1311_v56 = vadd.f32 %v1310_v6, %v2756_v44 }
 0x29b   : > { %v1647_v49 = vadd.f32 %v1646_v45, %v1534_v10 }
 0x29d   : > { %v1732_v40 = vadd.f32 %v1700_v60, %v1647_v49  ;;  %v1706_v49 = vld [vmem:[%s2827_s12 + $0xd8] sm:$0xff] }
 0x29e   : > { %v1423_v27 = vpop.f32.mrf.mxu2  ;;  %v1649_v38 = vpop.f32.mrf.mxu0 }
 0x29f   : > { %1764 = vst [vmem:[%s2836_s14 + $0xa8] sm:$0xff] %v1732_v40  ;;  %v1424_v25 = vadd.f32 %v1423_v27, %v1311_v56 }
 0x2a0   : > { %v1313_v18 = vpop.f32.mrf.mxu1  ;;  %v1536_v13 = vpop.f32.mrf.mxu3 }
 0x2a1   : > { %v1537_v8 = vadd.f32 %v1536_v13, %v1424_v25  ;;  %v1314_v35 = vadd.f32 %v1313_v18, %v2763_v9 }
 0x2a3   : > { %v1650_v36 = vadd.f32 %v1649_v38, %v1537_v8 }
 0x2a5   : > { %v1733_v26 = vadd.f32 %v1701_v12, %v1650_v36  ;;  %v1707_v12 = vld [vmem:[%s2827_s12 + $0xe0] sm:$0xff] }
 0x2a6   : > { %v1426_v39 = vpop.f32.mrf.mxu2  ;;  %v1652_v42 = vpop.f32.mrf.mxu0 }
 0x2a7   : > { %1765 = vst [vmem:[%s2836_s14 + $0xb0] sm:$0xff] %v1733_v26  ;;  %v1427_v44 = vadd.f32 %v1426_v39, %v1314_v35 }
 0x2a8   : > { %v1316_v50 = vpop.f32.mrf.mxu1  ;;  %v1539_v22 = vpop.f32.mrf.mxu3 }
 0x2a9   : > { %v1540_v4 = vadd.f32 %v1539_v22, %v1427_v44  ;;  %v1317_v43 = vadd.f32 %v1316_v50, %v2770_v32 }
 0x2ab   : > { %v1653_v7 = vadd.f32 %v1652_v42, %v1540_v4  ;;  %v1708_v4 = vld [vmem:[%s2827_s12 + $0xe8] sm:$0xff] }
 0x2ad   : > { %v1734_v3 = vadd.f32 %v1702_v37, %v1653_v7 }
 0x2ae   : > { %v1429_v41 = vpop.f32.mrf.mxu2  ;;  %v1655_v28 = vpop.f32.mrf.mxu0 }
 0x2af   : > { %1766 = vst [vmem:[%s2836_s14 + $0xb8] sm:$0xff] %v1734_v3  ;;  %v1430_v9 = vadd.f32 %v1429_v41, %v1317_v43 }
 0x2b0   : > { %v1319_v46 = vpop.f32.mrf.mxu1  ;;  %v1542_v29 = vpop.f32.mrf.mxu3 }
 0x2b1   : > { %v1543_v58 = vadd.f32 %v1542_v29, %v1430_v9  ;;  %v1320_v24 = vadd.f32 %v1319_v46, %v2777_v47  ;;  %v1709_v29 = vld [vmem:[%s2827_s12 + $0xf0] sm:$0xff] }
 0x2b3   : > { %v1656_v51 = vadd.f32 %v1655_v28, %v1543_v58 }
 0x2b5   : > { %v1735_v0 = vadd.f32 %v1703_v59, %v1656_v51 }
 0x2b6   : > { %v1432_v5 = vpop.f32.mrf.mxu2  ;;  %v1658_v54 = vpop.f32.mrf.mxu0 }
 0x2b7   : > { %1767 = vst [vmem:[%s2836_s14 + $0xc0] sm:$0xff] %v1735_v0  ;;  %v1433_v32 = vadd.f32 %v1432_v5, %v1320_v24 }
 0x2b8   : > { %v1322_v62 = vpop.f32.mrf.mxu1  ;;  %v1545_v34 = vpop.f32.mrf.mxu3 }
 0x2b9   : > { %v1546_v2 = vadd.f32 %v1545_v34, %v1433_v32  ;;  %v1323_v20 = vadd.f32 %v1322_v62, %v2784_v11  ;;  %v1710_v32 = vld [vmem:[%s2827_s12 + $0xf8] sm:$0xff] }
 0x2bb   : > { %v1659_v16 = vadd.f32 %v1658_v54, %v1546_v2 }
 0x2bd   : > { %v1736_v48 = vadd.f32 %v1704_v21, %v1659_v16 }
 0x2be   : > { %v1435_v52 = vpop.f32.mrf.mxu2  ;;  %v1661_v57 = vpop.f32.mrf.mxu0 }
 0x2bf   : > { %1768 = vst [vmem:[%s2836_s14 + $0xc8] sm:$0xff] %v1736_v48  ;;  %v1436_v47 = vadd.f32 %v1435_v52, %v1323_v20 }
 0x2c0   : > { %v1325_v33 = vpop.f32.mrf.mxu1  ;;  %v1548_v61 = vpop.f32.mrf.mxu3 }
 0x2c1   : > { %v1549_v14 = vadd.f32 %v1548_v61, %v1436_v47  ;;  %v1326_v19 = vadd.f32 %v1325_v33, %v2791_v30 }
 0x2c3   : > { %v1662_v17 = vadd.f32 %v1661_v57, %v1549_v14 }
 0x2c5   : > { %v1737_v45 = vadd.f32 %v1705_v15, %v1662_v17 }
 0x2c6   : > { %v1438_v63 = vpop.f32.mrf.mxu2  ;;  %v1664_v6 = vpop.f32.mrf.mxu0 }
 0x2c7   : > { %1769 = vst [vmem:[%s2836_s14 + $0xd0] sm:$0xff] %v1737_v45  ;;  %v1439_v11 = vadd.f32 %v1438_v63, %v1326_v19 }
 0x2c8   : > { %v1328_v1 = vpop.f32.mrf.mxu1  ;;  %v1551_v10 = vpop.f32.mrf.mxu3 }
 0x2c9   : > { %v1552_v60 = vadd.f32 %v1551_v10, %v1439_v11  ;;  %v1329_v40 = vadd.f32 %v1328_v1, %v2798_v53 }
 0x2cb   : > { %v1665_v56 = vadd.f32 %v1664_v6, %v1552_v60 }
 0x2cd   : > { %v1738_v27 = vadd.f32 %v1706_v49, %v1665_v56 }
 0x2ce   : > { %v1441_v38 = vpop.f32.mrf.mxu2  ;;  %v1667_v25 = vpop.f32.mrf.mxu0 }
 0x2cf   : > { %1770 = vst [vmem:[%s2836_s14 + $0xd8] sm:$0xff] %v1738_v27  ;;  %v1442_v30 = vadd.f32 %v1441_v38, %v1329_v40 }
 0x2d0   : > { %v1331_v18 = vpop.f32.mrf.mxu1  ;;  %v1554_v13 = vpop.f32.mrf.mxu3 }
 0x2d1   : > { %v1555_v8 = vadd.f32 %v1554_v13, %v1442_v30  ;;  %v1332_v35 = vadd.f32 %v1331_v18, %v2805_v23 }
 0x2d3   : > { %v1668_v36 = vadd.f32 %v1667_v25, %v1555_v8 }
 0x2d5   : > { %v1739_v26 = vadd.f32 %v1707_v12, %v1668_v36 }
 0x2d6   : > { %v1444_v39 = vpop.f32.mrf.mxu2  ;;  %v1670_v42 = vpop.f32.mrf.mxu0 }
 0x2d7   : > { %1771 = vst [vmem:[%s2836_s14 + $0xe0] sm:$0xff] %v1739_v26  ;;  %v1445_v53 = vadd.f32 %v1444_v39, %v1332_v35 }
 0x2d8   : > { %v1334_v44 = vpop.f32.mrf.mxu1  ;;  %v1557_v50 = vpop.f32.mrf.mxu3 }
 0x2d9   : > { %v1558_v22 = vadd.f32 %v1557_v50, %v1445_v53  ;;  %v1335_v7 = vadd.f32 %v1334_v44, %v2812_v31 }
 0x2db   : > { %v1671_v37 = vadd.f32 %v1670_v42, %v1558_v22 }
 0x2dd   : > { %v1740_v43 = vadd.f32 %v1708_v4, %v1671_v37 }
 0x2de   : > { %v1447_v3 = vpop.f32.mrf.mxu2  ;;  %v1673_v41 = vpop.f32.mrf.mxu0 }
 0x2df   : > { %1772 = vst [vmem:[%s2836_s14 + $0xe8] sm:$0xff] %v1740_v43  ;;  %v1448_v23 = vadd.f32 %v1447_v3, %v1335_v7 }
 0x2e0   : > { %v1560_v28 = vpop.f32.mrf.mxu3  ;;  %v1337_v46 = vpop.f32.mrf.mxu1 }
 0x2e1   : > { %v1561_v9 = vadd.f32 %v1560_v28, %v1448_v23  ;;  %v1338_v59 = vadd.f32 %v1337_v46, %v2819_v55 }
 0x2e3   : > { %v1674_v58 = vadd.f32 %v1673_v41, %v1561_v9 }
 0x2e5   : > { %v1741_v51 = vadd.f32 %v1709_v29, %v1674_v58 }
 0x2e6   : > { %v1450_v24 = vpop.f32.mrf.mxu2  ;;  %v1676_v31 = vpop.f32.mrf.mxu0 }
 0x2e7   : > { %1773 = vst [vmem:[%s2836_s14 + $0xf0] sm:$0xff] %v1741_v51  ;;  %v1451_v0 = vadd.f32 %v1450_v24, %v1338_v59 }
 0x2e8   : > { %v1563_v5 = vpop.f32.mrf.mxu3 }
 0x2e9   : > { %v1564_v54 = vadd.f32 %v1563_v5, %v1451_v0 }
 0x2eb   : > { %v1677_v62 = vadd.f32 %v1676_v31, %v1564_v54 }
 0x2ed   : > { %v1742_v34 = vadd.f32 %v1710_v32, %v1677_v62 }
 0x2ef   : > { %1774 = vst [vmem:[%s2836_s14 + $0xf8] sm:$0xff] %v1742_v34 }
 0x2f0 PF: > { %s14_s15 = sadd.s32 1, %s1920_s15  }
 0x2f1   : > { %p11_p4 = scmp.ge.s32.totalorder %s14_s15, 10  }
 0x2f3   :  { %13 = sbr.rel (!%p11_p4) target bundleno = 1 (0x1), region = 69 }

</bundles_post_ra>
